<compile_context>
chip_gen: v5e
topology: v5e:2x2
jax: 0.10.0
libtpu: 0.0.40
codegen_flags: <defaults>
</compile_context>

<pallas_src>
import math

import jax
import jax.numpy as jnp
from jax import lax
from jax.experimental import pallas as pl
from jax.experimental.pallas import tpu as pltpu

NUM_FEATS = 17      # d_model
SLICE_LEN = 32      # seq_len
NHEAD = 1
NLAYERS = 2
CLASSES = 4
D_FF = 2048         # TransformerEncoderLayer default dim_feedforward
D_PRE = 256
LN_EPS = 1e-5
HP = 128            # q/k/v head dim padded to one 128-lane tile


def _layer_norm(x, gamma, beta, eps=LN_EPS):
    # One pass: issue sum(x) and sum(x*x) back-to-back (no serialized XLU round-trip).
    mu = jnp.mean(x, axis=-1, keepdims=True)
    ms = jnp.mean(x * x, axis=-1, keepdims=True)
    var = ms - mu * mu
    return (x - mu) * lax.rsqrt(var + eps) * gamma + beta


def fused_kernel(x_ref, wqkv_ref, bqkv_ref, wot_ref, bo_ref,
                 g1_ref, be1_ref, w1_ref, b1_ref, w2t_ref, b2_ref,
                 g2_ref, be2_ref, pw_hbm, pb_ref, cwt_ref, cb_ref,
                 out_ref, x_sc, pw_sc, dma_sem):
    """One encoder layer per grid step; classifier head fused into the last step."""
    l = pl.program_id(0)
    B, S, F = x_ref.shape
    R = B * S

    @pl.when(l == 0)
    def _():
        # Fold batch into rows once: (B,S,F) -> (B*S,F); lane dim untouched.
        x_sc[...] = x_ref[...].reshape(R, F)
        # Kick off the classifier-head weight DMA; it completes long before the
        # head consumes it (hidden under both encoder layers, not the prologue).
        pltpu.make_async_copy(pw_hbm, pw_sc, dma_sem).start()

    x = x_sc[...]
    scale = 1.0 / math.sqrt(F)          # nhead=1 -> head_dim == d_model

    # --- self-attention block: fused, 128-lane-padded QKV projection ---
    qkv = jnp.dot(x, wqkv_ref[...], preferred_element_type=jnp.float32) + bqkv_ref[...]
    # 128-aligned lane slices; pad lanes are exactly zero (see pack_params).
    q = qkv[:, 0:HP].reshape(B, S, HP)
    k = qkv[:, HP:2 * HP].reshape(B, S, HP)
    v = qkv[:, 2 * HP:3 * HP].reshape(B, S, HP)

    # scores[b,i,j] = q[b,i,:] . k[b,j,:]  (no explicit transpose)
    s = lax.dot_general(q, k, (((2,), (2,)), ((0,), (0,))),
                        preferred_element_type=jnp.float32) * scale
    s = s - jnp.max(s, axis=-1, keepdims=True)
    p = jnp.exp(s)
    p = p * pl.reciprocal(jnp.sum(p, axis=-1, keepdims=True), approx=True)

    attn = lax.dot_general(p, v, (((2,), (1,)), ((0,), (0,))),
                           preferred_element_type=jnp.float32).reshape(R, HP)
    # out-projection against the lane-dense transposed weight (F, HP): trans-b form
    attn = lax.dot_general(attn, wot_ref[...], (((1,), (1,)), ((), ())),
                           preferred_element_type=jnp.float32) + bo_ref[...]

    # dropout1 is identity in eval mode
    x = _layer_norm(x + attn, g1_ref[...], be1_ref[...])

    # --- feed-forward block (relu, 2048 hidden) ---
    h = jnp.maximum(
        jnp.dot(x, w1_ref[...], preferred_element_type=jnp.float32) + b1_ref[...], 0.0)
    # w2 stored transposed (F, D_FF): lane-dense buffer, trans-b contraction
    f = lax.dot_general(h, w2t_ref[...], (((1,), (1,)), ((), ())),
                        preferred_element_type=jnp.float32) + b2_ref[...]
    # dropout2 is identity in eval mode
    x = _layer_norm(x + f, g2_ref[...], be2_ref[...])
    x_sc[...] = x                        # carry the residual stream to the next layer

    # --- fused classifier head on the final residual stream ---
    @pl.when(l == pl.num_programs(0) - 1)
    def _():
        pltpu.make_async_copy(pw_hbm, pw_sc, dma_sem).wait()
        x3 = x.reshape(B, S, F)
        # torch.flatten folded into the weight layout:
        #   pool[b,d] = sum_{s,f} x3[b,s,f] * pre_w[s*F+f, d]
        # computed as 32 small MXU matmuls (no activation relayout).
        acc = jnp.zeros((B, D_PRE), jnp.float32)
        for si in range(S):
            acc = acc + jnp.dot(x3[:, si, :], pw_sc[si],
                                preferred_element_type=jnp.float32)
        pool = jnp.maximum(acc + pb_ref[...], 0.0)
        # dropout is identity in eval mode
        o = lax.dot_general(pool, cwt_ref[...], (((1,), (1,)), ((), ())),
                            preferred_element_type=jnp.float32) + cb_ref[...]
        m = jnp.max(o, axis=-1, keepdims=True)
        lse = m + jnp.log(jnp.sum(jnp.exp(o - m), axis=-1, keepdims=True))
        out_ref[...] = o - lse


@jax.jit
def transformer_nn_forward(x, Q):
    B, S, F = x.shape
    L = Q['wqkv'].shape[0]

    def full(arr):                       # whole array, fetched once (constant index)
        n = arr.ndim
        return pl.BlockSpec(arr.shape, lambda l: (0,) * n)

    def per_layer(arr):                  # one layer's slice per grid step
        n = arr.ndim
        return pl.BlockSpec((None,) + arr.shape[1:],
                            lambda l: (l,) + (0,) * (n - 1))

    in_specs = ([full(x)]
                + [per_layer(Q[k]) for k in
                   ('wqkv', 'bqkv', 'wo_t', 'bo', 'g1', 'be1',
                    'w1', 'b1', 'w2_t', 'b2', 'g2', 'be2')]
                + [pl.BlockSpec(memory_space=pl.ANY),        # pre_w stays in HBM (manual DMA)
                   full(Q['pre_b']), full(Q['cls_w_t']), full(Q['cls_b'])])

    return pl.pallas_call(
        fused_kernel,
        out_shape=jax.ShapeDtypeStruct((B, CLASSES), jnp.float32),
        grid=(L,),
        in_specs=in_specs,
        out_specs=pl.BlockSpec((B, CLASSES), lambda l: (0, 0)),
        scratch_shapes=[
            pltpu.VMEM((B * S, F), jnp.float32),             # residual-stream carry
            pltpu.VMEM((SLICE_LEN, NUM_FEATS, D_PRE), jnp.float32),  # pre_classifier W
            pltpu.SemaphoreType.DMA,                         # head-weight DMA completion
        ],
        compiler_params=pltpu.CompilerParams(
            dimension_semantics=("arbitrary",),              # layers are sequentially dependent
            vmem_limit_bytes=8 * 1024 * 1024),
    )(x, Q['wqkv'], Q['bqkv'], Q['wo_t'], Q['bo'], Q['g1'], Q['be1'],
      Q['w1'], Q['b1'], Q['w2_t'], Q['b2'], Q['g2'], Q['be2'],
      Q['pre_w3'], Q['pre_b'], Q['cls_w_t'], Q['cls_b'])


def init_params(key):
    F, S, L = NUM_FEATS, SLICE_LEN, NLAYERS
    ks = iter(jax.random.split(key, 32))

    def w(shape, fan_in):
        return jax.random.normal(next(ks), shape, jnp.float32) / math.sqrt(fan_in)

    P = {}
    P['wq'] = w((L, F, F), F); P['bq'] = w((L, 1, F), F)
    P['wk'] = w((L, F, F), F); P['bk'] = w((L, 1, F), F)
    P['wv'] = w((L, F, F), F); P['bv'] = w((L, 1, F), F)
    P['wo'] = w((L, F, F), F); P['bo'] = w((L, 1, F), F)
    P['g1'] = 1.0 + 0.1 * jax.random.normal(next(ks), (L, 1, F), jnp.float32)
    P['be1'] = 0.1 * jax.random.normal(next(ks), (L, 1, F), jnp.float32)
    P['w1'] = w((L, F, D_FF), F);    P['b1'] = w((L, 1, D_FF), F)
    P['w2'] = w((L, D_FF, F), D_FF); P['b2'] = w((L, 1, F), D_FF)
    P['g2'] = 1.0 + 0.1 * jax.random.normal(next(ks), (L, 1, F), jnp.float32)
    P['be2'] = 0.1 * jax.random.normal(next(ks), (L, 1, F), jnp.float32)
    P['pre_w'] = w((S * F, D_PRE), S * F); P['pre_b'] = w((1, D_PRE), S * F)
    P['cls_w'] = w((D_PRE, CLASSES), D_PRE); P['cls_b'] = w((1, CLASSES), D_PRE)
    return P


def pack_params(P):
    """Pack q/k/v into one 128-lane-padded weight, store the 'N=17' matmul weights
    transposed (lane-dense), and fold torch.flatten into the pre_classifier layout."""
    L, F, S = NLAYERS, NUM_FEATS, SLICE_LEN
    wqkv = jnp.zeros((L, F, 3 * HP), jnp.float32)
    wqkv = wqkv.at[:, :, 0:F].set(P['wq'])
    wqkv = wqkv.at[:, :, HP:HP + F].set(P['wk'])
    wqkv = wqkv.at[:, :, 2 * HP:2 * HP + F].set(P['wv'])
    bqkv = jnp.zeros((L, 1, 3 * HP), jnp.float32)
    bqkv = bqkv.at[:, :, 0:F].set(P['bq'])
    bqkv = bqkv.at[:, :, HP:HP + F].set(P['bk'])
    bqkv = bqkv.at[:, :, 2 * HP:2 * HP + F].set(P['bv'])
    # out-proj transposed & input-dim padded to HP: wo_t[l, j, i] = wo[l, i, j]
    wo_t = jnp.zeros((L, F, HP), jnp.float32).at[:, :, 0:F].set(
        jnp.transpose(P['wo'], (0, 2, 1)))
    # FF second matmul stored transposed: (L, F, D_FF) — lane-dense 2048 lanes
    w2_t = jnp.transpose(P['w2'], (0, 2, 1))
    # torch.flatten folded into the weight: (S*F, D_PRE) -> (S, F, D_PRE)
    pre_w3 = P['pre_w'].reshape(S, F, D_PRE)
    cls_w_t = P['cls_w'].T                                  # (CLASSES, D_PRE)
    return {
        'wqkv': wqkv, 'bqkv': bqkv, 'wo_t': wo_t, 'bo': P['bo'],
        'g1': P['g1'], 'be1': P['be1'],
        'w1': P['w1'], 'b1': P['b1'], 'w2_t': w2_t, 'b2': P['b2'],
        'g2': P['g2'], 'be2': P['be2'],
        'pre_w3': pre_w3, 'pre_b': P['pre_b'],
        'cls_w_t': cls_w_t, 'cls_b': P['cls_b'],
    }


def reference_forward(x, P):
    """Pure-JAX reference matching the PyTorch forward (eval mode), unpacked weights."""
    scale = 1.0 / math.sqrt(NUM_FEATS)
    h = x
    for l in range(NLAYERS):
        q = h @ P['wq'][l] + P['bq'][l]
        k = h @ P['wk'][l] + P['bk'][l]
        v = h @ P['wv'][l] + P['bv'][l]
        s = jnp.einsum('bqf,bkf->bqk', q, k) * scale
        p = jax.nn.softmax(s, axis=-1)
        a = jnp.einsum('bqk,bkf->bqf', p, v) @ P['wo'][l] + P['bo'][l]
        h = _layer_norm(h + a, P['g1'][l], P['be1'][l])
        ff = jnp.maximum(h @ P['w1'][l] + P['b1'][l], 0.0) @ P['w2'][l] + P['b2'][l]
        h = _layer_norm(h + ff, P['g2'][l], P['be2'][l])
    t = h.reshape(h.shape[0], -1)
    pool = jnp.maximum(t @ P['pre_w'] + P['pre_b'], 0.0)
    out = pool @ P['cls_w'] + P['cls_b']
    return jax.nn.log_softmax(out, axis=1)


if __name__ == "__main__":
    # TODO(synk): self.norm (LayerNorm) and pos_encoder are unused in the default
    # forward (use_pos=False); all dropout layers are eval-mode identity.
    B = 4
    key = jax.random.PRNGKey(0)
    kx, kp = jax.random.split(key)
    x = jax.random.normal(kx, (B, SLICE_LEN, NUM_FEATS), jnp.float32)
    P = init_params(kp)
    Q = pack_params(P)

    out = transformer_nn_forward(x, Q)
    out = jax.block_until_ready(out)

    ref = reference_forward(x, P)
    assert out.shape == (B, CLASSES), out.shape
    max_err = float(jnp.max(jnp.abs(out - ref)))
    if not math.isfinite(max_err) or max_err > 1e-2:
        raise AssertionError(f"Pallas output mismatch vs JAX reference: {max_err}")
    print("KERNEL_OK")
</pallas_src>

<mosaic_0001>
module attributes {stable_mosaic.version = 11 : i64} {
  func.func @fused_kernel(%arg0: i32, %arg1: memref<4x32x17xf32, #tpu.memory_space<vmem>>, %arg2: memref<1x17x384xf32, #tpu.memory_space<vmem>>, %arg3: memref<1x1x384xf32, #tpu.memory_space<vmem>>, %arg4: memref<1x17x128xf32, #tpu.memory_space<vmem>>, %arg5: memref<1x1x17xf32, #tpu.memory_space<vmem>>, %arg6: memref<1x1x17xf32, #tpu.memory_space<vmem>>, %arg7: memref<1x1x17xf32, #tpu.memory_space<vmem>>, %arg8: memref<1x17x2048xf32, #tpu.memory_space<vmem>>, %arg9: memref<1x1x2048xf32, #tpu.memory_space<vmem>>, %arg10: memref<1x17x2048xf32, #tpu.memory_space<vmem>>, %arg11: memref<1x1x17xf32, #tpu.memory_space<vmem>>, %arg12: memref<1x1x17xf32, #tpu.memory_space<vmem>>, %arg13: memref<1x1x17xf32, #tpu.memory_space<vmem>>, %arg14: memref<32x17x256xf32, #tpu.memory_space<any>>, %arg15: memref<1x256xf32, #tpu.memory_space<vmem>>, %arg16: memref<4x256xf32, #tpu.memory_space<vmem>>, %arg17: memref<1x4xf32, #tpu.memory_space<vmem>>, %arg18: memref<4x4xf32, #tpu.memory_space<vmem>>, %arg19: memref<128x17xf32, #tpu.memory_space<vmem>>, %arg20: memref<32x17x256xf32, #tpu.memory_space<vmem>>, %arg21: memref<!tpu.dma_semaphore, #tpu.memory_space<semaphore_mem>>) attributes {dimension_semantics = [#tpu.dimension_semantics<arbitrary>], iteration_bounds = array<i64: 2>, scalar_prefetch = 0 : i64, scratch_operands = 3 : i64, tpu.core_type = #tpu.core_type<tc>, window_params = [{pipeline_mode = #tpu.pipeline_mode<synchronous>, transform_indices = @transform_0, window_bounds = array<i64: 4, 32, 17>}, {transform_indices = @transform_1, window_bounds = array<i64: 1, 17, 384>}, {transform_indices = @transform_2, window_bounds = array<i64: 1, 1, 384>}, {transform_indices = @transform_3, window_bounds = array<i64: 1, 17, 128>}, {transform_indices = @transform_4, window_bounds = array<i64: 1, 1, 17>}, {transform_indices = @transform_5, window_bounds = array<i64: 1, 1, 17>}, {transform_indices = @transform_6, window_bounds = array<i64: 1, 1, 17>}, {transform_indices = @transform_7, window_bounds = array<i64: 1, 17, 2048>}, {transform_indices = @transform_8, window_bounds = array<i64: 1, 1, 2048>}, {transform_indices = @transform_9, window_bounds = array<i64: 1, 17, 2048>}, {transform_indices = @transform_10, window_bounds = array<i64: 1, 1, 17>}, {transform_indices = @transform_11, window_bounds = array<i64: 1, 1, 17>}, {transform_indices = @transform_12, window_bounds = array<i64: 1, 1, 17>}, {}, {pipeline_mode = #tpu.pipeline_mode<synchronous>, transform_indices = @transform_14, window_bounds = array<i64: 1, 256>}, {pipeline_mode = #tpu.pipeline_mode<synchronous>, transform_indices = @transform_15, window_bounds = array<i64: 4, 256>}, {pipeline_mode = #tpu.pipeline_mode<synchronous>, transform_indices = @transform_16, window_bounds = array<i64: 1, 4>}, {pipeline_mode = #tpu.pipeline_mode<synchronous>, transform_indices = @transform_17, window_bounds = array<i64: 4, 4>}]} {
    %c0_i32 = arith.constant 0 : i32
    %0 = arith.cmpi eq, %arg0, %c0_i32 : i32
    %1 = arith.extui %0 : i1 to i32
    %c0_i32_0 = arith.constant 0 : i32
    %2 = arith.cmpi ne, %1, %c0_i32_0 : i32
    scf.if %2 {
      %c0_60 = arith.constant 0 : index
      %c0_61 = arith.constant 0 : index
      %c0_62 = arith.constant 0 : index
      %113 = vector.load %arg1[%c0_60, %c0_61, %c0_62] : memref<4x32x17xf32, #tpu.memory_space<vmem>>, vector<4x32x17xf32>
      %114 = vector.shape_cast %113 : vector<4x32x17xf32> to vector<128x17xf32>
      %c0_63 = arith.constant 0 : index
      %c0_64 = arith.constant 0 : index
      %115 = vector.load %arg19[%c0_63, %c0_64] : memref<128x17xf32, #tpu.memory_space<vmem>>, vector<128x17xf32>
      tpu.vector_store %arg19[%c0_63, %c0_64], %114 {strides = array<i32>} : memref<128x17xf32, #tpu.memory_space<vmem>>, vector<128x17xf32>,
      tpu.enqueue_dma source(%arg14 : memref<32x17x256xf32, #tpu.memory_space<any>>) target(%arg20 : memref<32x17x256xf32, #tpu.memory_space<vmem>>) target_semaphore(%arg21 : memref<!tpu.dma_semaphore, #tpu.memory_space<semaphore_mem>>)
    } else {
    }
    %c0 = arith.constant 0 : index
    %c0_1 = arith.constant 0 : index
    %3 = vector.load %arg19[%c0, %c0_1] : memref<128x17xf32, #tpu.memory_space<vmem>>, vector<128x17xf32>
    %c0_2 = arith.constant 0 : index
    %c0_3 = arith.constant 0 : index
    %c0_4 = arith.constant 0 : index
    %4 = vector.load %arg2[%c0_2, %c0_3, %c0_4] : memref<1x17x384xf32, #tpu.memory_space<vmem>>, vector<1x17x384xf32>
    %5 = vector.shape_cast %4 : vector<1x17x384xf32> to vector<17x384xf32>
    %cst = arith.constant dense<0.000000e+00> : vector<128x384xf32>
    %6 = tpu.matmul %3, %5, %cst {dimension_numbers = #tpu.dot_dimension_numbers<[1], [0], [0], [1], [0, 0, 1, 1], [], []>} : vector<128x17xf32>, vector<17x384xf32>, vector<128x384xf32> -> vector<128x384xf32>
    %c0_5 = arith.constant 0 : index
    %c0_6 = arith.constant 0 : index
    %c0_7 = arith.constant 0 : index
    %7 = vector.load %arg3[%c0_5, %c0_6, %c0_7] : memref<1x1x384xf32, #tpu.memory_space<vmem>>, vector<1x1x384xf32>
    %8 = vector.shape_cast %7 : vector<1x1x384xf32> to vector<1x384xf32>
    %9 = vector.broadcast %8 : vector<1x384xf32> to vector<128x384xf32>
    %10 = arith.addf %6, %9 : vector<128x384xf32>
    %11 = vector.extract_strided_slice %10 {offsets = [0, 0], sizes = [128, 128], strides = [1, 1]} : vector<128x384xf32> to vector<128x128xf32>
    %12 = vector.shape_cast %11 : vector<128x128xf32> to vector<4x32x128xf32>
    %13 = vector.extract_strided_slice %10 {offsets = [0, 128], sizes = [128, 128], strides = [1, 1]} : vector<128x384xf32> to vector<128x128xf32>
    %14 = vector.shape_cast %13 : vector<128x128xf32> to vector<4x32x128xf32>
    %15 = vector.extract_strided_slice %10 {offsets = [0, 256], sizes = [128, 128], strides = [1, 1]} : vector<128x384xf32> to vector<128x128xf32>
    %16 = vector.shape_cast %15 : vector<128x128xf32> to vector<4x32x128xf32>
    %cst_8 = arith.constant dense<0.000000e+00> : vector<4x32x32xf32>
    %17 = tpu.matmul %12, %14, %cst_8 {dimension_numbers = #tpu.dot_dimension_numbers<[2], [2], [1], [1], [0, 0, 0, 1, 1, 1], [0], [0]>} : vector<4x32x128xf32>, vector<4x32x128xf32>, vector<4x32x32xf32> -> vector<4x32x32xf32>
    %cst_9 = arith.constant 0.242535621 : f32
    %18 = vector.broadcast %cst_9 : f32 to vector<4x32x32xf32>
    %19 = arith.mulf %17, %18 : vector<4x32x32xf32>
    %cst_10 = arith.constant dense<0xFF800000> : vector<4x32xf32>
    %20 = vector.multi_reduction <maximumf>, %19, %cst_10 [2] : vector<4x32x32xf32> to vector<4x32xf32>
    %21 = vector.shape_cast %20 : vector<4x32xf32> to vector<4x32x1xf32>
    %22 = vector.broadcast %21 : vector<4x32x1xf32> to vector<4x32x32xf32>
    %23 = arith.subf %19, %22 : vector<4x32x32xf32>
    %24 = math.exp %23 : vector<4x32x32xf32>
    %cst_11 = arith.constant dense<0.000000e+00> : vector<4x32xf32>
    %25 = vector.multi_reduction <add>, %24, %cst_11 [2] : vector<4x32x32xf32> to vector<4x32xf32>
    %26 = vector.shape_cast %25 : vector<4x32xf32> to vector<4x32x1xf32>
    %27 = tpu.reciprocal %26 {approx = true} : vector<4x32x1xf32> -> vector<4x32x1xf32>
    %28 = vector.broadcast %27 : vector<4x32x1xf32> to vector<4x32x32xf32>
    %29 = arith.mulf %24, %28 : vector<4x32x32xf32>
    %cst_12 = arith.constant dense<0.000000e+00> : vector<4x32x128xf32>
    %30 = tpu.matmul %29, %16, %cst_12 {dimension_numbers = #tpu.dot_dimension_numbers<[2], [1], [1], [2], [0, 0, 0, 1, 1, 2], [0], [0]>} : vector<4x32x32xf32>, vector<4x32x128xf32>, vector<4x32x128xf32> -> vector<4x32x128xf32>
    %31 = vector.shape_cast %30 : vector<4x32x128xf32> to vector<128x128xf32>
    %c0_13 = arith.constant 0 : index
    %c0_14 = arith.constant 0 : index
    %c0_15 = arith.constant 0 : index
    %32 = vector.load %arg4[%c0_13, %c0_14, %c0_15] : memref<1x17x128xf32, #tpu.memory_space<vmem>>, vector<1x17x128xf32>
    %33 = vector.shape_cast %32 : vector<1x17x128xf32> to vector<17x128xf32>
    %cst_16 = arith.constant dense<0.000000e+00> : vector<128x17xf32>
    %34 = tpu.matmul %31, %33, %cst_16 {dimension_numbers = #tpu.dot_dimension_numbers<[1], [1], [0], [0], [0, 0, 1, 0], [], []>} : vector<128x128xf32>, vector<17x128xf32>, vector<128x17xf32> -> vector<128x17xf32>
    %c0_17 = arith.constant 0 : index
    %c0_18 = arith.constant 0 : index
    %c0_19 = arith.constant 0 : index
    %35 = vector.load %arg5[%c0_17, %c0_18, %c0_19] : memref<1x1x17xf32, #tpu.memory_space<vmem>>, vector<1x1x17xf32>
    %36 = vector.shape_cast %35 : vector<1x1x17xf32> to vector<1x17xf32>
    %37 = vector.broadcast %36 : vector<1x17xf32> to vector<128x17xf32>
    %38 = arith.addf %34, %37 : vector<128x17xf32>
    %39 = arith.addf %3, %38 : vector<128x17xf32>
    %c0_20 = arith.constant 0 : index
    %c0_21 = arith.constant 0 : index
    %c0_22 = arith.constant 0 : index
    %40 = vector.load %arg6[%c0_20, %c0_21, %c0_22] : memref<1x1x17xf32, #tpu.memory_space<vmem>>, vector<1x1x17xf32>
    %41 = vector.shape_cast %40 : vector<1x1x17xf32> to vector<1x17xf32>
    %c0_23 = arith.constant 0 : index
    %c0_24 = arith.constant 0 : index
    %c0_25 = arith.constant 0 : index
    %42 = vector.load %arg7[%c0_23, %c0_24, %c0_25] : memref<1x1x17xf32, #tpu.memory_space<vmem>>, vector<1x1x17xf32>
    %43 = vector.shape_cast %42 : vector<1x1x17xf32> to vector<1x17xf32>
    %cst_26 = arith.constant dense<0.000000e+00> : vector<128xf32>
    %44 = vector.multi_reduction <add>, %39, %cst_26 [1] : vector<128x17xf32> to vector<128xf32>
    %45 = vector.shape_cast %44 : vector<128xf32> to vector<128x1xf32>
    %cst_27 = arith.constant 1.700000e+01 : f32
    %46 = vector.broadcast %cst_27 : f32 to vector<128x1xf32>
    %47 = arith.divf %45, %46 : vector<128x1xf32>
    %48 = arith.mulf %39, %39 : vector<128x17xf32>
    %cst_28 = arith.constant dense<0.000000e+00> : vector<128xf32>
    %49 = vector.multi_reduction <add>, %48, %cst_28 [1] : vector<128x17xf32> to vector<128xf32>
    %50 = vector.shape_cast %49 : vector<128xf32> to vector<128x1xf32>
    %cst_29 = arith.constant 1.700000e+01 : f32
    %51 = vector.broadcast %cst_29 : f32 to vector<128x1xf32>
    %52 = arith.divf %50, %51 : vector<128x1xf32>
    %53 = arith.mulf %47, %47 : vector<128x1xf32>
    %54 = arith.subf %52, %53 : vector<128x1xf32>
    %55 = vector.broadcast %47 : vector<128x1xf32> to vector<128x17xf32>
    %56 = arith.subf %39, %55 : vector<128x17xf32>
    %cst_30 = arith.constant 9.99999974E-6 : f32
    %57 = vector.broadcast %cst_30 : f32 to vector<128x1xf32>
    %58 = arith.addf %54, %57 : vector<128x1xf32>
    %59 = math.rsqrt %58 : vector<128x1xf32>
    %60 = vector.broadcast %59 : vector<128x1xf32> to vector<128x17xf32>
    %61 = arith.mulf %56, %60 : vector<128x17xf32>
    %62 = vector.broadcast %41 : vector<1x17xf32> to vector<128x17xf32>
    %63 = arith.mulf %61, %62 : vector<128x17xf32>
    %64 = vector.broadcast %43 : vector<1x17xf32> to vector<128x17xf32>
    %65 = arith.addf %63, %64 : vector<128x17xf32>
    %c0_31 = arith.constant 0 : index
    %c0_32 = arith.constant 0 : index
    %c0_33 = arith.constant 0 : index
    %66 = vector.load %arg8[%c0_31, %c0_32, %c0_33] : memref<1x17x2048xf32, #tpu.memory_space<vmem>>, vector<1x17x2048xf32>
    %67 = vector.shape_cast %66 : vector<1x17x2048xf32> to vector<17x2048xf32>
    %cst_34 = arith.constant dense<0.000000e+00> : vector<128x2048xf32>
    %68 = tpu.matmul %65, %67, %cst_34 {dimension_numbers = #tpu.dot_dimension_numbers<[1], [0], [0], [1], [0, 0, 1, 1], [], []>} : vector<128x17xf32>, vector<17x2048xf32>, vector<128x2048xf32> -> vector<128x2048xf32>
    %c0_35 = arith.constant 0 : index
    %c0_36 = arith.constant 0 : index
    %c0_37 = arith.constant 0 : index
    %69 = vector.load %arg9[%c0_35, %c0_36, %c0_37] : memref<1x1x2048xf32, #tpu.memory_space<vmem>>, vector<1x1x2048xf32>
    %70 = vector.shape_cast %69 : vector<1x1x2048xf32> to vector<1x2048xf32>
    %71 = vector.broadcast %70 : vector<1x2048xf32> to vector<128x2048xf32>
    %72 = arith.addf %68, %71 : vector<128x2048xf32>
    %cst_38 = arith.constant 0.000000e+00 : f32
    %73 = vector.broadcast %cst_38 : f32 to vector<128x2048xf32>
    %74 = arith.maximumf %72, %73 : vector<128x2048xf32>
    %c0_39 = arith.constant 0 : index
    %c0_40 = arith.constant 0 : index
    %c0_41 = arith.constant 0 : index
    %75 = vector.load %arg10[%c0_39, %c0_40, %c0_41] : memref<1x17x2048xf32, #tpu.memory_space<vmem>>, vector<1x17x2048xf32>
    %76 = vector.shape_cast %75 : vector<1x17x2048xf32> to vector<17x2048xf32>
    %cst_42 = arith.constant dense<0.000000e+00> : vector<128x17xf32>
    %77 = tpu.matmul %74, %76, %cst_42 {dimension_numbers = #tpu.dot_dimension_numbers<[1], [1], [0], [0], [0, 0, 1, 0], [], []>} : vector<128x2048xf32>, vector<17x2048xf32>, vector<128x17xf32> -> vector<128x17xf32>
    %c0_43 = arith.constant 0 : index
    %c0_44 = arith.constant 0 : index
    %c0_45 = arith.constant 0 : index
    %78 = vector.load %arg11[%c0_43, %c0_44, %c0_45] : memref<1x1x17xf32, #tpu.memory_space<vmem>>, vector<1x1x17xf32>
    %79 = vector.shape_cast %78 : vector<1x1x17xf32> to vector<1x17xf32>
    %80 = vector.broadcast %79 : vector<1x17xf32> to vector<128x17xf32>
    %81 = arith.addf %77, %80 : vector<128x17xf32>
    %82 = arith.addf %65, %81 : vector<128x17xf32>
    %c0_46 = arith.constant 0 : index
    %c0_47 = arith.constant 0 : index
    %c0_48 = arith.constant 0 : index
    %83 = vector.load %arg12[%c0_46, %c0_47, %c0_48] : memref<1x1x17xf32, #tpu.memory_space<vmem>>, vector<1x1x17xf32>
    %84 = vector.shape_cast %83 : vector<1x1x17xf32> to vector<1x17xf32>
    %c0_49 = arith.constant 0 : index
    %c0_50 = arith.constant 0 : index
    %c0_51 = arith.constant 0 : index
    %85 = vector.load %arg13[%c0_49, %c0_50, %c0_51] : memref<1x1x17xf32, #tpu.memory_space<vmem>>, vector<1x1x17xf32>
    %86 = vector.shape_cast %85 : vector<1x1x17xf32> to vector<1x17xf32>
    %cst_52 = arith.constant dense<0.000000e+00> : vector<128xf32>
    %87 = vector.multi_reduction <add>, %82, %cst_52 [1] : vector<128x17xf32> to vector<128xf32>
    %88 = vector.shape_cast %87 : vector<128xf32> to vector<128x1xf32>
    %cst_53 = arith.constant 1.700000e+01 : f32
    %89 = vector.broadcast %cst_53 : f32 to vector<128x1xf32>
    %90 = arith.divf %88, %89 : vector<128x1xf32>
    %91 = arith.mulf %82, %82 : vector<128x17xf32>
    %cst_54 = arith.constant dense<0.000000e+00> : vector<128xf32>
    %92 = vector.multi_reduction <add>, %91, %cst_54 [1] : vector<128x17xf32> to vector<128xf32>
    %93 = vector.shape_cast %92 : vector<128xf32> to vector<128x1xf32>
    %cst_55 = arith.constant 1.700000e+01 : f32
    %94 = vector.broadcast %cst_55 : f32 to vector<128x1xf32>
    %95 = arith.divf %93, %94 : vector<128x1xf32>
    %96 = arith.mulf %90, %90 : vector<128x1xf32>
    %97 = arith.subf %95, %96 : vector<128x1xf32>
    %98 = vector.broadcast %90 : vector<128x1xf32> to vector<128x17xf32>
    %99 = arith.subf %82, %98 : vector<128x17xf32>
    %cst_56 = arith.constant 9.99999974E-6 : f32
    %100 = vector.broadcast %cst_56 : f32 to vector<128x1xf32>
    %101 = arith.addf %97, %100 : vector<128x1xf32>
    %102 = math.rsqrt %101 : vector<128x1xf32>
    %103 = vector.broadcast %102 : vector<128x1xf32> to vector<128x17xf32>
    %104 = arith.mulf %99, %103 : vector<128x17xf32>
    %105 = vector.broadcast %84 : vector<1x17xf32> to vector<128x17xf32>
    %106 = arith.mulf %104, %105 : vector<128x17xf32>
    %107 = vector.broadcast %86 : vector<1x17xf32> to vector<128x17xf32>
    %108 = arith.addf %106, %107 : vector<128x17xf32>
    %c0_57 = arith.constant 0 : index
    %c0_58 = arith.constant 0 : index
    %109 = vector.load %arg19[%c0_57, %c0_58] : memref<128x17xf32, #tpu.memory_space<vmem>>, vector<128x17xf32>
    tpu.vector_store %arg19[%c0_57, %c0_58], %108 {strides = array<i32>} : memref<128x17xf32, #tpu.memory_space<vmem>>, vector<128x17xf32>,
    %c1_i32 = arith.constant 1 : i32
    %110 = arith.cmpi eq, %arg0, %c1_i32 : i32
    %111 = arith.extui %110 : i1 to i32
    %c0_i32_59 = arith.constant 0 : i32
    %112 = arith.cmpi ne, %111, %c0_i32_59 : i32
    scf.if %112 {
      tpu.wait_dma2 semaphore(%arg21 : memref<!tpu.dma_semaphore, #tpu.memory_space<semaphore_mem>>) src(%arg14 : memref<32x17x256xf32, #tpu.memory_space<any>>) dst(%arg20 : memref<32x17x256xf32, #tpu.memory_space<vmem>>)
      %113 = vector.shape_cast %108 : vector<128x17xf32> to vector<4x32x17xf32>
      %cst_60 = arith.constant 0.000000e+00 : f32
      %114 = vector.broadcast %cst_60 : f32 to vector<4x256xf32>
      %115 = vector.extract_strided_slice %113 {offsets = [0, 0, 0], sizes = [4, 1, 17], strides = [1, 1, 1]} : vector<4x32x17xf32> to vector<4x1x17xf32>
      %116 = vector.shape_cast %115 : vector<4x1x17xf32> to vector<4x17xf32>
      %c0_61 = arith.constant 0 : index
      %c0_62 = arith.constant 0 : index
      %c0_63 = arith.constant 0 : index
      %117 = vector.load %arg20[%c0_61, %c0_62, %c0_63] : memref<32x17x256xf32, #tpu.memory_space<vmem>>, vector<1x17x256xf32>
      %118 = vector.shape_cast %117 : vector<1x17x256xf32> to vector<17x256xf32>
      %cst_64 = arith.constant dense<0.000000e+00> : vector<4x256xf32>
      %119 = tpu.matmul %116, %118, %cst_64 {dimension_numbers = #tpu.dot_dimension_numbers<[1], [0], [0], [1], [0, 0, 1, 1], [], []>} : vector<4x17xf32>, vector<17x256xf32>, vector<4x256xf32> -> vector<4x256xf32>
      %120 = arith.addf %114, %119 : vector<4x256xf32>
      %121 = vector.extract_strided_slice %113 {offsets = [0, 1, 0], sizes = [4, 1, 17], strides = [1, 1, 1]} : vector<4x32x17xf32> to vector<4x1x17xf32>
      %122 = vector.shape_cast %121 : vector<4x1x17xf32> to vector<4x17xf32>
      %c1 = arith.constant 1 : index
      %c0_65 = arith.constant 0 : index
      %c0_66 = arith.constant 0 : index
      %123 = vector.load %arg20[%c1, %c0_65, %c0_66] : memref<32x17x256xf32, #tpu.memory_space<vmem>>, vector<1x17x256xf32>
      %124 = vector.shape_cast %123 : vector<1x17x256xf32> to vector<17x256xf32>
      %cst_67 = arith.constant dense<0.000000e+00> : vector<4x256xf32>
      %125 = tpu.matmul %122, %124, %cst_67 {dimension_numbers = #tpu.dot_dimension_numbers<[1], [0], [0], [1], [0, 0, 1, 1], [], []>} : vector<4x17xf32>, vector<17x256xf32>, vector<4x256xf32> -> vector<4x256xf32>
      %126 = arith.addf %120, %125 : vector<4x256xf32>
      %127 = vector.extract_strided_slice %113 {offsets = [0, 2, 0], sizes = [4, 1, 17], strides = [1, 1, 1]} : vector<4x32x17xf32> to vector<4x1x17xf32>
      %128 = vector.shape_cast %127 : vector<4x1x17xf32> to vector<4x17xf32>
      %c2 = arith.constant 2 : index
      %c0_68 = arith.constant 0 : index
      %c0_69 = arith.constant 0 : index
      %129 = vector.load %arg20[%c2, %c0_68, %c0_69] : memref<32x17x256xf32, #tpu.memory_space<vmem>>, vector<1x17x256xf32>
      %130 = vector.shape_cast %129 : vector<1x17x256xf32> to vector<17x256xf32>
      %cst_70 = arith.constant dense<0.000000e+00> : vector<4x256xf32>
      %131 = tpu.matmul %128, %130, %cst_70 {dimension_numbers = #tpu.dot_dimension_numbers<[1], [0], [0], [1], [0, 0, 1, 1], [], []>} : vector<4x17xf32>, vector<17x256xf32>, vector<4x256xf32> -> vector<4x256xf32>
      %132 = arith.addf %126, %131 : vector<4x256xf32>
      %133 = vector.extract_strided_slice %113 {offsets = [0, 3, 0], sizes = [4, 1, 17], strides = [1, 1, 1]} : vector<4x32x17xf32> to vector<4x1x17xf32>
      %134 = vector.shape_cast %133 : vector<4x1x17xf32> to vector<4x17xf32>
      %c3 = arith.constant 3 : index
      %c0_71 = arith.constant 0 : index
      %c0_72 = arith.constant 0 : index
      %135 = vector.load %arg20[%c3, %c0_71, %c0_72] : memref<32x17x256xf32, #tpu.memory_space<vmem>>, vector<1x17x256xf32>
      %136 = vector.shape_cast %135 : vector<1x17x256xf32> to vector<17x256xf32>
      %cst_73 = arith.constant dense<0.000000e+00> : vector<4x256xf32>
      %137 = tpu.matmul %134, %136, %cst_73 {dimension_numbers = #tpu.dot_dimension_numbers<[1], [0], [0], [1], [0, 0, 1, 1], [], []>} : vector<4x17xf32>, vector<17x256xf32>, vector<4x256xf32> -> vector<4x256xf32>
      %138 = arith.addf %132, %137 : vector<4x256xf32>
      %139 = vector.extract_strided_slice %113 {offsets = [0, 4, 0], sizes = [4, 1, 17], strides = [1, 1, 1]} : vector<4x32x17xf32> to vector<4x1x17xf32>
      %140 = vector.shape_cast %139 : vector<4x1x17xf32> to vector<4x17xf32>
      %c4 = arith.constant 4 : index
      %c0_74 = arith.constant 0 : index
      %c0_75 = arith.constant 0 : index
      %141 = vector.load %arg20[%c4, %c0_74, %c0_75] : memref<32x17x256xf32, #tpu.memory_space<vmem>>, vector<1x17x256xf32>
      %142 = vector.shape_cast %141 : vector<1x17x256xf32> to vector<17x256xf32>
      %cst_76 = arith.constant dense<0.000000e+00> : vector<4x256xf32>
      %143 = tpu.matmul %140, %142, %cst_76 {dimension_numbers = #tpu.dot_dimension_numbers<[1], [0], [0], [1], [0, 0, 1, 1], [], []>} : vector<4x17xf32>, vector<17x256xf32>, vector<4x256xf32> -> vector<4x256xf32>
      %144 = arith.addf %138, %143 : vector<4x256xf32>
      %145 = vector.extract_strided_slice %113 {offsets = [0, 5, 0], sizes = [4, 1, 17], strides = [1, 1, 1]} : vector<4x32x17xf32> to vector<4x1x17xf32>
      %146 = vector.shape_cast %145 : vector<4x1x17xf32> to vector<4x17xf32>
      %c5 = arith.constant 5 : index
      %c0_77 = arith.constant 0 : index
      %c0_78 = arith.constant 0 : index
      %147 = vector.load %arg20[%c5, %c0_77, %c0_78] : memref<32x17x256xf32, #tpu.memory_space<vmem>>, vector<1x17x256xf32>
      %148 = vector.shape_cast %147 : vector<1x17x256xf32> to vector<17x256xf32>
      %cst_79 = arith.constant dense<0.000000e+00> : vector<4x256xf32>
      %149 = tpu.matmul %146, %148, %cst_79 {dimension_numbers = #tpu.dot_dimension_numbers<[1], [0], [0], [1], [0, 0, 1, 1], [], []>} : vector<4x17xf32>, vector<17x256xf32>, vector<4x256xf32> -> vector<4x256xf32>
      %150 = arith.addf %144, %149 : vector<4x256xf32>
      %151 = vector.extract_strided_slice %113 {offsets = [0, 6, 0], sizes = [4, 1, 17], strides = [1, 1, 1]} : vector<4x32x17xf32> to vector<4x1x17xf32>
      %152 = vector.shape_cast %151 : vector<4x1x17xf32> to vector<4x17xf32>
      %c6 = arith.constant 6 : index
      %c0_80 = arith.constant 0 : index
      %c0_81 = arith.constant 0 : index
      %153 = vector.load %arg20[%c6, %c0_80, %c0_81] : memref<32x17x256xf32, #tpu.memory_space<vmem>>, vector<1x17x256xf32>
      %154 = vector.shape_cast %153 : vector<1x17x256xf32> to vector<17x256xf32>
      %cst_82 = arith.constant dense<0.000000e+00> : vector<4x256xf32>
      %155 = tpu.matmul %152, %154, %cst_82 {dimension_numbers = #tpu.dot_dimension_numbers<[1], [0], [0], [1], [0, 0, 1, 1], [], []>} : vector<4x17xf32>, vector<17x256xf32>, vector<4x256xf32> -> vector<4x256xf32>
      %156 = arith.addf %150, %155 : vector<4x256xf32>
      %157 = vector.extract_strided_slice %113 {offsets = [0, 7, 0], sizes = [4, 1, 17], strides = [1, 1, 1]} : vector<4x32x17xf32> to vector<4x1x17xf32>
      %158 = vector.shape_cast %157 : vector<4x1x17xf32> to vector<4x17xf32>
      %c7 = arith.constant 7 : index
      %c0_83 = arith.constant 0 : index
      %c0_84 = arith.constant 0 : index
      %159 = vector.load %arg20[%c7, %c0_83, %c0_84] : memref<32x17x256xf32, #tpu.memory_space<vmem>>, vector<1x17x256xf32>
      %160 = vector.shape_cast %159 : vector<1x17x256xf32> to vector<17x256xf32>
      %cst_85 = arith.constant dense<0.000000e+00> : vector<4x256xf32>
      %161 = tpu.matmul %158, %160, %cst_85 {dimension_numbers = #tpu.dot_dimension_numbers<[1], [0], [0], [1], [0, 0, 1, 1], [], []>} : vector<4x17xf32>, vector<17x256xf32>, vector<4x256xf32> -> vector<4x256xf32>
      %162 = arith.addf %156, %161 : vector<4x256xf32>
      %163 = vector.extract_strided_slice %113 {offsets = [0, 8, 0], sizes = [4, 1, 17], strides = [1, 1, 1]} : vector<4x32x17xf32> to vector<4x1x17xf32>
      %164 = vector.shape_cast %163 : vector<4x1x17xf32> to vector<4x17xf32>
      %c8 = arith.constant 8 : index
      %c0_86 = arith.constant 0 : index
      %c0_87 = arith.constant 0 : index
      %165 = vector.load %arg20[%c8, %c0_86, %c0_87] : memref<32x17x256xf32, #tpu.memory_space<vmem>>, vector<1x17x256xf32>
      %166 = vector.shape_cast %165 : vector<1x17x256xf32> to vector<17x256xf32>
      %cst_88 = arith.constant dense<0.000000e+00> : vector<4x256xf32>
      %167 = tpu.matmul %164, %166, %cst_88 {dimension_numbers = #tpu.dot_dimension_numbers<[1], [0], [0], [1], [0, 0, 1, 1], [], []>} : vector<4x17xf32>, vector<17x256xf32>, vector<4x256xf32> -> vector<4x256xf32>
      %168 = arith.addf %162, %167 : vector<4x256xf32>
      %169 = vector.extract_strided_slice %113 {offsets = [0, 9, 0], sizes = [4, 1, 17], strides = [1, 1, 1]} : vector<4x32x17xf32> to vector<4x1x17xf32>
      %170 = vector.shape_cast %169 : vector<4x1x17xf32> to vector<4x17xf32>
      %c9 = arith.constant 9 : index
      %c0_89 = arith.constant 0 : index
      %c0_90 = arith.constant 0 : index
      %171 = vector.load %arg20[%c9, %c0_89, %c0_90] : memref<32x17x256xf32, #tpu.memory_space<vmem>>, vector<1x17x256xf32>
      %172 = vector.shape_cast %171 : vector<1x17x256xf32> to vector<17x256xf32>
      %cst_91 = arith.constant dense<0.000000e+00> : vector<4x256xf32>
      %173 = tpu.matmul %170, %172, %cst_91 {dimension_numbers = #tpu.dot_dimension_numbers<[1], [0], [0], [1], [0, 0, 1, 1], [], []>} : vector<4x17xf32>, vector<17x256xf32>, vector<4x256xf32> -> vector<4x256xf32>
      %174 = arith.addf %168, %173 : vector<4x256xf32>
      %175 = vector.extract_strided_slice %113 {offsets = [0, 10, 0], sizes = [4, 1, 17], strides = [1, 1, 1]} : vector<4x32x17xf32> to vector<4x1x17xf32>
      %176 = vector.shape_cast %175 : vector<4x1x17xf32> to vector<4x17xf32>
      %c10 = arith.constant 10 : index
      %c0_92 = arith.constant 0 : index
      %c0_93 = arith.constant 0 : index
      %177 = vector.load %arg20[%c10, %c0_92, %c0_93] : memref<32x17x256xf32, #tpu.memory_space<vmem>>, vector<1x17x256xf32>
      %178 = vector.shape_cast %177 : vector<1x17x256xf32> to vector<17x256xf32>
      %cst_94 = arith.constant dense<0.000000e+00> : vector<4x256xf32>
      %179 = tpu.matmul %176, %178, %cst_94 {dimension_numbers = #tpu.dot_dimension_numbers<[1], [0], [0], [1], [0, 0, 1, 1], [], []>} : vector<4x17xf32>, vector<17x256xf32>, vector<4x256xf32> -> vector<4x256xf32>
      %180 = arith.addf %174, %179 : vector<4x256xf32>
      %181 = vector.extract_strided_slice %113 {offsets = [0, 11, 0], sizes = [4, 1, 17], strides = [1, 1, 1]} : vector<4x32x17xf32> to vector<4x1x17xf32>
      %182 = vector.shape_cast %181 : vector<4x1x17xf32> to vector<4x17xf32>
      %c11 = arith.constant 11 : index
      %c0_95 = arith.constant 0 : index
      %c0_96 = arith.constant 0 : index
      %183 = vector.load %arg20[%c11, %c0_95, %c0_96] : memref<32x17x256xf32, #tpu.memory_space<vmem>>, vector<1x17x256xf32>
      %184 = vector.shape_cast %183 : vector<1x17x256xf32> to vector<17x256xf32>
      %cst_97 = arith.constant dense<0.000000e+00> : vector<4x256xf32>
      %185 = tpu.matmul %182, %184, %cst_97 {dimension_numbers = #tpu.dot_dimension_numbers<[1], [0], [0], [1], [0, 0, 1, 1], [], []>} : vector<4x17xf32>, vector<17x256xf32>, vector<4x256xf32> -> vector<4x256xf32>
      %186 = arith.addf %180, %185 : vector<4x256xf32>
      %187 = vector.extract_strided_slice %113 {offsets = [0, 12, 0], sizes = [4, 1, 17], strides = [1, 1, 1]} : vector<4x32x17xf32> to vector<4x1x17xf32>
      %188 = vector.shape_cast %187 : vector<4x1x17xf32> to vector<4x17xf32>
      %c12 = arith.constant 12 : index
      %c0_98 = arith.constant 0 : index
      %c0_99 = arith.constant 0 : index
      %189 = vector.load %arg20[%c12, %c0_98, %c0_99] : memref<32x17x256xf32, #tpu.memory_space<vmem>>, vector<1x17x256xf32>
      %190 = vector.shape_cast %189 : vector<1x17x256xf32> to vector<17x256xf32>
      %cst_100 = arith.constant dense<0.000000e+00> : vector<4x256xf32>
      %191 = tpu.matmul %188, %190, %cst_100 {dimension_numbers = #tpu.dot_dimension_numbers<[1], [0], [0], [1], [0, 0, 1, 1], [], []>} : vector<4x17xf32>, vector<17x256xf32>, vector<4x256xf32> -> vector<4x256xf32>
      %192 = arith.addf %186, %191 : vector<4x256xf32>
      %193 = vector.extract_strided_slice %113 {offsets = [0, 13, 0], sizes = [4, 1, 17], strides = [1, 1, 1]} : vector<4x32x17xf32> to vector<4x1x17xf32>
      %194 = vector.shape_cast %193 : vector<4x1x17xf32> to vector<4x17xf32>
      %c13 = arith.constant 13 : index
      %c0_101 = arith.constant 0 : index
      %c0_102 = arith.constant 0 : index
      %195 = vector.load %arg20[%c13, %c0_101, %c0_102] : memref<32x17x256xf32, #tpu.memory_space<vmem>>, vector<1x17x256xf32>
      %196 = vector.shape_cast %195 : vector<1x17x256xf32> to vector<17x256xf32>
      %cst_103 = arith.constant dense<0.000000e+00> : vector<4x256xf32>
      %197 = tpu.matmul %194, %196, %cst_103 {dimension_numbers = #tpu.dot_dimension_numbers<[1], [0], [0], [1], [0, 0, 1, 1], [], []>} : vector<4x17xf32>, vector<17x256xf32>, vector<4x256xf32> -> vector<4x256xf32>
      %198 = arith.addf %192, %197 : vector<4x256xf32>
      %199 = vector.extract_strided_slice %113 {offsets = [0, 14, 0], sizes = [4, 1, 17], strides = [1, 1, 1]} : vector<4x32x17xf32> to vector<4x1x17xf32>
      %200 = vector.shape_cast %199 : vector<4x1x17xf32> to vector<4x17xf32>
      %c14 = arith.constant 14 : index
      %c0_104 = arith.constant 0 : index
      %c0_105 = arith.constant 0 : index
      %201 = vector.load %arg20[%c14, %c0_104, %c0_105] : memref<32x17x256xf32, #tpu.memory_space<vmem>>, vector<1x17x256xf32>
      %202 = vector.shape_cast %201 : vector<1x17x256xf32> to vector<17x256xf32>
      %cst_106 = arith.constant dense<0.000000e+00> : vector<4x256xf32>
      %203 = tpu.matmul %200, %202, %cst_106 {dimension_numbers = #tpu.dot_dimension_numbers<[1], [0], [0], [1], [0, 0, 1, 1], [], []>} : vector<4x17xf32>, vector<17x256xf32>, vector<4x256xf32> -> vector<4x256xf32>
      %204 = arith.addf %198, %203 : vector<4x256xf32>
      %205 = vector.extract_strided_slice %113 {offsets = [0, 15, 0], sizes = [4, 1, 17], strides = [1, 1, 1]} : vector<4x32x17xf32> to vector<4x1x17xf32>
      %206 = vector.shape_cast %205 : vector<4x1x17xf32> to vector<4x17xf32>
      %c15 = arith.constant 15 : index
      %c0_107 = arith.constant 0 : index
      %c0_108 = arith.constant 0 : index
      %207 = vector.load %arg20[%c15, %c0_107, %c0_108] : memref<32x17x256xf32, #tpu.memory_space<vmem>>, vector<1x17x256xf32>
      %208 = vector.shape_cast %207 : vector<1x17x256xf32> to vector<17x256xf32>
      %cst_109 = arith.constant dense<0.000000e+00> : vector<4x256xf32>
      %209 = tpu.matmul %206, %208, %cst_109 {dimension_numbers = #tpu.dot_dimension_numbers<[1], [0], [0], [1], [0, 0, 1, 1], [], []>} : vector<4x17xf32>, vector<17x256xf32>, vector<4x256xf32> -> vector<4x256xf32>
      %210 = arith.addf %204, %209 : vector<4x256xf32>
      %211 = vector.extract_strided_slice %113 {offsets = [0, 16, 0], sizes = [4, 1, 17], strides = [1, 1, 1]} : vector<4x32x17xf32> to vector<4x1x17xf32>
      %212 = vector.shape_cast %211 : vector<4x1x17xf32> to vector<4x17xf32>
      %c16 = arith.constant 16 : index
      %c0_110 = arith.constant 0 : index
      %c0_111 = arith.constant 0 : index
      %213 = vector.load %arg20[%c16, %c0_110, %c0_111] : memref<32x17x256xf32, #tpu.memory_space<vmem>>, vector<1x17x256xf32>
      %214 = vector.shape_cast %213 : vector<1x17x256xf32> to vector<17x256xf32>
      %cst_112 = arith.constant dense<0.000000e+00> : vector<4x256xf32>
      %215 = tpu.matmul %212, %214, %cst_112 {dimension_numbers = #tpu.dot_dimension_numbers<[1], [0], [0], [1], [0, 0, 1, 1], [], []>} : vector<4x17xf32>, vector<17x256xf32>, vector<4x256xf32> -> vector<4x256xf32>
      %216 = arith.addf %210, %215 : vector<4x256xf32>
      %217 = vector.extract_strided_slice %113 {offsets = [0, 17, 0], sizes = [4, 1, 17], strides = [1, 1, 1]} : vector<4x32x17xf32> to vector<4x1x17xf32>
      %218 = vector.shape_cast %217 : vector<4x1x17xf32> to vector<4x17xf32>
      %c17 = arith.constant 17 : index
      %c0_113 = arith.constant 0 : index
      %c0_114 = arith.constant 0 : index
      %219 = vector.load %arg20[%c17, %c0_113, %c0_114] : memref<32x17x256xf32, #tpu.memory_space<vmem>>, vector<1x17x256xf32>
      %220 = vector.shape_cast %219 : vector<1x17x256xf32> to vector<17x256xf32>
      %cst_115 = arith.constant dense<0.000000e+00> : vector<4x256xf32>
      %221 = tpu.matmul %218, %220, %cst_115 {dimension_numbers = #tpu.dot_dimension_numbers<[1], [0], [0], [1], [0, 0, 1, 1], [], []>} : vector<4x17xf32>, vector<17x256xf32>, vector<4x256xf32> -> vector<4x256xf32>
      %222 = arith.addf %216, %221 : vector<4x256xf32>
      %223 = vector.extract_strided_slice %113 {offsets = [0, 18, 0], sizes = [4, 1, 17], strides = [1, 1, 1]} : vector<4x32x17xf32> to vector<4x1x17xf32>
      %224 = vector.shape_cast %223 : vector<4x1x17xf32> to vector<4x17xf32>
      %c18 = arith.constant 18 : index
      %c0_116 = arith.constant 0 : index
      %c0_117 = arith.constant 0 : index
      %225 = vector.load %arg20[%c18, %c0_116, %c0_117] : memref<32x17x256xf32, #tpu.memory_space<vmem>>, vector<1x17x256xf32>
      %226 = vector.shape_cast %225 : vector<1x17x256xf32> to vector<17x256xf32>
      %cst_118 = arith.constant dense<0.000000e+00> : vector<4x256xf32>
      %227 = tpu.matmul %224, %226, %cst_118 {dimension_numbers = #tpu.dot_dimension_numbers<[1], [0], [0], [1], [0, 0, 1, 1], [], []>} : vector<4x17xf32>, vector<17x256xf32>, vector<4x256xf32> -> vector<4x256xf32>
      %228 = arith.addf %222, %227 : vector<4x256xf32>
      %229 = vector.extract_strided_slice %113 {offsets = [0, 19, 0], sizes = [4, 1, 17], strides = [1, 1, 1]} : vector<4x32x17xf32> to vector<4x1x17xf32>
      %230 = vector.shape_cast %229 : vector<4x1x17xf32> to vector<4x17xf32>
      %c19 = arith.constant 19 : index
      %c0_119 = arith.constant 0 : index
      %c0_120 = arith.constant 0 : index
      %231 = vector.load %arg20[%c19, %c0_119, %c0_120] : memref<32x17x256xf32, #tpu.memory_space<vmem>>, vector<1x17x256xf32>
      %232 = vector.shape_cast %231 : vector<1x17x256xf32> to vector<17x256xf32>
      %cst_121 = arith.constant dense<0.000000e+00> : vector<4x256xf32>
      %233 = tpu.matmul %230, %232, %cst_121 {dimension_numbers = #tpu.dot_dimension_numbers<[1], [0], [0], [1], [0, 0, 1, 1], [], []>} : vector<4x17xf32>, vector<17x256xf32>, vector<4x256xf32> -> vector<4x256xf32>
      %234 = arith.addf %228, %233 : vector<4x256xf32>
      %235 = vector.extract_strided_slice %113 {offsets = [0, 20, 0], sizes = [4, 1, 17], strides = [1, 1, 1]} : vector<4x32x17xf32> to vector<4x1x17xf32>
      %236 = vector.shape_cast %235 : vector<4x1x17xf32> to vector<4x17xf32>
      %c20 = arith.constant 20 : index
      %c0_122 = arith.constant 0 : index
      %c0_123 = arith.constant 0 : index
      %237 = vector.load %arg20[%c20, %c0_122, %c0_123] : memref<32x17x256xf32, #tpu.memory_space<vmem>>, vector<1x17x256xf32>
      %238 = vector.shape_cast %237 : vector<1x17x256xf32> to vector<17x256xf32>
      %cst_124 = arith.constant dense<0.000000e+00> : vector<4x256xf32>
      %239 = tpu.matmul %236, %238, %cst_124 {dimension_numbers = #tpu.dot_dimension_numbers<[1], [0], [0], [1], [0, 0, 1, 1], [], []>} : vector<4x17xf32>, vector<17x256xf32>, vector<4x256xf32> -> vector<4x256xf32>
      %240 = arith.addf %234, %239 : vector<4x256xf32>
      %241 = vector.extract_strided_slice %113 {offsets = [0, 21, 0], sizes = [4, 1, 17], strides = [1, 1, 1]} : vector<4x32x17xf32> to vector<4x1x17xf32>
      %242 = vector.shape_cast %241 : vector<4x1x17xf32> to vector<4x17xf32>
      %c21 = arith.constant 21 : index
      %c0_125 = arith.constant 0 : index
      %c0_126 = arith.constant 0 : index
      %243 = vector.load %arg20[%c21, %c0_125, %c0_126] : memref<32x17x256xf32, #tpu.memory_space<vmem>>, vector<1x17x256xf32>
      %244 = vector.shape_cast %243 : vector<1x17x256xf32> to vector<17x256xf32>
      %cst_127 = arith.constant dense<0.000000e+00> : vector<4x256xf32>
      %245 = tpu.matmul %242, %244, %cst_127 {dimension_numbers = #tpu.dot_dimension_numbers<[1], [0], [0], [1], [0, 0, 1, 1], [], []>} : vector<4x17xf32>, vector<17x256xf32>, vector<4x256xf32> -> vector<4x256xf32>
      %246 = arith.addf %240, %245 : vector<4x256xf32>
      %247 = vector.extract_strided_slice %113 {offsets = [0, 22, 0], sizes = [4, 1, 17], strides = [1, 1, 1]} : vector<4x32x17xf32> to vector<4x1x17xf32>
      %248 = vector.shape_cast %247 : vector<4x1x17xf32> to vector<4x17xf32>
      %c22 = arith.constant 22 : index
      %c0_128 = arith.constant 0 : index
      %c0_129 = arith.constant 0 : index
      %249 = vector.load %arg20[%c22, %c0_128, %c0_129] : memref<32x17x256xf32, #tpu.memory_space<vmem>>, vector<1x17x256xf32>
      %250 = vector.shape_cast %249 : vector<1x17x256xf32> to vector<17x256xf32>
      %cst_130 = arith.constant dense<0.000000e+00> : vector<4x256xf32>
      %251 = tpu.matmul %248, %250, %cst_130 {dimension_numbers = #tpu.dot_dimension_numbers<[1], [0], [0], [1], [0, 0, 1, 1], [], []>} : vector<4x17xf32>, vector<17x256xf32>, vector<4x256xf32> -> vector<4x256xf32>
      %252 = arith.addf %246, %251 : vector<4x256xf32>
      %253 = vector.extract_strided_slice %113 {offsets = [0, 23, 0], sizes = [4, 1, 17], strides = [1, 1, 1]} : vector<4x32x17xf32> to vector<4x1x17xf32>
      %254 = vector.shape_cast %253 : vector<4x1x17xf32> to vector<4x17xf32>
      %c23 = arith.constant 23 : index
      %c0_131 = arith.constant 0 : index
      %c0_132 = arith.constant 0 : index
      %255 = vector.load %arg20[%c23, %c0_131, %c0_132] : memref<32x17x256xf32, #tpu.memory_space<vmem>>, vector<1x17x256xf32>
      %256 = vector.shape_cast %255 : vector<1x17x256xf32> to vector<17x256xf32>
      %cst_133 = arith.constant dense<0.000000e+00> : vector<4x256xf32>
      %257 = tpu.matmul %254, %256, %cst_133 {dimension_numbers = #tpu.dot_dimension_numbers<[1], [0], [0], [1], [0, 0, 1, 1], [], []>} : vector<4x17xf32>, vector<17x256xf32>, vector<4x256xf32> -> vector<4x256xf32>
      %258 = arith.addf %252, %257 : vector<4x256xf32>
      %259 = vector.extract_strided_slice %113 {offsets = [0, 24, 0], sizes = [4, 1, 17], strides = [1, 1, 1]} : vector<4x32x17xf32> to vector<4x1x17xf32>
      %260 = vector.shape_cast %259 : vector<4x1x17xf32> to vector<4x17xf32>
      %c24 = arith.constant 24 : index
      %c0_134 = arith.constant 0 : index
      %c0_135 = arith.constant 0 : index
      %261 = vector.load %arg20[%c24, %c0_134, %c0_135] : memref<32x17x256xf32, #tpu.memory_space<vmem>>, vector<1x17x256xf32>
      %262 = vector.shape_cast %261 : vector<1x17x256xf32> to vector<17x256xf32>
      %cst_136 = arith.constant dense<0.000000e+00> : vector<4x256xf32>
      %263 = tpu.matmul %260, %262, %cst_136 {dimension_numbers = #tpu.dot_dimension_numbers<[1], [0], [0], [1], [0, 0, 1, 1], [], []>} : vector<4x17xf32>, vector<17x256xf32>, vector<4x256xf32> -> vector<4x256xf32>
      %264 = arith.addf %258, %263 : vector<4x256xf32>
      %265 = vector.extract_strided_slice %113 {offsets = [0, 25, 0], sizes = [4, 1, 17], strides = [1, 1, 1]} : vector<4x32x17xf32> to vector<4x1x17xf32>
      %266 = vector.shape_cast %265 : vector<4x1x17xf32> to vector<4x17xf32>
      %c25 = arith.constant 25 : index
      %c0_137 = arith.constant 0 : index
      %c0_138 = arith.constant 0 : index
      %267 = vector.load %arg20[%c25, %c0_137, %c0_138] : memref<32x17x256xf32, #tpu.memory_space<vmem>>, vector<1x17x256xf32>
      %268 = vector.shape_cast %267 : vector<1x17x256xf32> to vector<17x256xf32>
      %cst_139 = arith.constant dense<0.000000e+00> : vector<4x256xf32>
      %269 = tpu.matmul %266, %268, %cst_139 {dimension_numbers = #tpu.dot_dimension_numbers<[1], [0], [0], [1], [0, 0, 1, 1], [], []>} : vector<4x17xf32>, vector<17x256xf32>, vector<4x256xf32> -> vector<4x256xf32>
      %270 = arith.addf %264, %269 : vector<4x256xf32>
      %271 = vector.extract_strided_slice %113 {offsets = [0, 26, 0], sizes = [4, 1, 17], strides = [1, 1, 1]} : vector<4x32x17xf32> to vector<4x1x17xf32>
      %272 = vector.shape_cast %271 : vector<4x1x17xf32> to vector<4x17xf32>
      %c26 = arith.constant 26 : index
      %c0_140 = arith.constant 0 : index
      %c0_141 = arith.constant 0 : index
      %273 = vector.load %arg20[%c26, %c0_140, %c0_141] : memref<32x17x256xf32, #tpu.memory_space<vmem>>, vector<1x17x256xf32>
      %274 = vector.shape_cast %273 : vector<1x17x256xf32> to vector<17x256xf32>
      %cst_142 = arith.constant dense<0.000000e+00> : vector<4x256xf32>
      %275 = tpu.matmul %272, %274, %cst_142 {dimension_numbers = #tpu.dot_dimension_numbers<[1], [0], [0], [1], [0, 0, 1, 1], [], []>} : vector<4x17xf32>, vector<17x256xf32>, vector<4x256xf32> -> vector<4x256xf32>
      %276 = arith.addf %270, %275 : vector<4x256xf32>
      %277 = vector.extract_strided_slice %113 {offsets = [0, 27, 0], sizes = [4, 1, 17], strides = [1, 1, 1]} : vector<4x32x17xf32> to vector<4x1x17xf32>
      %278 = vector.shape_cast %277 : vector<4x1x17xf32> to vector<4x17xf32>
      %c27 = arith.constant 27 : index
      %c0_143 = arith.constant 0 : index
      %c0_144 = arith.constant 0 : index
      %279 = vector.load %arg20[%c27, %c0_143, %c0_144] : memref<32x17x256xf32, #tpu.memory_space<vmem>>, vector<1x17x256xf32>
      %280 = vector.shape_cast %279 : vector<1x17x256xf32> to vector<17x256xf32>
      %cst_145 = arith.constant dense<0.000000e+00> : vector<4x256xf32>
      %281 = tpu.matmul %278, %280, %cst_145 {dimension_numbers = #tpu.dot_dimension_numbers<[1], [0], [0], [1], [0, 0, 1, 1], [], []>} : vector<4x17xf32>, vector<17x256xf32>, vector<4x256xf32> -> vector<4x256xf32>
      %282 = arith.addf %276, %281 : vector<4x256xf32>
      %283 = vector.extract_strided_slice %113 {offsets = [0, 28, 0], sizes = [4, 1, 17], strides = [1, 1, 1]} : vector<4x32x17xf32> to vector<4x1x17xf32>
      %284 = vector.shape_cast %283 : vector<4x1x17xf32> to vector<4x17xf32>
      %c28 = arith.constant 28 : index
      %c0_146 = arith.constant 0 : index
      %c0_147 = arith.constant 0 : index
      %285 = vector.load %arg20[%c28, %c0_146, %c0_147] : memref<32x17x256xf32, #tpu.memory_space<vmem>>, vector<1x17x256xf32>
      %286 = vector.shape_cast %285 : vector<1x17x256xf32> to vector<17x256xf32>
      %cst_148 = arith.constant dense<0.000000e+00> : vector<4x256xf32>
      %287 = tpu.matmul %284, %286, %cst_148 {dimension_numbers = #tpu.dot_dimension_numbers<[1], [0], [0], [1], [0, 0, 1, 1], [], []>} : vector<4x17xf32>, vector<17x256xf32>, vector<4x256xf32> -> vector<4x256xf32>
      %288 = arith.addf %282, %287 : vector<4x256xf32>
      %289 = vector.extract_strided_slice %113 {offsets = [0, 29, 0], sizes = [4, 1, 17], strides = [1, 1, 1]} : vector<4x32x17xf32> to vector<4x1x17xf32>
      %290 = vector.shape_cast %289 : vector<4x1x17xf32> to vector<4x17xf32>
      %c29 = arith.constant 29 : index
      %c0_149 = arith.constant 0 : index
      %c0_150 = arith.constant 0 : index
      %291 = vector.load %arg20[%c29, %c0_149, %c0_150] : memref<32x17x256xf32, #tpu.memory_space<vmem>>, vector<1x17x256xf32>
      %292 = vector.shape_cast %291 : vector<1x17x256xf32> to vector<17x256xf32>
      %cst_151 = arith.constant dense<0.000000e+00> : vector<4x256xf32>
      %293 = tpu.matmul %290, %292, %cst_151 {dimension_numbers = #tpu.dot_dimension_numbers<[1], [0], [0], [1], [0, 0, 1, 1], [], []>} : vector<4x17xf32>, vector<17x256xf32>, vector<4x256xf32> -> vector<4x256xf32>
      %294 = arith.addf %288, %293 : vector<4x256xf32>
      %295 = vector.extract_strided_slice %113 {offsets = [0, 30, 0], sizes = [4, 1, 17], strides = [1, 1, 1]} : vector<4x32x17xf32> to vector<4x1x17xf32>
      %296 = vector.shape_cast %295 : vector<4x1x17xf32> to vector<4x17xf32>
      %c30 = arith.constant 30 : index
      %c0_152 = arith.constant 0 : index
      %c0_153 = arith.constant 0 : index
      %297 = vector.load %arg20[%c30, %c0_152, %c0_153] : memref<32x17x256xf32, #tpu.memory_space<vmem>>, vector<1x17x256xf32>
      %298 = vector.shape_cast %297 : vector<1x17x256xf32> to vector<17x256xf32>
      %cst_154 = arith.constant dense<0.000000e+00> : vector<4x256xf32>
      %299 = tpu.matmul %296, %298, %cst_154 {dimension_numbers = #tpu.dot_dimension_numbers<[1], [0], [0], [1], [0, 0, 1, 1], [], []>} : vector<4x17xf32>, vector<17x256xf32>, vector<4x256xf32> -> vector<4x256xf32>
      %300 = arith.addf %294, %299 : vector<4x256xf32>
      %301 = vector.extract_strided_slice %113 {offsets = [0, 31, 0], sizes = [4, 1, 17], strides = [1, 1, 1]} : vector<4x32x17xf32> to vector<4x1x17xf32>
      %302 = vector.shape_cast %301 : vector<4x1x17xf32> to vector<4x17xf32>
      %c31 = arith.constant 31 : index
      %c0_155 = arith.constant 0 : index
      %c0_156 = arith.constant 0 : index
      %303 = vector.load %arg20[%c31, %c0_155, %c0_156] : memref<32x17x256xf32, #tpu.memory_space<vmem>>, vector<1x17x256xf32>
      %304 = vector.shape_cast %303 : vector<1x17x256xf32> to vector<17x256xf32>
      %cst_157 = arith.constant dense<0.000000e+00> : vector<4x256xf32>
      %305 = tpu.matmul %302, %304, %cst_157 {dimension_numbers = #tpu.dot_dimension_numbers<[1], [0], [0], [1], [0, 0, 1, 1], [], []>} : vector<4x17xf32>, vector<17x256xf32>, vector<4x256xf32> -> vector<4x256xf32>
      %306 = arith.addf %300, %305 : vector<4x256xf32>
      %c0_158 = arith.constant 0 : index
      %c0_159 = arith.constant 0 : index
      %307 = vector.load %arg15[%c0_158, %c0_159] : memref<1x256xf32, #tpu.memory_space<vmem>>, vector<1x256xf32>
      %308 = vector.broadcast %307 : vector<1x256xf32> to vector<4x256xf32>
      %309 = arith.addf %306, %308 : vector<4x256xf32>
      %cst_160 = arith.constant 0.000000e+00 : f32
      %310 = vector.broadcast %cst_160 : f32 to vector<4x256xf32>
      %311 = arith.maximumf %309, %310 : vector<4x256xf32>
      %c0_161 = arith.constant 0 : index
      %c0_162 = arith.constant 0 : index
      %312 = vector.load %arg16[%c0_161, %c0_162] : memref<4x256xf32, #tpu.memory_space<vmem>>, vector<4x256xf32>
      %cst_163 = arith.constant dense<0.000000e+00> : vector<4x4xf32>
      %313 = tpu.matmul %311, %312, %cst_163 {dimension_numbers = #tpu.dot_dimension_numbers<[1], [1], [0], [0], [0, 0, 1, 0], [], []>} : vector<4x256xf32>, vector<4x256xf32>, vector<4x4xf32> -> vector<4x4xf32>
      %c0_164 = arith.constant 0 : index
      %c0_165 = arith.constant 0 : index
      %314 = vector.load %arg17[%c0_164, %c0_165] : memref<1x4xf32, #tpu.memory_space<vmem>>, vector<1x4xf32>
      %315 = vector.broadcast %314 : vector<1x4xf32> to vector<4x4xf32>
      %316 = arith.addf %313, %315 : vector<4x4xf32>
      %cst_166 = arith.constant dense<0xFF800000> : vector<4xf32>
      %317 = vector.multi_reduction <maximumf>, %316, %cst_166 [1] : vector<4x4xf32> to vector<4xf32>
      %318 = vector.shape_cast %317 : vector<4xf32> to vector<4x1xf32>
      %319 = vector.broadcast %318 : vector<4x1xf32> to vector<4x4xf32>
      %320 = arith.subf %316, %319 : vector<4x4xf32>
      %321 = math.exp %320 : vector<4x4xf32>
      %cst_167 = arith.constant dense<0.000000e+00> : vector<4xf32>
      %322 = vector.multi_reduction <add>, %321, %cst_167 [1] : vector<4x4xf32> to vector<4xf32>
      %323 = vector.shape_cast %322 : vector<4xf32> to vector<4x1xf32>
      %324 = math.log %323 : vector<4x1xf32>
      %325 = arith.addf %318, %324 : vector<4x1xf32>
      %326 = vector.broadcast %325 : vector<4x1xf32> to vector<4x4xf32>
      %327 = arith.subf %316, %326 : vector<4x4xf32>
      %c0_168 = arith.constant 0 : index
      %c0_169 = arith.constant 0 : index
      %328 = vector.load %arg18[%c0_168, %c0_169] : memref<4x4xf32, #tpu.memory_space<vmem>>, vector<4x4xf32>
      tpu.vector_store %arg18[%c0_168, %c0_169], %327 {strides = array<i32>} : memref<4x4xf32, #tpu.memory_space<vmem>>, vector<4x4xf32>,
    } else {
    }
    return
  }
  func.func @transform_0(%arg0: i32) -> (i32, i32, i32) {
    %c0_i32 = arith.constant 0 : i32
    %c0_i32_0 = arith.constant 0 : i32
    %c0_i32_1 = arith.constant 0 : i32
    %c0_i32_2 = arith.constant 0 : i32
    return %c0_i32, %c0_i32_0, %c0_i32_1 : i32, i32, i32
  }
  func.func @transform_1(%arg0: i32) -> (i32, i32, i32) {
    %c0_i32 = arith.constant 0 : i32
    %c0_i32_0 = arith.constant 0 : i32
    %c0_i32_1 = arith.constant 0 : i32
    return %arg0, %c0_i32, %c0_i32_0 : i32, i32, i32
  }
  func.func @transform_2(%arg0: i32) -> (i32, i32, i32) {
    %c0_i32 = arith.constant 0 : i32
    %c0_i32_0 = arith.constant 0 : i32
    %c0_i32_1 = arith.constant 0 : i32
    return %arg0, %c0_i32, %c0_i32_0 : i32, i32, i32
  }
  func.func @transform_3(%arg0: i32) -> (i32, i32, i32) {
    %c0_i32 = arith.constant 0 : i32
    %c0_i32_0 = arith.constant 0 : i32
    %c0_i32_1 = arith.constant 0 : i32
    return %arg0, %c0_i32, %c0_i32_0 : i32, i32, i32
  }
  func.func @transform_4(%arg0: i32) -> (i32, i32, i32) {
    %c0_i32 = arith.constant 0 : i32
    %c0_i32_0 = arith.constant 0 : i32
    %c0_i32_1 = arith.constant 0 : i32
    return %arg0, %c0_i32, %c0_i32_0 : i32, i32, i32
  }
  func.func @transform_5(%arg0: i32) -> (i32, i32, i32) {
    %c0_i32 = arith.constant 0 : i32
    %c0_i32_0 = arith.constant 0 : i32
    %c0_i32_1 = arith.constant 0 : i32
    return %arg0, %c0_i32, %c0_i32_0 : i32, i32, i32
  }
  func.func @transform_6(%arg0: i32) -> (i32, i32, i32) {
    %c0_i32 = arith.constant 0 : i32
    %c0_i32_0 = arith.constant 0 : i32
    %c0_i32_1 = arith.constant 0 : i32
    return %arg0, %c0_i32, %c0_i32_0 : i32, i32, i32
  }
  func.func @transform_7(%arg0: i32) -> (i32, i32, i32) {
    %c0_i32 = arith.constant 0 : i32
    %c0_i32_0 = arith.constant 0 : i32
    %c0_i32_1 = arith.constant 0 : i32
    return %arg0, %c0_i32, %c0_i32_0 : i32, i32, i32
  }
  func.func @transform_8(%arg0: i32) -> (i32, i32, i32) {
    %c0_i32 = arith.constant 0 : i32
    %c0_i32_0 = arith.constant 0 : i32
    %c0_i32_1 = arith.constant 0 : i32
    return %arg0, %c0_i32, %c0_i32_0 : i32, i32, i32
  }
  func.func @transform_9(%arg0: i32) -> (i32, i32, i32) {
    %c0_i32 = arith.constant 0 : i32
    %c0_i32_0 = arith.constant 0 : i32
    %c0_i32_1 = arith.constant 0 : i32
    return %arg0, %c0_i32, %c0_i32_0 : i32, i32, i32
  }
  func.func @transform_10(%arg0: i32) -> (i32, i32, i32) {
    %c0_i32 = arith.constant 0 : i32
    %c0_i32_0 = arith.constant 0 : i32
    %c0_i32_1 = arith.constant 0 : i32
    return %arg0, %c0_i32, %c0_i32_0 : i32, i32, i32
  }
  func.func @transform_11(%arg0: i32) -> (i32, i32, i32) {
    %c0_i32 = arith.constant 0 : i32
    %c0_i32_0 = arith.constant 0 : i32
    %c0_i32_1 = arith.constant 0 : i32
    return %arg0, %c0_i32, %c0_i32_0 : i32, i32, i32
  }
  func.func @transform_12(%arg0: i32) -> (i32, i32, i32) {
    %c0_i32 = arith.constant 0 : i32
    %c0_i32_0 = arith.constant 0 : i32
    %c0_i32_1 = arith.constant 0 : i32
    return %arg0, %c0_i32, %c0_i32_0 : i32, i32, i32
  }
  func.func @transform_14(%arg0: i32) -> (i32, i32) {
    %c0_i32 = arith.constant 0 : i32
    %c0_i32_0 = arith.constant 0 : i32
    %c0_i32_1 = arith.constant 0 : i32
    return %c0_i32, %c0_i32_0 : i32, i32
  }
  func.func @transform_15(%arg0: i32) -> (i32, i32) {
    %c0_i32 = arith.constant 0 : i32
    %c0_i32_0 = arith.constant 0 : i32
    %c0_i32_1 = arith.constant 0 : i32
    return %c0_i32, %c0_i32_0 : i32, i32
  }
  func.func @transform_16(%arg0: i32) -> (i32, i32) {
    %c0_i32 = arith.constant 0 : i32
    %c0_i32_0 = arith.constant 0 : i32
    %c0_i32_1 = arith.constant 0 : i32
    return %c0_i32, %c0_i32_0 : i32, i32
  }
  func.func @transform_17(%arg0: i32) -> (i32, i32) {
    %c0_i32 = arith.constant 0 : i32
    %c0_i32_0 = arith.constant 0 : i32
    %c0_i32_1 = arith.constant 0 : i32
    return %c0_i32, %c0_i32_0 : i32, i32
  }
}

</mosaic_0001>

<bundles_post_ra>
// kernel: transformer_nn_forward.1
= control target key start
LH: loop header
LB: loop body
LE: loop exit
PB: predicated region body
PF: predicated region fallthrough
CT: control target
= control target key end

     0   :  { %s12571_s0 = inlined_call_operand.vmem [shape: f32[4,32,17], index: 0, kind: input, shape index: {}]   ;;  %s12572_s1 = inlined_call_operand.vmem [shape: f32[2,17,384], index: 1, kind: input, shape index: {}]   ;;  %s12573_s2 = inlined_call_operand.vmem [shape: f32[2,1,384], index: 2, kind: input, shape index: {}]   ;;  %s12574_s3 = inlined_call_operand.vmem [shape: f32[2,17,128], index: 3, kind: input, shape index: {}]   ;;  %s12575_s4 = inlined_call_operand.vmem [shape: f32[2,1,17], index: 4, kind: input, shape index: {}]   ;;  %s12576_s5 = inlined_call_operand.vmem [shape: f32[2,1,17], index: 5, kind: input, shape index: {}]   ;;  %s12577_s6 = inlined_call_operand.vmem [shape: f32[2,1,17], index: 6, kind: input, shape index: {}]   ;;  %s12578_s7 = inlined_call_operand.vmem [shape: f32[2,17,2048], index: 7, kind: input, shape index: {}]   ;;  %s12579_s8 = inlined_call_operand.vmem [shape: f32[2,1,2048], index: 8, kind: input, shape index: {}]   ;;  %s12580_s9 = inlined_call_operand.vmem [shape: f32[2,17,2048], index: 9, kind: input, shape index: {}]   ;;  %s12581_s10 = inlined_call_operand.vmem [shape: f32[2,1,17], index: 10, kind: input, shape index: {}]   ;;  %s12582_s11 = inlined_call_operand.vmem [shape: f32[2,1,17], index: 11, kind: input, shape index: {}]   ;;  %s12583_s12 = inlined_call_operand.vmem [shape: f32[2,1,17], index: 12, kind: input, shape index: {}]   ;;  %s12584_s13 = inlined_call_operand.vmem [shape: f32[32,17,256], index: 13, kind: input, shape index: {}]   ;;  %s12585_s14 = inlined_call_operand.vmem [shape: f32[1,256], index: 14, kind: input, shape index: {}]   ;;  %s12586_s15 = inlined_call_operand.vmem [shape: f32[4,256], index: 15, kind: input, shape index: {}]   ;;  %s12587_s16 = inlined_call_operand.vmem [shape: f32[1,4], index: 16, kind: input, shape index: {}]   ;;  %s12588_s17 = inlined_call_operand.hbm [shape: f32[4,4], index: 17, kind: output, shape index: {}]  }
   0x1   :  { %12609 = sst [smem:[#allocation192_spill]] %s12571_s0 }
   0x2   :  { %12610 = sst [smem:[#allocation193_spill]] %s12572_s1 }
   0x3   :  { %12611 = sst [smem:[#allocation194_spill]] %s12575_s4 }
   0x4   :  { %12612 = sst [smem:[#allocation195_spill]] %s12576_s5 }
   0x5   :  { %12613 = sst [smem:[#allocation196_spill]] %s12585_s14 }
   0x6   :  { %12614 = sst [smem:[#allocation197_spill]] %s12586_s15 }
   0x7   :  { %12615 = sst [smem:[#allocation198_spill]] %s12587_s16 }
   0x8   :  { %12616 = sst [smem:[#allocation199_spill]] %s12588_s17 }
   0x9   :  { %22 = vsyncpa [#allocation6], 0  ;;  %s8536_s24 = smov 0  }
   0xa LB: > { %12617 = sst [smem:[#allocation10_spill]] %s8442_s24  ;;  %s8542_s25 = sadd.s32 4294967295, %s8442_s24   ;;  %s8442_s24 = sphi %s8536_s24, %s28_s24  }
   0xb   : > { %p7733_p0 = scmp.ge.s32.totalorder %s8442_s24, 1  ;;  %p555_p1 = scmp.lt.s32.totalorder %s8442_s24, 3 }
   0xd   : > { %p556_p2 = pnand %p7733_p0, %p555_p1 }
   0xf   : > { %559 = sbr.rel (%p556_p2) target bundleno = 3301 (0xce5), region = 84 }
  0x14   : > { %p641_p3 = scmp.lt.s32.totalorder %s8542_s25, 1  ;;  %s12620_s22 = sld [smem:[#allocation193_spill]] }
  0x15   : > { %p7739_p4 = scmp.ne.s32.totalorder %s8542_s25, 0 }
  0x16   : > { %s8548_s26 = scalar_select %p641_p3, %s8542_s25, 1 }
  0x18   : > { %s8226_s27 = smul.u32 72, %s8548_s26  ;;  %s7737_s1 = sshll.u32 %s8548_s26, 4 }
  0x19   : > { %s8227_s30 = smul.u32 3, %s8548_s26  ;;  %s8594_s15 = scalar_lea.vmem %s12579_s8, %s7737_s1 }
  0x1a   : > { %s8563_s23 = scalar_lea.vmem %s12620_s22, %s8226_s27  ;;  %s8228_s24 = smul.u32 24, %s8548_s26 }
  0x1b   : > { %s8569_s14 = scalar_lea.vmem %s12573_s2, %s8227_s30  ;;  %s8229_s19 = smul.u32 384, %s8548_s26 }
  0x1c   : > { %s8578_s18 = scalar_lea.vmem %s12574_s3, %s8228_s24  ;;  %s683_s20 = scalar_lea.vmem %s12582_s11, %s8548_s26 }
  0x1d   : > { %s8589_s16 = scalar_lea.vmem %s12578_s7, %s8229_s19  ;;  %s8599_s24 = scalar_lea.vmem %s12580_s9, %s8229_s19 }
  0x1e   : > { %s686_s5 = scalar_lea.vmem %s12583_s12, %s8548_s26  ;;  %690 = sbr.rel (%p7739_p4) target bundleno = 245 (0xf5), region = 88 }
  0x1f   : > { %s12621_s1 = sld [smem:[#allocation192_spill]] (!%p7739_p4) }
  0x23   : > { %vm707_vm0 = vcmask 138240   ;;  %v734_v16 = vld [vmem:[%s12584_s13] sm:$0xff]  ;;  %v736_v17 = vld [vmem:[%s12584_s13 + $0x8] sm:$0xff]  ;;  %v738_v18 = vld [vmem:[%s12584_s13 + $0x10] sm:$0xff] }
  0x24   : > { %735 = vst [vmem:[#allocation3 + $0x2b0] sm:$0xff] %v734_v16  ;;  %v740_v19 = vld [vmem:[%s12584_s13 + $0x18] sm:$0xff]  ;;  %v742_v20 = vld [vmem:[%s12584_s13 + $0x20] sm:$0xff]  ;;  %v744_v21 = vld [vmem:[%s12584_s13 + $0x28] sm:$0xff] }
  0x25   : > { %v691_v0 = vld [vmem:[%s12621_s1] sm:$0xff]  ;;  %v692_v1 = vld [vmem:[%s12621_s1 + $0x8] sm:$0xff]  ;;  %v693_v2 = vld [vmem:[%s12621_s1 + $0x10] sm:$0xff]  ;;  %737 = vst [vmem:[#allocation3 + $0x3b0] sm:$0xff] %v736_v17 }
  0x26   : > { %708 = vst.msk [vmem:[#allocation2] sm:$0xff] %vm707_vm0, %v691_v0  ;;  %v694_v3 = vld [vmem:[%s12621_s1 + $0x18] sm:$0xff]  ;;  %v695_v4 = vld [vmem:[%s12621_s1 + $0x20] sm:$0xff]  ;;  %v696_v5 = vld [vmem:[%s12621_s1 + $0x28] sm:$0xff] }
  0x27   : > { %709 = vst.msk [vmem:[#allocation2 + $0x8] sm:$0xff] %vm707_vm0, %v692_v1  ;;  %v697_v6 = vld [vmem:[%s12621_s1 + $0x30] sm:$0xff]  ;;  %v698_v7 = vld [vmem:[%s12621_s1 + $0x38] sm:$0xff]  ;;  %v699_v8 = vld [vmem:[%s12621_s1 + $0x40] sm:$0xff] }
  0x28   : > { %710 = vst.msk [vmem:[#allocation2 + $0x10] sm:$0xff] %vm707_vm0, %v693_v2  ;;  %v700_v9 = vld [vmem:[%s12621_s1 + $0x48] sm:$0xff]  ;;  %v701_v10 = vld [vmem:[%s12621_s1 + $0x50] sm:$0xff]  ;;  %v702_v11 = vld [vmem:[%s12621_s1 + $0x58] sm:$0xff] }
  0x29   : > { %711 = vst.msk [vmem:[#allocation2 + $0x18] sm:$0xff] %vm707_vm0, %v694_v3  ;;  %v703_v12 = vld [vmem:[%s12621_s1 + $0x60] sm:$0xff]  ;;  %v704_v13 = vld [vmem:[%s12621_s1 + $0x68] sm:$0xff]  ;;  %v705_v14 = vld [vmem:[%s12621_s1 + $0x70] sm:$0xff] }
  0x2a   : > { %712 = vst.msk [vmem:[#allocation2 + $0x20] sm:$0xff] %vm707_vm0, %v695_v4  ;;  %v706_v15 = vld [vmem:[%s12621_s1 + $0x78] sm:$0xff]  ;;  %v746_v22 = vld [vmem:[%s12584_s13 + $0x30] sm:$0xff]  ;;  %v750_v24 = vld [vmem:[%s12584_s13 + $0x40] sm:$0xff] }
  0x2b   : > { %713 = vst.msk [vmem:[#allocation2 + $0x28] sm:$0xff] %vm707_vm0, %v696_v5  ;;  %v748_v23 = vld [vmem:[%s12584_s13 + $0x38] sm:$0xff]  ;;  %v752_v25 = vld [vmem:[%s12584_s13 + $0x48] sm:$0xff]  ;;  %v754_v26 = vld [vmem:[%s12584_s13 + $0x50] sm:$0xff] }
  0x2c   : > { %714 = vst.msk [vmem:[#allocation2 + $0x30] sm:$0xff] %vm707_vm0, %v697_v6  ;;  %v756_v27 = vld [vmem:[%s12584_s13 + $0x58] sm:$0xff]  ;;  %v758_v28 = vld [vmem:[%s12584_s13 + $0x60] sm:$0xff]  ;;  %v760_v29 = vld [vmem:[%s12584_s13 + $0x68] sm:$0xff] }
  0x2d   : > { %715 = vst.msk [vmem:[#allocation2 + $0x38] sm:$0xff] %vm707_vm0, %v698_v7  ;;  %v762_v30 = vld [vmem:[%s12584_s13 + $0x70] sm:$0xff]  ;;  %v764_v31 = vld [vmem:[%s12584_s13 + $0x78] sm:$0xff]  ;;  %v766_v32 = vld [vmem:[%s12584_s13 + $0x80] sm:$0xff] }
  0x2e   : > { %716 = vst.msk [vmem:[#allocation2 + $0x40] sm:$0xff] %vm707_vm0, %v699_v8  ;;  %v768_v33 = vld [vmem:[%s12584_s13 + $0x88] sm:$0xff]  ;;  %v770_v34 = vld [vmem:[%s12584_s13 + $0x90] sm:$0xff]  ;;  %v772_v35 = vld [vmem:[%s12584_s13 + $0x98] sm:$0xff] }
  0x2f   : > { %717 = vst.msk [vmem:[#allocation2 + $0x48] sm:$0xff] %vm707_vm0, %v700_v9  ;;  %v774_v36 = vld [vmem:[%s12584_s13 + $0xa0] sm:$0xff]  ;;  %v776_v37 = vld [vmem:[%s12584_s13 + $0xa8] sm:$0xff]  ;;  %v778_v38 = vld [vmem:[%s12584_s13 + $0xb0] sm:$0xff] }
  0x30   : > { %718 = vst.msk [vmem:[#allocation2 + $0x50] sm:$0xff] %vm707_vm0, %v701_v10  ;;  %v780_v39 = vld [vmem:[%s12584_s13 + $0xb8] sm:$0xff]  ;;  %v782_v40 = vld [vmem:[%s12584_s13 + $0xc0] sm:$0xff]  ;;  %v784_v41 = vld [vmem:[%s12584_s13 + $0xc8] sm:$0xff] }
  0x31   : > { %719 = vst.msk [vmem:[#allocation2 + $0x58] sm:$0xff] %vm707_vm0, %v702_v11  ;;  %v786_v42 = vld [vmem:[%s12584_s13 + $0xd0] sm:$0xff]  ;;  %v788_v43 = vld [vmem:[%s12584_s13 + $0xd8] sm:$0xff]  ;;  %v790_v44 = vld [vmem:[%s12584_s13 + $0xe0] sm:$0xff] }
  0x32   : > { %720 = vst.msk [vmem:[#allocation2 + $0x60] sm:$0xff] %vm707_vm0, %v703_v12  ;;  %v792_v45 = vld [vmem:[%s12584_s13 + $0xe8] sm:$0xff]  ;;  %v794_v46 = vld [vmem:[%s12584_s13 + $0xf0] sm:$0xff]  ;;  %v796_v47 = vld [vmem:[%s12584_s13 + $0xf8] sm:$0xff] }
  0x33   : > { %721 = vst.msk [vmem:[#allocation2 + $0x68] sm:$0xff] %vm707_vm0, %v704_v13  ;;  %v798_v48 = vld [vmem:[%s12584_s13 + $0x100] sm:$0xff]  ;;  %v800_v49 = vld [vmem:[%s12584_s13 + $0x108] sm:$0xff]  ;;  %v802_v50 = vld [vmem:[%s12584_s13 + $0x110] sm:$0xff] }
  0x34   : > { %722 = vst.msk [vmem:[#allocation2 + $0x70] sm:$0xff] %vm707_vm0, %v705_v14  ;;  %v804_v51 = vld [vmem:[%s12584_s13 + $0x118] sm:$0xff]  ;;  %v806_v52 = vld [vmem:[%s12584_s13 + $0x120] sm:$0xff]  ;;  %v808_v53 = vld [vmem:[%s12584_s13 + $0x128] sm:$0xff] }
  0x35   : > { %723 = vst.msk [vmem:[#allocation2 + $0x78] sm:$0xff] %vm707_vm0, %v706_v15  ;;  %v810_v54 = vld [vmem:[%s12584_s13 + $0x130] sm:$0xff]  ;;  %v812_v55 = vld [vmem:[%s12584_s13 + $0x138] sm:$0xff]  ;;  %v814_v56 = vld [vmem:[%s12584_s13 + $0x140] sm:$0xff] }
  0x36   : > { %739 = vst [vmem:[#allocation3 + $0x4d8] sm:$0xff] %v738_v18  ;;  %v816_v57 = vld [vmem:[%s12584_s13 + $0x148] sm:$0xff]  ;;  %v818_v58 = vld [vmem:[%s12584_s13 + $0x150] sm:$0xff]  ;;  %v820_v59 = vld [vmem:[%s12584_s13 + $0x158] sm:$0xff] }
  0x37   : > { %741 = vst [vmem:[#allocation3 + $0x18] sm:$0xff] %v740_v19  ;;  %v822_v60 = vld [vmem:[%s12584_s13 + $0x160] sm:$0xff]  ;;  %v824_v61 = vld [vmem:[%s12584_s13 + $0x168] sm:$0xff]  ;;  %v826_v62 = vld [vmem:[%s12584_s13 + $0x170] sm:$0xff] }
  0x38   : > { %743 = vst [vmem:[#allocation3 + $0x450] sm:$0xff] %v742_v20  ;;  %v828_v63 = vld [vmem:[%s12584_s13 + $0x178] sm:$0xff]  ;;  %v830_v0 = vld [vmem:[%s12584_s13 + $0x180] sm:$0xff]  ;;  %v832_v1 = vld [vmem:[%s12584_s13 + $0x188] sm:$0xff] }
  0x39   : > { %745 = vst [vmem:[#allocation3 + $0x328] sm:$0xff] %v744_v21  ;;  %v834_v2 = vld [vmem:[%s12584_s13 + $0x190] sm:$0xff]  ;;  %v836_v3 = vld [vmem:[%s12584_s13 + $0x198] sm:$0xff]  ;;  %v838_v4 = vld [vmem:[%s12584_s13 + $0x1a0] sm:$0xff] }
  0x3a   : > { %747 = vst [vmem:[#allocation3 + $0x440] sm:$0xff] %v746_v22  ;;  %v840_v5 = vld [vmem:[%s12584_s13 + $0x1a8] sm:$0xff]  ;;  %v842_v6 = vld [vmem:[%s12584_s13 + $0x1b0] sm:$0xff]  ;;  %v844_v7 = vld [vmem:[%s12584_s13 + $0x1b8] sm:$0xff] }
  0x3b   : > { %749 = vst [vmem:[#allocation3 + $0x378] sm:$0xff] %v748_v23  ;;  %v846_v8 = vld [vmem:[%s12584_s13 + $0x1c0] sm:$0xff]  ;;  %v848_v9 = vld [vmem:[%s12584_s13 + $0x1c8] sm:$0xff]  ;;  %v850_v10 = vld [vmem:[%s12584_s13 + $0x1d0] sm:$0xff] }
  0x3c   : > { %751 = vst [vmem:[#allocation3 + $0x108] sm:$0xff] %v750_v24  ;;  %v852_v11 = vld [vmem:[%s12584_s13 + $0x1d8] sm:$0xff]  ;;  %v854_v12 = vld [vmem:[%s12584_s13 + $0x1e0] sm:$0xff]  ;;  %v856_v13 = vld [vmem:[%s12584_s13 + $0x1e8] sm:$0xff] }
  0x3d   : > { %753 = vst [vmem:[#allocation3 + $0x510] sm:$0xff] %v752_v25  ;;  %v858_v14 = vld [vmem:[%s12584_s13 + $0x1f0] sm:$0xff]  ;;  %v860_v15 = vld [vmem:[%s12584_s13 + $0x1f8] sm:$0xff]  ;;  %v862_v16 = vld [vmem:[%s12584_s13 + $0x200] sm:$0xff] }
  0x3e   : > { %755 = vst [vmem:[#allocation3 + $0x490] sm:$0xff] %v754_v26  ;;  %v864_v17 = vld [vmem:[%s12584_s13 + $0x208] sm:$0xff]  ;;  %v866_v18 = vld [vmem:[%s12584_s13 + $0x210] sm:$0xff]  ;;  %v868_v19 = vld [vmem:[%s12584_s13 + $0x218] sm:$0xff] }
  0x3f   : > { %757 = vst [vmem:[#allocation3 + $0x318] sm:$0xff] %v756_v27  ;;  %v870_v20 = vld [vmem:[%s12584_s13 + $0x220] sm:$0xff]  ;;  %v872_v21 = vld [vmem:[%s12584_s13 + $0x228] sm:$0xff]  ;;  %v874_v22 = vld [vmem:[%s12584_s13 + $0x230] sm:$0xff] }
  0x40   : > { %759 = vst [vmem:[#allocation3 + $0x548] sm:$0xff] %v758_v28  ;;  %v876_v23 = vld [vmem:[%s12584_s13 + $0x238] sm:$0xff]  ;;  %v878_v24 = vld [vmem:[%s12584_s13 + $0x240] sm:$0xff]  ;;  %v880_v25 = vld [vmem:[%s12584_s13 + $0x248] sm:$0xff] }
  0x41   : > { %761 = vst [vmem:[#allocation3 + $0x500] sm:$0xff] %v760_v29  ;;  %v882_v26 = vld [vmem:[%s12584_s13 + $0x250] sm:$0xff]  ;;  %v884_v27 = vld [vmem:[%s12584_s13 + $0x258] sm:$0xff]  ;;  %v886_v28 = vld [vmem:[%s12584_s13 + $0x260] sm:$0xff] }
  0x42   : > { %763 = vst [vmem:[#allocation3 + $0x58] sm:$0xff] %v762_v30  ;;  %v888_v29 = vld [vmem:[%s12584_s13 + $0x268] sm:$0xff]  ;;  %v890_v30 = vld [vmem:[%s12584_s13 + $0x270] sm:$0xff] }
  0x43   : > { %765 = vst [vmem:[#allocation3 + $0x2b8] sm:$0xff] %v764_v31  ;;  %v892_v31 = vld [vmem:[%s12584_s13 + $0x278] sm:$0xff] }
  0x44   : > { %767 = vst [vmem:[#allocation3 + $0x580] sm:$0xff] %v766_v32  ;;  %v894_v32 = vld [vmem:[%s12584_s13 + $0x280] sm:$0xff] }
  0x45   : > { %769 = vst [vmem:[#allocation3 + $0x590] sm:$0xff] %v768_v33  ;;  %v896_v33 = vld [vmem:[%s12584_s13 + $0x288] sm:$0xff] }
  0x46   : > { %771 = vst [vmem:[#allocation3 + $0x540] sm:$0xff] %v770_v34  ;;  %v898_v34 = vld [vmem:[%s12584_s13 + $0x290] sm:$0xff] }
  0x47   : > { %773 = vst [vmem:[#allocation3 + $0x3c0] sm:$0xff] %v772_v35  ;;  %v900_v35 = vld [vmem:[%s12584_s13 + $0x298] sm:$0xff] }
  0x48   : > { %775 = vst [vmem:[#allocation3 + $0x330] sm:$0xff] %v774_v36  ;;  %v902_v36 = vld [vmem:[%s12584_s13 + $0x2a0] sm:$0xff] }
  0x49   : > { %777 = vst [vmem:[#allocation3 + $0x100] sm:$0xff] %v776_v37  ;;  %v904_v37 = vld [vmem:[%s12584_s13 + $0x2a8] sm:$0xff] }
  0x4a   : > { %779 = vst [vmem:[#allocation3 + $0x8] sm:$0xff] %v778_v38  ;;  %v906_v38 = vld [vmem:[%s12584_s13 + $0x2b0] sm:$0xff] }
  0x4b   : > { %781 = vst [vmem:[#allocation3 + $0x188] sm:$0xff] %v780_v39  ;;  %v908_v39 = vld [vmem:[%s12584_s13 + $0x2b8] sm:$0xff] }
  0x4c   : > { %783 = vst [vmem:[#allocation3 + $0x248] sm:$0xff] %v782_v40  ;;  %v910_v40 = vld [vmem:[%s12584_s13 + $0x2c0] sm:$0xff] }
  0x4d   : > { %785 = vst [vmem:[#allocation3 + $0xc8] sm:$0xff] %v784_v41  ;;  %v912_v41 = vld [vmem:[%s12584_s13 + $0x2c8] sm:$0xff] }
  0x4e   : > { %787 = vst [vmem:[#allocation3 + $0x388] sm:$0xff] %v786_v42  ;;  %v914_v42 = vld [vmem:[%s12584_s13 + $0x2d0] sm:$0xff] }
  0x4f   : > { %789 = vst [vmem:[#allocation3 + $0x520] sm:$0xff] %v788_v43  ;;  %v916_v43 = vld [vmem:[%s12584_s13 + $0x2d8] sm:$0xff] }
  0x50   : > { %791 = vst [vmem:[#allocation3 + $0x3a8] sm:$0xff] %v790_v44  ;;  %v918_v44 = vld [vmem:[%s12584_s13 + $0x2e0] sm:$0xff] }
  0x51   : > { %793 = vst [vmem:[#allocation3 + $0x5e0] sm:$0xff] %v792_v45  ;;  %v920_v45 = vld [vmem:[%s12584_s13 + $0x2e8] sm:$0xff] }
  0x52   : > { %795 = vst [vmem:[#allocation3 + $0x488] sm:$0xff] %v794_v46  ;;  %v922_v46 = vld [vmem:[%s12584_s13 + $0x2f0] sm:$0xff] }
  0x53   : > { %797 = vst [vmem:[#allocation3 + $0x4d0] sm:$0xff] %v796_v47  ;;  %v924_v47 = vld [vmem:[%s12584_s13 + $0x2f8] sm:$0xff] }
  0x54   : > { %799 = vst [vmem:[#allocation3 + $0x98] sm:$0xff] %v798_v48  ;;  %v926_v48 = vld [vmem:[%s12584_s13 + $0x300] sm:$0xff] }
  0x55   : > { %801 = vst [vmem:[#allocation3 + $0xb0] sm:$0xff] %v800_v49  ;;  %v928_v49 = vld [vmem:[%s12584_s13 + $0x308] sm:$0xff] }
  0x56   : > { %803 = vst [vmem:[#allocation3 + $0x2a0] sm:$0xff] %v802_v50  ;;  %v930_v50 = vld [vmem:[%s12584_s13 + $0x310] sm:$0xff] }
  0x57   : > { %805 = vst [vmem:[#allocation3 + $0x570] sm:$0xff] %v804_v51  ;;  %v932_v51 = vld [vmem:[%s12584_s13 + $0x318] sm:$0xff] }
  0x58   : > { %807 = vst [vmem:[#allocation3 + $0x598] sm:$0xff] %v806_v52  ;;  %v934_v52 = vld [vmem:[%s12584_s13 + $0x320] sm:$0xff] }
  0x59   : > { %809 = vst [vmem:[#allocation3 + $0x5a8] sm:$0xff] %v808_v53  ;;  %v936_v53 = vld [vmem:[%s12584_s13 + $0x328] sm:$0xff] }
  0x5a   : > { %811 = vst [vmem:[#allocation3 + $0x4c8] sm:$0xff] %v810_v54  ;;  %v938_v54 = vld [vmem:[%s12584_s13 + $0x330] sm:$0xff] }
  0x5b   : > { %813 = vst [vmem:[#allocation3 + $0x5e8] sm:$0xff] %v812_v55  ;;  %v940_v55 = vld [vmem:[%s12584_s13 + $0x338] sm:$0xff] }
  0x5c   : > { %815 = vst [vmem:[#allocation3 + $0x1f8] sm:$0xff] %v814_v56  ;;  %v942_v56 = vld [vmem:[%s12584_s13 + $0x340] sm:$0xff] }
  0x5d   : > { %817 = vst [vmem:[#allocation3 + $0x2f0] sm:$0xff] %v816_v57  ;;  %v944_v57 = vld [vmem:[%s12584_s13 + $0x348] sm:$0xff] }
  0x5e   : > { %819 = vst [vmem:[#allocation3 + $0x3c8] sm:$0xff] %v818_v58  ;;  %v946_v58 = vld [vmem:[%s12584_s13 + $0x350] sm:$0xff] }
  0x5f   : > { %821 = vst [vmem:[#allocation3 + $0x5c0] sm:$0xff] %v820_v59  ;;  %v948_v59 = vld [vmem:[%s12584_s13 + $0x358] sm:$0xff] }
  0x60   : > { %823 = vst [vmem:[#allocation3 + $0x338] sm:$0xff] %v822_v60  ;;  %v950_v60 = vld [vmem:[%s12584_s13 + $0x360] sm:$0xff] }
  0x61   : > { %825 = vst [vmem:[#allocation3 + $0x480] sm:$0xff] %v824_v61  ;;  %v952_v61 = vld [vmem:[%s12584_s13 + $0x368] sm:$0xff] }
  0x62   : > { %827 = vst [vmem:[#allocation3 + $0x2a8] sm:$0xff] %v826_v62  ;;  %v954_v62 = vld [vmem:[%s12584_s13 + $0x370] sm:$0xff] }
  0x63   : > { %829 = vst [vmem:[#allocation3 + $0x3e0] sm:$0xff] %v828_v63  ;;  %v956_v63 = vld [vmem:[%s12584_s13 + $0x378] sm:$0xff] }
  0x64   : > { %831 = vst [vmem:[#allocation3 + $0x3d8] sm:$0xff] %v830_v0  ;;  %v958_v0 = vld [vmem:[%s12584_s13 + $0x380] sm:$0xff] }
  0x65   : > { %833 = vst [vmem:[#allocation3 + $0x4b0] sm:$0xff] %v832_v1  ;;  %v960_v1 = vld [vmem:[%s12584_s13 + $0x388] sm:$0xff] }
  0x66   : > { %835 = vst [vmem:[#allocation3 + $0x28] sm:$0xff] %v834_v2  ;;  %v962_v2 = vld [vmem:[%s12584_s13 + $0x390] sm:$0xff] }
  0x67   : > { %837 = vst [vmem:[#allocation3 + $0xf8] sm:$0xff] %v836_v3  ;;  %v964_v3 = vld [vmem:[%s12584_s13 + $0x398] sm:$0xff] }
  0x68   : > { %839 = vst [vmem:[#allocation3 + $0x4e8] sm:$0xff] %v838_v4  ;;  %v966_v4 = vld [vmem:[%s12584_s13 + $0x3a0] sm:$0xff] }
  0x69   : > { %841 = vst [vmem:[#allocation3 + $0x120] sm:$0xff] %v840_v5  ;;  %v968_v5 = vld [vmem:[%s12584_s13 + $0x3a8] sm:$0xff] }
  0x6a   : > { %843 = vst [vmem:[#allocation3 + $0x2f8] sm:$0xff] %v842_v6  ;;  %v970_v6 = vld [vmem:[%s12584_s13 + $0x3b0] sm:$0xff] }
  0x6b   : > { %845 = vst [vmem:[#allocation3 + $0x268] sm:$0xff] %v844_v7  ;;  %v972_v7 = vld [vmem:[%s12584_s13 + $0x3b8] sm:$0xff] }
  0x6c   : > { %847 = vst [vmem:[#allocation3 + $0x560] sm:$0xff] %v846_v8  ;;  %v974_v8 = vld [vmem:[%s12584_s13 + $0x3c0] sm:$0xff] }
  0x6d   : > { %849 = vst [vmem:[#allocation3 + $0x4f8] sm:$0xff] %v848_v9  ;;  %v976_v9 = vld [vmem:[%s12584_s13 + $0x3c8] sm:$0xff] }
  0x6e   : > { %851 = vst [vmem:[#allocation3 + $0x2e8] sm:$0xff] %v850_v10  ;;  %v978_v10 = vld [vmem:[%s12584_s13 + $0x3d0] sm:$0xff] }
  0x6f   : > { %853 = vst [vmem:[#allocation3 + $0x370] sm:$0xff] %v852_v11  ;;  %v980_v11 = vld [vmem:[%s12584_s13 + $0x3d8] sm:$0xff] }
  0x70   : > { %855 = vst [vmem:[#allocation3 + $0x138] sm:$0xff] %v854_v12  ;;  %v982_v12 = vld [vmem:[%s12584_s13 + $0x3e0] sm:$0xff] }
  0x71   : > { %857 = vst [vmem:[#allocation3 + $0x308] sm:$0xff] %v856_v13  ;;  %v984_v13 = vld [vmem:[%s12584_s13 + $0x3e8] sm:$0xff] }
  0x72   : > { %859 = vst [vmem:[#allocation3 + $0x528] sm:$0xff] %v858_v14  ;;  %v986_v14 = vld [vmem:[%s12584_s13 + $0x3f0] sm:$0xff] }
  0x73   : > { %861 = vst [vmem:[#allocation3 + $0x1c0] sm:$0xff] %v860_v15  ;;  %v988_v15 = vld [vmem:[%s12584_s13 + $0x3f8] sm:$0xff] }
  0x74   : > { %863 = vst [vmem:[#allocation3 + $0x5d0] sm:$0xff] %v862_v16  ;;  %v990_v16 = vld [vmem:[%s12584_s13 + $0x400] sm:$0xff] }
  0x75   : > { %865 = vst [vmem:[#allocation3 + $0x260] sm:$0xff] %v864_v17  ;;  %v992_v17 = vld [vmem:[%s12584_s13 + $0x408] sm:$0xff] }
  0x76   : > { %867 = vst [vmem:[#allocation3 + $0x438] sm:$0xff] %v866_v18  ;;  %v994_v18 = vld [vmem:[%s12584_s13 + $0x410] sm:$0xff] }
  0x77   : > { %869 = vst [vmem:[#allocation3 + $0xf0] sm:$0xff] %v868_v19  ;;  %v996_v19 = vld [vmem:[%s12584_s13 + $0x418] sm:$0xff] }
  0x78   : > { %871 = vst [vmem:[#allocation3 + $0x60] sm:$0xff] %v870_v20  ;;  %v998_v20 = vld [vmem:[%s12584_s13 + $0x420] sm:$0xff] }
  0x79   : > { %873 = vst [vmem:[#allocation3 + $0x200] sm:$0xff] %v872_v21  ;;  %v1000_v21 = vld [vmem:[%s12584_s13 + $0x428] sm:$0xff] }
  0x7a   : > { %875 = vst [vmem:[#allocation3 + $0x80] sm:$0xff] %v874_v22  ;;  %v1002_v22 = vld [vmem:[%s12584_s13 + $0x430] sm:$0xff] }
  0x7b   : > { %877 = vst [vmem:[#allocation3 + $0x5a0] sm:$0xff] %v876_v23  ;;  %v1004_v23 = vld [vmem:[%s12584_s13 + $0x438] sm:$0xff] }
  0x7c   : > { %879 = vst [vmem:[#allocation3 + $0x4b8] sm:$0xff] %v878_v24  ;;  %v1006_v24 = vld [vmem:[%s12584_s13 + $0x440] sm:$0xff] }
  0x7d   : > { %881 = vst [vmem:[#allocation3 + $0x310] sm:$0xff] %v880_v25  ;;  %v1008_v25 = vld [vmem:[%s12584_s13 + $0x448] sm:$0xff] }
  0x7e   : > { %883 = vst [vmem:[#allocation3 + $0x1e8] sm:$0xff] %v882_v26  ;;  %v1010_v26 = vld [vmem:[%s12584_s13 + $0x450] sm:$0xff] }
  0x7f   : > { %885 = vst [vmem:[#allocation3 + $0x258] sm:$0xff] %v884_v27  ;;  %v1012_v27 = vld [vmem:[%s12584_s13 + $0x458] sm:$0xff] }
  0x80   : > { %887 = vst [vmem:[#allocation3 + $0x40] sm:$0xff] %v886_v28  ;;  %v1014_v28 = vld [vmem:[%s12584_s13 + $0x460] sm:$0xff] }
  0x81   : > { %889 = vst [vmem:[#allocation3 + $0x4e0] sm:$0xff] %v888_v29  ;;  %v1016_v29 = vld [vmem:[%s12584_s13 + $0x468] sm:$0xff] }
  0x82   : > { %891 = vst [vmem:[#allocation3 + $0x198] sm:$0xff] %v890_v30  ;;  %v1018_v30 = vld [vmem:[%s12584_s13 + $0x470] sm:$0xff] }
  0x83   : > { %893 = vst [vmem:[#allocation3 + $0x550] sm:$0xff] %v892_v31  ;;  %v1020_v31 = vld [vmem:[%s12584_s13 + $0x478] sm:$0xff] }
  0x84   : > { %895 = vst [vmem:[#allocation3 + $0x418] sm:$0xff] %v894_v32  ;;  %v1022_v32 = vld [vmem:[%s12584_s13 + $0x480] sm:$0xff] }
  0x85   : > { %897 = vst [vmem:[#allocation3 + $0x5c8] sm:$0xff] %v896_v33  ;;  %v1024_v33 = vld [vmem:[%s12584_s13 + $0x488] sm:$0xff] }
  0x86   : > { %899 = vst [vmem:[#allocation3 + $0x340] sm:$0xff] %v898_v34  ;;  %v1026_v34 = vld [vmem:[%s12584_s13 + $0x490] sm:$0xff] }
  0x87   : > { %901 = vst [vmem:[#allocation3 + $0x360] sm:$0xff] %v900_v35  ;;  %v1028_v35 = vld [vmem:[%s12584_s13 + $0x498] sm:$0xff] }
  0x88   : > { %903 = vst [vmem:[#allocation3 + $0x3b8] sm:$0xff] %v902_v36  ;;  %v1030_v36 = vld [vmem:[%s12584_s13 + $0x4a0] sm:$0xff] }
  0x89   : > { %905 = vst [vmem:[#allocation3 + $0x530] sm:$0xff] %v904_v37  ;;  %v1032_v37 = vld [vmem:[%s12584_s13 + $0x4a8] sm:$0xff] }
  0x8a   : > { %907 = vst [vmem:[#allocation3 + $0x1f0] sm:$0xff] %v906_v38  ;;  %v1034_v38 = vld [vmem:[%s12584_s13 + $0x4b0] sm:$0xff] }
  0x8b   : > { %909 = vst [vmem:[#allocation3 + $0x3a0] sm:$0xff] %v908_v39  ;;  %v1036_v39 = vld [vmem:[%s12584_s13 + $0x4b8] sm:$0xff] }
  0x8c   : > { %911 = vst [vmem:[#allocation3 + $0x460] sm:$0xff] %v910_v40  ;;  %v1038_v40 = vld [vmem:[%s12584_s13 + $0x4c0] sm:$0xff] }
  0x8d   : > { %913 = vst [vmem:[#allocation3 + $0x2c8] sm:$0xff] %v912_v41  ;;  %v1040_v41 = vld [vmem:[%s12584_s13 + $0x4c8] sm:$0xff] }
  0x8e   : > { %915 = vst [vmem:[#allocation3 + $0x1d0] sm:$0xff] %v914_v42  ;;  %v1042_v42 = vld [vmem:[%s12584_s13 + $0x4d0] sm:$0xff] }
  0x8f   : > { %917 = vst [vmem:[#allocation3 + $0x4f0] sm:$0xff] %v916_v43  ;;  %v1044_v43 = vld [vmem:[%s12584_s13 + $0x4d8] sm:$0xff] }
  0x90   : > { %919 = vst [vmem:[#allocation3 + $0x50] sm:$0xff] %v918_v44  ;;  %v1046_v44 = vld [vmem:[%s12584_s13 + $0x4e0] sm:$0xff] }
  0x91   : > { %921 = vst [vmem:[#allocation3 + $0x4a0] sm:$0xff] %v920_v45  ;;  %v1048_v45 = vld [vmem:[%s12584_s13 + $0x4e8] sm:$0xff] }
  0x92   : > { %923 = vst [vmem:[#allocation3 + $0x468] sm:$0xff] %v922_v46  ;;  %v1050_v46 = vld [vmem:[%s12584_s13 + $0x4f0] sm:$0xff] }
  0x93   : > { %925 = vst [vmem:[#allocation3 + $0x278] sm:$0xff] %v924_v47  ;;  %v1052_v47 = vld [vmem:[%s12584_s13 + $0x4f8] sm:$0xff] }
  0x94   : > { %927 = vst [vmem:[#allocation3 + $0x458] sm:$0xff] %v926_v48  ;;  %v1054_v48 = vld [vmem:[%s12584_s13 + $0x500] sm:$0xff] }
  0x95   : > { %929 = vst [vmem:[#allocation3 + $0x498] sm:$0xff] %v928_v49  ;;  %v1056_v49 = vld [vmem:[%s12584_s13 + $0x508] sm:$0xff] }
  0x96   : > { %931 = vst [vmem:[#allocation3 + $0x400] sm:$0xff] %v930_v50  ;;  %v1058_v50 = vld [vmem:[%s12584_s13 + $0x510] sm:$0xff] }
  0x97   : > { %933 = vst [vmem:[#allocation3 + $0x5d8] sm:$0xff] %v932_v51  ;;  %v1060_v51 = vld [vmem:[%s12584_s13 + $0x518] sm:$0xff] }
  0x98   : > { %935 = vst [vmem:[#allocation3 + $0xe8] sm:$0xff] %v934_v52  ;;  %v1062_v52 = vld [vmem:[%s12584_s13 + $0x520] sm:$0xff] }
  0x99   : > { %937 = vst [vmem:[#allocation3 + $0x160] sm:$0xff] %v936_v53  ;;  %v1064_v53 = vld [vmem:[%s12584_s13 + $0x528] sm:$0xff] }
  0x9a   : > { %939 = vst [vmem:[#allocation3 + $0x178] sm:$0xff] %v938_v54  ;;  %v1066_v54 = vld [vmem:[%s12584_s13 + $0x530] sm:$0xff] }
  0x9b   : > { %941 = vst [vmem:[#allocation3 + $0x538] sm:$0xff] %v940_v55  ;;  %v1068_v55 = vld [vmem:[%s12584_s13 + $0x538] sm:$0xff] }
  0x9c   : > { %943 = vst [vmem:[#allocation3 + $0x1e0] sm:$0xff] %v942_v56  ;;  %v1070_v56 = vld [vmem:[%s12584_s13 + $0x540] sm:$0xff] }
  0x9d   : > { %945 = vst [vmem:[#allocation3 + $0x390] sm:$0xff] %v944_v57  ;;  %v1072_v57 = vld [vmem:[%s12584_s13 + $0x548] sm:$0xff] }
  0x9e   : > { %947 = vst [vmem:[#allocation3 + $0x2c0] sm:$0xff] %v946_v58  ;;  %v1074_v58 = vld [vmem:[%s12584_s13 + $0x550] sm:$0xff] }
  0x9f   : > { %949 = vst [vmem:[#allocation3 + $0x228] sm:$0xff] %v948_v59  ;;  %v1076_v59 = vld [vmem:[%s12584_s13 + $0x558] sm:$0xff] }
  0xa0   : > { %951 = vst [vmem:[#allocation3 + $0x5b0] sm:$0xff] %v950_v60  ;;  %v1078_v60 = vld [vmem:[%s12584_s13 + $0x560] sm:$0xff] }
  0xa1   : > { %953 = vst [vmem:[#allocation3 + $0xc0] sm:$0xff] %v952_v61  ;;  %v1080_v61 = vld [vmem:[%s12584_s13 + $0x568] sm:$0xff] }
  0xa2   : > { %955 = vst [vmem:[#allocation3 + $0xd8] sm:$0xff] %v954_v62  ;;  %v1082_v62 = vld [vmem:[%s12584_s13 + $0x570] sm:$0xff] }
  0xa3   : > { %957 = vst [vmem:[#allocation3 + $0x428] sm:$0xff] %v956_v63  ;;  %v1084_v63 = vld [vmem:[%s12584_s13 + $0x578] sm:$0xff] }
  0xa4   : > { %959 = vst [vmem:[#allocation3 + $0x30] sm:$0xff] %v958_v0  ;;  %v1086_v0 = vld [vmem:[%s12584_s13 + $0x580] sm:$0xff] }
  0xa5   : > { %961 = vst [vmem:[#allocation3 + $0x410] sm:$0xff] %v960_v1  ;;  %v1088_v1 = vld [vmem:[%s12584_s13 + $0x588] sm:$0xff] }
  0xa6   : > { %963 = vst [vmem:[#allocation3 + $0x208] sm:$0xff] %v962_v2  ;;  %v1090_v2 = vld [vmem:[%s12584_s13 + $0x590] sm:$0xff] }
  0xa7   : > { %965 = vst [vmem:[#allocation3 + $0x4a8] sm:$0xff] %v964_v3  ;;  %v1092_v3 = vld [vmem:[%s12584_s13 + $0x598] sm:$0xff] }
  0xa8   : > { %967 = vst [vmem:[#allocation3 + $0x5b8] sm:$0xff] %v966_v4  ;;  %v1094_v4 = vld [vmem:[%s12584_s13 + $0x5a0] sm:$0xff] }
  0xa9   : > { %969 = vst [vmem:[#allocation3 + $0x218] sm:$0xff] %v968_v5  ;;  %v1096_v5 = vld [vmem:[%s12584_s13 + $0x5a8] sm:$0xff] }
  0xaa   : > { %971 = vst [vmem:[#allocation3 + $0x368] sm:$0xff] %v970_v6  ;;  %v1098_v6 = vld [vmem:[%s12584_s13 + $0x5b0] sm:$0xff] }
  0xab   : > { %973 = vst [vmem:[#allocation3 + $0x298] sm:$0xff] %v972_v7  ;;  %v1100_v7 = vld [vmem:[%s12584_s13 + $0x5b8] sm:$0xff] }
  0xac   : > { %975 = vst [vmem:[#allocation3 + $0x420] sm:$0xff] %v974_v8  ;;  %v1102_v8 = vld [vmem:[%s12584_s13 + $0x5c0] sm:$0xff] }
  0xad   : > { %977 = vst [vmem:[#allocation3 + $0x88] sm:$0xff] %v976_v9  ;;  %v1104_v9 = vld [vmem:[%s12584_s13 + $0x5c8] sm:$0xff] }
  0xae   : > { %979 = vst [vmem:[#allocation3 + $0x130] sm:$0xff] %v978_v10  ;;  %v1106_v10 = vld [vmem:[%s12584_s13 + $0x5d0] sm:$0xff] }
  0xaf   : > { %981 = vst [vmem:[#allocation3 + $0x5f0] sm:$0xff] %v980_v11  ;;  %v1108_v11 = vld [vmem:[%s12584_s13 + $0x5d8] sm:$0xff] }
  0xb0   : > { %983 = vst [vmem:[#allocation3 + $0x230] sm:$0xff] %v982_v12  ;;  %v1110_v12 = vld [vmem:[%s12584_s13 + $0x5e0] sm:$0xff] }
  0xb1   : > { %985 = vst [vmem:[#allocation3 + $0x2e0] sm:$0xff] %v984_v13  ;;  %v1112_v13 = vld [vmem:[%s12584_s13 + $0x5e8] sm:$0xff] }
  0xb2   : > { %987 = vst [vmem:[#allocation3 + $0x110] sm:$0xff] %v986_v14  ;;  %v1114_v14 = vld [vmem:[%s12584_s13 + $0x5f0] sm:$0xff] }
  0xb3   : > { %989 = vst [vmem:[#allocation3 + $0xa8] sm:$0xff] %v988_v15  ;;  %v1116_v15 = vld [vmem:[%s12584_s13 + $0x5f8] sm:$0xff] }
  0xb4   : > { %991 = vst [vmem:[#allocation3 + $0x190] sm:$0xff] %v990_v16 }
  0xb5   : > { %993 = vst [vmem:[#allocation3 + $0x1a8] sm:$0xff] %v992_v17 }
  0xb6   : > { %995 = vst [vmem:[#allocation3 + $0x398] sm:$0xff] %v994_v18 }
  0xb7   : > { %997 = vst [vmem:[#allocation3 + $0x470] sm:$0xff] %v996_v19 }
  0xb8   : > { %999 = vst [vmem:[#allocation3 + $0xe0] sm:$0xff] %v998_v20 }
  0xb9   : > { %1001 = vst [vmem:[#allocation3 + $0xd0] sm:$0xff] %v1000_v21 }
  0xba   : > { %1003 = vst [vmem:[#allocation3 + $0x38] sm:$0xff] %v1002_v22 }
  0xbb   : > { %1005 = vst [vmem:[#allocation3 + $0x240] sm:$0xff] %v1004_v23 }
  0xbc   : > { %1007 = vst [vmem:[#allocation3 + $0x280] sm:$0xff] %v1006_v24 }
  0xbd   : > { %1009 = vst [vmem:[#allocation3 + $0x518] sm:$0xff] %v1008_v25 }
  0xbe   : > { %1011 = vst [vmem:[#allocation3 + $0x148] sm:$0xff] %v1010_v26 }
  0xbf   : > { %1013 = vst [vmem:[#allocation3 + $0x508] sm:$0xff] %v1012_v27 }
  0xc0   : > { %1015 = vst [vmem:[#allocation3 + $0x3d0] sm:$0xff] %v1014_v28 }
  0xc1   : > { %1017 = vst [vmem:[#allocation3 + $0x68] sm:$0xff] %v1016_v29 }
  0xc2   : > { %1019 = vst [vmem:[#allocation3 + $0x358] sm:$0xff] %v1018_v30 }
  0xc3   : > { %1021 = vst [vmem:[#allocation3 + $0x70] sm:$0xff] %v1020_v31 }
  0xc4   : > { %1023 = vst [vmem:[#allocation3 + $0xb8] sm:$0xff] %v1022_v32 }
  0xc5   : > { %1025 = vst [vmem:[#allocation3 + $0x10] sm:$0xff] %v1024_v33 }
  0xc6   : > { %1027 = vst [vmem:[#allocation3 + $0x20] sm:$0xff] %v1026_v34 }
  0xc7   : > { %1029 = vst [vmem:[#allocation3 + $0x78] sm:$0xff] %v1028_v35 }
  0xc8   : > { %1031 = vst [vmem:[#allocation3 + $0x210] sm:$0xff] %v1030_v36 }
  0xc9   : > { %1033 = vst [vmem:[#allocation3 + $0x558] sm:$0xff] %v1032_v37 }
  0xca   : > { %1035 = vst [vmem:[#allocation3 + $0x588] sm:$0xff] %v1034_v38 }
  0xcb   : > { %1037 = vst [vmem:[#allocation3 + $0x48] sm:$0xff] %v1036_v39 }
  0xcc   : > { %1039 = vst [vmem:[#allocation3 + $0x118] sm:$0xff] %v1038_v40 }
  0xcd   : > { %1041 = vst [vmem:[#allocation3 + $0x478] sm:$0xff] %v1040_v41 }
  0xce   : > { %1043 = vst [vmem:[#allocation3 + $0x3f8] sm:$0xff] %v1042_v42 }
  0xcf   : > { %1045 = vst [vmem:[#allocation3 + $0x380] sm:$0xff] %v1044_v43 }
  0xd0   : > { %1047 = vst [vmem:[#allocation3 + $0x578] sm:$0xff] %v1046_v44 }
  0xd1   : > { %1049 = vst [vmem:[#allocation3 + $0x170] sm:$0xff] %v1048_v45 }
  0xd2   : > { %1051 = vst [vmem:[#allocation3 + $0x1a0] sm:$0xff] %v1050_v46 }
  0xd3   : > { %1053 = vst [vmem:[#allocation3 + $0x288] sm:$0xff] %v1052_v47 }
  0xd4   : > { %1055 = vst [vmem:[#allocation3 + $0x140] sm:$0xff] %v1054_v48 }
  0xd5   : > { %1057 = vst [vmem:[#allocation3 + $0x300] sm:$0xff] %v1056_v49 }
  0xd6   : > { %1059 = vst [vmem:[#allocation3] sm:$0xff] %v1058_v50 }
  0xd7   : > { %1061 = vst [vmem:[#allocation3 + $0x320] sm:$0xff] %v1060_v51 }
  0xd8   : > { %1063 = vst [vmem:[#allocation3 + $0x158] sm:$0xff] %v1062_v52 }
  0xd9   : > { %1065 = vst [vmem:[#allocation3 + $0x348] sm:$0xff] %v1064_v53 }
  0xda   : > { %1067 = vst [vmem:[#allocation3 + $0x2d8] sm:$0xff] %v1066_v54 }
  0xdb   : > { %1069 = vst [vmem:[#allocation3 + $0x168] sm:$0xff] %v1068_v55 }
  0xdc   : > { %1071 = vst [vmem:[#allocation3 + $0x1c8] sm:$0xff] %v1070_v56 }
  0xdd   : > { %1073 = vst [vmem:[#allocation3 + $0xa0] sm:$0xff] %v1072_v57 }
  0xde   : > { %1075 = vst [vmem:[#allocation3 + $0x408] sm:$0xff] %v1074_v58 }
  0xdf   : > { %1077 = vst [vmem:[#allocation3 + $0x5f8] sm:$0xff] %v1076_v59 }
  0xe0   : > { %1079 = vst [vmem:[#allocation3 + $0x270] sm:$0xff] %v1078_v60 }
  0xe1   : > { %1081 = vst [vmem:[#allocation3 + $0x250] sm:$0xff] %v1080_v61 }
  0xe2   : > { %1083 = vst [vmem:[#allocation3 + $0x2d0] sm:$0xff] %v1082_v62 }
  0xe3   : > { %1085 = vst [vmem:[#allocation3 + $0x1b8] sm:$0xff] %v1084_v63 }
  0xe4   : > { %1087 = vst [vmem:[#allocation3 + $0x150] sm:$0xff] %v1086_v0 }
  0xe5   : > { %1089 = vst [vmem:[#allocation3 + $0x1b0] sm:$0xff] %v1088_v1 }
  0xe6   : > { %1091 = vst [vmem:[#allocation3 + $0x220] sm:$0xff] %v1090_v2 }
  0xe7   : > { %1093 = vst [vmem:[#allocation3 + $0x1d8] sm:$0xff] %v1092_v3 }
  0xe8   : > { %1095 = vst [vmem:[#allocation3 + $0x3e8] sm:$0xff] %v1094_v4 }
  0xe9   : > { %1097 = vst [vmem:[#allocation3 + $0x448] sm:$0xff] %v1096_v5 }
  0xea   : > { %1099 = vst [vmem:[#allocation3 + $0x430] sm:$0xff] %v1098_v6 }
  0xeb   : > { %1101 = vst [vmem:[#allocation3 + $0x180] sm:$0xff] %v1100_v7 }
  0xec   : > { %1103 = vst [vmem:[#allocation3 + $0x350] sm:$0xff] %v1102_v8 }
  0xed   : > { %1105 = vst [vmem:[#allocation3 + $0x4c0] sm:$0xff] %v1104_v9 }
  0xee   : > { %1107 = vst [vmem:[#allocation3 + $0x128] sm:$0xff] %v1106_v10 }
  0xef   : > { %1109 = vst [vmem:[#allocation3 + $0x3f0] sm:$0xff] %v1108_v11 }
  0xf0   : > { %1111 = vst [vmem:[#allocation3 + $0x238] sm:$0xff] %v1110_v12 }
  0xf1   : > { %1113 = vst [vmem:[#allocation3 + $0x290] sm:$0xff] %v1112_v13 }
  0xf2   : > { %1115 = vst [vmem:[#allocation3 + $0x568] sm:$0xff] %v1114_v14 }
  0xf3   : > { %1117 = vst [vmem:[#allocation3 + $0x90] sm:$0xff] %v1116_v15 }
  0xf4   : > { %1123 = vsyncadd [#allocation4], 24576 }
  0xf5 PF: > { %v1146_v16 = vld [vmem:[%s8563_s23 + $0x30] sm:$0x1]  ;;  %vm1206_vm1 = vcmask 1040384   ;;  %v1143_v17 = vld [vmem:[%s8563_s23 + $0x18] sm:$0xff]  ;;  %v1140_v18 = vld [vmem:[%s8563_s23] sm:$0xff]  ;;  %vm1157_vm2 = vcmask 138240   ;;  %s12627_s28 = scalar_lea.vmem %s12577_s6, %s8548_s26  ;;  %s12860_s4 = scalar_lea.vmem %s12581_s10, %s8548_s26 }
  0xf6   : > { %8213 = vmatpush.msk.msra.mxu1 %vm1206_vm1, %v1146_v16  ;;  %7740 = vmatpush.msk.msra.mxu0 %vm1206_vm1, %v1146_v16  ;;  %v9257_v19 = vld [vmem:[#allocation2 + $0x30] sm:$0xff]  ;;  %v9260_v21 = vld [vmem:[#allocation2] sm:$0xff]  ;;  %v1144_v22 = vld [vmem:[%s8563_s23 + $0x20] sm:$0xff]  ;;  %vm1543_vm3 = vcmask 261120   ;;  %s12625_s27 = sld [smem:[#allocation195_spill]]  ;;  %p8079_p5 = scmp.ne.s32.totalorder %s8542_s25, 1 }
  0xf7   : > { %8214 = vmatpush.msk.msra.mxu2 %vm1206_vm1, %v1146_v16  ;;  %8215 = vmatpush.msk.msra.mxu3 %vm1206_vm1, %v1146_v16  ;;  %v1147_v20 = vld [vmem:[%s8563_s23 + $0x38] sm:$0x1]  ;;  %v1141_v23 = vld [vmem:[%s8563_s23 + $0x8] sm:$0xff]  ;;  %v9269_v24 = vld [vmem:[#allocation2 + $0x38] sm:$0xff] }
  0xf8   : > { %8216 = vmatpush.msra.mxu1 %v1143_v17  ;;  %1230 = vmatpush.msra.mxu0 %v1143_v17  ;;  %v9271_v25 = vld [vmem:[#allocation2 + $0x8] sm:$0xff]  ;;  %v9277_v26 = vld [vmem:[#allocation2 + $0x40] sm:$0xff]  ;;  %v9279_v27 = vld [vmem:[#allocation2 + $0x10] sm:$0xff] }
  0xf9   : > { %8217 = vmatpush.msra.mxu2 %v1143_v17  ;;  %8218 = vmatpush.msra.mxu3 %v1143_v17  ;;  %v9285_v28 = vld [vmem:[#allocation2 + $0x48] sm:$0xff]  ;;  %v9287_v29 = vld [vmem:[#allocation2 + $0x18] sm:$0xff]  ;;  %v9293_v30 = vld [vmem:[#allocation2 + $0x20] sm:$0xff] }
  0xfa   : > { %8219 = vmatpush.msra.mxu1 %v1140_v18  ;;  %1231 = vmatpush.msra.mxu0 %v1140_v18  ;;  %v9299_v31 = vld [vmem:[#allocation2 + $0x28] sm:$0xff]  ;;  %v9313_v32 = vld [vmem:[#allocation2 + $0x50] sm:$0xff]  ;;  %v9319_v33 = vld [vmem:[#allocation2 + $0x58] sm:$0xff] }
  0xfb   : > { %7747 = vmatmul.msk.f32.vlgmr.msra.gmra.mxu1 %vm1157_vm2, %v9257_v19  ;;  %7741 = vmatmul.msk.f32.vlgmr.msra.gmra.mxu0 %vm1157_vm2, %v9260_v21  ;;  %v9327_v34 = vld [vmem:[#allocation2 + $0x60] sm:$0xff]  ;;  %v9333_v35 = vld [vmem:[#allocation2 + $0x68] sm:$0xff]  ;;  %v9339_v36 = vld [vmem:[#allocation2 + $0x70] sm:$0xff] }
  0xfc   : > { %7757 = vmatpush.msk.msrb.mxu1 %vm1206_vm1, %v1147_v20  ;;  %8220 = vmatpush.msra.mxu2 %v1140_v18  ;;  %v9345_v38 = vld [vmem:[#allocation2 + $0x78] sm:$0xff]  ;;  %s12626_s22 = scalar_lea.vmem %s12625_s27, %s8548_s26 }
  0xfd   : > { %8221 = vmatpush.msra.mxu3 %v1140_v18  ;;  %7751 = vmatmul.msk.f32.vlgmr.msra.gmra.mxu2 %vm1157_vm2, %v9313_v32  ;;  %v9362_v45 = vld [vmem:[%s8569_s14] sm:$0x7] }
  0xfe   : > { %1295 = vmatpush.msrb.mxu1 %v1144_v22  ;;  %7755 = vmatmul.msk.f32.vlgmr.msra.gmra.mxu3 %vm1157_vm2, %v9339_v36  ;;  %v9365_v46 = vperm.slane %v9362_v45, 1  ;;  %v9371_v54 = vperm.slane %v9362_v45, 0 }
 0x100   : > { %1296 = vmatpush.msrb.mxu1 %v1141_v23 }
 0x103   : > { %7748 = vmatmul.msk.f32.gmra.mxu1 %vm1157_vm2, %v9269_v24  ;;  %7742 = vmatmul.msk.f32.gmra.mxu0 %vm1157_vm2, %v9271_v25 }
 0x105   : > { %7752 = vmatmul.msk.f32.gmra.mxu2 %vm1157_vm2, %v9319_v33 }
 0x106   : > { %7756 = vmatmul.msk.f32.gmra.mxu3 %vm1157_vm2, %v9345_v38 }
 0x10b   : > { %7749 = vmatmul.msk.f32.gmra.mxu1 %vm1157_vm2, %v9277_v26  ;;  %7743 = vmatmul.msk.f32.gmra.mxu0 %vm1157_vm2, %v9279_v27 }
 0x10d   : > { %7753 = vmatmul.msk.f32.gmra.mxu2 %vm1157_vm2, %v9327_v34 }
 0x113   : > { %7750 = vmatmul.msk.f32.gmra.mxu1 %vm1157_vm2, %v9285_v28  ;;  %7744 = vmatmul.msk.f32.gmra.mxu0 %vm1157_vm2, %v9287_v29 }
 0x115   : > { %7754 = vmatmul.msk.f32.gmra.mxu2 %vm1157_vm2, %v9333_v35 }
 0x11b   : > { %7758 = vmatmul.msk.f32.vlgmr.msrb.gmra.mxu1 %vm1157_vm2, %v9260_v21  ;;  %7745 = vmatmul.msk.f32.gmra.mxu0 %vm1157_vm2, %v9293_v30 }
 0x123   : > { %7759 = vmatmul.msk.f32.gmra.mxu1 %vm1157_vm2, %v9271_v25  ;;  %7746 = vmatmul.msk.f32.gmra.mxu0 %vm1157_vm2, %v9299_v31 }
 0x12b   : > { %7760 = vmatmul.msk.f32.gmra.mxu1 %vm1157_vm2, %v9279_v27 }
 0x133   : > { %7761 = vmatmul.msk.f32.gmra.mxu1 %vm1157_vm2, %v9287_v29 }
 0x13b   : > { %7762 = vmatmul.msk.f32.gmra.mxu1 %vm1157_vm2, %v9293_v30 }
 0x143   : > { %7763 = vmatmul.msk.f32.gmra.mxu1 %vm1157_vm2, %v9299_v31 }
 0x14b   : > { %7764 = vmatmul.msk.f32.gmra.mxu1 %vm1157_vm2, %v9257_v19 }
 0x153   : > { %7765 = vmatmul.msk.f32.gmra.mxu1 %vm1157_vm2, %v9269_v24 }
 0x15b   : > { %7766 = vmatmul.msk.f32.gmra.mxu1 %vm1157_vm2, %v9277_v26 }
 0x163   : > { %7767 = vmatmul.msk.f32.gmra.mxu1 %vm1157_vm2, %v9285_v28 }
 0x16b   : > { %7768 = vmatmul.msk.f32.gmra.mxu1 %vm1157_vm2, %v9313_v32 }
 0x173   : > { %7769 = vmatmul.msk.f32.gmra.mxu1 %vm1157_vm2, %v9319_v33 }
 0x178   : > { %v1251_v37 = vpop.f32.mrf.mxu1  ;;  %v1233_v49 = vpop.f32.mrf.mxu0 }
 0x179   : > { %v1234_v56 = vadd.f32 %v1233_v49, %v9371_v54  ;;  %v1252_v13 = vadd.f32 %v1251_v37, %v9371_v54 }
 0x17b   : > { %7770 = vmatmul.msk.f32.gmra.mxu1 %vm1157_vm2, %v9327_v34 }
 0x180   : > { %v1254_v39 = vpop.f32.mrf.mxu1  ;;  %v1236_v53 = vpop.f32.mrf.mxu0 }
 0x181   : > { %v1237_v59 = vadd.f32 %v1236_v53, %v9371_v54  ;;  %v1255_v17 = vadd.f32 %v1254_v39, %v9371_v54  ;;  %v1263_v37 = vpop.f32.mrf.mxu2 }
 0x183   : > { %7771 = vmatmul.msk.f32.gmra.mxu1 %vm1157_vm2, %v9333_v35 }
 0x188   : > { %v9353_v40 = vpop.f32.mrf.mxu1  ;;  %v1239_v58 = vpop.f32.mrf.mxu0 }
 0x189   : > { %v1240_v61 = vadd.f32 %v1239_v58, %v9371_v54  ;;  %v1258_v22 = vadd.f32 %v9353_v40, %v9371_v54 }
 0x18b   : > { %7772 = vmatmul.msk.f32.gmra.mxu1 %vm1157_vm2, %v9339_v36 }
 0x190   : > { %v9357_v41 = vpop.f32.mrf.mxu1  ;;  %v1242_v62 = vpop.f32.mrf.mxu0 }
 0x191   : > { %v1243_v2 = vadd.f32 %v1242_v62, %v9371_v54 }
 0x193   : > { %7773 = vmatmul.msk.f32.gmra.mxu1 %vm1157_vm2, %v9345_v38 }
 0x198   : > { %v1298_v42 = vpop.f32.mrf.mxu1  ;;  %v1245_v5 = vpop.f32.mrf.mxu0 }
 0x199   : > { %v1299_v55 = vadd.f32 %v1298_v42, %v9365_v46  ;;  %v1246_v7 = vadd.f32 %v1245_v5, %v9371_v54  ;;  %v1261_v42 = vadd.f32 %v9357_v41, %v9371_v54 }
 0x1a0   : > { %v1301_v43 = vpop.f32.mrf.mxu1  ;;  %v1248_v9 = vpop.f32.mrf.mxu0 }
 0x1a1   : > { %v1302_v52 = vadd.f32 %v1301_v43, %v9365_v46  ;;  %v1249_v10 = vadd.f32 %v1248_v9, %v9371_v54 }
 0x1a8   : > { %v1304_v44 = vpop.f32.mrf.mxu1 }
 0x1a9   : > { %v1305_v50 = vadd.f32 %v1304_v44, %v9365_v46  ;;  %v1264_v44 = vadd.f32 %v1263_v37, %v9371_v54 }
 0x1b0   : > { %v1307_v47 = vpop.f32.mrf.mxu1 }
 0x1b1   : > { %v1308_v48 = vadd.f32 %v1307_v47, %v9365_v46  ;;  %v1266_v47 = vpop.f32.mrf.mxu2 }
 0x1b2   : > { %v1267_v40 = vadd.f32 %v1266_v47, %v9371_v54 }
 0x1b3   : > { %1423 = vmatpush.xpose.msrb.mxu3 %v1308_v48 }
 0x1b7   : > { %1424 = vmatpush.xpose.msrb.mxu3 %v1305_v50 }
 0x1b8   : > { %v1310_v51 = vpop.f32.mrf.mxu1 }
 0x1b9   : > { %v1311_v6 = vadd.f32 %v1310_v51, %v9365_v46  ;;  %v1269_v41 = vpop.f32.mrf.mxu2 }
 0x1bb   : > { %1425 = vmatpush.xpose.msrb.mxu3 %v1302_v52  ;;  %v1270_v52 = vadd.f32 %v1269_v41, %v9371_v54 }
 0x1bf   : > { %1426 = vmatpush.xpose.msrb.mxu3 %v1299_v55 }
 0x1c0   : > { %v1313_v57 = vpop.f32.mrf.mxu1 }
 0x1c1   : > { %v1314_v4 = vadd.f32 %v1313_v57, %v9365_v46  ;;  %v1272_v53 = vpop.f32.mrf.mxu2 }
 0x1c2   : > { %1427 = vmatmul.f32.vlgmr.msrb.gmra.mxu3 %v1234_v56  ;;  %v1273_v55 = vadd.f32 %v1272_v53, %v9371_v54  ;;  %v1275_v56 = vpop.f32.mrf.mxu3 }
 0x1c3   : > { %v1276_v57 = vadd.f32 %v1275_v56, %v9371_v54 }
 0x1c8   : > { %v1316_v60 = vpop.f32.mrf.mxu1 }
 0x1c9   : > { %v1317_v1 = vadd.f32 %v1316_v60, %v9365_v46  ;;  %v1145_v60 = vld [vmem:[%s8563_s23 + $0x28] sm:$0xff] }
 0x1ca   : > { %1430 = vmatmul.f32.gmra.mxu3 %v1237_v59  ;;  %v1278_v58 = vpop.f32.mrf.mxu3  ;;  %v1148_v59 = vld [vmem:[%s8563_s23 + $0x40] sm:$0x1] }
 0x1cb   : > { %7774 = vmatpush.msk.msrb.mxu2 %vm1206_vm1, %v1148_v59 }
 0x1cd   : > { %1360 = vmatpush.msrb.mxu2 %v1145_v60 }
 0x1d0   : > { %v1319_v63 = vpop.f32.mrf.mxu1 }
 0x1d1   : > { %v1320_v0 = vadd.f32 %v1319_v63, %v9365_v46 }
 0x1d2   : > { %1433 = vmatmul.f32.gmra.mxu3 %v1240_v61  ;;  %v1279_v61 = vadd.f32 %v1278_v58, %v9371_v54 }
 0x1d3   : > { %1452 = vmatpush.xpose.msra.mxu3 %v1320_v0 }
 0x1d7   : > { %1453 = vmatpush.xpose.msra.mxu3 %v1317_v1 }
 0x1d8   : > { %v1322_v3 = vpop.f32.mrf.mxu1 }
 0x1d9   : > { %v1323_v20 = vadd.f32 %v1322_v3, %v9365_v46 }
 0x1da   : > { %1436 = vmatmul.f32.gmra.mxu3 %v1243_v2 }
 0x1db   : > { %1454 = vmatpush.xpose.msra.mxu3 %v1314_v4 }
 0x1df   : > { %1455 = vmatpush.xpose.msra.mxu3 %v1311_v6 }
 0x1e0   : > { %v1325_v8 = vpop.f32.mrf.mxu1 }
 0x1e1   : > { %v1326_v16 = vadd.f32 %v1325_v8, %v9365_v46 }
 0x1e2   : > { %1456 = vmatmul.f32.vlgmr.msra.gmra.mxu3 %v1246_v7 }
 0x1e8   : > { %v1328_v11 = vpop.f32.mrf.mxu1 }
 0x1e9   : > { %v1329_v15 = vadd.f32 %v1328_v11, %v9365_v46 }
 0x1ea   : > { %1459 = vmatmul.f32.gmra.mxu3 %v1249_v10 }
 0x1f0   : > { %v1331_v12 = vpop.f32.mrf.mxu1 }
 0x1f1   : > { %v1332_v14 = vadd.f32 %v1331_v12, %v9365_v46 }
 0x1f2   : > { %1462 = vmatmul.f32.gmra.mxu3 %v1252_v13 }
 0x1f3   : > { %1481 = vmatpush.xpose.msrb.mxu3 %v1332_v14 }
 0x1f7   : > { %1482 = vmatpush.xpose.msrb.mxu3 %v1329_v15 }
 0x1f8   : > { %v1334_v18 = vpop.f32.mrf.mxu1 }
 0x1f9   : > { %v1335_v51 = vadd.f32 %v1334_v18, %v9365_v46 }
 0x1fa   : > { %1465 = vmatmul.f32.gmra.mxu3 %v1255_v17 }
 0x1fb   : > { %1483 = vmatpush.xpose.msrb.mxu3 %v1326_v16 }
 0x1ff   : > { %1484 = vmatpush.xpose.msrb.mxu3 %v1323_v20 }
 0x200   : > { %v1337_v23 = vpop.f32.mrf.mxu1 }
 0x201   : > { %v1338_v50 = vadd.f32 %v1337_v23, %v9365_v46 }
 0x202   : > { %1485 = vmatmul.f32.vlgmr.msrb.gmra.mxu3 %v1258_v22 }
 0x208   : > { %v1340_v43 = vpop.f32.mrf.mxu1 }
 0x209   : > { %v1341_v49 = vadd.f32 %v1340_v43, %v9365_v46 }
 0x20a   : > { %1488 = vmatmul.f32.gmra.mxu3 %v1261_v42 }
 0x210   : > { %v1343_v39 = vpop.f32.mrf.mxu1 }
 0x211   : > { %v1344_v48 = vadd.f32 %v1343_v39, %v9365_v46  ;;  %v1142_v46 = vld [vmem:[%s8563_s23 + $0x10] sm:$0xff] }
 0x212   : > { %1491 = vmatmul.f32.gmra.mxu3 %v1264_v44  ;;  %1361 = vmatpush.msrb.mxu2 %v1142_v46 }
 0x213   : > { %1510 = vmatpush.xpose.msra.mxu3 %v1344_v48  ;;  %7775 = vmatmul.msk.f32.vlgmr.msrb.gmra.mxu2 %vm1157_vm2, %v9260_v21 }
 0x217   : > { %1511 = vmatpush.xpose.msra.mxu3 %v1341_v49 }
 0x21a   : > { %1494 = vmatmul.f32.gmra.mxu3 %v1267_v40 }
 0x21b   : > { %1512 = vmatpush.xpose.msra.mxu3 %v1338_v50  ;;  %7776 = vmatmul.msk.f32.gmra.mxu2 %vm1157_vm2, %v9271_v25 }
 0x21f   : > { %1513 = vmatpush.xpose.msra.mxu3 %v1335_v51 }
 0x222   : > { %1514 = vmatmul.f32.vlgmr.msra.gmra.mxu3 %v1270_v52 }
 0x223   : > { %7777 = vmatmul.msk.f32.gmra.mxu2 %vm1157_vm2, %v9279_v27 }
 0x22a   : > { %1517 = vmatmul.f32.gmra.mxu3 %v1273_v55 }
 0x22b   : > { %7778 = vmatmul.msk.f32.gmra.mxu2 %vm1157_vm2, %v9287_v29 }
 0x232   : > { %1520 = vmatmul.f32.gmra.mxu3 %v1276_v57  ;;  %v9493_v57 = vperm.slane %v9362_v45, 2 }
 0x233   : > { %7779 = vmatmul.msk.f32.gmra.mxu2 %vm1157_vm2, %v9293_v30 }
 0x23a   : > { %1523 = vmatmul.f32.gmra.mxu3 %v1279_v61 }
 0x23b   : > { %7780 = vmatmul.msk.f32.gmra.mxu2 %vm1157_vm2, %v9299_v31 }
 0x243   : > { %7781 = vmatmul.msk.f32.gmra.mxu2 %vm1157_vm2, %v9257_v19 }
 0x245   : > { %v1428_v62 = vpop.f32.mrf.mxu3 }
 0x246   : > { %v1527_v63 = vmul.f32 0.24253562, %v1428_v62 }
 0x248   : > { %v1544_v0 = vsel %vm1543_vm3, %v1527_v63, -inf }
 0x249   : > { %1545 = vmax.xlane.f32.xlu0 %v1544_v0 }
 0x24b   : > { %7782 = vmatmul.msk.f32.gmra.mxu2 %vm1157_vm2, %v9269_v24 }
 0x24d   : > { %v1431_v54 = vpop.f32.mrf.mxu3 }
 0x24e   : > { %v1528_v1 = vmul.f32 0.24253562, %v1431_v54 }
 0x250   : > { %v1547_v2 = vsel %vm1543_vm3, %v1528_v1, -inf }
 0x251   : > { %1548 = vmax.xlane.f32.xlu0 %v1547_v2 }
 0x253   : > { %7783 = vmatmul.msk.f32.gmra.mxu2 %vm1157_vm2, %v9277_v26 }
 0x255   : > { %v1434_v21 = vpop.f32.mrf.mxu3 }
 0x256   : > { %v9418_v3 = vmul.f32 0.24253562, %v1434_v21 }
 0x258   : > { %v1550_v4 = vsel %vm1543_vm3, %v9418_v3, -inf }
 0x259   : > { %1551 = vmax.xlane.f32.xlu1 %v1550_v4 }
 0x25b   : > { %7784 = vmatmul.msk.f32.gmra.mxu2 %vm1157_vm2, %v9285_v28 }
 0x25d   : > { %v1437_v5 = vpop.f32.mrf.mxu3 }
 0x25e   : > { %v9424_v27 = vmul.f32 0.24253562, %v1437_v5 }
 0x260   : > { %v1553_v6 = vsel %vm1543_vm3, %v9424_v27, -inf }
 0x261   : > { %1554 = vmax.xlane.f32.xlu1 %v1553_v6 }
 0x263   : > { %7785 = vmatmul.msk.f32.gmra.mxu2 %vm1157_vm2, %v9313_v32 }
 0x265   : > { %v1457_v29 = vpop.f32.mrf.mxu3 }
 0x266   : > { %v9430_v7 = vmul.f32 0.24253562, %v1457_v29 }
 0x268   : > { %v1556_v8 = vsel %vm1543_vm3, %v9430_v7, -inf }
 0x269   : > { %1557 = vmax.xlane.f32.xlu2 %v1556_v8 }
 0x26b   : > { %7786 = vmatmul.msk.f32.gmra.mxu2 %vm1157_vm2, %v9319_v33 }
 0x26d   : > { %v1460_v30 = vpop.f32.mrf.mxu3 }
 0x26e   : > { %v9436_v9 = vmul.f32 0.24253562, %v1460_v30 }
 0x270   : > { %v1559_v10 = vsel %vm1543_vm3, %v9436_v9, -inf }
 0x271   : > { %1560 = vmax.xlane.f32.xlu2 %v1559_v10 }
 0x273   : > { %7787 = vmatmul.msk.f32.gmra.mxu2 %vm1157_vm2, %v9327_v34 }
 0x275   : > { %v1463_v31 = vpop.f32.mrf.mxu3 }
 0x276   : > { %v9442_v11 = vmul.f32 0.24253562, %v1463_v31 }
 0x278   : > { %v1562_v12 = vsel %vm1543_vm3, %v9442_v11, -inf }
 0x279   : > { %1563 = vmax.xlane.f32.xlu0 %v1562_v12 }
 0x27b   : > { %7788 = vmatmul.msk.f32.gmra.mxu2 %vm1157_vm2, %v9333_v35 }
 0x27d   : > { %v1466_v19 = vpop.f32.mrf.mxu3 }
 0x27e   : > { %v9448_v13 = vmul.f32 0.24253562, %v1466_v19 }
 0x280   : > { %v1565_v14 = vsel %vm1543_vm3, %v9448_v13, -inf }
 0x281   : > { %1566 = vmax.xlane.f32.xlu2 %v1565_v14 }
 0x283   : > { %7789 = vmatmul.msk.f32.gmra.mxu2 %vm1157_vm2, %v9339_v36 }
 0x285   : > { %v1486_v24 = vpop.f32.mrf.mxu3 }
 0x286   : > { %v9454_v15 = vmul.f32 0.24253562, %v1486_v24 }
 0x288   : > { %v1568_v16 = vsel %vm1543_vm3, %v9454_v15, -inf }
 0x289   : > { %1569 = vmax.xlane.f32.xlu0 %v1568_v16 }
 0x28b   : > { %7790 = vmatmul.msk.f32.gmra.mxu2 %vm1157_vm2, %v9345_v38 }
 0x28d   : > { %v1489_v26 = vpop.f32.mrf.mxu3 }
 0x28e   : > { %v9460_v17 = vmul.f32 0.24253562, %v1489_v26 }
 0x290   : > { %v1571_v18 = vsel %vm1543_vm3, %v9460_v17, -inf }
 0x291   : > { %1572 = vmax.xlane.f32.xlu0 %v1571_v18 }
 0x295   : > { %v1492_v28 = vpop.f32.mrf.mxu3 }
 0x296   : > { %v1363_v34 = vpop.f32.mrf.mxu2  ;;  %v9495_v58 = vmul.f32 0.24253562, %v1492_v28 }
 0x297   : > { %v1364_v21 = vadd.f32 %v1363_v34, %v9493_v57 }
 0x29d   : > { %v1495_v20 = vpop.f32.mrf.mxu3 }
 0x29e   : > { %v9468_v22 = vmul.f32 0.24253562, %v1495_v20  ;;  %v1366_v35 = vpop.f32.mrf.mxu2 }
 0x2a0   : > { %v1577_v32 = vsel %vm1543_vm3, %v9468_v22, -inf }
 0x2a1   : > { %1578 = vmax.xlane.f32.xlu0 %v1577_v32 }
 0x2a5   : > { %v1515_v59 = vpop.f32.mrf.mxu3 }
 0x2a6   : > { %v1369_v50 = vpop.f32.mrf.mxu2 }
 0x2a7   : > { %v1370_v61 = vadd.f32 %v1369_v50, %v9493_v57 }
 0x2ad   : > { %v1518_v5 = vpop.f32.mrf.mxu3 }
 0x2ae   : > { %v1372_v56 = vpop.f32.mrf.mxu2  ;;  %v9517_v10 = vmul.f32 0.24253562, %v1518_v5 }
 0x2af   : > { %v1373_v60 = vadd.f32 %v1372_v56, %v9493_v57 }
 0x2b0   : > { %v1583_v12 = vsel %vm1543_vm3, %v9517_v10, -inf }
 0x2b1   : > { %1744 = vmatpush.msrb.mxu0 %v1373_v60  ;;  %8222 = vmatpush.msrb.mxu3 %v1373_v60 }
 0x2b3   : > { %1745 = vmatpush.msrb.mxu0 %v1370_v61  ;;  %8223 = vmatpush.msrb.mxu3 %v1370_v61 }
 0x2b5   : > { %v1521_v14 = vpop.f32.mrf.mxu3 }
 0x2b6   : > { %v1375_v2 = vpop.f32.mrf.mxu2  ;;  %v9526_v18 = vmul.f32 0.24253562, %v1521_v14 }
 0x2bc   : > { %v1546_v33 = vpop.xlane.xlu0 %1545 }
 0x2bd   : > { %v1592_v23 = vsub.f32 %v1527_v63, %v1546_v33  ;;  %v1574_v63 = vsel %vm1543_vm3, %v9495_v58, -inf }
 0x2be   : > { %v1378_v30 = vpop.f32.mrf.mxu2 }
 0x2bf   : > { %v1608_v37 = vmul.f32 1.442695, %v1592_v23  ;;  %v1586_v23 = vsel %vm1543_vm3, %v9526_v18, -inf }
 0x2c1   : > { %8252 = vpow2.f32 %v1608_v37  ;;  %v1524_v37 = vpop.f32.mrf.mxu3 }
 0x2c4   : > { %v1549_v42 = vpop.xlane.xlu0 %1548 }
 0x2c5   : > { %v1593_v43 = vsub.f32 %v1528_v1, %v1549_v42  ;;  %v1367_v1 = vadd.f32 %v1366_v35, %v9493_v57 }
 0x2c6   : > { %v1381_v26 = vpop.f32.mrf.mxu2 }
 0x2c7   : > { %v9478_v44 = vpop.eup %8252  ;;  %v1610_v39 = vmul.f32 1.442695, %v1593_v43  ;;  %1746 = vmatpush.msrb.mxu0 %v1367_v1  ;;  %8224 = vmatpush.msrb.mxu3 %v1367_v1  ;;  %v1382_v42 = vadd.f32 %v1381_v26, %v9493_v57 }
 0x2c8   : > { %v1640_v47 = vsel %vm1543_vm3, %v9478_v44, 0.0 }
 0x2c9   : > { %8254 = vpow2.f32 %v1610_v39  ;;  %1641 = vadd.xlane.f32.xlu1 %v1640_v47  ;;  %1747 = vmatpush.msrb.mxu0 %v1364_v21  ;;  %v9537_v39 = vmul.f32 0.24253562, %v1524_v37  ;;  %v1379_v47 = vadd.f32 %v1378_v30, %v9493_v57 }
 0x2ca   : > { %8225 = vmatpush.msrb.mxu3 %v1364_v21 }
 0x2cb   : > { %v1589_v50 = vsel %vm1543_vm3, %v9537_v39, -inf }
 0x2cc   : > { %v1552_v36 = vpop.xlane.xlu1 %1551 }
 0x2cd   : > { %v1594_v48 = vsub.f32 %v9418_v3, %v1552_v36  ;;  %v9508_v3 = vmul.f32 0.24253562, %v1515_v59  ;;  %v1376_v36 = vadd.f32 %v1375_v2, %v9493_v57 }
 0x2ce   : > { %v1384_v34 = vpop.f32.mrf.mxu2 }
 0x2cf   : > { %v9483_v38 = vpop.eup %8254  ;;  %v1612_v49 = vmul.f32 1.442695, %v1594_v48  ;;  %v1580_v6 = vsel %vm1543_vm3, %v9508_v3, -inf  ;;  %v1385_v43 = vadd.f32 %v1384_v34, %v9493_v57 }
 0x2d0   : > { %v1643_v40 = vsel %vm1543_vm3, %v9483_v38, 0.0 }
 0x2d1   : > { %8256 = vpow2.f32 %v1612_v49  ;;  %1644 = vadd.xlane.f32.xlu1 %v1643_v40  ;;  %1785 = vmatpush.msra.mxu1 %v1385_v43 }
 0x2d3   : > { %1786 = vmatpush.msra.mxu1 %v1382_v42 }
 0x2d4   : > { %v1555_v41 = vpop.xlane.xlu1 %1554 }
 0x2d5   : > { %v1595_v51 = vsub.f32 %v9424_v27, %v1555_v41  ;;  %1787 = vmatpush.msra.mxu1 %v1379_v47 }
 0x2d6   : > { %v1387_v41 = vpop.f32.mrf.mxu2 }
 0x2d7   : > { %v9488_v52 = vpop.eup %8256  ;;  %v1614_v53 = vmul.f32 1.442695, %v1595_v51  ;;  %1788 = vmatpush.msra.mxu1 %v1376_v36  ;;  %v1388_v21 = vadd.f32 %v1387_v41, %v9493_v57 }
 0x2d8   : > { %v1646_v55 = vsel %vm1543_vm3, %v9488_v52, 0.0 }
 0x2d9   : > { %8258 = vpow2.f32 %v1614_v53  ;;  %1647 = vadd.xlane.f32.xlu2 %v1646_v55 }
 0x2dc   : > { %v1558_v46 = vpop.xlane.xlu2 %1557 }
 0x2dd   : > { %v1596_v62 = vsub.f32 %v9430_v7, %v1558_v46 }
 0x2de   : > { %v1390_v59 = vpop.f32.mrf.mxu2 }
 0x2df   : > { %v9502_v0 = vpop.eup %8258  ;;  %v1616_v54 = vmul.f32 1.442695, %v1596_v62  ;;  %v1391_v2 = vadd.f32 %v1390_v59, %v9493_v57 }
 0x2e0   : > { %v1649_v45 = vsel %vm1543_vm3, %v9502_v0, 0.0 }
 0x2e1   : > { %8260 = vpow2.f32 %v1616_v54  ;;  %1650 = vadd.xlane.f32.xlu1 %v1649_v45  ;;  %1575 = vmax.xlane.f32.xlu2 %v1574_v63 }
 0x2e4   : > { %v1561_v4 = vpop.xlane.xlu2 %1560 }
 0x2e5   : > { %v1597_v27 = vsub.f32 %v9436_v9, %v1561_v4 }
 0x2e6   : > { %v1393_v46 = vpop.f32.mrf.mxu2 }
 0x2e7   : > { %v9513_v29 = vpop.eup %8260  ;;  %v1618_v7 = vmul.f32 1.442695, %v1597_v27  ;;  %v1394_v45 = vadd.f32 %v1393_v46, %v9493_v57 }
 0x2e8   : > { %v1652_v8 = vsel %vm1543_vm3, %v9513_v29, 0.0 }
 0x2e9   : > { %8262 = vpow2.f32 %v1618_v7  ;;  %1653 = vadd.xlane.f32.xlu1 %v1652_v8  ;;  %1581 = vmax.xlane.f32.xlu2 %v1580_v6 }
 0x2ec   : > { %v1564_v31 = vpop.xlane.xlu0 %1563 }
 0x2ed   : > { %v1598_v9 = vsub.f32 %v9442_v11, %v1564_v31 }
 0x2ee   : > { %v1396_v54 = vpop.f32.mrf.mxu2 }
 0x2ef   : > { %v9522_v19 = vpop.eup %8262  ;;  %v1620_v24 = vmul.f32 1.442695, %v1598_v9  ;;  %v1397_v1 = vadd.f32 %v1396_v54, %v9493_v57 }
 0x2f0   : > { %v1655_v16 = vsel %vm1543_vm3, %v9522_v19, 0.0 }
 0x2f1   : > { %8264 = vpow2.f32 %v1620_v24  ;;  %1656 = vadd.xlane.f32.xlu0 %v1655_v16  ;;  %1584 = vmax.xlane.f32.xlu1 %v1583_v12 }
 0x2f2   : > { %1826 = vmatpush.msra.mxu2 %v1397_v1 }
 0x2f4   : > { %v1567_v28 = vpop.xlane.xlu2 %1566  ;;  %1827 = vmatpush.msra.mxu2 %v1394_v45 }
 0x2f5   : > { %v1599_v20 = vsub.f32 %v9448_v13, %v1567_v28 }
 0x2f6   : > { %1828 = vmatpush.msra.mxu2 %v1391_v2 }
 0x2f7   : > { %v9529_v11 = vpop.eup %8264  ;;  %v1622_v32 = vmul.f32 1.442695, %v1599_v20 }
 0x2f8   : > { %v1658_v33 = vsel %vm1543_vm3, %v9529_v11, 0.0  ;;  %1829 = vmatpush.msra.mxu2 %v1388_v21  ;;  %v1399_v21 = vpop.f32.mrf.mxu2 }
 0x2f9   : > { %8266 = vpow2.f32 %v1622_v32  ;;  %1659 = vadd.xlane.f32.xlu2 %v1658_v33  ;;  %1587 = vmax.xlane.f32.xlu0 %v1586_v23 }
 0x2fc   : > { %v1570_v13 = vpop.xlane.xlu0 %1569 }
 0x2fd   : > { %v1600_v35 = vsub.f32 %v9454_v15, %v1570_v13 }
 0x2ff   : > { %v9542_v48 = vpop.eup %8266  ;;  %v1624_v49 = vmul.f32 1.442695, %v1600_v35 }
 0x300   : > { %v1661_v40 = vsel %vm1543_vm3, %v9542_v48, 0.0 }
 0x301   : > { %8268 = vpow2.f32 %v1624_v49  ;;  %1662 = vadd.xlane.f32.xlu1 %v1661_v40  ;;  %1590 = vmax.xlane.f32.xlu0 %v1589_v50 }
 0x304   : > { %v1573_v51 = vpop.xlane.xlu0 %1572 }
 0x305   : > { %v1601_v15 = vsub.f32 %v9460_v17, %v1573_v51 }
 0x307   : > { %v9549_v53 = vpop.eup %8268  ;;  %v1626_v55 = vmul.f32 1.442695, %v1601_v15 }
 0x308   : > { %v1664_v56 = vsel %vm1543_vm3, %v9549_v53, 0.0 }
 0x309   : > { %8270 = vpow2.f32 %v1626_v55  ;;  %1665 = vadd.xlane.f32.xlu2 %v1664_v56  ;;  %v1886_v55 = vld [vmem:[%s8578_s18 + $0x10] sm:$0x1] }
 0x30a   : > { %1904 = vmatpush.xpose.msra.mxu0 %v1886_v55 }
 0x30f   : > { %v9553_v60 = vpop.eup %8270 }
 0x310   : > { %v1667_v61 = vsel %vm1543_vm3, %v9553_v60, 0.0 }
 0x311   : > { %1668 = vadd.xlane.f32.xlu1 %v1667_v61  ;;  %v1885_v61 = vld [vmem:[%s8578_s18 + $0x8] sm:$0xff] }
 0x312   : > { %1905 = vmatpush.xpose.msra.mxu0 %v1885_v61 }
 0x314   : > { %v1579_v62 = vpop.xlane.xlu0 %1578 }
 0x315   : > { %v1603_v63 = vsub.f32 %v9468_v22, %v1579_v62 }
 0x317   : > { %v1630_v17 = vmul.f32 1.442695, %v1603_v63  ;;  %v1884_v63 = vld [vmem:[%s8578_s18] sm:$0xff]  ;;  %s12622_s18 = sld [smem:[#allocation194_spill]] }
 0x318   : > { %1906 = vmatpush.xpose.msra.mxu0 %v1884_v63 }
 0x319   : > { %8272 = vpow2.f32 %v1630_v17 }
 0x31d   : > { %s12623_s29 = scalar_lea.vmem %s12622_s18, %s8548_s26 }
 0x31f   : > { %v9562_v4 = vpop.eup %8272 }
 0x320   : > { %v1673_v5 = vsel %vm1543_vm3, %v9562_v4, 0.0 }
 0x321   : > { %1674 = vadd.xlane.f32.xlu0 %v1673_v5 }
 0x33c   : > { %v1642_v22 = vpop.xlane.xlu1 %1641 }
 0x33d   : > { %8274 = vrcp.f32 %v1642_v22  ;;  %v1402_v22 = vpop.f32.mrf.mxu2 }
 0x343   : > { %v8275_v27 = vpop.eup %8274 }
 0x344   : > { %v1645_v6 = vpop.xlane.xlu1 %1644  ;;  %v1704_v7 = vmul.f32 %v8275_v27, %v9478_v44 }
 0x345   : > { %8276 = vrcp.f32 %v1645_v6  ;;  %v1405_v27 = vpop.f32.mrf.mxu2 }
 0x346   : > { %7791 = vmatmul.msk.f32.vlgmr.msrb.gmra.mxu0 %vm1543_vm3, %v1704_v7  ;;  %v1406_v7 = vadd.f32 %v1405_v27, %v9493_v57 }
 0x34b   : > { %v8277_v8 = vpop.eup %8276 }
 0x34c   : > { %v1648_v30 = vpop.xlane.xlu2 %1647  ;;  %v1705_v31 = vmul.f32 %v8277_v8, %v9483_v38 }
 0x34d   : > { %8278 = vrcp.f32 %v1648_v30  ;;  %v1408_v6 = vpop.f32.mrf.mxu2  ;;  %v1403_v30 = vadd.f32 %v1402_v22, %v9493_v57 }
 0x34e   : > { %7792 = vmatmul.msk.f32.gmra.mxu0 %vm1543_vm3, %v1705_v31  ;;  %v1409_v8 = vadd.f32 %v1408_v6, %v9493_v57 }
 0x350   : > { %1867 = vmatpush.msra.mxu3 %v1409_v8 }
 0x352   : > { %1868 = vmatpush.msra.mxu3 %v1406_v7  ;;  %v8385_v7 = vld [vmem:[#allocation2 + $0x20] sm:$0xff] }
 0x353   : > { %v8279_v9 = vpop.eup %8278 }
 0x354   : > { %v1706_v12 = vmul.f32 %v8279_v9, %v9488_v52  ;;  %v1651_v14 = vpop.xlane.xlu1 %1650  ;;  %v1576_v24 = vpop.xlane.xlu2 %1575  ;;  %1869 = vmatpush.msra.mxu3 %v1403_v30 }
 0x355   : > { %8280 = vrcp.f32 %v1651_v14  ;;  %v1602_v16 = vsub.f32 %v9495_v58, %v1576_v24 }
 0x356   : > { %7793 = vmatmul.msk.f32.vlgmr.msrb.gmra.mxu3 %vm1543_vm3, %v1706_v12 }
 0x357   : > { %v1628_v44 = vmul.f32 1.442695, %v1602_v16 }
 0x359   : > { %8282 = vpow2.f32 %v1628_v44 }
 0x35b   : > { %v8281_v26 = vpop.eup %8280 }
 0x35c   : > { %v1654_v28 = vpop.xlane.xlu1 %1653  ;;  %v1582_v20 = vpop.xlane.xlu2 %1581  ;;  %v1707_v38 = vmul.f32 %v8281_v26, %v9502_v0 }
 0x35d   : > { %8284 = vrcp.f32 %v1654_v28  ;;  %v1604_v32 = vsub.f32 %v9508_v3, %v1582_v20 }
 0x35e   : > { %7794 = vmatmul.msk.f32.gmra.mxu3 %vm1543_vm3, %v1707_v38 }
 0x35f   : > { %v9576_v52 = vpop.eup %8282  ;;  %v1632_v33 = vmul.f32 1.442695, %v1604_v32 }
 0x360   : > { %v1670_v58 = vsel %vm1543_vm3, %v9576_v52, 0.0 }
 0x361   : > { %8286 = vpow2.f32 %v1632_v33  ;;  %1671 = vadd.xlane.f32.xlu2 %v1670_v58 }
 0x363   : > { %v8285_v23 = vpop.eup %8284 }
 0x364   : > { %v1708_v37 = vmul.f32 %v8285_v23, %v9513_v29  ;;  %v1657_v34 = vpop.xlane.xlu0 %1656  ;;  %v1585_v42 = vpop.xlane.xlu1 %1584 }
 0x365   : > { %8288 = vrcp.f32 %v1657_v34  ;;  %v1605_v0 = vsub.f32 %v9517_v10, %v1585_v42 }
 0x366   : > { %7795 = vmatmul.msk.f32.vlgmr.msra.gmra.mxu1 %vm1543_vm3, %v1708_v37 }
 0x367   : > { %v9583_v3 = vpop.eup %8286  ;;  %v1634_v43 = vmul.f32 1.442695, %v1605_v0 }
 0x368   : > { %v1676_v13 = vsel %vm1543_vm3, %v9583_v3, 0.0 }
 0x369   : > { %8290 = vpow2.f32 %v1634_v43  ;;  %1677 = vadd.xlane.f32.xlu1 %v1676_v13 }
 0x36b   : > { %v8289_v47 = vpop.eup %8288 }
 0x36c   : > { %v1660_v35 = vpop.xlane.xlu2 %1659  ;;  %v1588_v36 = vpop.xlane.xlu0 %1587  ;;  %v1709_v29 = vmul.f32 %v8289_v47, %v9522_v19 }
 0x36d   : > { %8292 = vrcp.f32 %v1660_v35  ;;  %v1606_v49 = vsub.f32 %v9526_v18, %v1588_v36  ;;  %v9635_v36 = vld [vmem:[%s12623_s29] ss:$0 sm:$0xff] }
 0x36e   : > { %7796 = vmatmul.msk.f32.gmra.mxu1 %vm1543_vm3, %v1709_v29 }
 0x36f   : > { %v9590_v10 = vpop.eup %8290  ;;  %v1636_v40 = vmul.f32 1.442695, %v1606_v49 }
 0x370   : > { %v1679_v50 = vsel %vm1543_vm3, %v9590_v10, 0.0 }
 0x371   : > { %8294 = vpow2.f32 %v1636_v40  ;;  %1680 = vadd.xlane.f32.xlu2 %v1679_v50 }
 0x373   : > { %v8293_v41 = vpop.eup %8292 }
 0x374   : > { %v1663_v51 = vpop.xlane.xlu1 %1662  ;;  %v1591_v15 = vpop.xlane.xlu0 %1590  ;;  %v1710_v19 = vmul.f32 %v8293_v41, %v9529_v11 }
 0x375   : > { %8296 = vrcp.f32 %v1663_v51  ;;  %v1607_v18 = vsub.f32 %v9537_v39, %v1591_v15 }
 0x376   : > { %7797 = vmatmul.msk.f32.gmra.mxu1 %vm1543_vm3, %v1710_v19 }
 0x377   : > { %v9598_v56 = vpop.eup %8294  ;;  %v1638_v59 = vmul.f32 1.442695, %v1607_v18 }
 0x378   : > { %v1682_v46 = vsel %vm1543_vm3, %v9598_v56, 0.0 }
 0x379   : > { %8298 = vpow2.f32 %v1638_v59  ;;  %1683 = vadd.xlane.f32.xlu0 %v1682_v46 }
 0x37b   : > { %v8297_v62 = vpop.eup %8296 }
 0x37c   : > { %v1666_v11 = vpop.xlane.xlu2 %1665  ;;  %v1711_v17 = vmul.f32 %v8297_v62, %v9542_v48  ;;  %v8383_v62 = vld [vmem:[#allocation2 + $0x10] sm:$0xff] }
 0x37d   : > { %8300 = vrcp.f32 %v1666_v11 }
 0x37e   : > { %7798 = vmatmul.msk.f32.gmra.mxu1 %vm1543_vm3, %v1711_v17 }
 0x37f   : > { %v9606_v39 = vpop.eup %8298 }
 0x380   : > { %v1685_v54 = vsel %vm1543_vm3, %v9606_v39, 0.0 }
 0x381   : > { %1686 = vadd.xlane.f32.xlu1 %v1685_v54 }
 0x383   : > { %v8301_v45 = vpop.eup %8300 }
 0x384   : > { %v1712_v1 = vmul.f32 %v8301_v45, %v9549_v53  ;;  %v1669_v2 = vpop.xlane.xlu1 %1668  ;;  %v1400_v53 = vadd.f32 %v1399_v21, %v9493_v57 }
 0x385   : > { %8302 = vrcp.f32 %v1669_v2 }
 0x386   : > { %7799 = vmatmul.msk.f32.vlgmr.msra.gmra.mxu2 %vm1543_vm3, %v1712_v1  ;;  %1870 = vmatpush.msra.mxu3 %v1400_v53  ;;  %v8384_v1 = vld [vmem:[#allocation2 + $0x18] sm:$0xff] }
 0x38b   : > { %v8303_v5 = vpop.eup %8302 }
 0x38c   : > { %v1713_v48 = vmul.f32 %v8303_v5, %v9553_v60 }
 0x38e   : > { %7800 = vmatmul.msk.f32.gmra.mxu2 %vm1543_vm3, %v1713_v48 }
 0x394   : > { %v1675_v12 = vpop.xlane.xlu0 %1674 }
 0x3c3   : > { %v1749_v31 = vpop.f32.mrf.mxu0 }
 0x3c4   : > { %1907 = vmatmul.f32.vlgmr.msra.gmra.mxu0 %v1749_v31 }
 0x3cb   : > { %v1752_v60 = vpop.f32.mrf.mxu0 }
 0x3cc   : > { %1910 = vmatmul.f32.gmra.mxu0 %v1752_v60 }
 0x3d4   : > { %v1672_v9 = vpop.xlane.xlu2 %1671 }
 0x3d5   : > { %8304 = vrcp.f32 %v1672_v9 }
 0x3d6   : > { %8306 = vrcp.f32 %v1675_v12 }
 0x3d9   : > { %v1755_v14 = vpop.f32.mrf.mxu3 }
 0x3da   : > { %1913 = vmatmul.f32.gmra.mxu0 %v1755_v14  ;;  %v8386_v14 = vld [vmem:[#allocation2 + $0x28] sm:$0xff] }
 0x3db   : > { %v8305_v24 = vpop.eup %8304 }
 0x3dc   : > { %v1678_v16 = vpop.xlane.xlu1 %1677  ;;  %v1714_v44 = vmul.f32 %v8305_v24, %v9576_v52  ;;  %v8307_v57 = vpop.eup %8306 }
 0x3dd   : > { %8308 = vrcp.f32 %v1678_v16  ;;  %v1715_v33 = vmul.f32 %v8307_v57, %v9562_v4 }
 0x3de   : > { %7801 = vmatmul.msk.f32.gmra.mxu2 %vm1543_vm3, %v1714_v44 }
 0x3e1   : > { %v1758_v26 = vpop.f32.mrf.mxu3 }
 0x3e2   : > { %1916 = vmatmul.f32.gmra.mxu0 %v1758_v26 }
 0x3e3   : > { %v8309_v28 = vpop.eup %8308  ;;  %v1790_v20 = vpop.f32.mrf.mxu1 }
 0x3e4   : > { %v1716_v38 = vmul.f32 %v8309_v28, %v9583_v3  ;;  %v1681_v32 = vpop.xlane.xlu2 %1680 }
 0x3e5   : > { %8310 = vrcp.f32 %v1681_v32 }
 0x3e6   : > { %7802 = vmatmul.msk.f32.gmra.mxu2 %vm1543_vm3, %v1715_v33  ;;  %7803 = vmatmul.msk.f32.vlgmr.msra.gmra.mxu3 %vm1543_vm3, %v1716_v38  ;;  %v8387_v38 = vld [vmem:[#allocation2 + $0x30] sm:$0xff] }
 0x3ea   : > { %1919 = vmatmul.f32.gmra.mxu0 %v1790_v20 }
 0x3eb   : > { %v8311_v52 = vpop.eup %8310  ;;  %v1793_v37 = vpop.f32.mrf.mxu1 }
 0x3ec   : > { %v1684_v58 = vpop.xlane.xlu0 %1683  ;;  %v1717_v23 = vmul.f32 %v8311_v52, %v9590_v10  ;;  %v8382_v10 = vld [vmem:[#allocation2] sm:$0xff] }
 0x3ed   : > { %8312 = vrcp.f32 %v1684_v58 }
 0x3ee   : > { %7804 = vmatmul.msk.f32.gmra.mxu3 %vm1543_vm3, %v1717_v23 }
 0x3f2   : > { %1922 = vmatmul.f32.gmra.mxu0 %v1793_v37 }
 0x3f3   : > { %v8313_v34 = vpop.eup %8312  ;;  %v1796_v0 = vpop.f32.mrf.mxu1 }
 0x3f4   : > { %v1687_v42 = vpop.xlane.xlu1 %1686  ;;  %v1718_v4 = vmul.f32 %v8313_v34, %v9598_v56 }
 0x3f5   : > { %8314 = vrcp.f32 %v1687_v42  ;;  %v8388_v42 = vld [vmem:[#allocation2 + $0x38] sm:$0xff] }
 0x3f6   : > { %7805 = vmatmul.msk.f32.gmra.mxu3 %vm1543_vm3, %v1718_v4 }
 0x3fa   : > { %1925 = vmatmul.f32.gmra.mxu0 %v1796_v0 }
 0x3fb   : > { %v8315_v3 = vpop.eup %8314  ;;  %v1799_v13 = vpop.f32.mrf.mxu1 }
 0x3fc   : > { %v1719_v43 = vmul.f32 %v8315_v3, %v9606_v39 }
 0x3fe   : > { %7806 = vmatmul.msk.f32.gmra.mxu3 %vm1543_vm3, %v1719_v43 }
 0x402   : > { %1928 = vmatmul.f32.gmra.mxu0 %v1799_v13 }
 0x409   : > { %v1831_v47 = vpop.f32.mrf.mxu2 }
 0x40a   : > { %1931 = vmatmul.f32.gmra.mxu0 %v1831_v47 }
 0x411   : > { %v1834_v35 = vpop.f32.mrf.mxu2 }
 0x412   : > { %1934 = vmatmul.f32.gmra.mxu0 %v1834_v35 }
 0x441   : > { %v1908_v29 = vpop.f32.mrf.mxu0 }
 0x442   : > { %v1909_v49 = vadd.f32 %v9635_v36, %v1908_v29  ;;  %v8389_v29 = vld [vmem:[#allocation2 + $0x40] sm:$0xff] }
 0x444   : > { %v9638_v40 = vadd.f32 %v8382_v10, %v1909_v49 }
 0x446   : > { %v1974_v50 = vsel %vm1157_vm2, %v9638_v40, 0.0  ;;  %v2045_v41 = vmul.f32 %v9638_v40, %v9638_v40 }
 0x447   : > { %1975 = vadd.xlane.f32.xlu2 %v1974_v50 }
 0x448   : > { %v2061_v51 = vsel %vm1157_vm2, %v2045_v41, 0.0 }
 0x449   : > { %v1911_v15 = vpop.f32.mrf.mxu0  ;;  %2062 = vadd.xlane.f32.xlu0 %v2061_v51 }
 0x44a   : > { %v1912_v19 = vadd.f32 %v9635_v36, %v1911_v15 }
 0x44c   : > { %v9647_v18 = vadd.f32 %v1912_v19, %v9271_v25  ;;  %v8390_v19 = vld [vmem:[#allocation2 + $0x48] sm:$0xff] }
 0x44e   : > { %v1977_v55 = vsel %vm1157_vm2, %v9647_v18, 0.0  ;;  %v2046_v56 = vmul.f32 %v9647_v18, %v9647_v18 }
 0x44f   : > { %1978 = vadd.xlane.f32.xlu1 %v1977_v55 }
 0x450   : > { %v2064_v59 = vsel %vm1157_vm2, %v2046_v56, 0.0 }
 0x451   : > { %2065 = vadd.xlane.f32.xlu2 %v2064_v59 }
 0x457   : > { %v1914_v61 = vpop.f32.mrf.mxu0 }
 0x458   : > { %v1915_v46 = vadd.f32 %v9635_v36, %v1914_v61 }
 0x45a   : > { %v9655_v63 = vadd.f32 %v8383_v62, %v1915_v46  ;;  %v2438_v46 = vld [vmem:[%s8589_s16 + $0x118] sm:$0x1]  ;;  %v8444_v62 = vmov 17.0  }
 0x45b   : > { %7858 = vmatpush.msk.msrb.mxu0 %vm1206_vm1, %v2438_v46  ;;  %8316 = vrcp.f32 %v8444_v62 }
 0x45c   : > { %v1980_v25 = vsel %vm1157_vm2, %v9655_v63, 0.0  ;;  %v2047_v11 = vmul.f32 %v9655_v63, %v9655_v63 }
 0x45d   : > { %1981 = vadd.xlane.f32.xlu0 %v1980_v25 }
 0x45e   : > { %v2067_v17 = vsel %vm1157_vm2, %v2047_v11, 0.0 }
 0x45f   : > { %v1917_v39 = vpop.f32.mrf.mxu0  ;;  %2068 = vadd.xlane.f32.xlu1 %v2067_v17 }
 0x460   : > { %v1918_v54 = vadd.f32 %v9635_v36, %v1917_v39 }
 0x461   : > { %v1837_v45 = vpop.f32.mrf.mxu2  ;;  %v8317_v25 = vpop.eup %8316 }
 0x462   : > { %v9663_v2 = vadd.f32 %v8384_v1, %v1918_v54  ;;  %1937 = vmatmul.f32.gmra.mxu0 %v1837_v45  ;;  %v2023_v11 = vmul.f32 17.0, %v8317_v25  ;;  %vm2027_vm4 = vweird.f32 %v8317_v25  ;;  %v2435_v45 = vld [vmem:[%s8589_s16 + $0x100] sm:$0x1]  ;;  %v2436_v1 = vld [vmem:[%s8589_s16 + $0x108] sm:$0x1] }
 0x463   : > { %7807 = vmatpush.msk.msrb.mxu1 %vm1206_vm1, %v2435_v45  ;;  %7824 = vmatpush.msk.msrb.mxu2 %vm1206_vm1, %v2436_v1 }
 0x464   : > { %v1983_v21 = vsel %vm1157_vm2, %v9663_v2, 0.0  ;;  %v2048_v5 = vmul.f32 %v9663_v2, %v9663_v2  ;;  %v2024_v17 = vsub.f32 1.0, %v2023_v11 }
 0x465   : > { %1984 = vadd.xlane.f32.xlu2 %v1983_v21  ;;  %v2437_v21 = vld [vmem:[%s8589_s16 + $0x110] sm:$0x1] }
 0x466   : > { %v2070_v48 = vsel %vm1157_vm2, %v2048_v5, 0.0  ;;  %v2025_v39 = vmul.f32 %v8317_v25, %v2024_v17  ;;  %7841 = vmatpush.msk.msrb.mxu3 %vm1206_vm1, %v2437_v21  ;;  %v2419_v5 = vld [vmem:[%s8589_s16 + $0x80] sm:$0xff] }
 0x467   : > { %v1920_v22 = vpop.f32.mrf.mxu0  ;;  %2071 = vadd.xlane.f32.xlu0 %v2070_v48  ;;  %v2420_v48 = vld [vmem:[%s8589_s16 + $0x88] sm:$0xff]  ;;  %2597 = vmatpush.msrb.mxu1 %v2419_v5 }
 0x468   : > { %v1921_v27 = vadd.f32 %v9635_v36, %v1920_v22  ;;  %v2026_v54 = vadd.f32 %v8317_v25, %v2025_v39  ;;  %v2421_v22 = vld [vmem:[%s8589_s16 + $0x90] sm:$0xff]  ;;  %2662 = vmatpush.msrb.mxu2 %v2420_v48 }
 0x469   : > { %v1840_v6 = vpop.f32.mrf.mxu2  ;;  %v1872_v30 = vpop.f32.mrf.mxu3  ;;  %2727 = vmatpush.msrb.mxu3 %v2421_v22 }
 0x46a   : > { %v9671_v8 = vadd.f32 %v8385_v7, %v1921_v27  ;;  %1940 = vmatmul.f32.gmra.mxu0 %v1840_v6  ;;  %v9729_v27 = vsel %vm2027_vm4, %v8317_v25, %v2026_v54  ;;  %v2422_v6 = vld [vmem:[%s8589_s16 + $0x98] sm:$0xff]  ;;  %v2403_v7 = vld [vmem:[%s8589_s16] sm:$0xff] }
 0x46b   : > { %12624 = vst [vmem:[#allocation11_spill] sm:$0xff] %v9729_v27  ;;  %2792 = vmatpush.msrb.mxu0 %v2422_v6  ;;  %2598 = vmatpush.msrb.mxu1 %v2403_v7 }
 0x46c   : > { %v1986_v53 = vsel %vm1157_vm2, %v9671_v8, 0.0  ;;  %v2049_v31 = vmul.f32 %v9671_v8, %v9671_v8 }
 0x46d   : > { %1987 = vadd.xlane.f32.xlu1 %v1986_v53  ;;  %v2405_v53 = vld [vmem:[%s8589_s16 + $0x10] sm:$0xff] }
 0x46e   : > { %v2073_v60 = vsel %vm1157_vm2, %v2049_v31, 0.0  ;;  %2728 = vmatpush.msrb.mxu3 %v2405_v53 }
 0x46f   : > { %v1923_v9 = vpop.f32.mrf.mxu0  ;;  %2074 = vadd.xlane.f32.xlu2 %v2073_v60  ;;  %v2406_v60 = vld [vmem:[%s8589_s16 + $0x18] sm:$0xff] }
 0x470   : > { %v1924_v12 = vadd.f32 %v9635_v36, %v1923_v9  ;;  %2793 = vmatpush.msrb.mxu0 %v2406_v60 }
 0x471   : > { %v1875_v57 = vpop.f32.mrf.mxu3 }
 0x472   : > { %v9679_v24 = vadd.f32 %v8386_v14, %v1924_v12  ;;  %1943 = vmatmul.f32.gmra.mxu0 %v1872_v30  ;;  %v2404_v30 = vld [vmem:[%s8589_s16 + $0x8] sm:$0xff] }
 0x473   : > { %2663 = vmatpush.msrb.mxu2 %v2404_v30 }
 0x474   : > { %v1989_v16 = vsel %vm1157_vm2, %v9679_v24, 0.0  ;;  %v2050_v44 = vmul.f32 %v9679_v24, %v9679_v24 }
 0x475   : > { %1990 = vadd.xlane.f32.xlu0 %v1989_v16 }
 0x476   : > { %v2076_v26 = vsel %vm1157_vm2, %v2050_v44, 0.0 }
 0x477   : > { %v1926_v28 = vpop.f32.mrf.mxu0  ;;  %2077 = vadd.xlane.f32.xlu1 %v2076_v26 }
 0x478   : > { %v1927_v20 = vadd.f32 %v9635_v36, %v1926_v28 }
 0x479   : > { %v1878_v23 = vpop.f32.mrf.mxu3 }
 0x47a   : > { %v9687_v32 = vadd.f32 %v8387_v38, %v1927_v20  ;;  %1946 = vmatmul.f32.gmra.mxu0 %v1875_v57 }
 0x47c   : > { %v1992_v33 = vsel %vm1157_vm2, %v9687_v32, 0.0  ;;  %v2051_v52 = vmul.f32 %v9687_v32, %v9687_v32 }
 0x47d   : > { %1993 = vadd.xlane.f32.xlu2 %v1992_v33 }
 0x47e   : > { %v2079_v58 = vsel %vm1157_vm2, %v2051_v52, 0.0 }
 0x47f   : > { %v1929_v37 = vpop.f32.mrf.mxu0  ;;  %2080 = vadd.xlane.f32.xlu0 %v2079_v58 }
 0x480   : > { %v1930_v34 = vadd.f32 %v9635_v36, %v1929_v37 }
 0x481   : > { %v1881_v35 = vpop.f32.mrf.mxu3 }
 0x482   : > { %v9695_v4 = vadd.f32 %v8388_v42, %v1930_v34  ;;  %1949 = vmatmul.f32.gmra.mxu0 %v1878_v23 }
 0x484   : > { %v1995_v0 = vsel %vm1157_vm2, %v9695_v4, 0.0  ;;  %v2052_v3 = vmul.f32 %v9695_v4, %v9695_v4 }
 0x485   : > { %1996 = vadd.xlane.f32.xlu1 %v1995_v0 }
 0x486   : > { %v2082_v43 = vsel %vm1157_vm2, %v2052_v3, 0.0 }
 0x487   : > { %v1932_v13 = vpop.f32.mrf.mxu0  ;;  %2083 = vadd.xlane.f32.xlu2 %v2082_v43 }
 0x488   : > { %v1933_v47 = vadd.f32 %v9635_v36, %v1932_v13 }
 0x48a   : > { %v9703_v49 = vadd.f32 %v8389_v29, %v1933_v47  ;;  %1952 = vmatmul.f32.gmra.mxu0 %v1881_v35 }
 0x48c   : > { %v1998_v10 = vsel %vm1157_vm2, %v9703_v49, 0.0  ;;  %v2053_v50 = vmul.f32 %v9703_v49, %v9703_v49 }
 0x48d   : > { %1999 = vadd.xlane.f32.xlu0 %v1998_v10 }
 0x48e   : > { %v2085_v41 = vsel %vm1157_vm2, %v2053_v50, 0.0  ;;  %v9749_v50 = vld [vmem:[%s12626_s22] ss:$0 sm:$0xff] }
 0x48f   : > { %v1935_v51 = vpop.f32.mrf.mxu0  ;;  %2086 = vadd.xlane.f32.xlu1 %v2085_v41 }
 0x490   : > { %v1936_v15 = vadd.f32 %v9635_v36, %v1935_v51 }
 0x492   : > { %v9711_v55 = vadd.f32 %v8390_v19, %v1936_v15 }
 0x494   : > { %v2001_v56 = vsel %vm1157_vm2, %v9711_v55, 0.0  ;;  %v2054_v59 = vmul.f32 %v9711_v55, %v9711_v55 }
 0x495   : > { %2002 = vadd.xlane.f32.xlu2 %v2001_v56  ;;  %v9759_v56 = vld [vmem:[%s12627_s28] ss:$0 sm:$0xff] }
 0x496   : > { %v2088_v61 = vsel %vm1157_vm2, %v2054_v59, 0.0 }
 0x497   : > { %2089 = vadd.xlane.f32.xlu0 %v2088_v61 }
 0x4ba   : > { %v1976_v31 = vpop.xlane.xlu2 %1975 }
 0x4bb   : > { %v2029_v9 = vmul.f32 %v9729_v27, %v1976_v31 }
 0x4bc   : > { %v2063_v12 = vpop.xlane.xlu0 %2062 }
 0x4bd   : > { %v2125_v14 = vmul.f32 %v2029_v9, %v2029_v9  ;;  %v2109_v16 = vmul.f32 %v2063_v12, %v9729_v27  ;;  %v2157_v10 = vsub.f32 %v9638_v40, %v2029_v9 }
 0x4bf   : > { %v2141_v44 = vsub.f32 %v2109_v16, %v2125_v14 }
 0x4c1   : > { %v2173_v57 = vadd.f32 1e-05, %v2141_v44  ;;  %v8391_v44 = vld [vmem:[#allocation2 + $0x50] sm:$0xff] }
 0x4c2   : > { %v1979_v26 = vpop.xlane.xlu1 %1978 }
 0x4c3   : > { %8318 = vrsqrt.f32 %v2173_v57  ;;  %v2030_v28 = vmul.f32 %v9729_v27, %v1979_v26  ;;  %vm2195_vm6 = vweird.f32 %v2173_v57 }
 0x4c4   : > { %v2066_v20 = vpop.xlane.xlu2 %2065 }
 0x4c5   : > { %v2126_v38 = vmul.f32 %v2030_v28, %v2030_v28  ;;  %v2110_v33 = vmul.f32 %v2066_v20, %v9729_v27  ;;  %v2158_v1 = vsub.f32 %v9647_v18, %v2030_v28 }
 0x4c7   : > { %v2142_v52 = vsub.f32 %v2110_v33, %v2126_v38 }
 0x4c9   : > { %v8319_v58 = vpop.eup %8318  ;;  %v2174_v23 = vadd.f32 1e-05, %v2142_v52 }
 0x4ca   : > { %v2190_v37 = vmul.f32 %v8319_v58, %v2173_v57  ;;  %vm2196_vm5 = vweird.f32 %v8319_v58 }
 0x4cb   : > { %8320 = vrsqrt.f32 %v2174_v23  ;;  %vm2197_vm7 = vmor %vm2195_vm6, %vm2196_vm5  ;;  %vm2205_vm9 = vweird.f32 %v2174_v23 }
 0x4cc   : > { %v2191_v34 = vmul.f32 %v8319_v58, %v2190_v37 }
 0x4ce   : > { %v2192_v42 = vmul.f32 0.5, %v2191_v34 }
 0x4d0   : > { %v2193_v0 = vsub.f32 1.5, %v2192_v42  ;;  %v1982_v3 = vpop.xlane.xlu0 %1981 }
 0x4d1   : > { %v8321_v43 = vpop.eup %8320  ;;  %v9741_v13 = vmul.f32 %v9729_v27, %v1982_v3 }
 0x4d2   : > { %v2194_v47 = vmul.f32 %v8319_v58, %v2193_v0  ;;  %v2200_v35 = vmul.f32 %v8321_v43, %v2174_v23  ;;  %v2069_v29 = vpop.xlane.xlu1 %2068  ;;  %vm2206_vm8 = vweird.f32 %v8321_v43 }
 0x4d3   : > { %v2127_v41 = vmul.f32 %v9741_v13, %v9741_v13  ;;  %v2111_v51 = vmul.f32 %v2069_v29, %v9729_v27  ;;  %vm2207_vm10 = vmor %vm2205_vm9, %vm2206_vm8  ;;  %v2159_v29 = vsub.f32 %v9655_v63, %v9741_v13 }
 0x4d4   : > { %v2198_v15 = vsel %vm2197_vm7, %v8319_v58, %v2194_v47  ;;  %v2201_v19 = vmul.f32 %v8321_v43, %v2200_v35 }
 0x4d5   : > { %v2349_v40 = vmul.f32 %v2198_v15, %v2157_v10  ;;  %v2143_v59 = vsub.f32 %v2111_v51, %v2127_v41  ;;  %v8392_v15 = vld [vmem:[#allocation2 + $0x58] sm:$0xff] }
 0x4d6   : > { %v2202_v61 = vmul.f32 0.5, %v2201_v19 }
 0x4d7   : > { %v2368_v46 = vmul.f32 %v9749_v50, %v2349_v40  ;;  %v2175_v62 = vadd.f32 1e-05, %v2143_v59 }
 0x4d8   : > { %v2203_v25 = vsub.f32 1.5, %v2202_v61  ;;  %v1985_v11 = vpop.xlane.xlu2 %1984 }
 0x4d9   : > { %v9763_v17 = vadd.f32 %v9759_v56, %v2368_v46  ;;  %8322 = vrsqrt.f32 %v2175_v62  ;;  %v9766_v39 = vmul.f32 %v9729_v27, %v1985_v11  ;;  %vm2215_vm12 = vweird.f32 %v2175_v62 }
 0x4da   : > { %v2204_v54 = vmul.f32 %v8321_v43, %v2203_v25  ;;  %v2072_v45 = vpop.xlane.xlu0 %2071 }
 0x4db   : > { %12628 = vst [vmem:[#allocation12_spill] sm:$0xff] %v9763_v17  ;;  %v2128_v21 = vmul.f32 %v9766_v39, %v9766_v39  ;;  %v2112_v5 = vmul.f32 %v2072_v45, %v9729_v27  ;;  %7808 = vmatmul.msk.f32.vlgmr.msrb.gmra.mxu1 %vm1157_vm2, %v9763_v17  ;;  %7825 = vmatmul.msk.f32.vlgmr.msrb.gmra.mxu2 %vm1157_vm2, %v9763_v17 }
 0x4dc   : > { %v2208_v48 = vsel %vm2207_vm10, %v8321_v43, %v2204_v54  ;;  %7842 = vmatmul.msk.f32.vlgmr.msrb.gmra.mxu3 %vm1157_vm2, %v9763_v17  ;;  %7859 = vmatmul.msk.f32.vlgmr.msrb.gmra.mxu0 %vm1157_vm2, %v9763_v17 }
 0x4dd   : > { %v2350_v18 = vmul.f32 %v2208_v48, %v2158_v1  ;;  %v2144_v22 = vsub.f32 %v2112_v5, %v2128_v21 }
 0x4df   : > { %v8323_v6 = vpop.eup %8322  ;;  %v2369_v7 = vmul.f32 %v9749_v50, %v2350_v18  ;;  %v9781_v30 = vadd.f32 1e-05, %v2144_v22  ;;  %v1938_v53 = vpop.f32.mrf.mxu0 }
 0x4e0   : > { %v2210_v31 = vmul.f32 %v8323_v6, %v2175_v62  ;;  %v1939_v60 = vadd.f32 %v9635_v36, %v1938_v53  ;;  %v1988_v9 = vpop.xlane.xlu1 %1987  ;;  %vm2216_vm11 = vweird.f32 %v8323_v6  ;;  %v2160_v53 = vsub.f32 %v9663_v2, %v9766_v39 }
 0x4e1   : > { %v9785_v12 = vadd.f32 %v9759_v56, %v2369_v7  ;;  %8324 = vrsqrt.f32 %v9781_v30  ;;  %v9789_v14 = vmul.f32 %v9729_v27, %v1988_v9  ;;  %vm2217_vm13 = vmor %vm2215_vm12, %vm2216_vm11  ;;  %vm2225_vm15 = vweird.f32 %v9781_v30  ;;  %v8393_v9 = vld [vmem:[#allocation2 + $0x60] sm:$0xff] }
 0x4e2   : > { %v2211_v16 = vmul.f32 %v8323_v6, %v2210_v31  ;;  %v9791_v57 = vadd.f32 %v8391_v44, %v1939_v60  ;;  %v2075_v26 = vpop.xlane.xlu2 %2074 }
 0x4e3   : > { %12629 = vst [vmem:[#allocation13_spill] sm:$0xff] %v9785_v12  ;;  %v2129_v28 = vmul.f32 %v9789_v14, %v9789_v14  ;;  %v2113_v20 = vmul.f32 %v2075_v26, %v9729_v27  ;;  %7809 = vmatmul.msk.f32.gmra.mxu1 %vm1157_vm2, %v9785_v12  ;;  %7826 = vmatmul.msk.f32.gmra.mxu2 %vm1157_vm2, %v9785_v12 }
 0x4e4   : > { %v2212_v38 = vmul.f32 0.5, %v2211_v16  ;;  %7843 = vmatmul.msk.f32.gmra.mxu3 %vm1157_vm2, %v9785_v12  ;;  %7860 = vmatmul.msk.f32.gmra.mxu0 %vm1157_vm2, %v9785_v12  ;;  %v2004_v33 = vsel %vm1157_vm2, %v9791_v57, 0.0  ;;  %v2055_v52 = vmul.f32 %v9791_v57, %v9791_v57 }
 0x4e5   : > { %v2145_v58 = vsub.f32 %v2113_v20, %v2129_v28  ;;  %2005 = vadd.xlane.f32.xlu1 %v2004_v33 }
 0x4e6   : > { %v2213_v23 = vsub.f32 1.5, %v2212_v38  ;;  %v2091_v37 = vsel %vm1157_vm2, %v2055_v52, 0.0 }
 0x4e7   : > { %v8325_v34 = vpop.eup %8324  ;;  %v9809_v42 = vadd.f32 1e-05, %v2145_v58  ;;  %2092 = vadd.xlane.f32.xlu2 %v2091_v37  ;;  %v1941_v0 = vpop.f32.mrf.mxu0 }
 0x4e8   : > { %v2214_v3 = vmul.f32 %v8323_v6, %v2213_v23  ;;  %v2220_v43 = vmul.f32 %v8325_v34, %v9781_v30  ;;  %v1942_v47 = vadd.f32 %v9635_v36, %v1941_v0  ;;  %v1991_v35 = vpop.xlane.xlu0 %1990  ;;  %vm2226_vm14 = vweird.f32 %v8325_v34 }
 0x4e9   : > { %8326 = vrsqrt.f32 %v9809_v42  ;;  %v9817_v10 = vmul.f32 %v9729_v27, %v1991_v35  ;;  %vm2227_vm0 = vmor %vm2225_vm15, %vm2226_vm14  ;;  %vm2235_vm4 = vweird.f32 %v9809_v42 }
 0x4ea   : > { %v2218_v41 = vsel %vm2217_vm13, %v8323_v6, %v2214_v3  ;;  %v2221_v51 = vmul.f32 %v8325_v34, %v2220_v43  ;;  %v9819_v19 = vadd.f32 %v8392_v15, %v1942_v47  ;;  %v2078_v40 = vpop.xlane.xlu1 %2077 }
 0x4eb   : > { %v2351_v59 = vmul.f32 %v2218_v41, %v2159_v29  ;;  %v2130_v61 = vmul.f32 %v9817_v10, %v9817_v10  ;;  %v2114_v46 = vmul.f32 %v2078_v40, %v9729_v27  ;;  %v2161_v41 = vsub.f32 %v9671_v8, %v9789_v14  ;;  %v8394_v40 = vld [vmem:[#allocation2 + $0x68] sm:$0xff] }
 0x4ec   : > { %v2222_v62 = vmul.f32 0.5, %v2221_v51  ;;  %v2007_v63 = vsel %vm1157_vm2, %v9819_v19, 0.0  ;;  %v2056_v13 = vmul.f32 %v9819_v19, %v9819_v19 }
 0x4ed   : > { %v2370_v25 = vmul.f32 %v9749_v50, %v2351_v59  ;;  %v2146_v11 = vsub.f32 %v2114_v46, %v2130_v61  ;;  %2008 = vadd.xlane.f32.xlu0 %v2007_v63 }
 0x4ee   : > { %v2223_v54 = vsub.f32 1.5, %v2222_v62  ;;  %v2094_v45 = vsel %vm1157_vm2, %v2056_v13, 0.0 }
 0x4ef   : > { %v8327_v1 = vpop.eup %8326  ;;  %v9831_v21 = vadd.f32 %v9759_v56, %v2370_v25  ;;  %v9833_v5 = vadd.f32 1e-05, %v2146_v11  ;;  %v1944_v48 = vpop.f32.mrf.mxu0  ;;  %2095 = vadd.xlane.f32.xlu1 %v2094_v45 }
 0x4f0   : > { %v2224_v18 = vmul.f32 %v8325_v34, %v2223_v54  ;;  %v2230_v22 = vmul.f32 %v8327_v1, %v9809_v42  ;;  %v1945_v6 = vadd.f32 %v9635_v36, %v1944_v48  ;;  %v1994_v7 = vpop.xlane.xlu2 %1993  ;;  %vm2236_vm3 = vweird.f32 %v8327_v1 }
 0x4f1   : > { %12630 = vst [vmem:[#allocation14_spill] sm:$0xff] %v9831_v21  ;;  %8328 = vrsqrt.f32 %v9833_v5  ;;  %v9842_v31 = vmul.f32 %v9729_v27, %v1994_v7  ;;  %7810 = vmatmul.msk.f32.gmra.mxu1 %vm1157_vm2, %v9831_v21  ;;  %7827 = vmatmul.msk.f32.gmra.mxu2 %vm1157_vm2, %v9831_v21  ;;  %vm2237_vm5 = vmor %vm2235_vm4, %vm2236_vm3  ;;  %vm2245_vm7 = vweird.f32 %v9833_v5 }
 0x4f2   : > { %v2228_v30 = vsel %vm2227_vm0, %v8325_v34, %v2224_v18  ;;  %v2231_v60 = vmul.f32 %v8327_v1, %v2230_v22  ;;  %v9848_v16 = vadd.f32 %v8393_v9, %v1945_v6  ;;  %7844 = vmatmul.msk.f32.gmra.mxu3 %vm1157_vm2, %v9831_v21  ;;  %7861 = vmatmul.msk.f32.gmra.mxu0 %vm1157_vm2, %v9831_v21  ;;  %v2081_v2 = vpop.xlane.xlu0 %2080 }
 0x4f3   : > { %v2352_v39 = vmul.f32 %v2228_v30, %v2160_v53  ;;  %v2131_v44 = vmul.f32 %v9842_v31, %v9842_v31  ;;  %v2115_v26 = vmul.f32 %v2081_v2, %v9729_v27 }
 0x4f4   : > { %v2232_v28 = vmul.f32 0.5, %v2231_v60  ;;  %v2010_v20 = vsel %vm1157_vm2, %v9848_v16, 0.0  ;;  %v2057_v38 = vmul.f32 %v9848_v16, %v9848_v16  ;;  %v2162_v60 = vsub.f32 %v9679_v24, %v9817_v10 }
 0x4f5   : > { %v2371_v33 = vmul.f32 %v9749_v50, %v2352_v39  ;;  %v2147_v52 = vsub.f32 %v2115_v26, %v2131_v44  ;;  %2011 = vadd.xlane.f32.xlu2 %v2010_v20  ;;  %v8395_v39 = vld [vmem:[#allocation2 + $0x70] sm:$0xff] }
 0x4f6   : > { %v2233_v58 = vsub.f32 1.5, %v2232_v28  ;;  %v2097_v23 = vsel %vm1157_vm2, %v2057_v38, 0.0 }
 0x4f7   : > { %v8329_v37 = vpop.eup %8328  ;;  %v9864_v34 = vadd.f32 %v9759_v56, %v2371_v33  ;;  %v9866_v0 = vadd.f32 1e-05, %v2147_v52  ;;  %v1947_v3 = vpop.f32.mrf.mxu0  ;;  %2098 = vadd.xlane.f32.xlu0 %v2097_v23 }
 0x4f8   : > { %v2234_v43 = vmul.f32 %v8327_v1, %v2233_v58  ;;  %v2240_v47 = vmul.f32 %v8329_v37, %v9833_v5  ;;  %v1948_v35 = vadd.f32 %v9635_v36, %v1947_v3  ;;  %v1997_v29 = vpop.xlane.xlu1 %1996  ;;  %vm2246_vm6 = vweird.f32 %v8329_v37 }
 0x4f9   : > { %12631 = vst [vmem:[#allocation15_spill] sm:$0xff] %v9864_v34  ;;  %8330 = vrsqrt.f32 %v9866_v0  ;;  %v9875_v51 = vmul.f32 %v9729_v27, %v1997_v29  ;;  %7811 = vmatmul.msk.f32.gmra.mxu1 %vm1157_vm2, %v9864_v34  ;;  %7828 = vmatmul.msk.f32.gmra.mxu2 %vm1157_vm2, %v9864_v34  ;;  %vm2247_vm8 = vmor %vm2245_vm7, %vm2246_vm6  ;;  %vm2255_vm10 = vweird.f32 %v9866_v0 }
 0x4fa   : > { %v2238_v42 = vsel %vm2237_vm5, %v8327_v1, %v2234_v43  ;;  %v2241_v15 = vmul.f32 %v8329_v37, %v2240_v47  ;;  %v9881_v59 = vadd.f32 %v8394_v40, %v1948_v35  ;;  %7845 = vmatmul.msk.f32.gmra.mxu3 %vm1157_vm2, %v9864_v34  ;;  %7862 = vmatmul.msk.f32.gmra.mxu0 %vm1157_vm2, %v9864_v34  ;;  %v2084_v8 = vpop.xlane.xlu2 %2083 }
 0x4fb   : > { %v2353_v14 = vmul.f32 %v2238_v42, %v2161_v41  ;;  %v2132_v61 = vmul.f32 %v9875_v51, %v9875_v51  ;;  %v2116_v46 = vmul.f32 %v2084_v8, %v9729_v27  ;;  %v2163_v40 = vsub.f32 %v9687_v32, %v9842_v31  ;;  %v2440_v31 = vld [vmem:[%s8589_s16 + $0x128] sm:$0x1] }
 0x4fc   : > { %v2242_v62 = vmul.f32 0.5, %v2241_v15  ;;  %v2013_v63 = vsel %vm1157_vm2, %v9881_v59, 0.0  ;;  %v2058_v13 = vmul.f32 %v9881_v59, %v9881_v59  ;;  %7892 = vmatpush.msk.msra.mxu2 %vm1206_vm1, %v2440_v31 }
 0x4fd   : > { %v2372_v25 = vmul.f32 %v9749_v50, %v2353_v14  ;;  %v2148_v11 = vsub.f32 %v2116_v46, %v2132_v61  ;;  %2014 = vadd.xlane.f32.xlu1 %v2013_v63  ;;  %v8396_v14 = vld [vmem:[#allocation2 + $0x78] sm:$0xff]  ;;  %v2441_v46 = vld [vmem:[%s8589_s16 + $0x130] sm:$0x1] }
 0x4fe   : > { %v2243_v54 = vsub.f32 1.5, %v2242_v62  ;;  %v2100_v45 = vsel %vm1157_vm2, %v2058_v13, 0.0  ;;  %v2439_v62 = vld [vmem:[%s8589_s16 + $0x120] sm:$0x1]  ;;  %7909 = vmatpush.msk.msra.mxu3 %vm1206_vm1, %v2441_v46 }
 0x4ff   : > { %v8331_v1 = vpop.eup %8330  ;;  %v9897_v48 = vadd.f32 %v9759_v56, %v2372_v25  ;;  %v9899_v18 = vadd.f32 1e-05, %v2148_v11  ;;  %2101 = vadd.xlane.f32.xlu2 %v2100_v45  ;;  %v1950_v22 = vpop.f32.mrf.mxu0  ;;  %v2442_v11 = vld [vmem:[%s8589_s16 + $0x138] sm:$0x1]  ;;  %7875 = vmatpush.msk.msra.mxu1 %vm1206_vm1, %v2439_v62 }
 0x500   : > { %v2244_v6 = vmul.f32 %v8329_v37, %v2243_v54  ;;  %v2250_v7 = vmul.f32 %v8331_v1, %v9866_v0  ;;  %v1951_v53 = vadd.f32 %v9635_v36, %v1950_v22  ;;  %v2000_v30 = vpop.xlane.xlu0 %1999  ;;  %vm2256_vm9 = vweird.f32 %v8331_v1  ;;  %7926 = vmatpush.msk.msra.mxu0 %vm1206_vm1, %v2442_v11  ;;  %v2426_v11 = vld [vmem:[%s8589_s16 + $0xb8] sm:$0xff] }
 0x501   : > { %12632 = vst [vmem:[#allocation16_spill] sm:$0xff] %v9897_v48  ;;  %8332 = vrsqrt.f32 %v9899_v18  ;;  %v9908_v9 = vmul.f32 %v9729_v27, %v2000_v30  ;;  %7812 = vmatmul.msk.f32.gmra.mxu1 %vm1157_vm2, %v9897_v48  ;;  %7829 = vmatmul.msk.f32.gmra.mxu2 %vm1157_vm2, %v9897_v48  ;;  %vm2257_vm11 = vmor %vm2255_vm10, %vm2256_vm9  ;;  %vm2265_vm13 = vweird.f32 %v9899_v18 }
 0x502   : > { %v2248_v5 = vsel %vm2247_vm8, %v8329_v37, %v2244_v6  ;;  %v2251_v2 = vmul.f32 %v8331_v1, %v2250_v7  ;;  %v9914_v44 = vadd.f32 %v8395_v39, %v1951_v53  ;;  %7846 = vmatmul.msk.f32.gmra.mxu3 %vm1157_vm2, %v9897_v48  ;;  %7863 = vmatmul.msk.f32.gmra.mxu0 %vm1157_vm2, %v9897_v48  ;;  %v2087_v24 = vpop.xlane.xlu1 %2086 }
 0x503   : > { %v2354_v10 = vmul.f32 %v2248_v5, %v2162_v60  ;;  %v2133_v26 = vmul.f32 %v9908_v9, %v9908_v9  ;;  %v2117_v28 = vmul.f32 %v2087_v24, %v9729_v27  ;;  %v2164_v24 = vsub.f32 %v9695_v4, %v9875_v51  ;;  %3052 = vmatpush.msra.mxu0 %v2426_v11 }
 0x504   : > { %v2252_v20 = vmul.f32 0.5, %v2251_v2  ;;  %v2016_v38 = vsel %vm1157_vm2, %v9914_v44, 0.0  ;;  %v2059_v33 = vmul.f32 %v9914_v44, %v9914_v44 }
 0x505   : > { %v2373_v52 = vmul.f32 %v9749_v50, %v2354_v10  ;;  %v2149_v58 = vsub.f32 %v2117_v28, %v2133_v26  ;;  %2017 = vadd.xlane.f32.xlu0 %v2016_v38 }
 0x506   : > { %v2253_v23 = vsub.f32 1.5, %v2252_v20  ;;  %v2103_v37 = vsel %vm1157_vm2, %v2059_v33, 0.0 }
 0x507   : > { %v8333_v3 = vpop.eup %8332  ;;  %v9930_v43 = vadd.f32 %v9759_v56, %v2373_v52  ;;  %v9932_v47 = vadd.f32 1e-05, %v2149_v58  ;;  %2104 = vadd.xlane.f32.xlu1 %v2103_v37  ;;  %v1953_v35 = vpop.f32.mrf.mxu0  ;;  %v2165_v58 = vsub.f32 %v9703_v49, %v9908_v9 }
 0x508   : > { %v2254_v29 = vmul.f32 %v8331_v1, %v2253_v23  ;;  %v2260_v41 = vmul.f32 %v8333_v3, %v9899_v18  ;;  %v1954_v42 = vadd.f32 %v9635_v36, %v1953_v35  ;;  %v2003_v15 = vpop.xlane.xlu2 %2002  ;;  %vm2266_vm12 = vweird.f32 %v8333_v3 }
 0x509   : > { %12633 = vst [vmem:[#allocation17_spill] sm:$0xff] %v9930_v43  ;;  %8334 = vrsqrt.f32 %v9932_v47  ;;  %v9941_v8 = vmul.f32 %v9729_v27, %v2003_v15  ;;  %7813 = vmatmul.msk.f32.gmra.mxu1 %vm1157_vm2, %v9930_v43  ;;  %7830 = vmatmul.msk.f32.gmra.mxu2 %vm1157_vm2, %v9930_v43  ;;  %vm2267_vm14 = vmor %vm2265_vm13, %vm2266_vm12  ;;  %vm2275_vm0 = vweird.f32 %v9932_v47 }
 0x50a   : > { %v2258_v36 = vsel %vm2257_vm11, %v8331_v1, %v2254_v29  ;;  %v2261_v0 = vmul.f32 %v8333_v3, %v2260_v41  ;;  %v9947_v61 = vadd.f32 %v8396_v14, %v1954_v42  ;;  %7847 = vmatmul.msk.f32.gmra.mxu3 %vm1157_vm2, %v9930_v43  ;;  %7864 = vmatmul.msk.f32.gmra.mxu0 %vm1157_vm2, %v9930_v43  ;;  %v2090_v32 = vpop.xlane.xlu0 %2089 }
 0x50b   : > { %v2355_v63 = vmul.f32 %v2258_v36, %v2163_v40  ;;  %v2134_v13 = vmul.f32 %v9941_v8, %v9941_v8  ;;  %v2118_v25 = vmul.f32 %v2090_v32, %v9729_v27  ;;  %v2166_v41 = vsub.f32 %v9711_v55, %v9941_v8  ;;  %v2424_v8 = vld [vmem:[%s8589_s16 + $0xa8] sm:$0xff]  ;;  %v2425_v36 = vld [vmem:[%s8589_s16 + $0xb0] sm:$0xff] }
 0x50c   : > { %v2262_v54 = vmul.f32 0.5, %v2261_v0  ;;  %v2019_v45 = vsel %vm1157_vm2, %v9947_v61, 0.0  ;;  %v2060_v1 = vmul.f32 %v9947_v61, %v9947_v61  ;;  %v2423_v0 = vld [vmem:[%s8589_s16 + $0xa0] sm:$0xff]  ;;  %2922 = vmatpush.msra.mxu2 %v2424_v8  ;;  %2987 = vmatpush.msra.mxu3 %v2425_v36 }
 0x50d   : > { %v2374_v22 = vmul.f32 %v9749_v50, %v2355_v63  ;;  %v2150_v6 = vsub.f32 %v2118_v25, %v2134_v13  ;;  %2020 = vadd.xlane.f32.xlu2 %v2019_v45  ;;  %2857 = vmatpush.msra.mxu1 %v2423_v0 }
 0x50e   : > { %v2263_v7 = vsub.f32 1.5, %v2262_v54  ;;  %v2106_v53 = vsel %vm1157_vm2, %v2060_v1, 0.0 }
 0x50f   : > { %v8335_v30 = vpop.eup %8334  ;;  %v9971_v60 = vadd.f32 %v9759_v56, %v2374_v22  ;;  %v2182_v5 = vadd.f32 1e-05, %v2150_v6  ;;  %2107 = vadd.xlane.f32.xlu0 %v2106_v53 }
 0x510   : > { %v2264_v2 = vmul.f32 %v8333_v3, %v2263_v7  ;;  %v2270_v39 = vmul.f32 %v8335_v30, %v9932_v47  ;;  %vm2276_vm15 = vweird.f32 %v8335_v30 }
 0x511   : > { %12634 = vst [vmem:[#allocation18_spill] sm:$0xff] %v9971_v60  ;;  %8336 = vrsqrt.f32 %v2182_v5  ;;  %7814 = vmatmul.msk.f32.gmra.mxu1 %vm1157_vm2, %v9971_v60  ;;  %7831 = vmatmul.msk.f32.gmra.mxu2 %vm1157_vm2, %v9971_v60  ;;  %vm2277_vm3 = vmor %vm2275_vm0, %vm2276_vm15  ;;  %vm2285_vm5 = vweird.f32 %v2182_v5 }
 0x512   : > { %v2268_v10 = vsel %vm2267_vm14, %v8333_v3, %v2264_v2  ;;  %v2271_v26 = vmul.f32 %v8335_v30, %v2270_v39  ;;  %7848 = vmatmul.msk.f32.gmra.mxu3 %vm1157_vm2, %v9971_v60  ;;  %7865 = vmatmul.msk.f32.gmra.mxu0 %vm1157_vm2, %v9971_v60 }
 0x513   : > { %v2356_v18 = vmul.f32 %v2268_v10, %v2164_v24 }
 0x514   : > { %v2272_v28 = vmul.f32 0.5, %v2271_v26 }
 0x515   : > { %v2375_v4 = vmul.f32 %v9749_v50, %v2356_v18 }
 0x516   : > { %v2273_v51 = vsub.f32 1.5, %v2272_v28 }
 0x517   : > { %v8337_v20 = vpop.eup %8336  ;;  %v9987_v38 = vadd.f32 %v9759_v56, %v2375_v4 }
 0x518   : > { %v2274_v33 = vmul.f32 %v8335_v30, %v2273_v51  ;;  %v2280_v52 = vmul.f32 %v8337_v20, %v2182_v5  ;;  %vm2286_vm4 = vweird.f32 %v8337_v20 }
 0x519   : > { %12635 = vst [vmem:[#allocation19_spill] sm:$0xff] %v9987_v38  ;;  %7815 = vmatmul.msk.f32.gmra.mxu1 %vm1157_vm2, %v9987_v38  ;;  %7832 = vmatmul.msk.f32.gmra.mxu2 %vm1157_vm2, %v9987_v38  ;;  %vm2287_vm6 = vmor %vm2285_vm5, %vm2286_vm4 }
 0x51a   : > { %v2278_v23 = vsel %vm2277_vm3, %v8335_v30, %v2274_v33  ;;  %v2281_v37 = vmul.f32 %v8337_v20, %v2280_v52  ;;  %7849 = vmatmul.msk.f32.gmra.mxu3 %vm1157_vm2, %v9987_v38  ;;  %7866 = vmatmul.msk.f32.gmra.mxu0 %vm1157_vm2, %v9987_v38 }
 0x51b   : > { %v2357_v3 = vmul.f32 %v2278_v23, %v2165_v58 }
 0x51c   : > { %v2282_v47 = vmul.f32 0.5, %v2281_v37 }
 0x51d   : > { %v2376_v35 = vmul.f32 %v9749_v50, %v2357_v3 }
 0x51e   : > { %v2283_v49 = vsub.f32 1.5, %v2282_v47 }
 0x51f   : > { %v10002_v9 = vadd.f32 %v9759_v56, %v2376_v35 }
 0x520   : > { %v2284_v29 = vmul.f32 %v8337_v20, %v2283_v49 }
 0x521   : > { %12636 = vst [vmem:[#allocation20_spill] sm:$0xff] %v10002_v9  ;;  %7816 = vmatmul.msk.f32.gmra.mxu1 %vm1157_vm2, %v10002_v9  ;;  %7833 = vmatmul.msk.f32.gmra.mxu2 %vm1157_vm2, %v10002_v9 }
 0x522   : > { %v2288_v42 = vsel %vm2287_vm6, %v8337_v20, %v2284_v29  ;;  %7850 = vmatmul.msk.f32.gmra.mxu3 %vm1157_vm2, %v10002_v9  ;;  %7867 = vmatmul.msk.f32.gmra.mxu0 %vm1157_vm2, %v10002_v9 }
 0x523   : > { %v2358_v15 = vmul.f32 %v2288_v42, %v2166_v41 }
 0x525   : > { %v2377_v40 = vmul.f32 %v9749_v50, %v2358_v15 }
 0x527   : > { %v10016_v55 = vadd.f32 %v9759_v56, %v2377_v40 }
 0x529   : > { %12637 = vst [vmem:[#allocation21_spill] sm:$0xff] %v10016_v55  ;;  %7817 = vmatmul.msk.f32.gmra.mxu1 %vm1157_vm2, %v10016_v55  ;;  %7834 = vmatmul.msk.f32.gmra.mxu2 %vm1157_vm2, %v10016_v55 }
 0x52a   : > { %7851 = vmatmul.msk.f32.gmra.mxu3 %vm1157_vm2, %v10016_v55  ;;  %7868 = vmatmul.msk.f32.gmra.mxu0 %vm1157_vm2, %v10016_v55 }
 0x558   : > { %v2006_v14 = vpop.xlane.xlu1 %2005 }
 0x559   : > { %v2039_v32 = vmul.f32 %v9729_v27, %v2006_v14 }
 0x55a   : > { %v2093_v31 = vpop.xlane.xlu2 %2092 }
 0x55b   : > { %v2135_v46 = vmul.f32 %v2039_v32, %v2039_v32  ;;  %v2119_v62 = vmul.f32 %v2093_v31, %v9729_v27  ;;  %v2167_v58 = vsub.f32 %v9791_v57, %v2039_v32 }
 0x55d   : > { %v2151_v63 = vsub.f32 %v2119_v62, %v2135_v46 }
 0x55f   : > { %v2183_v13 = vadd.f32 1e-05, %v2151_v63 }
 0x560   : > { %v2009_v25 = vpop.xlane.xlu0 %2008 }
 0x561   : > { %8338 = vrsqrt.f32 %v2183_v13  ;;  %v2040_v54 = vmul.f32 %v9729_v27, %v2009_v25  ;;  %vm2295_vm8 = vweird.f32 %v2183_v13 }
 0x562   : > { %v2096_v45 = vpop.xlane.xlu1 %2095 }
 0x563   : > { %v2120_v1 = vmul.f32 %v2096_v45, %v9729_v27  ;;  %v2136_v22 = vmul.f32 %v2040_v54, %v2040_v54  ;;  %v2168_v62 = vsub.f32 %v9819_v19, %v2040_v54 }
 0x565   : > { %v2152_v6 = vsub.f32 %v2120_v1, %v2136_v22 }
 0x567   : > { %v8339_v7 = vpop.eup %8338  ;;  %v2184_v30 = vadd.f32 1e-05, %v2152_v6 }
 0x568   : > { %v2290_v53 = vmul.f32 %v8339_v7, %v2183_v13  ;;  %v2012_v5 = vpop.xlane.xlu2 %2011  ;;  %vm2296_vm7 = vweird.f32 %v8339_v7 }
 0x569   : > { %v10035_v2 = vmul.f32 %v9729_v27, %v2012_v5  ;;  %8340 = vrsqrt.f32 %v2184_v30  ;;  %vm2297_vm9 = vmor %vm2295_vm8, %vm2296_vm7  ;;  %vm2305_vm11 = vweird.f32 %v2184_v30 }
 0x56a   : > { %v2291_v39 = vmul.f32 %v8339_v7, %v2290_v53  ;;  %v2099_v24 = vpop.xlane.xlu0 %2098 }
 0x56b   : > { %v2137_v10 = vmul.f32 %v10035_v2, %v10035_v2  ;;  %v2121_v26 = vmul.f32 %v2099_v24, %v9729_v27  ;;  %v2408_v24 = vld [vmem:[%s8589_s16 + $0x28] sm:$0xff] }
 0x56c   : > { %v2292_v18 = vmul.f32 0.5, %v2291_v39  ;;  %2923 = vmatpush.msra.mxu2 %v2408_v24 }
 0x56d   : > { %v2153_v28 = vsub.f32 %v2121_v26, %v2137_v10  ;;  %v2409_v10 = vld [vmem:[%s8589_s16 + $0x30] sm:$0xff]  ;;  %v2169_v26 = vsub.f32 %v9848_v16, %v10035_v2 }
 0x56e   : > { %v2293_v4 = vsub.f32 1.5, %v2292_v18  ;;  %2988 = vmatpush.msra.mxu3 %v2409_v10  ;;  %v2446_v10 = vld [vmem:[%s8589_s16 + $0x158] sm:$0x1] }
 0x56f   : > { %v2185_v51 = vadd.f32 1e-05, %v2153_v28  ;;  %v8341_v20 = vpop.eup %8340  ;;  %v2407_v28 = vld [vmem:[%s8589_s16 + $0x20] sm:$0xff] }
 0x570   : > { %v2294_v33 = vmul.f32 %v8339_v7, %v2293_v4  ;;  %v2015_v52 = vpop.xlane.xlu1 %2014  ;;  %v2300_v23 = vmul.f32 %v8341_v20, %v2184_v30  ;;  %vm2306_vm10 = vweird.f32 %v8341_v20  ;;  %v2410_v4 = vld [vmem:[%s8589_s16 + $0x38] sm:$0xff]  ;;  %2858 = vmatpush.msra.mxu1 %v2407_v28 }
 0x571   : > { %8342 = vrsqrt.f32 %v2185_v51  ;;  %v10042_v3 = vmul.f32 %v9729_v27, %v2015_v52  ;;  %vm2307_vm12 = vmor %vm2305_vm11, %vm2306_vm10  ;;  %vm2315_vm14 = vweird.f32 %v2185_v51  ;;  %3053 = vmatpush.msra.mxu0 %v2410_v4 }
 0x572   : > { %v2298_v37 = vsel %vm2297_vm9, %v8339_v7, %v2294_v33  ;;  %v2102_v47 = vpop.xlane.xlu2 %2101  ;;  %v2301_v49 = vmul.f32 %v8341_v20, %v2300_v23 }
 0x573   : > { %v2359_v35 = vmul.f32 %v2298_v37, %v2167_v58  ;;  %v2122_v29 = vmul.f32 %v2102_v47, %v9729_v27  ;;  %v2138_v41 = vmul.f32 %v10042_v3, %v10042_v3  ;;  %7994 = vmatpush.msk.msrb.mxu0 %vm1206_vm1, %v2446_v10  ;;  %v2411_v10 = vld [vmem:[%s8589_s16 + $0x40] sm:$0xff] }
 0x574   : > { %v2302_v15 = vmul.f32 0.5, %v2301_v49 }
 0x575   : > { %v2378_v42 = vmul.f32 %v9749_v50, %v2359_v35  ;;  %v2154_v40 = vsub.f32 %v2122_v29, %v2138_v41 }
 0x576   : > { %v2303_v36 = vsub.f32 1.5, %v2302_v15 }
 0x577   : > { %v8343_v57 = vpop.eup %8342  ;;  %v10049_v8 = vadd.f32 %v9759_v56, %v2378_v42  ;;  %v10051_v14 = vadd.f32 1e-05, %v2154_v40  ;;  %v2170_v40 = vsub.f32 %v9881_v59, %v10042_v3 }
 0x578   : > { %v2310_v0 = vmul.f32 %v8343_v57, %v2185_v51  ;;  %v2018_v32 = vpop.xlane.xlu0 %2017  ;;  %v2304_v31 = vmul.f32 %v8341_v20, %v2303_v36  ;;  %vm2316_vm13 = vweird.f32 %v8343_v57 }
 0x579   : > { %12638 = vst [vmem:[#allocation22_spill] sm:$0xff] %v10049_v8  ;;  %v10054_v46 = vmul.f32 %v9729_v27, %v2018_v32  ;;  %7818 = vmatmul.msk.f32.gmra.mxu1 %vm1157_vm2, %v10049_v8  ;;  %7835 = vmatmul.msk.f32.gmra.mxu2 %vm1157_vm2, %v10049_v8  ;;  %8344 = vrsqrt.f32 %v10051_v14  ;;  %vm2317_vm15 = vmor %vm2315_vm14, %vm2316_vm13  ;;  %vm2325_vm3 = vweird.f32 %v10051_v14 }
 0x57a   : > { %v2311_v63 = vmul.f32 %v8343_v57, %v2310_v0  ;;  %7852 = vmatmul.msk.f32.gmra.mxu3 %vm1157_vm2, %v10049_v8  ;;  %7869 = vmatmul.msk.f32.gmra.mxu0 %vm1157_vm2, %v10049_v8  ;;  %v2105_v13 = vpop.xlane.xlu1 %2104  ;;  %v2308_v25 = vsel %vm2307_vm12, %v8341_v20, %v2304_v31 }
 0x57b   : > { %v2139_v11 = vmul.f32 %v10054_v46, %v10054_v46  ;;  %v2360_v45 = vmul.f32 %v2308_v25, %v2168_v62  ;;  %v2123_v19 = vmul.f32 %v2105_v13, %v9729_v27  ;;  %v2171_v13 = vsub.f32 %v9914_v44, %v10054_v46  ;;  %v10129_v46 = vpop.f32.mrf.mxu1 }
 0x57c   : > { %v2312_v1 = vmul.f32 0.5, %v2311_v63 }
 0x57d   : > { %v2379_v54 = vmul.f32 %v9749_v50, %v2360_v45  ;;  %v2155_v6 = vsub.f32 %v2123_v19, %v2139_v11  ;;  %v2444_v45 = vld [vmem:[%s8589_s16 + $0x148] sm:$0x1]  ;;  %v2443_v19 = vld [vmem:[%s8589_s16 + $0x140] sm:$0x1] }
 0x57e   : > { %v2313_v22 = vsub.f32 1.5, %v2312_v1  ;;  %v2445_v1 = vld [vmem:[%s8589_s16 + $0x150] sm:$0x1]  ;;  %7960 = vmatpush.msk.msrb.mxu2 %vm1206_vm1, %v2444_v45  ;;  %7943 = vmatpush.msk.msrb.mxu1 %vm1206_vm1, %v2443_v19 }
 0x57f   : > { %v8345_v7 = vpop.eup %8344  ;;  %v10071_v53 = vadd.f32 %v9759_v56, %v2379_v54  ;;  %v2187_v5 = vadd.f32 1e-05, %v2155_v6  ;;  %7977 = vmatpush.msk.msrb.mxu3 %vm1206_vm1, %v2445_v1  ;;  %v10132_v6 = vpop.f32.mrf.mxu0 }
 0x580   : > { %v2314_v30 = vmul.f32 %v8343_v57, %v2313_v22  ;;  %v2021_v39 = vpop.xlane.xlu2 %2020  ;;  %v2320_v18 = vmul.f32 %v8345_v7, %v10051_v14  ;;  %vm2326_vm0 = vweird.f32 %v8345_v7 }
 0x581   : > { %12639 = vst [vmem:[#allocation23_spill] sm:$0xff] %v10071_v53  ;;  %8346 = vrsqrt.f32 %v2187_v5  ;;  %v10081_v33 = vmul.f32 %v9729_v27, %v2021_v39  ;;  %7819 = vmatmul.msk.f32.gmra.mxu1 %vm1157_vm2, %v10071_v53  ;;  %7836 = vmatmul.msk.f32.gmra.mxu2 %vm1157_vm2, %v10071_v53  ;;  %vm2327_vm4 = vmor %vm2325_vm3, %vm2326_vm0  ;;  %vm2335_vm6 = vweird.f32 %v2187_v5 }
 0x582   : > { %v2318_v20 = vsel %vm2317_vm15, %v8343_v57, %v2314_v30  ;;  %v2108_v51 = vpop.xlane.xlu0 %2107  ;;  %v2321_v2 = vmul.f32 %v8345_v7, %v2320_v18  ;;  %7853 = vmatmul.msk.f32.gmra.mxu3 %vm1157_vm2, %v10071_v53  ;;  %7870 = vmatmul.msk.f32.gmra.mxu0 %vm1157_vm2, %v10071_v53 }
 0x583   : > { %v2361_v16 = vmul.f32 %v2318_v20, %v2169_v26  ;;  %v2124_v52 = vmul.f32 %v2108_v51, %v9729_v27  ;;  %v2140_v58 = vmul.f32 %v10081_v33, %v10081_v33  ;;  %v2172_v39 = vsub.f32 %v9947_v61, %v10081_v33  ;;  %v10148_v26 = vpop.f32.mrf.mxu2  ;;  %v10151_v61 = vpop.f32.mrf.mxu3 }
 0x584   : > { %v2322_v37 = vmul.f32 0.5, %v2321_v2  ;;  %v10154_v4 = vpop.f32.mrf.mxu1 }
 0x585   : > { %v2380_v23 = vmul.f32 %v9749_v50, %v2361_v16  ;;  %v2156_v47 = vsub.f32 %v2124_v52, %v2140_v58 }
 0x586   : > { %v2323_v49 = vsub.f32 1.5, %v2322_v37 }
 0x587   : > { %v10096_v35 = vadd.f32 %v9759_v56, %v2380_v23  ;;  %v8347_v29 = vpop.eup %8346  ;;  %v2188_v41 = vadd.f32 1e-05, %v2156_v47  ;;  %v10159_v33 = vpop.f32.mrf.mxu0 }
 0x588   : > { %v2324_v42 = vmul.f32 %v8345_v7, %v2323_v49  ;;  %v2330_v15 = vmul.f32 %v8347_v29, %v2187_v5  ;;  %vm2336_vm5 = vweird.f32 %v8347_v29  ;;  %v2428_v49 = vld [vmem:[%s8589_s16 + $0xc8] sm:$0xff] }
 0x589   : > { %12640 = vst [vmem:[#allocation24_spill] sm:$0xff] %v10096_v35  ;;  %8348 = vrsqrt.f32 %v2188_v41  ;;  %7820 = vmatmul.msk.f32.gmra.mxu1 %vm1157_vm2, %v10096_v35  ;;  %7837 = vmatmul.msk.f32.gmra.mxu2 %vm1157_vm2, %v10096_v35  ;;  %vm2337_vm7 = vmor %vm2335_vm6, %vm2336_vm5  ;;  %vm2345_vm9 = vweird.f32 %v2188_v41 }
 0x58a   : > { %v2328_v57 = vsel %vm2327_vm4, %v8345_v7, %v2324_v42  ;;  %v2331_v36 = vmul.f32 %v8347_v29, %v2330_v15  ;;  %7854 = vmatmul.msk.f32.gmra.mxu3 %vm1157_vm2, %v10096_v35  ;;  %7871 = vmatmul.msk.f32.gmra.mxu0 %vm1157_vm2, %v10096_v35 }
 0x58b   : > { %v2362_v0 = vmul.f32 %v2328_v57, %v2170_v40  ;;  %v10171_v51 = vpop.f32.mrf.mxu3  ;;  %3182 = vmatpush.msrb.mxu2 %v2428_v49  ;;  %v2427_v57 = vld [vmem:[%s8589_s16 + $0xc0] sm:$0xff] }
 0x58c   : > { %v2332_v14 = vmul.f32 0.5, %v2331_v36  ;;  %v2430_v36 = vld [vmem:[%s8589_s16 + $0xd8] sm:$0xff]  ;;  %3117 = vmatpush.msrb.mxu1 %v2427_v57 }
 0x58d   : > { %v2381_v59 = vmul.f32 %v9749_v50, %v2362_v0  ;;  %3312 = vmatpush.msrb.mxu0 %v2430_v36 }
 0x58e   : > { %v2333_v3 = vsub.f32 1.5, %v2332_v14  ;;  %3118 = vmatpush.msrb.mxu1 %v2411_v10 }
 0x58f   : > { %v8349_v32 = vpop.eup %8348  ;;  %v10111_v31 = vadd.f32 %v9759_v56, %v2381_v59  ;;  %v10175_v16 = vpop.f32.mrf.mxu0 }
 0x590   : > { %v2334_v62 = vmul.f32 %v8347_v29, %v2333_v3  ;;  %v2340_v63 = vmul.f32 %v8349_v32, %v2188_v41  ;;  %vm2346_vm8 = vweird.f32 %v8349_v32 }
 0x591   : > { %12641 = vst [vmem:[#allocation25_spill] sm:$0xff] %v10111_v31  ;;  %7821 = vmatmul.msk.f32.gmra.mxu1 %vm1157_vm2, %v10111_v31  ;;  %7838 = vmatmul.msk.f32.gmra.mxu2 %vm1157_vm2, %v10111_v31  ;;  %vm2347_vm10 = vmor %vm2345_vm9, %vm2346_vm8 }
 0x592   : > { %v2338_v25 = vsel %vm2337_vm7, %v8347_v29, %v2334_v62  ;;  %v2341_v11 = vmul.f32 %v8349_v32, %v2340_v63  ;;  %7855 = vmatmul.msk.f32.gmra.mxu3 %vm1157_vm2, %v10111_v31  ;;  %7872 = vmatmul.msk.f32.gmra.mxu0 %vm1157_vm2, %v10111_v31  ;;  %v2429_v29 = vld [vmem:[%s8589_s16 + $0xd0] sm:$0xff] }
 0x593   : > { %v2363_v54 = vmul.f32 %v2338_v25, %v2171_v13  ;;  %v10187_v52 = vpop.f32.mrf.mxu3  ;;  %3247 = vmatpush.msrb.mxu3 %v2429_v29 }
 0x594   : > { %v2342_v44 = vmul.f32 0.5, %v2341_v11 }
 0x595   : > { %v2382_v22 = vmul.f32 %v9749_v50, %v2363_v54 }
 0x596   : > { %v2343_v7 = vsub.f32 1.5, %v2342_v44 }
 0x597   : > { %v10135_v30 = vadd.f32 %v9759_v56, %v2382_v22  ;;  %v10195_v23 = vpop.f32.mrf.mxu0 }
 0x598   : > { %v2344_v5 = vmul.f32 %v8349_v32, %v2343_v7  ;;  %v2412_v7 = vld [vmem:[%s8589_s16 + $0x48] sm:$0xff] }
 0x599   : > { %12642 = vst [vmem:[#allocation26_spill] sm:$0xff] %v10135_v30  ;;  %7822 = vmatmul.msk.f32.gmra.mxu1 %vm1157_vm2, %v10135_v30  ;;  %7839 = vmatmul.msk.f32.gmra.mxu2 %vm1157_vm2, %v10135_v30 }
 0x59a   : > { %v2348_v24 = vsel %vm2347_vm10, %v8349_v32, %v2344_v5  ;;  %7856 = vmatmul.msk.f32.gmra.mxu3 %vm1157_vm2, %v10135_v30  ;;  %7873 = vmatmul.msk.f32.gmra.mxu0 %vm1157_vm2, %v10135_v30  ;;  %v2413_v5 = vld [vmem:[%s8589_s16 + $0x50] sm:$0xff] }
 0x59b   : > { %v2364_v18 = vmul.f32 %v2348_v24, %v2172_v39  ;;  %v10203_v47 = vpop.f32.mrf.mxu3  ;;  %3183 = vmatpush.msrb.mxu2 %v2412_v7  ;;  %3248 = vmatpush.msrb.mxu3 %v2413_v5 }
 0x59d   : > { %v2383_v28 = vmul.f32 %v9749_v50, %v2364_v18  ;;  %v10169_v50 = vpop.f32.mrf.mxu2  ;;  %v2414_v18 = vld [vmem:[%s8589_s16 + $0x58] sm:$0xff] }
 0x59e   : > { %3313 = vmatpush.msrb.mxu0 %v2414_v18 }
 0x59f   : > { %v10157_v20 = vadd.f32 %v9759_v56, %v2383_v28  ;;  %v10173_v56 = vpop.f32.mrf.mxu1  ;;  %v10217_v42 = vpop.f32.mrf.mxu0 }
 0x5a1   : > { %12643 = vst [vmem:[#allocation27_spill] sm:$0xff] %v10157_v20  ;;  %7823 = vmatmul.msk.f32.gmra.mxu1 %vm1157_vm2, %v10157_v20  ;;  %7840 = vmatmul.msk.f32.gmra.mxu2 %vm1157_vm2, %v10157_v20 }
 0x5a2   : > { %7857 = vmatmul.msk.f32.gmra.mxu3 %vm1157_vm2, %v10157_v20  ;;  %7874 = vmatmul.msk.f32.gmra.mxu0 %vm1157_vm2, %v10157_v20 }
 0x5a3   : > { %v10225_v40 = vpop.f32.mrf.mxu3 }
 0x5a5   : > { %v10185_v2 = vpop.f32.mrf.mxu2 }
 0x5a7   : > { %v10189_v58 = vpop.f32.mrf.mxu1  ;;  %v10235_v14 = vpop.f32.mrf.mxu0 }
 0x5a9   : > { %7876 = vmatmul.msk.f32.vlgmr.msra.gmra.mxu1 %vm1157_vm2, %v9763_v17  ;;  %7893 = vmatmul.msk.f32.vlgmr.msra.gmra.mxu2 %vm1157_vm2, %v9763_v17 }
 0x5aa   : > { %7910 = vmatmul.msk.f32.vlgmr.msra.gmra.mxu3 %vm1157_vm2, %v9763_v17  ;;  %7927 = vmatmul.msk.f32.vlgmr.msra.gmra.mxu0 %vm1157_vm2, %v9763_v17 }
 0x5ab   : > { %v10247_v3 = vpop.f32.mrf.mxu3 }
 0x5ad   : > { %v10201_v37 = vpop.f32.mrf.mxu2 }
 0x5af   : > { %v10215_v41 = vpop.f32.mrf.mxu1  ;;  %v10251_v62 = vpop.f32.mrf.mxu0 }
 0x5b1   : > { %7877 = vmatmul.msk.f32.gmra.mxu1 %vm1157_vm2, %v9785_v12  ;;  %7894 = vmatmul.msk.f32.gmra.mxu2 %vm1157_vm2, %v9785_v12 }
 0x5b2   : > { %7911 = vmatmul.msk.f32.gmra.mxu3 %vm1157_vm2, %v9785_v12  ;;  %7928 = vmatmul.msk.f32.gmra.mxu0 %vm1157_vm2, %v9785_v12 }
 0x5b3   : > { %v10263_v13 = vpop.f32.mrf.mxu3 }
 0x5b5   : > { %v10219_v15 = vpop.f32.mrf.mxu2 }
 0x5b7   : > { %v10233_v0 = vpop.f32.mrf.mxu1  ;;  %v10271_v11 = vpop.f32.mrf.mxu0 }
 0x5b9   : > { %7878 = vmatmul.msk.f32.gmra.mxu1 %vm1157_vm2, %v9831_v21  ;;  %7895 = vmatmul.msk.f32.gmra.mxu2 %vm1157_vm2, %v9831_v21 }
 0x5ba   : > { %7912 = vmatmul.msk.f32.gmra.mxu3 %vm1157_vm2, %v9831_v21  ;;  %7929 = vmatmul.msk.f32.gmra.mxu0 %vm1157_vm2, %v9831_v21 }
 0x5bb   : > { %v10279_v1 = vpop.f32.mrf.mxu3 }
 0x5bd   : > { %v10245_v59 = vpop.f32.mrf.mxu2 }
 0x5bf   : > { %v10249_v32 = vpop.f32.mrf.mxu1  ;;  %v10291_v54 = vpop.f32.mrf.mxu0 }
 0x5c1   : > { %7879 = vmatmul.msk.f32.gmra.mxu1 %vm1157_vm2, %v9864_v34  ;;  %7896 = vmatmul.msk.f32.gmra.mxu2 %vm1157_vm2, %v9864_v34 }
 0x5c2   : > { %7913 = vmatmul.msk.f32.gmra.mxu3 %vm1157_vm2, %v9864_v34  ;;  %7930 = vmatmul.msk.f32.gmra.mxu0 %vm1157_vm2, %v9864_v34 }
 0x5c3   : > { %v10299_v22 = vpop.f32.mrf.mxu3 }
 0x5c5   : > { %v10261_v63 = vpop.f32.mrf.mxu2 }
 0x5c7   : > { %v10265_v25 = vpop.f32.mrf.mxu1  ;;  %v10309_v24 = vpop.f32.mrf.mxu0 }
 0x5c9   : > { %7880 = vmatmul.msk.f32.gmra.mxu1 %vm1157_vm2, %v9897_v48  ;;  %7897 = vmatmul.msk.f32.gmra.mxu2 %vm1157_vm2, %v9897_v48 }
 0x5ca   : > { %7914 = vmatmul.msk.f32.gmra.mxu3 %vm1157_vm2, %v9897_v48  ;;  %7931 = vmatmul.msk.f32.gmra.mxu0 %vm1157_vm2, %v9897_v48 }
 0x5cb   : > { %v10323_v49 = vpop.f32.mrf.mxu3 }
 0x5cd   : > { %v10277_v45 = vpop.f32.mrf.mxu2 }
 0x5cf   : > { %v10289_v19 = vpop.f32.mrf.mxu1 }
 0x5d1   : > { %7881 = vmatmul.msk.f32.gmra.mxu1 %vm1157_vm2, %v9930_v43  ;;  %7898 = vmatmul.msk.f32.gmra.mxu2 %vm1157_vm2, %v9930_v43 }
 0x5d2   : > { %7915 = vmatmul.msk.f32.gmra.mxu3 %vm1157_vm2, %v9930_v43  ;;  %7932 = vmatmul.msk.f32.gmra.mxu0 %vm1157_vm2, %v9930_v43 }
 0x5d5   : > { %v10293_v44 = vpop.f32.mrf.mxu2 }
 0x5d7   : > { %v10307_v39 = vpop.f32.mrf.mxu1 }
 0x5d9   : > { %7882 = vmatmul.msk.f32.gmra.mxu1 %vm1157_vm2, %v9971_v60  ;;  %7899 = vmatmul.msk.f32.gmra.mxu2 %vm1157_vm2, %v9971_v60 }
 0x5da   : > { %7916 = vmatmul.msk.f32.gmra.mxu3 %vm1157_vm2, %v9971_v60  ;;  %7933 = vmatmul.msk.f32.gmra.mxu0 %vm1157_vm2, %v9971_v60 }
 0x5dd   : > { %v10321_v28 = vpop.f32.mrf.mxu2 }
 0x5e1   : > { %7883 = vmatmul.msk.f32.gmra.mxu1 %vm1157_vm2, %v9987_v38  ;;  %7900 = vmatmul.msk.f32.gmra.mxu2 %vm1157_vm2, %v9987_v38 }
 0x5e2   : > { %7917 = vmatmul.msk.f32.gmra.mxu3 %vm1157_vm2, %v9987_v38  ;;  %7934 = vmatmul.msk.f32.gmra.mxu0 %vm1157_vm2, %v9987_v38 }
 0x5e9   : > { %7884 = vmatmul.msk.f32.gmra.mxu1 %vm1157_vm2, %v10002_v9  ;;  %7901 = vmatmul.msk.f32.gmra.mxu2 %vm1157_vm2, %v10002_v9 }
 0x5ea   : > { %7918 = vmatmul.msk.f32.gmra.mxu3 %vm1157_vm2, %v10002_v9  ;;  %7935 = vmatmul.msk.f32.gmra.mxu0 %vm1157_vm2, %v10002_v9 }
 0x5f1   : > { %7885 = vmatmul.msk.f32.gmra.mxu1 %vm1157_vm2, %v10016_v55  ;;  %7902 = vmatmul.msk.f32.gmra.mxu2 %vm1157_vm2, %v10016_v55 }
 0x5f2   : > { %7919 = vmatmul.msk.f32.gmra.mxu3 %vm1157_vm2, %v10016_v55  ;;  %7936 = vmatmul.msk.f32.gmra.mxu0 %vm1157_vm2, %v10016_v55 }
 0x5f6   : > { %v10325_v29 = vpop.f32.mrf.mxu1 }
 0x5f7   : > { %v10327_v57 = vpop.f32.mrf.mxu0 }
 0x5f8   : > { %12644 = vst [vmem:[#allocation28_spill] sm:$0xff] %v10327_v57  ;;  %v2449_v57 = vld [vmem:[%s8589_s16 + $0x170] sm:$0x1] }
 0x5f9   : > { %7886 = vmatmul.msk.f32.gmra.mxu1 %vm1157_vm2, %v10049_v8  ;;  %7903 = vmatmul.msk.f32.gmra.mxu2 %vm1157_vm2, %v10049_v8 }
 0x5fa   : > { %7920 = vmatmul.msk.f32.gmra.mxu3 %vm1157_vm2, %v10049_v8  ;;  %7937 = vmatmul.msk.f32.gmra.mxu0 %vm1157_vm2, %v10049_v8 }
 0x5fb   : > { %8045 = vmatpush.msk.msra.mxu3 %vm1206_vm1, %v2449_v57 }
 0x5fc   : > { %v10337_v36 = vpop.f32.mrf.mxu2 }
 0x5fd   : > { %12645 = vst [vmem:[#allocation29_spill] sm:$0xff] %v10337_v36  ;;  %v10339_v7 = vpop.f32.mrf.mxu3  ;;  %v2450_v36 = vld [vmem:[%s8589_s16 + $0x178] sm:$0x1] }
 0x5fe   : > { %12646 = vst [vmem:[#allocation30_spill] sm:$0xff] %v10339_v7  ;;  %v10341_v5 = vpop.f32.mrf.mxu1  ;;  %8062 = vmatpush.msk.msra.mxu0 %vm1206_vm1, %v2450_v36 }
 0x5ff   : > { %12647 = vst [vmem:[#allocation31_spill] sm:$0xff] %v10341_v5  ;;  %v10343_v10 = vpop.f32.mrf.mxu0 }
 0x600   : > { %12648 = vst [vmem:[#allocation32_spill] sm:$0xff] %v10343_v10 }
 0x601   : > { %7887 = vmatmul.msk.f32.gmra.mxu1 %vm1157_vm2, %v10071_v53  ;;  %7904 = vmatmul.msk.f32.gmra.mxu2 %vm1157_vm2, %v10071_v53 }
 0x602   : > { %7921 = vmatmul.msk.f32.gmra.mxu3 %vm1157_vm2, %v10071_v53  ;;  %7938 = vmatmul.msk.f32.gmra.mxu0 %vm1157_vm2, %v10071_v53 }
 0x604   : > { %v10353_v18 = vpop.f32.mrf.mxu2 }
 0x605   : > { %12649 = vst [vmem:[#allocation33_spill] sm:$0xff] %v10353_v18  ;;  %v10355_v27 = vpop.f32.mrf.mxu3 }
 0x606   : > { %12650 = vst [vmem:[#allocation34_spill] sm:$0xff] %v10355_v27  ;;  %v10357_v5 = vpop.f32.mrf.mxu1 }
 0x607   : > { %12651 = vst [vmem:[#allocation35_spill] sm:$0xff] %v10357_v5  ;;  %v10359_v10 = vpop.f32.mrf.mxu0 }
 0x608   : > { %12652 = vst [vmem:[#allocation36_spill] sm:$0xff] %v10359_v10 }
 0x609   : > { %7888 = vmatmul.msk.f32.gmra.mxu1 %vm1157_vm2, %v10096_v35  ;;  %7905 = vmatmul.msk.f32.gmra.mxu2 %vm1157_vm2, %v10096_v35 }
 0x60a   : > { %7922 = vmatmul.msk.f32.gmra.mxu3 %vm1157_vm2, %v10096_v35  ;;  %7939 = vmatmul.msk.f32.gmra.mxu0 %vm1157_vm2, %v10096_v35 }
 0x60c   : > { %v10369_v18 = vpop.f32.mrf.mxu2 }
 0x60d   : > { %12653 = vst [vmem:[#allocation37_spill] sm:$0xff] %v10369_v18  ;;  %v10371_v27 = vpop.f32.mrf.mxu3  ;;  %v2448_v18 = vld [vmem:[%s8589_s16 + $0x168] sm:$0x1] }
 0x60e   : > { %12654 = vst [vmem:[#allocation38_spill] sm:$0xff] %v10371_v27  ;;  %v10373_v5 = vpop.f32.mrf.mxu1  ;;  %8028 = vmatpush.msk.msra.mxu2 %vm1206_vm1, %v2448_v18  ;;  %v2447_v18 = vld [vmem:[%s8589_s16 + $0x160] sm:$0x1] }
 0x60f   : > { %12655 = vst [vmem:[#allocation39_spill] sm:$0xff] %v10373_v5  ;;  %v10375_v10 = vpop.f32.mrf.mxu0  ;;  %8011 = vmatpush.msk.msra.mxu1 %vm1206_vm1, %v2447_v18 }
 0x610   : > { %12656 = vst [vmem:[#allocation40_spill] sm:$0xff] %v10375_v10 }
 0x611   : > { %7889 = vmatmul.msk.f32.gmra.mxu1 %vm1157_vm2, %v10111_v31  ;;  %7906 = vmatmul.msk.f32.gmra.mxu2 %vm1157_vm2, %v10111_v31 }
 0x612   : > { %7923 = vmatmul.msk.f32.gmra.mxu3 %vm1157_vm2, %v10111_v31  ;;  %7940 = vmatmul.msk.f32.gmra.mxu0 %vm1157_vm2, %v10111_v31 }
 0x614   : > { %v10387_v27 = vpop.f32.mrf.mxu2 }
 0x615   : > { %12657 = vst [vmem:[#allocation41_spill] sm:$0xff] %v10387_v27  ;;  %v10389_v10 = vpop.f32.mrf.mxu3 }
 0x616   : > { %12658 = vst [vmem:[#allocation42_spill] sm:$0xff] %v10389_v10  ;;  %v10391_v5 = vpop.f32.mrf.mxu1 }
 0x617   : > { %12659 = vst [vmem:[#allocation43_spill] sm:$0xff] %v10391_v5  ;;  %v10393_v7 = vpop.f32.mrf.mxu0 }
 0x618   : > { %12660 = vst [vmem:[#allocation44_spill] sm:$0xff] %v10393_v7 }
 0x619   : > { %7890 = vmatmul.msk.f32.gmra.mxu1 %vm1157_vm2, %v10135_v30  ;;  %7907 = vmatmul.msk.f32.gmra.mxu2 %vm1157_vm2, %v10135_v30 }
 0x61a   : > { %7924 = vmatmul.msk.f32.gmra.mxu3 %vm1157_vm2, %v10135_v30  ;;  %7941 = vmatmul.msk.f32.gmra.mxu0 %vm1157_vm2, %v10135_v30 }
 0x61c   : > { %v10407_v5 = vpop.f32.mrf.mxu2 }
 0x61d   : > { %12661 = vst [vmem:[#allocation45_spill] sm:$0xff] %v10407_v5  ;;  %v10409_v7 = vpop.f32.mrf.mxu3 }
 0x61e   : > { %12662 = vst [vmem:[#allocation46_spill] sm:$0xff] %v10409_v7  ;;  %v10411_v10 = vpop.f32.mrf.mxu1 }
 0x61f   : > { %12663 = vst [vmem:[#allocation47_spill] sm:$0xff] %v10411_v10  ;;  %v10413_v27 = vpop.f32.mrf.mxu0 }
 0x620   : > { %12664 = vst [vmem:[#allocation48_spill] sm:$0xff] %v10413_v27 }
 0x621   : > { %7891 = vmatmul.msk.f32.gmra.mxu1 %vm1157_vm2, %v10157_v20  ;;  %7908 = vmatmul.msk.f32.gmra.mxu2 %vm1157_vm2, %v10157_v20 }
 0x622   : > { %7925 = vmatmul.msk.f32.gmra.mxu3 %vm1157_vm2, %v10157_v20  ;;  %7942 = vmatmul.msk.f32.gmra.mxu0 %vm1157_vm2, %v10157_v20 }
 0x624   : > { %v10425_v57 = vpop.f32.mrf.mxu2 }
 0x625   : > { %12665 = vst [vmem:[#allocation49_spill] sm:$0xff] %v10425_v57  ;;  %v10427_v18 = vpop.f32.mrf.mxu3 }
 0x626   : > { %12666 = vst [vmem:[#allocation50_spill] sm:$0xff] %v10427_v18  ;;  %v10429_v27 = vpop.f32.mrf.mxu1 }
 0x627   : > { %12667 = vst [vmem:[#allocation51_spill] sm:$0xff] %v10429_v27  ;;  %v10431_v10 = vpop.f32.mrf.mxu0 }
 0x628   : > { %12668 = vst [vmem:[#allocation52_spill] sm:$0xff] %v10431_v10 }
 0x629   : > { %7944 = vmatmul.msk.f32.vlgmr.msrb.gmra.mxu1 %vm1157_vm2, %v9763_v17  ;;  %7961 = vmatmul.msk.f32.vlgmr.msrb.gmra.mxu2 %vm1157_vm2, %v9763_v17 }
 0x62a   : > { %7978 = vmatmul.msk.f32.vlgmr.msrb.gmra.mxu3 %vm1157_vm2, %v9763_v17  ;;  %7995 = vmatmul.msk.f32.vlgmr.msrb.gmra.mxu0 %vm1157_vm2, %v9763_v17 }
 0x62c   : > { %v10441_v36 = vpop.f32.mrf.mxu2 }
 0x62d   : > { %12669 = vst [vmem:[#allocation53_spill] sm:$0xff] %v10441_v36  ;;  %v10443_v57 = vpop.f32.mrf.mxu3 }
 0x62e   : > { %12670 = vst [vmem:[#allocation54_spill] sm:$0xff] %v10443_v57  ;;  %v10445_v18 = vpop.f32.mrf.mxu1 }
 0x62f   : > { %12671 = vst [vmem:[#allocation55_spill] sm:$0xff] %v10445_v18  ;;  %v10447_v27 = vpop.f32.mrf.mxu0 }
 0x630   : > { %12672 = vst [vmem:[#allocation56_spill] sm:$0xff] %v10447_v27 }
 0x631   : > { %7945 = vmatmul.msk.f32.gmra.mxu1 %vm1157_vm2, %v9785_v12  ;;  %7962 = vmatmul.msk.f32.gmra.mxu2 %vm1157_vm2, %v9785_v12 }
 0x632   : > { %7979 = vmatmul.msk.f32.gmra.mxu3 %vm1157_vm2, %v9785_v12  ;;  %7996 = vmatmul.msk.f32.gmra.mxu0 %vm1157_vm2, %v9785_v12 }
 0x634   : > { %v10457_v10 = vpop.f32.mrf.mxu2 }
 0x635   : > { %12673 = vst [vmem:[#allocation57_spill] sm:$0xff] %v10457_v10  ;;  %v10459_v57 = vpop.f32.mrf.mxu3 }
 0x636   : > { %12674 = vst [vmem:[#allocation58_spill] sm:$0xff] %v10459_v57  ;;  %v10461_v18 = vpop.f32.mrf.mxu1 }
 0x637   : > { %12675 = vst [vmem:[#allocation59_spill] sm:$0xff] %v10461_v18  ;;  %v10463_v27 = vpop.f32.mrf.mxu0 }
 0x638   : > { %12676 = vst [vmem:[#allocation60_spill] sm:$0xff] %v10463_v27  ;;  %v2432_v27 = vld [vmem:[%s8589_s16 + $0xe8] sm:$0xff] }
 0x639   : > { %7946 = vmatmul.msk.f32.gmra.mxu1 %vm1157_vm2, %v9831_v21  ;;  %7963 = vmatmul.msk.f32.gmra.mxu2 %vm1157_vm2, %v9831_v21 }
 0x63a   : > { %7980 = vmatmul.msk.f32.gmra.mxu3 %vm1157_vm2, %v9831_v21  ;;  %7997 = vmatmul.msk.f32.gmra.mxu0 %vm1157_vm2, %v9831_v21 }
 0x63b   : > { %3442 = vmatpush.msra.mxu2 %v2432_v27  ;;  %v2434_v27 = vld [vmem:[%s8589_s16 + $0xf8] sm:$0xff] }
 0x63c   : > { %v10473_v10 = vpop.f32.mrf.mxu2  ;;  %3572 = vmatpush.msra.mxu0 %v2434_v27 }
 0x63d   : > { %12677 = vst [vmem:[#allocation61_spill] sm:$0xff] %v10473_v10  ;;  %v10475_v57 = vpop.f32.mrf.mxu3  ;;  %v2433_v10 = vld [vmem:[%s8589_s16 + $0xf0] sm:$0xff] }
 0x63e   : > { %12678 = vst [vmem:[#allocation62_spill] sm:$0xff] %v10475_v57  ;;  %v10477_v18 = vpop.f32.mrf.mxu1  ;;  %v2431_v57 = vld [vmem:[%s8589_s16 + $0xe0] sm:$0xff]  ;;  %3507 = vmatpush.msra.mxu3 %v2433_v10 }
 0x63f   : > { %12679 = vst [vmem:[#allocation63_spill] sm:$0xff] %v10477_v18  ;;  %v10479_v36 = vpop.f32.mrf.mxu0  ;;  %3377 = vmatpush.msra.mxu1 %v2431_v57 }
 0x640   : > { %12680 = vst [vmem:[#allocation64_spill] sm:$0xff] %v10479_v36 }
 0x641   : > { %7947 = vmatmul.msk.f32.gmra.mxu1 %vm1157_vm2, %v9864_v34  ;;  %7964 = vmatmul.msk.f32.gmra.mxu2 %vm1157_vm2, %v9864_v34 }
 0x642   : > { %7981 = vmatmul.msk.f32.gmra.mxu3 %vm1157_vm2, %v9864_v34  ;;  %7998 = vmatmul.msk.f32.gmra.mxu0 %vm1157_vm2, %v9864_v34 }
 0x644   : > { %v10492_v18 = vpop.f32.mrf.mxu2 }
 0x645   : > { %12681 = vst [vmem:[#allocation65_spill] sm:$0xff] %v10492_v18  ;;  %v10494_v36 = vpop.f32.mrf.mxu3  ;;  %v2415_v18 = vld [vmem:[%s8589_s16 + $0x60] sm:$0xff] }
 0x646   : > { %12682 = vst [vmem:[#allocation66_spill] sm:$0xff] %v10494_v36  ;;  %v10496_v7 = vpop.f32.mrf.mxu1  ;;  %3378 = vmatpush.msra.mxu1 %v2415_v18 }
 0x647   : > { %12683 = vst [vmem:[#allocation67_spill] sm:$0xff] %v10496_v7  ;;  %v10498_v5 = vpop.f32.mrf.mxu0 }
 0x648   : > { %12684 = vst [vmem:[#allocation68_spill] sm:$0xff] %v10498_v5 }
 0x649   : > { %7948 = vmatmul.msk.f32.gmra.mxu1 %vm1157_vm2, %v9897_v48  ;;  %7965 = vmatmul.msk.f32.gmra.mxu2 %vm1157_vm2, %v9897_v48 }
 0x64a   : > { %7982 = vmatmul.msk.f32.gmra.mxu3 %vm1157_vm2, %v9897_v48  ;;  %7999 = vmatmul.msk.f32.gmra.mxu0 %vm1157_vm2, %v9897_v48 }
 0x64c   : > { %v10509_v10 = vpop.f32.mrf.mxu2 }
 0x64d   : > { %12685 = vst [vmem:[#allocation69_spill] sm:$0xff] %v10509_v10  ;;  %v10511_v57 = vpop.f32.mrf.mxu3 }
 0x64e   : > { %12686 = vst [vmem:[#allocation70_spill] sm:$0xff] %v10511_v57  ;;  %v10513_v7 = vpop.f32.mrf.mxu1 }
 0x64f   : > { %12687 = vst [vmem:[#allocation71_spill] sm:$0xff] %v10513_v7  ;;  %v10515_v5 = vpop.f32.mrf.mxu0 }
 0x650   : > { %12688 = vst [vmem:[#allocation72_spill] sm:$0xff] %v10515_v5 }
 0x651   : > { %7949 = vmatmul.msk.f32.gmra.mxu1 %vm1157_vm2, %v9930_v43  ;;  %7966 = vmatmul.msk.f32.gmra.mxu2 %vm1157_vm2, %v9930_v43 }
 0x652   : > { %7983 = vmatmul.msk.f32.gmra.mxu3 %vm1157_vm2, %v9930_v43  ;;  %8000 = vmatmul.msk.f32.gmra.mxu0 %vm1157_vm2, %v9930_v43 }
 0x654   : > { %v10525_v27 = vpop.f32.mrf.mxu2 }
 0x655   : > { %12689 = vst [vmem:[#allocation73_spill] sm:$0xff] %v10525_v27  ;;  %v10527_v10 = vpop.f32.mrf.mxu3  ;;  %v2417_v27 = vld [vmem:[%s8589_s16 + $0x70] sm:$0xff] }
 0x656   : > { %12690 = vst [vmem:[#allocation74_spill] sm:$0xff] %v10527_v10  ;;  %v10529_v57 = vpop.f32.mrf.mxu1  ;;  %3508 = vmatpush.msra.mxu3 %v2417_v27 }
 0x657   : > { %12691 = vst [vmem:[#allocation75_spill] sm:$0xff] %v10529_v57  ;;  %v10531_v7 = vpop.f32.mrf.mxu0 }
 0x658   : > { %12692 = vst [vmem:[#allocation76_spill] sm:$0xff] %v10531_v7 }
 0x659   : > { %7950 = vmatmul.msk.f32.gmra.mxu1 %vm1157_vm2, %v9971_v60  ;;  %7967 = vmatmul.msk.f32.gmra.mxu2 %vm1157_vm2, %v9971_v60 }
 0x65a   : > { %7984 = vmatmul.msk.f32.gmra.mxu3 %vm1157_vm2, %v9971_v60  ;;  %8001 = vmatmul.msk.f32.gmra.mxu0 %vm1157_vm2, %v9971_v60 }
 0x65c   : > { %v10541_v5 = vpop.f32.mrf.mxu2 }
 0x65d   : > { %12693 = vst [vmem:[#allocation77_spill] sm:$0xff] %v10541_v5  ;;  %v10543_v10 = vpop.f32.mrf.mxu3 }
 0x65e   : > { %12694 = vst [vmem:[#allocation78_spill] sm:$0xff] %v10543_v10  ;;  %v10545_v57 = vpop.f32.mrf.mxu1 }
 0x65f   : > { %12695 = vst [vmem:[#allocation79_spill] sm:$0xff] %v10545_v57  ;;  %v10547_v7 = vpop.f32.mrf.mxu0 }
 0x660   : > { %12696 = vst [vmem:[#allocation80_spill] sm:$0xff] %v10547_v7 }
 0x661   : > { %7951 = vmatmul.msk.f32.gmra.mxu1 %vm1157_vm2, %v9987_v38  ;;  %7968 = vmatmul.msk.f32.gmra.mxu2 %vm1157_vm2, %v9987_v38 }
 0x662   : > { %7985 = vmatmul.msk.f32.gmra.mxu3 %vm1157_vm2, %v9987_v38  ;;  %8002 = vmatmul.msk.f32.gmra.mxu0 %vm1157_vm2, %v9987_v38 }
 0x664   : > { %v10557_v5 = vpop.f32.mrf.mxu2 }
 0x665   : > { %12697 = vst [vmem:[#allocation81_spill] sm:$0xff] %v10557_v5  ;;  %v10559_v10 = vpop.f32.mrf.mxu3  ;;  %v2416_v5 = vld [vmem:[%s8589_s16 + $0x68] sm:$0xff] }
 0x666   : > { %12698 = vst [vmem:[#allocation82_spill] sm:$0xff] %v10559_v10  ;;  %v10561_v57 = vpop.f32.mrf.mxu1  ;;  %3443 = vmatpush.msra.mxu2 %v2416_v5  ;;  %v2418_v5 = vld [vmem:[%s8589_s16 + $0x78] sm:$0xff] }
 0x667   : > { %12699 = vst [vmem:[#allocation83_spill] sm:$0xff] %v10561_v57  ;;  %v10563_v7 = vpop.f32.mrf.mxu0  ;;  %3573 = vmatpush.msra.mxu0 %v2418_v5 }
 0x668   : > { %12700 = vst [vmem:[#allocation84_spill] sm:$0xff] %v10563_v7 }
 0x669   : > { %7952 = vmatmul.msk.f32.gmra.mxu1 %vm1157_vm2, %v10002_v9  ;;  %7969 = vmatmul.msk.f32.gmra.mxu2 %vm1157_vm2, %v10002_v9 }
 0x66a   : > { %7986 = vmatmul.msk.f32.gmra.mxu3 %vm1157_vm2, %v10002_v9  ;;  %8003 = vmatmul.msk.f32.gmra.mxu0 %vm1157_vm2, %v10002_v9 }
 0x66c   : > { %v10575_v57 = vpop.f32.mrf.mxu2 }
 0x66d   : > { %12701 = vst [vmem:[#allocation85_spill] sm:$0xff] %v10575_v57  ;;  %v10577_v7 = vpop.f32.mrf.mxu3  ;;  %v3914_v57 = vld [vmem:[%s8599_s24 + $0x118] sm:$0x1] }
 0x66e   : > { %12702 = vst [vmem:[#allocation86_spill] sm:$0xff] %v10577_v7  ;;  %v10579_v10 = vpop.f32.mrf.mxu1  ;;  %4139 = vmatpush.xpose.msrb.mxu0 %v3914_v57 }
 0x66f   : > { %12703 = vst [vmem:[#allocation87_spill] sm:$0xff] %v10579_v10  ;;  %v10581_v36 = vpop.f32.mrf.mxu0 }
 0x670   : > { %12704 = vst [vmem:[#allocation88_spill] sm:$0xff] %v10581_v36 }
 0x671   : > { %7953 = vmatmul.msk.f32.gmra.mxu1 %vm1157_vm2, %v10016_v55  ;;  %7970 = vmatmul.msk.f32.gmra.mxu2 %vm1157_vm2, %v10016_v55 }
 0x672   : > { %7987 = vmatmul.msk.f32.gmra.mxu3 %vm1157_vm2, %v10016_v55  ;;  %8004 = vmatmul.msk.f32.gmra.mxu0 %vm1157_vm2, %v10016_v55 }
 0x674   : > { %v10593_v27 = vpop.f32.mrf.mxu2 }
 0x675   : > { %12705 = vst [vmem:[#allocation89_spill] sm:$0xff] %v10593_v27  ;;  %v10595_v10 = vpop.f32.mrf.mxu3  ;;  %v3913_v27 = vld [vmem:[%s8599_s24 + $0x110] sm:$0x1] }
 0x676   : > { %12706 = vst [vmem:[#allocation90_spill] sm:$0xff] %v10595_v10  ;;  %v10597_v36 = vpop.f32.mrf.mxu1  ;;  %4074 = vmatpush.xpose.msrb.mxu3 %v3913_v27 }
 0x677   : > { %12707 = vst [vmem:[#allocation91_spill] sm:$0xff] %v10597_v36  ;;  %v10599_v7 = vpop.f32.mrf.mxu0 }
 0x678   : > { %12708 = vst [vmem:[#allocation92_spill] sm:$0xff] %v10599_v7 }
 0x679   : > { %7954 = vmatmul.msk.f32.gmra.mxu1 %vm1157_vm2, %v10049_v8  ;;  %7971 = vmatmul.msk.f32.gmra.mxu2 %vm1157_vm2, %v10049_v8 }
 0x67a   : > { %7988 = vmatmul.msk.f32.gmra.mxu3 %vm1157_vm2, %v10049_v8  ;;  %8005 = vmatmul.msk.f32.gmra.mxu0 %vm1157_vm2, %v10049_v8 }
 0x67c   : > { %v10609_v18 = vpop.f32.mrf.mxu2 }
 0x67d   : > { %12709 = vst [vmem:[#allocation93_spill] sm:$0xff] %v10609_v18  ;;  %v10611_v5 = vpop.f32.mrf.mxu3 }
 0x67e   : > { %12710 = vst [vmem:[#allocation94_spill] sm:$0xff] %v10611_v5  ;;  %v10613_v10 = vpop.f32.mrf.mxu1 }
 0x67f   : > { %12711 = vst [vmem:[#allocation95_spill] sm:$0xff] %v10613_v10  ;;  %v10615_v36 = vpop.f32.mrf.mxu0 }
 0x680   : > { %12712 = vst [vmem:[#allocation96_spill] sm:$0xff] %v10615_v36 }
 0x681   : > { %7955 = vmatmul.msk.f32.gmra.mxu1 %vm1157_vm2, %v10071_v53  ;;  %7972 = vmatmul.msk.f32.gmra.mxu2 %vm1157_vm2, %v10071_v53 }
 0x682   : > { %7989 = vmatmul.msk.f32.gmra.mxu3 %vm1157_vm2, %v10071_v53  ;;  %8006 = vmatmul.msk.f32.gmra.mxu0 %vm1157_vm2, %v10071_v53 }
 0x684   : > { %v10625_v7 = vpop.f32.mrf.mxu2 }
 0x685   : > { %12713 = vst [vmem:[#allocation97_spill] sm:$0xff] %v10625_v7  ;;  %v10627_v5 = vpop.f32.mrf.mxu3 }
 0x686   : > { %12714 = vst [vmem:[#allocation98_spill] sm:$0xff] %v10627_v5  ;;  %v10629_v10 = vpop.f32.mrf.mxu1 }
 0x687   : > { %12715 = vst [vmem:[#allocation99_spill] sm:$0xff] %v10629_v10  ;;  %v10631_v36 = vpop.f32.mrf.mxu0 }
 0x688   : > { %12716 = vst [vmem:[#allocation100_spill] sm:$0xff] %v10631_v36 }
 0x689   : > { %7956 = vmatmul.msk.f32.gmra.mxu1 %vm1157_vm2, %v10096_v35  ;;  %7973 = vmatmul.msk.f32.gmra.mxu2 %vm1157_vm2, %v10096_v35 }
 0x68a   : > { %7990 = vmatmul.msk.f32.gmra.mxu3 %vm1157_vm2, %v10096_v35  ;;  %8007 = vmatmul.msk.f32.gmra.mxu0 %vm1157_vm2, %v10096_v35 }
 0x68c   : > { %v10641_v7 = vpop.f32.mrf.mxu2 }
 0x68d   : > { %12717 = vst [vmem:[#allocation101_spill] sm:$0xff] %v10641_v7  ;;  %v10643_v5 = vpop.f32.mrf.mxu3  ;;  %v3912_v7 = vld [vmem:[%s8599_s24 + $0x108] sm:$0x1] }
 0x68e   : > { %12718 = vst [vmem:[#allocation102_spill] sm:$0xff] %v10643_v5  ;;  %v10645_v10 = vpop.f32.mrf.mxu1  ;;  %4009 = vmatpush.xpose.msrb.mxu2 %v3912_v7  ;;  %v3911_v7 = vld [vmem:[%s8599_s24 + $0x100] sm:$0x1] }
 0x68f   : > { %12719 = vst [vmem:[#allocation103_spill] sm:$0xff] %v10645_v10  ;;  %v10647_v36 = vpop.f32.mrf.mxu0  ;;  %3944 = vmatpush.xpose.msrb.mxu1 %v3911_v7 }
 0x690   : > { %12720 = vst [vmem:[#allocation104_spill] sm:$0xff] %v10647_v36 }
 0x691   : > { %7957 = vmatmul.msk.f32.gmra.mxu1 %vm1157_vm2, %v10111_v31  ;;  %7974 = vmatmul.msk.f32.gmra.mxu2 %vm1157_vm2, %v10111_v31 }
 0x692   : > { %7991 = vmatmul.msk.f32.gmra.mxu3 %vm1157_vm2, %v10111_v31  ;;  %8008 = vmatmul.msk.f32.gmra.mxu0 %vm1157_vm2, %v10111_v31 }
 0x694   : > { %v10658_v5 = vpop.f32.mrf.mxu2 }
 0x695   : > { %12721 = vst [vmem:[#allocation105_spill] sm:$0xff] %v10658_v5  ;;  %v10660_v10 = vpop.f32.mrf.mxu3 }
 0x696   : > { %12722 = vst [vmem:[#allocation106_spill] sm:$0xff] %v10660_v10  ;;  %v10662_v36 = vpop.f32.mrf.mxu1 }
 0x697   : > { %12723 = vst [vmem:[#allocation107_spill] sm:$0xff] %v10662_v36  ;;  %v10664_v18 = vpop.f32.mrf.mxu0 }
 0x698   : > { %12724 = vst [vmem:[#allocation108_spill] sm:$0xff] %v10664_v18 }
 0x699   : > { %7958 = vmatmul.msk.f32.gmra.mxu1 %vm1157_vm2, %v10135_v30  ;;  %7975 = vmatmul.msk.f32.gmra.mxu2 %vm1157_vm2, %v10135_v30 }
 0x69a   : > { %7992 = vmatmul.msk.f32.gmra.mxu3 %vm1157_vm2, %v10135_v30  ;;  %8009 = vmatmul.msk.f32.gmra.mxu0 %vm1157_vm2, %v10135_v30 }
 0x69c   : > { %v10676_v10 = vpop.f32.mrf.mxu2 }
 0x69d   : > { %v10678_v36 = vpop.f32.mrf.mxu3 }
 0x69e   : > { %v10680_v18 = vpop.f32.mrf.mxu1 }
 0x69f   : > { %12725 = vst [vmem:[#allocation109_spill] sm:$0xff] %v10680_v18  ;;  %v10682_v5 = vpop.f32.mrf.mxu0 }
 0x6a0   : > { %12726 = vst [vmem:[#allocation110_spill] sm:$0xff] %v10682_v5 }
 0x6a1   : > { %7959 = vmatmul.msk.f32.gmra.mxu1 %vm1157_vm2, %v10157_v20  ;;  %7976 = vmatmul.msk.f32.gmra.mxu2 %vm1157_vm2, %v10157_v20 }
 0x6a2   : > { %7993 = vmatmul.msk.f32.gmra.mxu3 %vm1157_vm2, %v10157_v20  ;;  %8010 = vmatmul.msk.f32.gmra.mxu0 %vm1157_vm2, %v10157_v20 }
 0x6a4   : > { %v10693_v27 = vpop.f32.mrf.mxu2 }
 0x6a5   : > { %12727 = vst [vmem:[#allocation111_spill] sm:$0xff] %v10693_v27  ;;  %v10695_v7 = vpop.f32.mrf.mxu3 }
 0x6a6   : > { %12728 = vst [vmem:[#allocation112_spill] sm:$0xff] %v10695_v7  ;;  %v10697_v18 = vpop.f32.mrf.mxu1 }
 0x6a7   : > { %12729 = vst [vmem:[#allocation113_spill] sm:$0xff] %v10697_v18  ;;  %v10699_v5 = vpop.f32.mrf.mxu0 }
 0x6a8   : > { %12730 = vst [vmem:[#allocation114_spill] sm:$0xff] %v10699_v5 }
 0x6a9   : > { %8012 = vmatmul.msk.f32.vlgmr.msra.gmra.mxu1 %vm1157_vm2, %v9763_v17  ;;  %8029 = vmatmul.msk.f32.vlgmr.msra.gmra.mxu2 %vm1157_vm2, %v9763_v17 }
 0x6aa   : > { %8046 = vmatmul.msk.f32.vlgmr.msra.gmra.mxu3 %vm1157_vm2, %v9763_v17  ;;  %8063 = vmatmul.msk.f32.vlgmr.msra.gmra.mxu0 %vm1157_vm2, %v9763_v17 }
 0x6ac   : > { %v10709_v57 = vpop.f32.mrf.mxu2 }
 0x6ad   : > { %v10711_v27 = vpop.f32.mrf.mxu3 }
 0x6ae   : > { %12731 = vst [vmem:[#allocation115_spill] sm:$0xff] %v10711_v27  ;;  %v10713_v7 = vpop.f32.mrf.mxu1 }
 0x6af   : > { %12732 = vst [vmem:[#allocation116_spill] sm:$0xff] %v10713_v7  ;;  %v10715_v18 = vpop.f32.mrf.mxu0 }
 0x6b0   : > { %12733 = vst [vmem:[#allocation117_spill] sm:$0xff] %v10715_v18 }
 0x6b1   : > { %8013 = vmatmul.msk.f32.gmra.mxu1 %vm1157_vm2, %v9785_v12  ;;  %8030 = vmatmul.msk.f32.gmra.mxu2 %vm1157_vm2, %v9785_v12 }
 0x6b2   : > { %8047 = vmatmul.msk.f32.gmra.mxu3 %vm1157_vm2, %v9785_v12  ;;  %8064 = vmatmul.msk.f32.gmra.mxu0 %vm1157_vm2, %v9785_v12 }
 0x6b4   : > { %v10725_v17 = vpop.f32.mrf.mxu2 }
 0x6b5   : > { %12734 = vst [vmem:[#allocation118_spill] sm:$0xff] %v10725_v17  ;;  %v10727_v27 = vpop.f32.mrf.mxu3 }
 0x6b6   : > { %12735 = vst [vmem:[#allocation119_spill] sm:$0xff] %v10727_v27  ;;  %v10729_v7 = vpop.f32.mrf.mxu1 }
 0x6b7   : > { %12736 = vst [vmem:[#allocation120_spill] sm:$0xff] %v10729_v7  ;;  %v10731_v18 = vpop.f32.mrf.mxu0 }
 0x6b8   : > { %12737 = vst [vmem:[#allocation121_spill] sm:$0xff] %v10731_v18  ;;  %v3896_v18 = vld [vmem:[%s8599_s24 + $0x88] sm:$0xff] }
 0x6b9   : > { %8014 = vmatmul.msk.f32.gmra.mxu1 %vm1157_vm2, %v9831_v21  ;;  %8031 = vmatmul.msk.f32.gmra.mxu2 %vm1157_vm2, %v9831_v21 }
 0x6ba   : > { %8048 = vmatmul.msk.f32.gmra.mxu3 %vm1157_vm2, %v9831_v21  ;;  %8065 = vmatmul.msk.f32.gmra.mxu0 %vm1157_vm2, %v9831_v21  ;;  %v3897_v21 = vld [vmem:[%s8599_s24 + $0x90] sm:$0xff] }
 0x6bb   : > { %4010 = vmatpush.xpose.msrb.mxu2 %v3896_v18  ;;  %4075 = vmatpush.xpose.msrb.mxu3 %v3897_v21  ;;  %v3898_v21 = vld [vmem:[%s8599_s24 + $0x98] sm:$0xff] }
 0x6bc   : > { %v10741_v12 = vpop.f32.mrf.mxu2  ;;  %4140 = vmatpush.xpose.msrb.mxu0 %v3898_v21 }
 0x6bd   : > { %12738 = vst [vmem:[#allocation122_spill] sm:$0xff] %v10741_v12  ;;  %v10743_v27 = vpop.f32.mrf.mxu3 }
 0x6be   : > { %12739 = vst [vmem:[#allocation123_spill] sm:$0xff] %v10743_v27  ;;  %v10745_v7 = vpop.f32.mrf.mxu1  ;;  %v3895_v27 = vld [vmem:[%s8599_s24 + $0x80] sm:$0xff] }
 0x6bf   : > { %12740 = vst [vmem:[#allocation124_spill] sm:$0xff] %v10745_v7  ;;  %v10747_v17 = vpop.f32.mrf.mxu0  ;;  %3945 = vmatpush.xpose.msrb.mxu1 %v3895_v27 }
 0x6c0   : > { %12741 = vst [vmem:[#allocation125_spill] sm:$0xff] %v10747_v17 }
 0x6c1   : > { %8015 = vmatmul.msk.f32.gmra.mxu1 %vm1157_vm2, %v9864_v34  ;;  %8032 = vmatmul.msk.f32.gmra.mxu2 %vm1157_vm2, %v9864_v34 }
 0x6c2   : > { %8049 = vmatmul.msk.f32.gmra.mxu3 %vm1157_vm2, %v9864_v34  ;;  %8066 = vmatmul.msk.f32.gmra.mxu0 %vm1157_vm2, %v9864_v34 }
 0x6c4   : > { %v10760_v7 = vpop.f32.mrf.mxu2 }
 0x6c5   : > { %v10762_v17 = vpop.f32.mrf.mxu3 }
 0x6c6   : > { %v10764_v12 = vpop.f32.mrf.mxu1 }
 0x6c7   : > { %v10766_v5 = vpop.f32.mrf.mxu0 }
 0x6c8   : > { %12742 = vst [vmem:[#allocation126_spill] sm:$0xff] %v10766_v5 }
 0x6c9   : > { %8016 = vmatmul.msk.f32.gmra.mxu1 %vm1157_vm2, %v9897_v48  ;;  %8033 = vmatmul.msk.f32.gmra.mxu2 %vm1157_vm2, %v9897_v48 }
 0x6ca   : > { %8050 = vmatmul.msk.f32.gmra.mxu3 %vm1157_vm2, %v9897_v48  ;;  %8067 = vmatmul.msk.f32.gmra.mxu0 %vm1157_vm2, %v9897_v48 }
 0x6cc   : > { %v10777_v18 = vpop.f32.mrf.mxu2 }
 0x6cd   : > { %12743 = vst [vmem:[#allocation127_spill] sm:$0xff] %v10777_v18  ;;  %v10779_v27 = vpop.f32.mrf.mxu3 }
 0x6ce   : > { %12744 = vst [vmem:[#allocation128_spill] sm:$0xff] %v10779_v27  ;;  %v10781_v34 = vpop.f32.mrf.mxu1 }
 0x6cf   : > { %12745 = vst [vmem:[#allocation129_spill] sm:$0xff] %v10781_v34  ;;  %v10783_v5 = vpop.f32.mrf.mxu0 }
 0x6d0   : > { %12746 = vst [vmem:[#allocation130_spill] sm:$0xff] %v10783_v5  ;;  %v3879_v5 = vld [vmem:[%s8599_s24] sm:$0xff] }
 0x6d1   : > { %8017 = vmatmul.msk.f32.gmra.mxu1 %vm1157_vm2, %v9930_v43  ;;  %8034 = vmatmul.msk.f32.gmra.mxu2 %vm1157_vm2, %v9930_v43 }
 0x6d2   : > { %8051 = vmatmul.msk.f32.gmra.mxu3 %vm1157_vm2, %v9930_v43  ;;  %8068 = vmatmul.msk.f32.gmra.mxu0 %vm1157_vm2, %v9930_v43 }
 0x6d3   : > { %3946 = vmatpush.xpose.msrb.mxu1 %v3879_v5 }
 0x6d4   : > { %v10793_v21 = vpop.f32.mrf.mxu2 }
 0x6d5   : > { %12747 = vst [vmem:[#allocation131_spill] sm:$0xff] %v10793_v21  ;;  %v10795_v48 = vpop.f32.mrf.mxu3 }
 0x6d6   : > { %12748 = vst [vmem:[#allocation132_spill] sm:$0xff] %v10795_v48  ;;  %v10797_v27 = vpop.f32.mrf.mxu1 }
 0x6d7   : > { %12749 = vst [vmem:[#allocation133_spill] sm:$0xff] %v10797_v27  ;;  %v10799_v34 = vpop.f32.mrf.mxu0 }
 0x6d8   : > { %12750 = vst [vmem:[#allocation134_spill] sm:$0xff] %v10799_v34 }
 0x6d9   : > { %8018 = vmatmul.msk.f32.gmra.mxu1 %vm1157_vm2, %v9971_v60  ;;  %8035 = vmatmul.msk.f32.gmra.mxu2 %vm1157_vm2, %v9971_v60 }
 0x6da   : > { %8052 = vmatmul.msk.f32.gmra.mxu3 %vm1157_vm2, %v9971_v60  ;;  %8069 = vmatmul.msk.f32.gmra.mxu0 %vm1157_vm2, %v9971_v60 }
 0x6dc   : > { %v10809_v43 = vpop.f32.mrf.mxu2 }
 0x6dd   : > { %12751 = vst [vmem:[#allocation135_spill] sm:$0xff] %v10809_v43  ;;  %v10811_v48 = vpop.f32.mrf.mxu3 }
 0x6de   : > { %12752 = vst [vmem:[#allocation136_spill] sm:$0xff] %v10811_v48  ;;  %v10813_v27 = vpop.f32.mrf.mxu1 }
 0x6df   : > { %12753 = vst [vmem:[#allocation137_spill] sm:$0xff] %v10813_v27  ;;  %v10815_v34 = vpop.f32.mrf.mxu0 }
 0x6e0   : > { %12754 = vst [vmem:[#allocation138_spill] sm:$0xff] %v10815_v34 }
 0x6e1   : > { %8019 = vmatmul.msk.f32.gmra.mxu1 %vm1157_vm2, %v9987_v38  ;;  %8036 = vmatmul.msk.f32.gmra.mxu2 %vm1157_vm2, %v9987_v38 }
 0x6e2   : > { %8053 = vmatmul.msk.f32.gmra.mxu3 %vm1157_vm2, %v9987_v38  ;;  %8070 = vmatmul.msk.f32.gmra.mxu0 %vm1157_vm2, %v9987_v38  ;;  %v3880_v38 = vld [vmem:[%s8599_s24 + $0x8] sm:$0xff] }
 0x6e3   : > { %4011 = vmatpush.xpose.msrb.mxu2 %v3880_v38 }
 0x6e4   : > { %v10825_v60 = vpop.f32.mrf.mxu2 }
 0x6e5   : > { %12755 = vst [vmem:[#allocation139_spill] sm:$0xff] %v10825_v60  ;;  %v10827_v48 = vpop.f32.mrf.mxu3  ;;  %v3881_v60 = vld [vmem:[%s8599_s24 + $0x10] sm:$0xff] }
 0x6e6   : > { %12756 = vst [vmem:[#allocation140_spill] sm:$0xff] %v10827_v48  ;;  %v10829_v27 = vpop.f32.mrf.mxu1  ;;  %4076 = vmatpush.xpose.msrb.mxu3 %v3881_v60  ;;  %v3882_v60 = vld [vmem:[%s8599_s24 + $0x18] sm:$0xff] }
 0x6e7   : > { %12757 = vst [vmem:[#allocation141_spill] sm:$0xff] %v10829_v27  ;;  %v10831_v34 = vpop.f32.mrf.mxu0  ;;  %4141 = vmatpush.xpose.msrb.mxu0 %v3882_v60 }
 0x6e8   : > { %12758 = vst [vmem:[#allocation142_spill] sm:$0xff] %v10831_v34 }
 0x6e9   : > { %8020 = vmatmul.msk.f32.gmra.mxu1 %vm1157_vm2, %v10002_v9  ;;  %8037 = vmatmul.msk.f32.gmra.mxu2 %vm1157_vm2, %v10002_v9 }
 0x6ea   : > { %8054 = vmatmul.msk.f32.gmra.mxu3 %vm1157_vm2, %v10002_v9  ;;  %8071 = vmatmul.msk.f32.gmra.mxu0 %vm1157_vm2, %v10002_v9 }
 0x6ec   : > { %v10843_v27 = vpop.f32.mrf.mxu2 }
 0x6ed   : > { %12759 = vst [vmem:[#allocation143_spill] sm:$0xff] %v10843_v27  ;;  %v10845_v34 = vpop.f32.mrf.mxu3 }
 0x6ee   : > { %12760 = vst [vmem:[#allocation144_spill] sm:$0xff] %v10845_v34  ;;  %v10847_v48 = vpop.f32.mrf.mxu1 }
 0x6ef   : > { %12761 = vst [vmem:[#allocation145_spill] sm:$0xff] %v10847_v48  ;;  %v10849_v43 = vpop.f32.mrf.mxu0 }
 0x6f0   : > { %12762 = vst [vmem:[#allocation146_spill] sm:$0xff] %v10849_v43 }
 0x6f1   : > { %8021 = vmatmul.msk.f32.gmra.mxu1 %vm1157_vm2, %v10016_v55  ;;  %8038 = vmatmul.msk.f32.gmra.mxu2 %vm1157_vm2, %v10016_v55 }
 0x6f2   : > { %8055 = vmatmul.msk.f32.gmra.mxu3 %vm1157_vm2, %v10016_v55  ;;  %8072 = vmatmul.msk.f32.gmra.mxu0 %vm1157_vm2, %v10016_v55 }
 0x6f4   : > { %v10861_v38 = vpop.f32.mrf.mxu2 }
 0x6f5   : > { %12763 = vst [vmem:[#allocation147_spill] sm:$0xff] %v10861_v38  ;;  %v10863_v9 = vpop.f32.mrf.mxu3 }
 0x6f6   : > { %12764 = vst [vmem:[#allocation148_spill] sm:$0xff] %v10863_v9  ;;  %v10865_v43 = vpop.f32.mrf.mxu1 }
 0x6f7   : > { %12765 = vst [vmem:[#allocation149_spill] sm:$0xff] %v10865_v43  ;;  %v10867_v48 = vpop.f32.mrf.mxu0 }
 0x6f8   : > { %12766 = vst [vmem:[#allocation150_spill] sm:$0xff] %v10867_v48 }
 0x6f9   : > { %8022 = vmatmul.msk.f32.gmra.mxu1 %vm1157_vm2, %v10049_v8  ;;  %8039 = vmatmul.msk.f32.gmra.mxu2 %vm1157_vm2, %v10049_v8 }
 0x6fa   : > { %8056 = vmatmul.msk.f32.gmra.mxu3 %vm1157_vm2, %v10049_v8  ;;  %8073 = vmatmul.msk.f32.gmra.mxu0 %vm1157_vm2, %v10049_v8 }
 0x6fc   : > { %v10877_v5 = vpop.f32.mrf.mxu2 }
 0x6fd   : > { %12767 = vst [vmem:[#allocation151_spill] sm:$0xff] %v10877_v5  ;;  %v10879_v60 = vpop.f32.mrf.mxu3 }
 0x6fe   : > { %12768 = vst [vmem:[#allocation152_spill] sm:$0xff] %v10879_v60  ;;  %v10881_v55 = vpop.f32.mrf.mxu1 }
 0x6ff   : > { %12769 = vst [vmem:[#allocation153_spill] sm:$0xff] %v10881_v55  ;;  %v10883_v43 = vpop.f32.mrf.mxu0 }
 0x700   : > { %12770 = vst [vmem:[#allocation154_spill] sm:$0xff] %v10883_v43 }
 0x701   : > { %8023 = vmatmul.msk.f32.gmra.mxu1 %vm1157_vm2, %v10071_v53  ;;  %8040 = vmatmul.msk.f32.gmra.mxu2 %vm1157_vm2, %v10071_v53 }
 0x702   : > { %8057 = vmatmul.msk.f32.gmra.mxu3 %vm1157_vm2, %v10071_v53  ;;  %8074 = vmatmul.msk.f32.gmra.mxu0 %vm1157_vm2, %v10071_v53 }
 0x704   : > { %v10893_v8 = vpop.f32.mrf.mxu2 }
 0x705   : > { %12771 = vst [vmem:[#allocation155_spill] sm:$0xff] %v10893_v8  ;;  %v10895_v60 = vpop.f32.mrf.mxu3  ;;  %v3917_v8 = vld [vmem:[%s8599_s24 + $0x130] sm:$0x1] }
 0x706   : > { %12772 = vst [vmem:[#allocation156_spill] sm:$0xff] %v10895_v60  ;;  %v10897_v55 = vpop.f32.mrf.mxu1  ;;  %4334 = vmatpush.xpose.msra.mxu3 %v3917_v8 }
 0x707   : > { %12773 = vst [vmem:[#allocation157_spill] sm:$0xff] %v10897_v55  ;;  %v10899_v43 = vpop.f32.mrf.mxu0 }
 0x708   : > { %12774 = vst [vmem:[#allocation158_spill] sm:$0xff] %v10899_v43 }
 0x709   : > { %8024 = vmatmul.msk.f32.gmra.mxu1 %vm1157_vm2, %v10096_v35  ;;  %8041 = vmatmul.msk.f32.gmra.mxu2 %vm1157_vm2, %v10096_v35 }
 0x70a   : > { %8058 = vmatmul.msk.f32.gmra.mxu3 %vm1157_vm2, %v10096_v35  ;;  %8075 = vmatmul.msk.f32.gmra.mxu0 %vm1157_vm2, %v10096_v35  ;;  %v3916_v35 = vld [vmem:[%s8599_s24 + $0x128] sm:$0x1] }
 0x70b   : > { %4269 = vmatpush.xpose.msra.mxu2 %v3916_v35  ;;  %v3915_v35 = vld [vmem:[%s8599_s24 + $0x120] sm:$0x1] }
 0x70c   : > { %v10909_v53 = vpop.f32.mrf.mxu2  ;;  %4204 = vmatpush.xpose.msra.mxu1 %v3915_v35  ;;  %v3918_v35 = vld [vmem:[%s8599_s24 + $0x138] sm:$0x1] }
 0x70d   : > { %12775 = vst [vmem:[#allocation159_spill] sm:$0xff] %v10909_v53  ;;  %v10911_v60 = vpop.f32.mrf.mxu3  ;;  %4399 = vmatpush.xpose.msra.mxu0 %v3918_v35 }
 0x70e   : > { %12776 = vst [vmem:[#allocation160_spill] sm:$0xff] %v10911_v60  ;;  %v10913_v55 = vpop.f32.mrf.mxu1 }
 0x70f   : > { %12777 = vst [vmem:[#allocation161_spill] sm:$0xff] %v10913_v55  ;;  %v10915_v43 = vpop.f32.mrf.mxu0 }
 0x710   : > { %12778 = vst [vmem:[#allocation162_spill] sm:$0xff] %v10915_v43 }
 0x711   : > { %8025 = vmatmul.msk.f32.gmra.mxu1 %vm1157_vm2, %v10111_v31  ;;  %8042 = vmatmul.msk.f32.gmra.mxu2 %vm1157_vm2, %v10111_v31 }
 0x712   : > { %8059 = vmatmul.msk.f32.gmra.mxu3 %vm1157_vm2, %v10111_v31  ;;  %8076 = vmatmul.msk.f32.gmra.mxu0 %vm1157_vm2, %v10111_v31  ;;  %v10945_v31 = vld [vmem:[%s8594_s15] sm:$0xff] }
 0x713   : > { %v10957_v48 = vperm.slane %v10945_v31, 1  ;;  %v10965_v8 = vperm.slane %v10945_v31, 2 }
 0x714   : > { %v10926_v60 = vpop.f32.mrf.mxu2 }
 0x715   : > { %12779 = vst [vmem:[#allocation163_spill] sm:$0xff] %v10926_v60  ;;  %v10928_v55 = vpop.f32.mrf.mxu3  ;;  %v10954_v60 = vperm.slane %v10945_v31, 0 }
 0x716   : > { %12780 = vst [vmem:[#allocation164_spill] sm:$0xff] %v10928_v55  ;;  %v10930_v43 = vpop.f32.mrf.mxu1 }
 0x717   : > { %12781 = vst [vmem:[#allocation165_spill] sm:$0xff] %v10930_v43  ;;  %v10932_v53 = vpop.f32.mrf.mxu0 }
 0x718   : > { %12782 = vst [vmem:[#allocation166_spill] sm:$0xff] %v10932_v53 }
 0x719   : > { %8026 = vmatmul.msk.f32.gmra.mxu1 %vm1157_vm2, %v10135_v30  ;;  %8043 = vmatmul.msk.f32.gmra.mxu2 %vm1157_vm2, %v10135_v30 }
 0x71a   : > { %8060 = vmatmul.msk.f32.gmra.mxu3 %vm1157_vm2, %v10135_v30  ;;  %8077 = vmatmul.msk.f32.gmra.mxu0 %vm1157_vm2, %v10135_v30  ;;  %v10962_v30 = vperm.slane %v10945_v31, 3 }
 0x71c   : > { %v10947_v53 = vpop.f32.mrf.mxu2 }
 0x71d   : > { %12783 = vst [vmem:[#allocation167_spill] sm:$0xff] %v10947_v53  ;;  %v10949_v43 = vpop.f32.mrf.mxu3  ;;  %v2731_v53 = vadd.f32 %v10151_v61, %v10965_v8  ;;  %v2799_v61 = vadd.f32 %v10159_v33, %v10962_v30  ;;  %v2607_v33 = vadd.f32 %v10173_v56, %v10954_v60 }
 0x71e   : > { %12784 = vst [vmem:[#allocation168_spill] sm:$0xff] %v10949_v43  ;;  %v10951_v55 = vpop.f32.mrf.mxu1  ;;  %v2796_v43 = vadd.f32 %v10132_v6, %v10962_v30  ;;  %v2604_v6 = vadd.f32 %v10154_v4, %v10954_v60 }
 0x71f   : > { %12785 = vst [vmem:[#allocation169_spill] sm:$0xff] %v10951_v55  ;;  %v10959_v5 = vpop.f32.mrf.mxu0  ;;  %v2666_v55 = vadd.f32 %v10148_v26, %v10957_v48  ;;  %v3625_v18 = vmax.f32 %v2731_v53, 0.0  ;;  %v2669_v26 = vadd.f32 %v10169_v50, %v10957_v48  ;;  %v3642_v4 = vmax.f32 %v2799_v61, 0.0 }
 0x720   : > { %12786 = vst [vmem:[#allocation170_spill] sm:$0xff] %v10959_v5  ;;  %v2601_v5 = vadd.f32 %v10129_v46, %v10954_v60  ;;  %v3626_v46 = vmax.f32 %v2796_v43, 0.0  ;;  %v2672_v50 = vadd.f32 %v10185_v2, %v10957_v48  ;;  %v2675_v2 = vadd.f32 %v10201_v37, %v10957_v48 }
 0x721   : > { %8027 = vmatmul.msk.f32.gmra.mxu1 %vm1157_vm2, %v10157_v20  ;;  %8044 = vmatmul.msk.f32.gmra.mxu2 %vm1157_vm2, %v10157_v20  ;;  %v3624_v27 = vmax.f32 %v2666_v55, 0.0  ;;  %v2734_v55 = vadd.f32 %v10171_v51, %v10965_v8  ;;  %v2802_v51 = vadd.f32 %v10175_v16, %v10962_v30  ;;  %v2610_v16 = vadd.f32 %v10189_v58, %v10954_v60 }
 0x722   : > { %8061 = vmatmul.msk.f32.gmra.mxu3 %vm1157_vm2, %v10157_v20  ;;  %8078 = vmatmul.msk.f32.gmra.mxu0 %vm1157_vm2, %v10157_v20  ;;  %v3623_v20 = vmax.f32 %v2601_v5, 0.0 }
 0x723   : > { %v3641_v35 = vmax.f32 %v2734_v55, 0.0  ;;  %v3655_v55 = vmax.f32 %v2607_v33, 0.0  ;;  %v3658_v56 = vmax.f32 %v2802_v51, 0.0 }
 0x724   : > { %v10984_v9 = vpop.f32.mrf.mxu2 }
 0x725   : > { %v10986_v38 = vpop.f32.mrf.mxu3 }
 0x726   : > { %v10988_v34 = vpop.f32.mrf.mxu1 }
 0x727   : > { %v10990_v21 = vpop.f32.mrf.mxu0 }
 0x729   : > { %3947 = vmatmul.f32.vlgmr.msrb.gmra.mxu1 %v3623_v20  ;;  %4012 = vmatmul.f32.vlgmr.msrb.gmra.mxu2 %v3624_v27  ;;  %v3639_v20 = vmax.f32 %v2604_v6, 0.0 }
 0x72a   : > { %4077 = vmatmul.f32.vlgmr.msrb.gmra.mxu3 %v3625_v18  ;;  %4142 = vmatmul.f32.vlgmr.msrb.gmra.mxu0 %v3626_v46  ;;  %v3640_v18 = vmax.f32 %v2669_v26, 0.0  ;;  %v2737_v46 = vadd.f32 %v10187_v52, %v10965_v8  ;;  %v2805_v52 = vadd.f32 %v10195_v23, %v10962_v30  ;;  %v3901_v23 = vld [vmem:[%s8599_s24 + $0xb0] sm:$0xff] }
 0x72b   : > { %4335 = vmatpush.xpose.msra.mxu3 %v3901_v23  ;;  %v2811_v23 = vadd.f32 %v10235_v14, %v10962_v30  ;;  %v2619_v14 = vadd.f32 %v10249_v32, %v10954_v60 }
 0x72c   : > { %v11000_v5 = vpop.f32.mrf.mxu2 }
 0x72d   : > { %v11002_v43 = vpop.f32.mrf.mxu3 }
 0x72e   : > { %v11004_v53 = vpop.f32.mrf.mxu1 }
 0x72f   : > { %v11006_v27 = vpop.f32.mrf.mxu0 }
 0x731   : > { %3950 = vmatmul.f32.gmra.mxu1 %v3639_v20  ;;  %4015 = vmatmul.f32.gmra.mxu2 %v3640_v18  ;;  %v3656_v20 = vmax.f32 %v2672_v50, 0.0 }
 0x732   : > { %4080 = vmatmul.f32.gmra.mxu3 %v3641_v35  ;;  %4145 = vmatmul.f32.gmra.mxu0 %v3642_v4  ;;  %v3657_v4 = vmax.f32 %v2737_v46, 0.0  ;;  %v2740_v35 = vadd.f32 %v10203_v47, %v10965_v8  ;;  %v3671_v46 = vmax.f32 %v2610_v16, 0.0  ;;  %v2613_v47 = vadd.f32 %v10215_v41, %v10954_v60 }
 0x733   : > { %v2808_v16 = vadd.f32 %v10217_v42, %v10962_v30  ;;  %v3902_v42 = vld [vmem:[%s8599_s24 + $0xb8] sm:$0xff] }
 0x734   : > { %v11016_v6 = vpop.f32.mrf.mxu2  ;;  %v3673_v37 = vmax.f32 %v2740_v35, 0.0  ;;  %v3687_v41 = vmax.f32 %v2613_v47, 0.0  ;;  %4400 = vmatpush.xpose.msra.mxu0 %v3902_v42 }
 0x735   : > { %v11018_v26 = vpop.f32.mrf.mxu3 }
 0x736   : > { %v11020_v61 = vpop.f32.mrf.mxu1 }
 0x737   : > { %v11022_v18 = vpop.f32.mrf.mxu0 }
 0x739   : > { %3953 = vmatmul.f32.gmra.mxu1 %v3655_v55  ;;  %4018 = vmatmul.f32.gmra.mxu2 %v3656_v20  ;;  %v3672_v55 = vmax.f32 %v2675_v2, 0.0  ;;  %v3674_v20 = vmax.f32 %v2805_v52, 0.0  ;;  %v2743_v2 = vadd.f32 %v10225_v40, %v10965_v8  ;;  %v2616_v40 = vadd.f32 %v10233_v0, %v10954_v60 }
 0x73a   : > { %4083 = vmatmul.f32.gmra.mxu3 %v3657_v4  ;;  %4148 = vmatmul.f32.gmra.mxu0 %v3658_v56  ;;  %v3900_v56 = vld [vmem:[%s8599_s24 + $0xa8] sm:$0xff]  ;;  %v3899_v4 = vld [vmem:[%s8599_s24 + $0xa0] sm:$0xff]  ;;  %v3706_v0 = vmax.f32 %v2811_v23, 0.0  ;;  %v3719_v23 = vmax.f32 %v2619_v14, 0.0 }
 0x73b   : > { %4270 = vmatpush.xpose.msra.mxu2 %v3900_v56  ;;  %4205 = vmatpush.xpose.msra.mxu1 %v3899_v4  ;;  %v2681_v56 = vadd.f32 %v10245_v59, %v10957_v48  ;;  %v2684_v59 = vadd.f32 %v10261_v63, %v10957_v48  ;;  %v2687_v63 = vadd.f32 %v10277_v45, %v10957_v48 }
 0x73c   : > { %v11032_v33 = vpop.f32.mrf.mxu2  ;;  %v2690_v45 = vadd.f32 %v10293_v44, %v10957_v48  ;;  %v3885_v44 = vld [vmem:[%s8599_s24 + $0x30] sm:$0xff] }
 0x73d   : > { %v11034_v50 = vpop.f32.mrf.mxu3  ;;  %4336 = vmatpush.xpose.msra.mxu3 %v3885_v44 }
 0x73e   : > { %12787 = vst [vmem:[#allocation171_spill] sm:$0xff] %v11034_v50  ;;  %v11036_v51 = vpop.f32.mrf.mxu1  ;;  %v2678_v50 = vadd.f32 %v10219_v15, %v10957_v48  ;;  %v3690_v15 = vmax.f32 %v2808_v16, 0.0 }
 0x73f   : > { %v11038_v58 = vpop.f32.mrf.mxu0 }
 0x741   : > { %3956 = vmatmul.f32.gmra.mxu1 %v3671_v46  ;;  %4021 = vmatmul.f32.gmra.mxu2 %v3672_v55  ;;  %v3688_v55 = vmax.f32 %v2678_v50, 0.0  ;;  %v2746_v50 = vadd.f32 %v10247_v3, %v10965_v8  ;;  %v2814_v3 = vadd.f32 %v10251_v62, %v10962_v30  ;;  %v2622_v62 = vadd.f32 %v10265_v25, %v10954_v60 }
 0x742   : > { %4086 = vmatmul.f32.gmra.mxu3 %v3673_v37  ;;  %4151 = vmatmul.f32.gmra.mxu0 %v3674_v20  ;;  %v3689_v37 = vmax.f32 %v2743_v2, 0.0  ;;  %v3703_v2 = vmax.f32 %v2616_v40, 0.0 }
 0x743   : > { %v3722_v32 = vmax.f32 %v2814_v3, 0.0  ;;  %v3735_v3 = vmax.f32 %v2622_v62, 0.0 }
 0x744   : > { %v11051_v52 = vpop.f32.mrf.mxu2 }
 0x745   : > { %v11053_v35 = vpop.f32.mrf.mxu3 }
 0x746   : > { %v11055_v46 = vpop.f32.mrf.mxu1 }
 0x747   : > { %v11057_v20 = vpop.f32.mrf.mxu0 }
 0x749   : > { %3959 = vmatmul.f32.gmra.mxu1 %v3687_v41  ;;  %4024 = vmatmul.f32.gmra.mxu2 %v3688_v55  ;;  %v3704_v41 = vmax.f32 %v2681_v56, 0.0 }
 0x74a   : > { %4089 = vmatmul.f32.gmra.mxu3 %v3689_v37  ;;  %4154 = vmatmul.f32.gmra.mxu0 %v3690_v15  ;;  %v3705_v15 = vmax.f32 %v2746_v50, 0.0  ;;  %v2749_v37 = vadd.f32 %v10263_v13, %v10965_v8  ;;  %v3720_v50 = vmax.f32 %v2684_v59, 0.0  ;;  %v2817_v13 = vadd.f32 %v10271_v11, %v10962_v30 }
 0x74b   : > { %v2625_v11 = vadd.f32 %v10289_v19, %v10954_v60 }
 0x74c   : > { %v11068_v4 = vpop.f32.mrf.mxu2  ;;  %v3738_v25 = vmax.f32 %v2817_v13, 0.0 }
 0x74d   : > { %v11070_v47 = vpop.f32.mrf.mxu3  ;;  %v3751_v13 = vmax.f32 %v2625_v11, 0.0  ;;  %v2758_v11 = vadd.f32 %v10323_v49, %v10965_v8  ;;  %v2631_v49 = vadd.f32 %v10325_v29, %v10954_v60 }
 0x74e   : > { %12788 = vst [vmem:[#allocation172_spill] sm:$0xff] %v11070_v47  ;;  %v11072_v16 = vpop.f32.mrf.mxu1 }
 0x74f   : > { %12789 = vst [vmem:[#allocation173_spill] sm:$0xff] %v11072_v16  ;;  %v11074_v55 = vpop.f32.mrf.mxu0 }
 0x750   : > { %12790 = vst [vmem:[#allocation174_spill] sm:$0xff] %v11074_v55 }
 0x751   : > { %3962 = vmatmul.f32.gmra.mxu1 %v3703_v2  ;;  %4027 = vmatmul.f32.gmra.mxu2 %v3704_v41  ;;  %v3721_v41 = vmax.f32 %v2749_v37, 0.0  ;;  %v3736_v37 = vmax.f32 %v2687_v63, 0.0 }
 0x752   : > { %4092 = vmatmul.f32.gmra.mxu3 %v3705_v15  ;;  %4157 = vmatmul.f32.gmra.mxu0 %v3706_v0  ;;  %v2752_v0 = vadd.f32 %v10279_v1, %v10965_v8  ;;  %v2820_v1 = vadd.f32 %v10291_v54, %v10962_v30  ;;  %v3884_v54 = vld [vmem:[%s8599_s24 + $0x28] sm:$0xff] }
 0x753   : > { %4271 = vmatpush.xpose.msra.mxu2 %v3884_v54  ;;  %v12807_v54 = vld [vmem:[#allocation29_spill] sm:$0xff] }
 0x754   : > { %v11084_v42 = vpop.f32.mrf.mxu2  ;;  %v2696_v44 = vadd.f32 %v12807_v54, %v10957_v48 }
 0x755   : > { %12791 = vst [vmem:[#allocation175_spill] sm:$0xff] %v11084_v42  ;;  %v11086_v40 = vpop.f32.mrf.mxu3 }
 0x756   : > { %12792 = vst [vmem:[#allocation176_spill] sm:$0xff] %v11086_v40  ;;  %v11088_v56 = vpop.f32.mrf.mxu1 }
 0x757   : > { %12793 = vst [vmem:[#allocation177_spill] sm:$0xff] %v11088_v56  ;;  %v11090_v2 = vpop.f32.mrf.mxu0  ;;  %v3887_v56 = vld [vmem:[%s8599_s24 + $0x40] sm:$0xff] }
 0x758   : > { %12794 = vst [vmem:[#allocation178_spill] sm:$0xff] %v11090_v2 }
 0x759   : > { %3965 = vmatmul.f32.gmra.mxu1 %v3719_v23  ;;  %4030 = vmatmul.f32.gmra.mxu2 %v3720_v50  ;;  %v3737_v50 = vmax.f32 %v2752_v0, 0.0  ;;  %v3752_v0 = vmax.f32 %v2690_v45, 0.0 }
 0x75a   : > { %4095 = vmatmul.f32.gmra.mxu3 %v3721_v41  ;;  %4160 = vmatmul.f32.gmra.mxu0 %v3722_v32  ;;  %v2755_v32 = vadd.f32 %v10299_v22, %v10965_v8  ;;  %v2628_v22 = vadd.f32 %v10307_v39, %v10954_v60 }
 0x75c   : > { %v11100_v15 = vpop.f32.mrf.mxu2 }
 0x75d   : > { %12795 = vst [vmem:[#allocation179_spill] sm:$0xff] %v11100_v15  ;;  %v11102_v14 = vpop.f32.mrf.mxu3 }
 0x75e   : > { %12796 = vst [vmem:[#allocation180_spill] sm:$0xff] %v11102_v14  ;;  %v11104_v59 = vpop.f32.mrf.mxu1 }
 0x75f   : > { %12797 = vst [vmem:[#allocation181_spill] sm:$0xff] %v11104_v59  ;;  %v11106_v23 = vpop.f32.mrf.mxu0 }
 0x760   : > { %12798 = vst [vmem:[#allocation182_spill] sm:$0xff] %v11106_v23  ;;  %v3905_v23 = vld [vmem:[%s8599_s24 + $0xd0] sm:$0xff] }
 0x761   : > { %3968 = vmatmul.f32.gmra.mxu1 %v3735_v3  ;;  %4033 = vmatmul.f32.gmra.mxu2 %v3736_v37  ;;  %v3754_v3 = vmax.f32 %v2820_v1, 0.0  ;;  %v3753_v37 = vmax.f32 %v2755_v32, 0.0 }
 0x762   : > { %4098 = vmatmul.f32.gmra.mxu3 %v3737_v50  ;;  %4163 = vmatmul.f32.gmra.mxu0 %v3738_v25  ;;  %v2693_v25 = vadd.f32 %v10321_v28, %v10957_v48  ;;  %v2823_v50 = vadd.f32 %v10309_v24, %v10962_v30  ;;  %v3886_v24 = vld [vmem:[%s8599_s24 + $0x38] sm:$0xff] }
 0x763   : > { %4401 = vmatpush.xpose.msra.mxu0 %v3886_v24 }
 0x764   : > { %v11116_v41 = vpop.f32.mrf.mxu2  ;;  %v3768_v39 = vmax.f32 %v2693_v25, 0.0  ;;  %v3770_v28 = vmax.f32 %v2823_v50, 0.0  ;;  %v12809_v50 = vld [vmem:[#allocation30_spill] sm:$0xff] }
 0x765   : > { %12799 = vst [vmem:[#allocation183_spill] sm:$0xff] %v11116_v41  ;;  %v11118_v62 = vpop.f32.mrf.mxu3 }
 0x766   : > { %12800 = vst [vmem:[#allocation184_spill] sm:$0xff] %v11118_v62  ;;  %v11120_v63 = vpop.f32.mrf.mxu1 }
 0x767   : > { %12801 = vst [vmem:[#allocation185_spill] sm:$0xff] %v11120_v63  ;;  %v11122_v19 = vpop.f32.mrf.mxu0 }
 0x768   : > { %12802 = vst [vmem:[#allocation186_spill] sm:$0xff] %v11122_v19 }
 0x769   : > { %3971 = vmatmul.f32.gmra.mxu1 %v3751_v13  ;;  %4036 = vmatmul.f32.gmra.mxu2 %v3752_v0  ;;  %v3767_v13 = vmax.f32 %v2628_v22, 0.0  ;;  %v12808_v22 = vld [vmem:[#allocation28_spill] sm:$0xff] }
 0x76a   : > { %4101 = vmatmul.f32.gmra.mxu3 %v3753_v37  ;;  %4166 = vmatmul.f32.gmra.mxu0 %v3754_v3  ;;  %v3769_v3 = vmax.f32 %v2758_v11, 0.0  ;;  %v3883_v37 = vld [vmem:[%s8599_s24 + $0x20] sm:$0xff]  ;;  %v2826_v25 = vadd.f32 %v12808_v22, %v10962_v30  ;;  %v2761_v11 = vadd.f32 %v12809_v50, %v10965_v8 }
 0x76b   : > { %4206 = vmatpush.xpose.msra.mxu1 %v3883_v37  ;;  %v12814_v37 = vld [vmem:[#allocation31_spill] sm:$0xff]  ;;  %v12815_v22 = vld [vmem:[#allocation33_spill] sm:$0xff] }
 0x76c   : > { %v11134_v45 = vpop.f32.mrf.mxu2  ;;  %v3785_v54 = vmax.f32 %v2761_v11, 0.0  ;;  %v2634_v24 = vadd.f32 %v12814_v37, %v10954_v60  ;;  %v2699_v50 = vadd.f32 %v12815_v22, %v10957_v48 }
 0x76d   : > { %12803 = vst [vmem:[#allocation187_spill] sm:$0xff] %v11134_v45  ;;  %v11136_v1 = vpop.f32.mrf.mxu3 }
 0x76e   : > { %12804 = vst [vmem:[#allocation188_spill] sm:$0xff] %v11136_v1  ;;  %v11138_v32 = vpop.f32.mrf.mxu1 }
 0x76f   : > { %12805 = vst [vmem:[#allocation189_spill] sm:$0xff] %v11138_v32  ;;  %v11140_v0 = vpop.f32.mrf.mxu0  ;;  %v3786_v32 = vmax.f32 %v2826_v25, 0.0 }
 0x770   : > { %12806 = vst [vmem:[#allocation190_spill] sm:$0xff] %v11140_v0 }
 0x771   : > { %3974 = vmatmul.f32.gmra.mxu1 %v3767_v13  ;;  %4039 = vmatmul.f32.gmra.mxu2 %v3768_v39 }
 0x772   : > { %4104 = vmatmul.f32.gmra.mxu3 %v3769_v3  ;;  %4169 = vmatmul.f32.gmra.mxu0 %v3770_v28  ;;  %v3783_v28 = vmax.f32 %v2631_v49, 0.0  ;;  %v3784_v3 = vmax.f32 %v2696_v44, 0.0  ;;  %v12817_v49 = vld [vmem:[#allocation34_spill] sm:$0xff] }
 0x773   : > { %v2764_v44 = vadd.f32 %v12817_v49, %v10965_v8  ;;  %v12823_v49 = vld [vmem:[#allocation37_spill] sm:$0xff] }
 0x774   : > { %v11152_v0 = vpop.f32.mrf.mxu2 }
 0x775   : > { %12810 = vst [vmem:[#allocation29_spill] sm:$0xff] %v11152_v0  ;;  %v11154_v13 = vpop.f32.mrf.mxu3  ;;  %v3801_v37 = vmax.f32 %v2764_v44, 0.0 }
 0x776   : > { %12811 = vst [vmem:[#allocation28_spill] sm:$0xff] %v11154_v13  ;;  %v11156_v39 = vpop.f32.mrf.mxu1  ;;  %v12816_v13 = vld [vmem:[#allocation32_spill] sm:$0xff] }
 0x777   : > { %12812 = vst [vmem:[#allocation30_spill] sm:$0xff] %v11156_v39  ;;  %v11158_v29 = vpop.f32.mrf.mxu0  ;;  %v2829_v0 = vadd.f32 %v12816_v13, %v10962_v30  ;;  %v12822_v13 = vld [vmem:[#allocation35_spill] sm:$0xff] }
 0x778   : > { %12813 = vst [vmem:[#allocation191_spill] sm:$0xff] %v11158_v29  ;;  %v2637_v22 = vadd.f32 %v12822_v13, %v10954_v60  ;;  %v2702_v29 = vadd.f32 %v12823_v49, %v10957_v48 }
 0x779   : > { %3977 = vmatmul.f32.gmra.mxu1 %v3783_v28  ;;  %4042 = vmatmul.f32.gmra.mxu2 %v3784_v3  ;;  %v3799_v28 = vmax.f32 %v2634_v24, 0.0  ;;  %v12825_v24 = vld [vmem:[#allocation38_spill] sm:$0xff] }
 0x77a   : > { %4107 = vmatmul.f32.gmra.mxu3 %v3785_v54  ;;  %4172 = vmatmul.f32.gmra.mxu0 %v3786_v32  ;;  %v3800_v32 = vmax.f32 %v2699_v50, 0.0  ;;  %v3802_v54 = vmax.f32 %v2829_v0, 0.0  ;;  %v2767_v50 = vadd.f32 %v12825_v24, %v10965_v8  ;;  %v12831_v24 = vld [vmem:[#allocation41_spill] sm:$0xff] }
 0x77c   : > { %v11168_v39 = vpop.f32.mrf.mxu2  ;;  %v3817_v13 = vmax.f32 %v2767_v50, 0.0 }
 0x77d   : > { %12818 = vst [vmem:[#allocation31_spill] sm:$0xff] %v11168_v39  ;;  %v11170_v25 = vpop.f32.mrf.mxu3 }
 0x77e   : > { %12819 = vst [vmem:[#allocation33_spill] sm:$0xff] %v11170_v25  ;;  %v11172_v11 = vpop.f32.mrf.mxu1  ;;  %v12824_v25 = vld [vmem:[#allocation36_spill] sm:$0xff] }
 0x77f   : > { %12820 = vst [vmem:[#allocation32_spill] sm:$0xff] %v11172_v11  ;;  %v11174_v3 = vpop.f32.mrf.mxu0  ;;  %v2832_v39 = vadd.f32 %v12824_v25, %v10962_v30  ;;  %v12830_v25 = vld [vmem:[#allocation39_spill] sm:$0xff] }
 0x780   : > { %12821 = vst [vmem:[#allocation34_spill] sm:$0xff] %v11174_v3  ;;  %v2640_v49 = vadd.f32 %v12830_v25, %v10954_v60  ;;  %v2705_v3 = vadd.f32 %v12831_v24, %v10957_v48  ;;  %v12838_v24 = vld [vmem:[#allocation43_spill] sm:$0xff] }
 0x781   : > { %3980 = vmatmul.f32.gmra.mxu1 %v3799_v28  ;;  %4045 = vmatmul.f32.gmra.mxu2 %v3800_v32  ;;  %v3815_v28 = vmax.f32 %v2637_v22, 0.0  ;;  %v3816_v32 = vmax.f32 %v2702_v29, 0.0  ;;  %v12833_v29 = vld [vmem:[#allocation42_spill] sm:$0xff] }
 0x782   : > { %4110 = vmatmul.f32.gmra.mxu3 %v3801_v37  ;;  %4175 = vmatmul.f32.gmra.mxu0 %v3802_v54  ;;  %v3818_v37 = vmax.f32 %v2832_v39, 0.0  ;;  %v2770_v22 = vadd.f32 %v12833_v29, %v10965_v8  ;;  %v2643_v29 = vadd.f32 %v12838_v24, %v10954_v60  ;;  %v3921_v24 = vld [vmem:[%s8599_s24 + $0x150] sm:$0x1] }
 0x783   : > { %4594 = vmatpush.xpose.msrb.mxu3 %v3921_v24 }
 0x784   : > { %v11184_v11 = vpop.f32.mrf.mxu2  ;;  %v3833_v25 = vmax.f32 %v2770_v22, 0.0 }
 0x785   : > { %12826 = vst [vmem:[#allocation35_spill] sm:$0xff] %v11184_v11  ;;  %v11186_v0 = vpop.f32.mrf.mxu3  ;;  %v3919_v11 = vld [vmem:[%s8599_s24 + $0x140] sm:$0x1] }
 0x786   : > { %12827 = vst [vmem:[#allocation37_spill] sm:$0xff] %v11186_v0  ;;  %v11188_v44 = vpop.f32.mrf.mxu1  ;;  %v12832_v0 = vld [vmem:[#allocation40_spill] sm:$0xff]  ;;  %4464 = vmatpush.xpose.msrb.mxu1 %v3919_v11 }
 0x787   : > { %12828 = vst [vmem:[#allocation36_spill] sm:$0xff] %v11188_v44  ;;  %v11190_v54 = vpop.f32.mrf.mxu0  ;;  %v2835_v44 = vadd.f32 %v12832_v0, %v10962_v30  ;;  %v3920_v0 = vld [vmem:[%s8599_s24 + $0x148] sm:$0x1]  ;;  %4595 = vmatpush.xpose.msrb.mxu3 %v3905_v23 }
 0x788   : > { %12829 = vst [vmem:[#allocation38_spill] sm:$0xff] %v11190_v54  ;;  %4529 = vmatpush.xpose.msrb.mxu2 %v3920_v0 }
 0x789   : > { %3983 = vmatmul.f32.gmra.mxu1 %v3815_v28  ;;  %4048 = vmatmul.f32.gmra.mxu2 %v3816_v32  ;;  %v3831_v28 = vmax.f32 %v2640_v49, 0.0  ;;  %v3832_v32 = vmax.f32 %v2705_v3, 0.0  ;;  %v12840_v3 = vld [vmem:[#allocation44_spill] sm:$0xff] }
 0x78a   : > { %4113 = vmatmul.f32.gmra.mxu3 %v3817_v13  ;;  %4178 = vmatmul.f32.gmra.mxu0 %v3818_v37  ;;  %v3834_v13 = vmax.f32 %v2835_v44, 0.0  ;;  %v2838_v49 = vadd.f32 %v12840_v3, %v10962_v30  ;;  %v12841_v44 = vld [vmem:[#allocation46_spill] sm:$0xff]  ;;  %v12846_v3 = vld [vmem:[#allocation47_spill] sm:$0xff] }
 0x78b   : > { %v2773_v22 = vadd.f32 %v12841_v44, %v10965_v8  ;;  %v2646_v44 = vadd.f32 %v12846_v3, %v10954_v60  ;;  %v11245_v60 = vperm.slane %v10945_v31, 5  ;;  %v12854_v3 = vld [vmem:[#allocation51_spill] sm:$0xff] }
 0x78c   : > { %v11200_v54 = vpop.f32.mrf.mxu2 }
 0x78d   : > { %12834 = vst [vmem:[#allocation39_spill] sm:$0xff] %v11200_v54  ;;  %v11202_v39 = vpop.f32.mrf.mxu3  ;;  %v3849_v0 = vmax.f32 %v2773_v22, 0.0 }
 0x78e   : > { %12835 = vst [vmem:[#allocation41_spill] sm:$0xff] %v11202_v39  ;;  %v11204_v50 = vpop.f32.mrf.mxu1  ;;  %v12839_v39 = vld [vmem:[#allocation45_spill] sm:$0xff] }
 0x78f   : > { %12836 = vst [vmem:[#allocation40_spill] sm:$0xff] %v11204_v50  ;;  %v11206_v37 = vpop.f32.mrf.mxu0  ;;  %v2708_v54 = vadd.f32 %v12839_v39, %v10957_v48  ;;  %v3850_v39 = vmax.f32 %v2838_v49, 0.0 }
 0x790   : > { %12837 = vst [vmem:[#allocation42_spill] sm:$0xff] %v11206_v37 }
 0x791   : > { %3986 = vmatmul.f32.gmra.mxu1 %v3831_v28  ;;  %4051 = vmatmul.f32.gmra.mxu2 %v3832_v32  ;;  %v3848_v37 = vmax.f32 %v2708_v54, 0.0  ;;  %v12848_v54 = vld [vmem:[#allocation48_spill] sm:$0xff] }
 0x792   : > { %4116 = vmatmul.f32.gmra.mxu3 %v3833_v25  ;;  %4181 = vmatmul.f32.gmra.mxu0 %v3834_v13  ;;  %v3847_v13 = vmax.f32 %v2643_v29, 0.0 }
 0x794   : > { %v11217_v28 = vpop.f32.mrf.mxu2 }
 0x795   : > { %12842 = vst [vmem:[#allocation43_spill] sm:$0xff] %v11217_v28  ;;  %v11219_v32 = vpop.f32.mrf.mxu3  ;;  %v12864_v28 = vld [vmem:[#allocation58_spill] sm:$0xff] }
 0x796   : > { %12843 = vst [vmem:[#allocation45_spill] sm:$0xff] %v11219_v32  ;;  %v11221_v25 = vpop.f32.mrf.mxu1  ;;  %v12849_v32 = vld [vmem:[#allocation50_spill] sm:$0xff] }
 0x797   : > { %12844 = vst [vmem:[#allocation44_spill] sm:$0xff] %v11221_v25  ;;  %v11223_v50 = vpop.f32.mrf.mxu0  ;;  %v12847_v25 = vld [vmem:[#allocation49_spill] sm:$0xff]  ;;  %v2776_v49 = vadd.f32 %v12849_v32, %v10965_v8  ;;  %v11251_v8 = vperm.slane %v10945_v31, 7  ;;  %v11254_v32 = vperm.slane %v10945_v31, 6 }
 0x798   : > { %12845 = vst [vmem:[#allocation46_spill] sm:$0xff] %v11223_v50  ;;  %v2711_v29 = vadd.f32 %v12847_v25, %v10957_v48  ;;  %v2841_v50 = vadd.f32 %v12848_v54, %v10962_v30  ;;  %v3922_v30 = vld [vmem:[%s8599_s24 + $0x158] sm:$0x1] }
 0x799   : > { %3989 = vmatmul.f32.gmra.mxu1 %v3847_v13  ;;  %4054 = vmatmul.f32.gmra.mxu2 %v3848_v37  ;;  %v3863_v37 = vmax.f32 %v2646_v44, 0.0  ;;  %v2994_v1 = vadd.f32 %v12864_v28, %v11254_v32  ;;  %v12866_v28 = vld [vmem:[#allocation61_spill] sm:$0xff] }
 0x79a   : > { %4119 = vmatmul.f32.gmra.mxu3 %v3849_v0  ;;  %4184 = vmatmul.f32.gmra.mxu0 %v3850_v39  ;;  %v3864_v24 = vmax.f32 %v2711_v29, 0.0  ;;  %v11242_v39 = vperm.slane %v10945_v31, 4  ;;  %v3866_v25 = vmax.f32 %v2841_v50, 0.0  ;;  %v3865_v0 = vmax.f32 %v2776_v49, 0.0  ;;  %v12855_v29 = vld [vmem:[#allocation53_spill] sm:$0xff]  ;;  %v12856_v50 = vld [vmem:[#allocation52_spill] sm:$0xff] }
 0x79b   : > { %4659 = vmatpush.xpose.msrb.mxu0 %v3922_v30  ;;  %v2926_v54 = vadd.f32 %v12855_v29, %v11245_v60  ;;  %v3056_v49 = vadd.f32 %v12856_v50, %v11251_v8  ;;  %v3645_v63 = vmax.f32 %v2994_v1, 0.0 }
 0x79c   : > { %v11235_v22 = vpop.f32.mrf.mxu2  ;;  %v2861_v44 = vadd.f32 %v12854_v3, %v11242_v39 }
 0x79d   : > { %12850 = vst [vmem:[#allocation47_spill] sm:$0xff] %v11235_v22  ;;  %v11237_v11 = vpop.f32.mrf.mxu3  ;;  %v3628_v30 = vmax.f32 %v2926_v54, 0.0  ;;  %v3630_v3 = vmax.f32 %v3056_v49, 0.0 }
 0x79e   : > { %12851 = vst [vmem:[#allocation49_spill] sm:$0xff] %v11237_v11  ;;  %v11239_v13 = vpop.f32.mrf.mxu1 }
 0x79f   : > { %12852 = vst [vmem:[#allocation48_spill] sm:$0xff] %v11239_v13  ;;  %v11247_v48 = vpop.f32.mrf.mxu0 }
 0x7a0   : > { %12853 = vst [vmem:[#allocation50_spill] sm:$0xff] %v11247_v48  ;;  %v12857_v48 = vld [vmem:[#allocation54_spill] sm:$0xff] }
 0x7a1   : > { %3992 = vmatmul.f32.gmra.mxu1 %v3863_v37  ;;  %4057 = vmatmul.f32.gmra.mxu2 %v3864_v24  ;;  %v2991_v13 = vadd.f32 %v12857_v48, %v11254_v32  ;;  %v3627_v24 = vmax.f32 %v2861_v44, 0.0  ;;  %v12861_v48 = vld [vmem:[#allocation55_spill] sm:$0xff] }
 0x7a2   : > { %4122 = vmatmul.f32.gmra.mxu3 %v3865_v0  ;;  %4187 = vmatmul.f32.gmra.mxu0 %v3866_v25  ;;  %v11273_v25 = vld [vmem:[%s12860_s4] ss:$0 sm:$0xff]  ;;  %v2864_v50 = vadd.f32 %v12861_v48, %v11242_v39 }
 0x7a3   : > { %v3629_v29 = vmax.f32 %v2991_v13, 0.0 }
 0x7a4   : > { %v11264_v11 = vpop.f32.mrf.mxu2 }
 0x7a5   : > { %12858 = vst [vmem:[#allocation51_spill] sm:$0xff] %v11264_v11  ;;  %v11266_v31 = vpop.f32.mrf.mxu3  ;;  %v12863_v11 = vld [vmem:[#allocation56_spill] sm:$0xff] }
 0x7a6   : > { %12859 = vst [vmem:[#allocation53_spill] sm:$0xff] %v11266_v31  ;;  %v3948_v37 = vpop.f32.mrf.mxu1  ;;  %v12862_v31 = vld [vmem:[#allocation57_spill] sm:$0xff]  ;;  %v3059_v22 = vadd.f32 %v12863_v11, %v11251_v8  ;;  %v12865_v11 = vld [vmem:[#allocation59_spill] sm:$0xff] }
 0x7a7   : > { %v4143_v0 = vpop.f32.mrf.mxu0  ;;  %v2929_v44 = vadd.f32 %v12862_v31, %v11245_v60  ;;  %v3949_v54 = vadd.f32 %v11273_v25, %v3948_v37  ;;  %v2867_v37 = vadd.f32 %v12865_v11, %v11242_v39 }
 0x7a8   : > { %v3646_v48 = vmax.f32 %v3059_v22, 0.0  ;;  %v12868_v22 = vld [vmem:[#allocation62_spill] sm:$0xff] }
 0x7a9   : > { %4207 = vmatmul.f32.vlgmr.msra.gmra.mxu1 %v3627_v24  ;;  %4272 = vmatmul.f32.vlgmr.msra.gmra.mxu2 %v3628_v30  ;;  %v2997_v1 = vadd.f32 %v12868_v22, %v11254_v32 }
 0x7aa   : > { %4337 = vmatmul.f32.vlgmr.msra.gmra.mxu3 %v3629_v29  ;;  %4402 = vmatmul.f32.vlgmr.msra.gmra.mxu0 %v3630_v3  ;;  %v3643_v29 = vmax.f32 %v2864_v50, 0.0  ;;  %v3644_v3 = vmax.f32 %v2929_v44, 0.0  ;;  %v12867_v50 = vld [vmem:[#allocation60_spill] sm:$0xff] }
 0x7ab   : > { %v3062_v44 = vadd.f32 %v12867_v50, %v11251_v8  ;;  %v3661_v62 = vmax.f32 %v2997_v1, 0.0  ;;  %v12872_v1 = vld [vmem:[#allocation66_spill] sm:$0xff] }
 0x7ac   : > { %v4013_v49 = vpop.f32.mrf.mxu2 }
 0x7ad   : > { %v4014_v13 = vadd.f32 %v4013_v49, %v3949_v54  ;;  %v4078_v24 = vpop.f32.mrf.mxu3  ;;  %v2932_v54 = vadd.f32 %v12866_v28, %v11245_v60  ;;  %v3662_v11 = vmax.f32 %v3062_v44, 0.0 }
 0x7ae   : > { %v3951_v30 = vpop.f32.mrf.mxu1 }
 0x7af   : > { %v4079_v19 = vadd.f32 %v4078_v24, %v4014_v13  ;;  %v4146_v45 = vpop.f32.mrf.mxu0  ;;  %v3952_v49 = vadd.f32 %v11273_v25, %v3951_v30  ;;  %v12869_v30 = vld [vmem:[#allocation63_spill] sm:$0xff] }
 0x7b0   : > { %v2870_v50 = vadd.f32 %v12869_v30, %v11242_v39  ;;  %v3904_v30 = vld [vmem:[%s8599_s24 + $0xc8] sm:$0xff] }
 0x7b1   : > { %4210 = vmatmul.f32.gmra.mxu1 %v3643_v29  ;;  %4275 = vmatmul.f32.gmra.mxu2 %v3644_v3  ;;  %v11284_v31 = vadd.f32 %v4143_v0, %v4079_v19  ;;  %v3660_v29 = vmax.f32 %v2932_v54, 0.0  ;;  %v12871_v54 = vld [vmem:[#allocation64_spill] sm:$0xff] }
 0x7b2   : > { %4340 = vmatmul.f32.gmra.mxu3 %v3645_v63  ;;  %4405 = vmatmul.f32.gmra.mxu0 %v3646_v48  ;;  %v3659_v63 = vmax.f32 %v2867_v37, 0.0  ;;  %v3065_v44 = vadd.f32 %v12871_v54, %v11251_v8  ;;  %v12873_v54 = vld [vmem:[#allocation67_spill] sm:$0xff] }
 0x7b3   : > { %4530 = vmatpush.xpose.msrb.mxu2 %v3904_v30 }
 0x7b4   : > { %v4016_v13 = vpop.f32.mrf.mxu2 }
 0x7b5   : > { %v4017_v24 = vadd.f32 %v4016_v13, %v3952_v49  ;;  %v4081_v19 = vpop.f32.mrf.mxu3  ;;  %v12870_v49 = vld [vmem:[#allocation65_spill] sm:$0xff]  ;;  %v3000_v13 = vadd.f32 %v12872_v1, %v11254_v32 }
 0x7b6   : > { %v3954_v0 = vpop.f32.mrf.mxu1  ;;  %v2935_v22 = vadd.f32 %v12870_v49, %v11245_v60  ;;  %v3678_v49 = vmax.f32 %v3065_v44, 0.0  ;;  %v12875_v44 = vld [vmem:[#allocation68_spill] sm:$0xff] }
 0x7b7   : > { %v4082_v3 = vadd.f32 %v4081_v19, %v4017_v24  ;;  %v4149_v48 = vpop.f32.mrf.mxu0  ;;  %v3955_v37 = vadd.f32 %v11273_v25, %v3954_v0  ;;  %v3677_v41 = vmax.f32 %v3000_v13, 0.0  ;;  %v3068_v23 = vadd.f32 %v12875_v44, %v11251_v8  ;;  %v12876_v13 = vld [vmem:[#allocation70_spill] sm:$0xff] }
 0x7b9   : > { %4213 = vmatmul.f32.gmra.mxu1 %v3659_v63  ;;  %4278 = vmatmul.f32.gmra.mxu2 %v3660_v29  ;;  %v11295_v28 = vadd.f32 %v4146_v45, %v4082_v3  ;;  %v3675_v63 = vmax.f32 %v2870_v50, 0.0  ;;  %v3676_v29 = vmax.f32 %v2935_v22, 0.0  ;;  %v2873_v50 = vadd.f32 %v12873_v54, %v11242_v39  ;;  %v12874_v22 = vld [vmem:[#allocation69_spill] sm:$0xff] }
 0x7ba   : > { %4343 = vmatmul.f32.gmra.mxu3 %v3661_v62  ;;  %4408 = vmatmul.f32.gmra.mxu0 %v3662_v11  ;;  %v2938_v1 = vadd.f32 %v12874_v22, %v11245_v60  ;;  %v3906_v54 = vld [vmem:[%s8599_s24 + $0xd8] sm:$0xff]  ;;  %v3694_v59 = vmax.f32 %v3068_v23, 0.0  ;;  %v12880_v23 = vld [vmem:[#allocation74_spill] sm:$0xff] }
 0x7bb   : > { %4660 = vmatpush.xpose.msrb.mxu0 %v3906_v54 }
 0x7bc   : > { %v4019_v45 = vpop.f32.mrf.mxu2 }
 0x7bd   : > { %v4020_v24 = vadd.f32 %v4019_v45, %v3955_v37  ;;  %v4084_v19 = vpop.f32.mrf.mxu3  ;;  %v3903_v37 = vld [vmem:[%s8599_s24 + $0xc0] sm:$0xff] }
 0x7be   : > { %v3957_v62 = vpop.f32.mrf.mxu1  ;;  %4465 = vmatpush.xpose.msrb.mxu1 %v3903_v37  ;;  %v12877_v37 = vld [vmem:[#allocation71_spill] sm:$0xff] }
 0x7bf   : > { %v4085_v3 = vadd.f32 %v4084_v19, %v4020_v24  ;;  %v4152_v11 = vpop.f32.mrf.mxu0  ;;  %v3958_v45 = vadd.f32 %v11273_v25, %v3957_v62  ;;  %v2876_v44 = vadd.f32 %v12877_v37, %v11242_v39 }
 0x7c1   : > { %4216 = vmatmul.f32.gmra.mxu1 %v3675_v63  ;;  %4281 = vmatmul.f32.gmra.mxu2 %v3676_v29  ;;  %v11308_v0 = vadd.f32 %v4149_v48, %v4085_v3  ;;  %v3003_v48 = vadd.f32 %v12876_v13, %v11254_v32  ;;  %v3691_v29 = vmax.f32 %v2873_v50, 0.0  ;;  %v3692_v3 = vmax.f32 %v2938_v1, 0.0  ;;  %v12879_v1 = vld [vmem:[#allocation72_spill] sm:$0xff] }
 0x7c2   : > { %4346 = vmatmul.f32.gmra.mxu3 %v3677_v41  ;;  %4411 = vmatmul.f32.gmra.mxu0 %v3678_v49 }
 0x7c3   : > { %v3693_v22 = vmax.f32 %v3003_v48, 0.0  ;;  %v3006_v48 = vadd.f32 %v12880_v23, %v11254_v32  ;;  %v12882_v23 = vld [vmem:[#allocation77_spill] sm:$0xff]  ;;  %4466 = vmatpush.xpose.msrb.mxu1 %v3887_v56  ;;  %v12900_v56 = vld [vmem:[#allocation94_spill] sm:$0xff] }
 0x7c4   : > { %v4022_v24 = vpop.f32.mrf.mxu2 }
 0x7c5   : > { %v4023_v41 = vadd.f32 %v4022_v24, %v3958_v45  ;;  %v4087_v19 = vpop.f32.mrf.mxu3  ;;  %v12878_v45 = vld [vmem:[#allocation73_spill] sm:$0xff]  ;;  %v3071_v24 = vadd.f32 %v12879_v1, %v11251_v8  ;;  %v3709_v37 = vmax.f32 %v3006_v48, 0.0 }
 0x7c6   : > { %v3960_v63 = vpop.f32.mrf.mxu1  ;;  %v2941_v13 = vadd.f32 %v12878_v45, %v11245_v60 }
 0x7c7   : > { %v4088_v30 = vadd.f32 %v4087_v19, %v4023_v41  ;;  %v4155_v49 = vpop.f32.mrf.mxu0  ;;  %v3961_v50 = vadd.f32 %v11273_v25, %v3960_v63  ;;  %v12881_v63 = vld [vmem:[#allocation75_spill] sm:$0xff] }
 0x7c8   : > { %v2879_v1 = vadd.f32 %v12881_v63, %v11242_v39 }
 0x7c9   : > { %4219 = vmatmul.f32.gmra.mxu1 %v3691_v29  ;;  %4284 = vmatmul.f32.gmra.mxu2 %v3692_v3  ;;  %v11321_v62 = vadd.f32 %v4152_v11, %v4088_v30  ;;  %v3707_v3 = vmax.f32 %v2876_v44, 0.0  ;;  %v12883_v44 = vld [vmem:[#allocation76_spill] sm:$0xff] }
 0x7ca   : > { %4349 = vmatmul.f32.gmra.mxu3 %v3693_v22  ;;  %4414 = vmatmul.f32.gmra.mxu0 %v3694_v59  ;;  %v3708_v59 = vmax.f32 %v2941_v13, 0.0  ;;  %v3710_v22 = vmax.f32 %v3071_v24, 0.0  ;;  %v3074_v13 = vadd.f32 %v12883_v44, %v11251_v8  ;;  %v12884_v24 = vld [vmem:[#allocation78_spill] sm:$0xff] }
 0x7cb   : > { %v3009_v48 = vadd.f32 %v12884_v24, %v11254_v32  ;;  %v12886_v24 = vld [vmem:[#allocation81_spill] sm:$0xff] }
 0x7cc   : > { %v4025_v41 = vpop.f32.mrf.mxu2  ;;  %v3726_v63 = vmax.f32 %v3074_v13, 0.0  ;;  %v12888_v13 = vld [vmem:[#allocation82_spill] sm:$0xff] }
 0x7cd   : > { %v4026_v19 = vadd.f32 %v4025_v41, %v3961_v50  ;;  %v4090_v11 = vpop.f32.mrf.mxu3  ;;  %v2944_v50 = vadd.f32 %v12882_v23, %v11245_v60  ;;  %v3725_v14 = vmax.f32 %v3009_v48, 0.0  ;;  %v3012_v48 = vadd.f32 %v12888_v13, %v11254_v32 }
 0x7ce   : > { %v3963_v29 = vpop.f32.mrf.mxu1 }
 0x7cf   : > { %v4091_v30 = vadd.f32 %v4090_v11, %v4026_v19  ;;  %v4158_v54 = vpop.f32.mrf.mxu0  ;;  %v3964_v41 = vadd.f32 %v11273_v25, %v3963_v29  ;;  %v12885_v29 = vld [vmem:[#allocation79_spill] sm:$0xff]  ;;  %v3741_v2 = vmax.f32 %v3012_v48, 0.0 }
 0x7d0   : > { %v2882_v44 = vadd.f32 %v12885_v29, %v11242_v39 }
 0x7d1   : > { %4222 = vmatmul.f32.gmra.mxu1 %v3707_v3  ;;  %4287 = vmatmul.f32.gmra.mxu2 %v3708_v59  ;;  %v11332_v45 = vadd.f32 %v4155_v49, %v4091_v30  ;;  %v3723_v59 = vmax.f32 %v2879_v1, 0.0  ;;  %v3724_v30 = vmax.f32 %v2944_v50, 0.0  ;;  %v12887_v1 = vld [vmem:[#allocation80_spill] sm:$0xff] }
 0x7d2   : > { %4352 = vmatmul.f32.gmra.mxu3 %v3709_v37  ;;  %4417 = vmatmul.f32.gmra.mxu0 %v3710_v22  ;;  %v3077_v50 = vadd.f32 %v12887_v1, %v11251_v8 }
 0x7d4   : > { %v4028_v19 = vpop.f32.mrf.mxu2  ;;  %v3742_v29 = vmax.f32 %v3077_v50, 0.0  ;;  %v12892_v50 = vld [vmem:[#allocation86_spill] sm:$0xff] }
 0x7d5   : > { %v4029_v11 = vadd.f32 %v4028_v19, %v3964_v41  ;;  %v4093_v49 = vpop.f32.mrf.mxu3  ;;  %v2947_v41 = vadd.f32 %v12886_v24, %v11245_v60  ;;  %v3015_v48 = vadd.f32 %v12892_v50, %v11254_v32 }
 0x7d6   : > { %v3966_v3 = vpop.f32.mrf.mxu1 }
 0x7d7   : > { %v4094_v22 = vadd.f32 %v4093_v49, %v4029_v11  ;;  %v4161_v37 = vpop.f32.mrf.mxu0  ;;  %v3967_v19 = vadd.f32 %v11273_v25, %v3966_v3  ;;  %v12889_v3 = vld [vmem:[#allocation83_spill] sm:$0xff] }
 0x7d8   : > { %v2885_v1 = vadd.f32 %v12889_v3, %v11242_v39  ;;  %v3888_v3 = vld [vmem:[%s8599_s24 + $0x48] sm:$0xff] }
 0x7d9   : > { %4225 = vmatmul.f32.gmra.mxu1 %v3723_v59  ;;  %4290 = vmatmul.f32.gmra.mxu2 %v3724_v30  ;;  %v11343_v23 = vadd.f32 %v4158_v54, %v4094_v22  ;;  %v3740_v30 = vmax.f32 %v2947_v41, 0.0  ;;  %v12891_v41 = vld [vmem:[#allocation84_spill] sm:$0xff] }
 0x7da   : > { %4355 = vmatmul.f32.gmra.mxu3 %v3725_v14  ;;  %4420 = vmatmul.f32.gmra.mxu0 %v3726_v63  ;;  %v3739_v14 = vmax.f32 %v2882_v44, 0.0 }
 0x7db   : > { %4531 = vmatpush.xpose.msrb.mxu2 %v3888_v3 }
 0x7dc   : > { %v4031_v11 = vpop.f32.mrf.mxu2 }
 0x7dd   : > { %v4032_v49 = vadd.f32 %v4031_v11, %v3967_v19  ;;  %v4096_v54 = vpop.f32.mrf.mxu3  ;;  %v12890_v19 = vld [vmem:[#allocation85_spill] sm:$0xff]  ;;  %v3080_v11 = vadd.f32 %v12891_v41, %v11251_v8  ;;  %v3889_v41 = vld [vmem:[%s8599_s24 + $0x50] sm:$0xff] }
 0x7de   : > { %v3969_v59 = vpop.f32.mrf.mxu1  ;;  %v2950_v13 = vadd.f32 %v12890_v19, %v11245_v60  ;;  %v3757_v19 = vmax.f32 %v3015_v48, 0.0  ;;  %4596 = vmatpush.xpose.msrb.mxu3 %v3889_v41  ;;  %v3890_v41 = vld [vmem:[%s8599_s24 + $0x58] sm:$0xff] }
 0x7df   : > { %v4097_v22 = vadd.f32 %v4096_v54, %v4032_v49  ;;  %v4164_v63 = vpop.f32.mrf.mxu0  ;;  %v3970_v44 = vadd.f32 %v11273_v25, %v3969_v59  ;;  %v3758_v15 = vmax.f32 %v3080_v11, 0.0  ;;  %v12895_v11 = vld [vmem:[#allocation88_spill] sm:$0xff]  ;;  %4661 = vmatpush.xpose.msrb.mxu0 %v3890_v41  ;;  %v12901_v41 = vld [vmem:[#allocation95_spill] sm:$0xff] }
 0x7e0   : > { %v3083_v48 = vadd.f32 %v12895_v11, %v11251_v8 }
 0x7e1   : > { %4228 = vmatmul.f32.gmra.mxu1 %v3739_v14  ;;  %4293 = vmatmul.f32.gmra.mxu2 %v3740_v30  ;;  %v11354_v24 = vadd.f32 %v4161_v37, %v4097_v22  ;;  %v3755_v14 = vmax.f32 %v2885_v1, 0.0  ;;  %v3756_v30 = vmax.f32 %v2950_v13, 0.0  ;;  %v12894_v1 = vld [vmem:[#allocation89_spill] sm:$0xff] }
 0x7e2   : > { %4358 = vmatmul.f32.gmra.mxu3 %v3741_v2  ;;  %4423 = vmatmul.f32.gmra.mxu0 %v3742_v29  ;;  %v2953_v13 = vadd.f32 %v12894_v1, %v11245_v60  ;;  %v3774_v1 = vmax.f32 %v3083_v48, 0.0  ;;  %v12899_v48 = vld [vmem:[#allocation92_spill] sm:$0xff] }
 0x7e4   : > { %v4034_v49 = vpop.f32.mrf.mxu2  ;;  %v3772_v3 = vmax.f32 %v2953_v13, 0.0 }
 0x7e5   : > { %v4035_v37 = vadd.f32 %v4034_v49, %v3970_v44  ;;  %v4099_v54 = vpop.f32.mrf.mxu3  ;;  %v12893_v44 = vld [vmem:[#allocation87_spill] sm:$0xff] }
 0x7e6   : > { %v3972_v2 = vpop.f32.mrf.mxu1  ;;  %v2888_v50 = vadd.f32 %v12893_v44, %v11242_v39 }
 0x7e7   : > { %v4100_v22 = vadd.f32 %v4099_v54, %v4035_v37  ;;  %v4167_v29 = vpop.f32.mrf.mxu0  ;;  %v3973_v49 = vadd.f32 %v11273_v25, %v3972_v2  ;;  %v12896_v37 = vld [vmem:[#allocation90_spill] sm:$0xff] }
 0x7e9   : > { %4231 = vmatmul.f32.gmra.mxu1 %v3755_v14  ;;  %4296 = vmatmul.f32.gmra.mxu2 %v3756_v30  ;;  %v11366_v59 = vadd.f32 %v4164_v63, %v4100_v22  ;;  %v3018_v63 = vadd.f32 %v12896_v37, %v11254_v32  ;;  %v3771_v22 = vmax.f32 %v2888_v50, 0.0  ;;  %v12898_v37 = vld [vmem:[#allocation93_spill] sm:$0xff] }
 0x7ea   : > { %4361 = vmatmul.f32.gmra.mxu3 %v3757_v19  ;;  %4426 = vmatmul.f32.gmra.mxu0 %v3758_v15  ;;  %v2956_v50 = vadd.f32 %v12898_v37, %v11245_v60  ;;  %v2894_v37 = vadd.f32 %v12901_v41, %v11242_v39 }
 0x7eb   : > { %v3773_v40 = vmax.f32 %v3018_v63, 0.0  ;;  %v3086_v63 = vadd.f32 %v12899_v48, %v11251_v8  ;;  %v12902_v48 = vld [vmem:[#allocation97_spill] sm:$0xff] }
 0x7ec   : > { %v4037_v54 = vpop.f32.mrf.mxu2 }
 0x7ed   : > { %v4038_v14 = vadd.f32 %v4037_v54, %v3973_v49  ;;  %v4102_v15 = vpop.f32.mrf.mxu3  ;;  %v12897_v49 = vld [vmem:[#allocation91_spill] sm:$0xff]  ;;  %v3021_v54 = vadd.f32 %v12900_v56, %v11254_v32 }
 0x7ee   : > { %v3975_v30 = vpop.f32.mrf.mxu1  ;;  %v2891_v11 = vadd.f32 %v12897_v49, %v11242_v39  ;;  %v3790_v49 = vmax.f32 %v3086_v63, 0.0  ;;  %v12904_v63 = vld [vmem:[#allocation98_spill] sm:$0xff] }
 0x7ef   : > { %v4103_v19 = vadd.f32 %v4102_v15, %v4038_v14  ;;  %v4170_v44 = vpop.f32.mrf.mxu0  ;;  %v3976_v13 = vadd.f32 %v11273_v25, %v3975_v30  ;;  %v3789_v55 = vmax.f32 %v3021_v54, 0.0  ;;  %v3024_v54 = vadd.f32 %v12904_v63, %v11254_v32  ;;  %v12906_v63 = vld [vmem:[#allocation101_spill] sm:$0xff] }
 0x7f1   : > { %4234 = vmatmul.f32.gmra.mxu1 %v3771_v22  ;;  %4299 = vmatmul.f32.gmra.mxu2 %v3772_v3  ;;  %v11379_v2 = vadd.f32 %v4167_v29, %v4103_v19  ;;  %v3787_v22 = vmax.f32 %v2891_v11, 0.0  ;;  %v3788_v3 = vmax.f32 %v2956_v50, 0.0  ;;  %v12903_v11 = vld [vmem:[#allocation96_spill] sm:$0xff]  ;;  %v3805_v41 = vmax.f32 %v3024_v54, 0.0 }
 0x7f2   : > { %4364 = vmatmul.f32.gmra.mxu3 %v3773_v40  ;;  %4429 = vmatmul.f32.gmra.mxu0 %v3774_v1  ;;  %v3089_v50 = vadd.f32 %v12903_v11, %v11251_v8 }
 0x7f4   : > { %v4040_v29 = vpop.f32.mrf.mxu2 }
 0x7f5   : > { %v4041_v14 = vadd.f32 %v4040_v29, %v3976_v13  ;;  %v4105_v40 = vpop.f32.mrf.mxu3  ;;  %v2959_v13 = vadd.f32 %v12902_v48, %v11245_v60 }
 0x7f6   : > { %v3978_v15 = vpop.f32.mrf.mxu1 }
 0x7f7   : > { %v4106_v19 = vadd.f32 %v4105_v40, %v4041_v14  ;;  %v4173_v1 = vpop.f32.mrf.mxu0  ;;  %v3979_v56 = vadd.f32 %v11273_v25, %v3978_v15  ;;  %v12905_v15 = vld [vmem:[#allocation99_spill] sm:$0xff] }
 0x7f8   : > { %v2897_v11 = vadd.f32 %v12905_v15, %v11242_v39 }
 0x7f9   : > { %4237 = vmatmul.f32.gmra.mxu1 %v3787_v22  ;;  %4302 = vmatmul.f32.gmra.mxu2 %v3788_v3  ;;  %v11391_v30 = vadd.f32 %v4170_v44, %v4106_v19  ;;  %v3804_v22 = vmax.f32 %v2959_v13, 0.0 }
 0x7fa   : > { %4367 = vmatmul.f32.gmra.mxu3 %v3789_v55  ;;  %4432 = vmatmul.f32.gmra.mxu0 %v3790_v49  ;;  %v3803_v55 = vmax.f32 %v2894_v37, 0.0  ;;  %v3806_v49 = vmax.f32 %v3089_v50, 0.0  ;;  %v12907_v37 = vld [vmem:[#allocation100_spill] sm:$0xff]  ;;  %v12908_v50 = vld [vmem:[#allocation102_spill] sm:$0xff] }
 0x7fb   : > { %v3092_v13 = vadd.f32 %v12907_v37, %v11251_v8  ;;  %v3027_v54 = vadd.f32 %v12908_v50, %v11254_v32  ;;  %v12910_v50 = vld [vmem:[#allocation105_spill] sm:$0xff] }
 0x7fc   : > { %v4043_v29 = vpop.f32.mrf.mxu2 }
 0x7fd   : > { %v4044_v14 = vadd.f32 %v4043_v29, %v3979_v56  ;;  %v4108_v44 = vpop.f32.mrf.mxu3  ;;  %v2962_v56 = vadd.f32 %v12906_v63, %v11245_v60  ;;  %v3822_v15 = vmax.f32 %v3092_v13, 0.0  ;;  %v3821_v42 = vmax.f32 %v3027_v54, 0.0  ;;  %v12912_v13 = vld [vmem:[#allocation106_spill] sm:$0xff] }
 0x7fe   : > { %v3981_v40 = vpop.f32.mrf.mxu1  ;;  %v3030_v54 = vadd.f32 %v12912_v13, %v11254_v32 }
 0x7ff   : > { %v4109_v3 = vadd.f32 %v4108_v44, %v4044_v14  ;;  %v4176_v19 = vpop.f32.mrf.mxu0  ;;  %v3982_v29 = vadd.f32 %v11273_v25, %v3981_v40  ;;  %v12909_v40 = vld [vmem:[#allocation103_spill] sm:$0xff] }
 0x800   : > { %v2900_v37 = vadd.f32 %v12909_v40, %v11242_v39  ;;  %v3837_v16 = vmax.f32 %v3030_v54, 0.0 }
 0x801   : > { %4240 = vmatmul.f32.gmra.mxu1 %v3803_v55  ;;  %4305 = vmatmul.f32.gmra.mxu2 %v3804_v22  ;;  %v11402_v48 = vadd.f32 %v4173_v1, %v4109_v3  ;;  %v3819_v22 = vmax.f32 %v2897_v11, 0.0  ;;  %v3820_v3 = vmax.f32 %v2962_v56, 0.0  ;;  %v12911_v11 = vld [vmem:[#allocation104_spill] sm:$0xff] }
 0x802   : > { %4370 = vmatmul.f32.gmra.mxu3 %v3805_v41  ;;  %4435 = vmatmul.f32.gmra.mxu0 %v3806_v49  ;;  %v3095_v56 = vadd.f32 %v12911_v11, %v11251_v8  ;;  %v12913_v11 = vld [vmem:[#allocation107_spill] sm:$0xff] }
 0x804   : > { %v4046_v14 = vpop.f32.mrf.mxu2  ;;  %v3838_v40 = vmax.f32 %v3095_v56, 0.0  ;;  %v12914_v56 = vld [vmem:[#allocation108_spill] sm:$0xff] }
 0x805   : > { %v4047_v44 = vadd.f32 %v4046_v14, %v3982_v29  ;;  %v4111_v1 = vpop.f32.mrf.mxu3  ;;  %v2965_v29 = vadd.f32 %v12910_v50, %v11245_v60  ;;  %v3924_v50 = vld [vmem:[%s8599_s24 + $0x168] sm:$0x1]  ;;  %v3098_v13 = vadd.f32 %v12914_v56, %v11251_v8 }
 0x806   : > { %v3984_v55 = vpop.f32.mrf.mxu1  ;;  %4789 = vmatpush.xpose.msra.mxu2 %v3924_v50  ;;  %v11445_v56 = vld [vmem:[%s8594_s15 + $0x8] sm:$0xff] }
 0x807   : > { %v4112_v49 = vadd.f32 %v4111_v1, %v4047_v44  ;;  %v4179_v41 = vpop.f32.mrf.mxu0  ;;  %v3985_v14 = vadd.f32 %v11273_v25, %v3984_v55 }
 0x809   : > { %4243 = vmatmul.f32.gmra.mxu1 %v3819_v22  ;;  %4308 = vmatmul.f32.gmra.mxu2 %v3820_v3  ;;  %v11413_v63 = vadd.f32 %v4176_v19, %v4112_v49  ;;  %v3835_v22 = vmax.f32 %v2900_v37, 0.0  ;;  %v3836_v3 = vmax.f32 %v2965_v29, 0.0  ;;  %v2968_v37 = vadd.f32 %v10676_v10, %v11245_v60  ;;  %v3923_v10 = vld [vmem:[%s8599_s24 + $0x160] sm:$0x1] }
 0x80a   : > { %4373 = vmatmul.f32.gmra.mxu3 %v3821_v42  ;;  %4438 = vmatmul.f32.gmra.mxu0 %v3822_v15 }
 0x80b   : > { %4724 = vmatpush.xpose.msra.mxu1 %v3923_v10 }
 0x80c   : > { %v4049_v44 = vpop.f32.mrf.mxu2 }
 0x80d   : > { %v4050_v19 = vadd.f32 %v4049_v44, %v3985_v14  ;;  %v4114_v1 = vpop.f32.mrf.mxu3  ;;  %v2903_v14 = vadd.f32 %v12913_v11, %v11242_v39  ;;  %v3854_v11 = vmax.f32 %v3098_v13, 0.0 }
 0x80e   : > { %v3987_v42 = vpop.f32.mrf.mxu1 }
 0x80f   : > { %v4115_v49 = vadd.f32 %v4114_v1, %v4050_v19  ;;  %v4182_v15 = vpop.f32.mrf.mxu0  ;;  %v3988_v29 = vadd.f32 %v11273_v25, %v3987_v42  ;;  %v3851_v1 = vmax.f32 %v2903_v14, 0.0  ;;  %v12916_v14 = vld [vmem:[#allocation111_spill] sm:$0xff] }
 0x811   : > { %4246 = vmatmul.f32.gmra.mxu1 %v3835_v22  ;;  %4311 = vmatmul.f32.gmra.mxu2 %v3836_v3  ;;  %v11424_v55 = vadd.f32 %v4179_v41, %v4115_v49  ;;  %v3033_v41 = vadd.f32 %v10678_v36, %v11254_v32  ;;  %v3852_v22 = vmax.f32 %v2968_v37, 0.0  ;;  %v12915_v36 = vld [vmem:[#allocation109_spill] sm:$0xff]  ;;  %v2971_v37 = vadd.f32 %v12916_v14, %v11245_v60 }
 0x812   : > { %4376 = vmatmul.f32.gmra.mxu3 %v3837_v16  ;;  %4441 = vmatmul.f32.gmra.mxu0 %v3838_v40  ;;  %v3925_v40 = vld [vmem:[%s8599_s24 + $0x170] sm:$0x1]  ;;  %v11456_v60 = vperm.slane %v11445_v56, 1  ;;  %v11460_v14 = vperm.slane %v11445_v56, 3 }
 0x813   : > { %v3853_v42 = vmax.f32 %v3033_v41, 0.0  ;;  %4854 = vmatpush.xpose.msra.mxu3 %v3925_v40  ;;  %v12917_v41 = vld [vmem:[#allocation110_spill] sm:$0xff]  ;;  %v3868_v10 = vmax.f32 %v2971_v37, 0.0 }
 0x814   : > { %v4052_v16 = vpop.f32.mrf.mxu2 }
 0x815   : > { %v4053_v54 = vadd.f32 %v4052_v16, %v3988_v29  ;;  %v4117_v44 = vpop.f32.mrf.mxu3  ;;  %v2906_v29 = vadd.f32 %v12915_v36, %v11242_v39  ;;  %v3101_v16 = vadd.f32 %v12917_v41, %v11251_v8  ;;  %v3186_v41 = vadd.f32 %v10709_v57, %v11456_v60 }
 0x816   : > { %v3990_v19 = vpop.f32.mrf.mxu1 }
 0x817   : > { %v4118_v3 = vadd.f32 %v4117_v44, %v4053_v54  ;;  %v4185_v49 = vpop.f32.mrf.mxu0  ;;  %v3991_v13 = vadd.f32 %v11273_v25, %v3990_v19  ;;  %v12918_v54 = vld [vmem:[#allocation112_spill] sm:$0xff]  ;;  %v3867_v40 = vmax.f32 %v2906_v29, 0.0  ;;  %v3870_v36 = vmax.f32 %v3101_v16, 0.0  ;;  %v12919_v29 = vld [vmem:[#allocation113_spill] sm:$0xff] }
 0x819   : > { %4249 = vmatmul.f32.gmra.mxu1 %v3851_v1  ;;  %4314 = vmatmul.f32.gmra.mxu2 %v3852_v22  ;;  %v11438_v50 = vadd.f32 %v4182_v15, %v4118_v3  ;;  %v3036_v15 = vadd.f32 %v12918_v54, %v11254_v32  ;;  %v11453_v3 = vperm.slane %v11445_v56, 0  ;;  %v11463_v32 = vperm.slane %v11445_v56, 2  ;;  %v12920_v54 = vld [vmem:[#allocation114_spill] sm:$0xff] }
 0x81a   : > { %4379 = vmatmul.f32.gmra.mxu3 %v3853_v42  ;;  %4444 = vmatmul.f32.gmra.mxu0 %v3854_v11  ;;  %v3926_v42 = vld [vmem:[%s8599_s24 + $0x178] sm:$0x1] }
 0x81b   : > { %v3869_v8 = vmax.f32 %v3036_v15, 0.0  ;;  %4919 = vmatpush.xpose.msra.mxu0 %v3926_v42  ;;  %v3121_v37 = vadd.f32 %v12919_v29, %v11453_v3  ;;  %v3316_v15 = vadd.f32 %v12920_v54, %v11460_v14  ;;  %v3632_v42 = vmax.f32 %v3186_v41, 0.0  ;;  %v12923_v54 = vld [vmem:[#allocation118_spill] sm:$0xff] }
 0x81c   : > { %v4055_v44 = vpop.f32.mrf.mxu2 }
 0x81d   : > { %v4056_v1 = vadd.f32 %v4055_v44, %v3991_v13  ;;  %v4120_v22 = vpop.f32.mrf.mxu3  ;;  %v12921_v44 = vld [vmem:[#allocation115_spill] sm:$0xff]  ;;  %v3634_v29 = vmax.f32 %v3316_v15, 0.0 }
 0x81e   : > { %v3993_v39 = vpop.f32.mrf.mxu1  ;;  %v12925_v15 = vld [vmem:[#allocation119_spill] sm:$0xff] }
 0x81f   : > { %v4121_v11 = vadd.f32 %v4120_v22, %v4056_v1  ;;  %v4188_v19 = vpop.f32.mrf.mxu0  ;;  %v3994_v16 = vadd.f32 %v11273_v25, %v3993_v39  ;;  %v3251_v1 = vadd.f32 %v12921_v44, %v11463_v32  ;;  %v12922_v25 = vld [vmem:[#allocation116_spill] sm:$0xff] }
 0x820   : > { %v3124_v39 = vadd.f32 %v12922_v25, %v11453_v3 }
 0x821   : > { %4252 = vmatmul.f32.gmra.mxu1 %v3867_v40  ;;  %4317 = vmatmul.f32.gmra.mxu2 %v3868_v10  ;;  %v11465_v13 = vadd.f32 %v4185_v49, %v4121_v11  ;;  %v3631_v11 = vmax.f32 %v3121_v37, 0.0  ;;  %v3633_v47 = vmax.f32 %v3251_v1, 0.0  ;;  %v12924_v37 = vld [vmem:[#allocation117_spill] sm:$0xff]  ;;  %v3254_v1 = vadd.f32 %v12925_v15, %v11463_v32 }
 0x822   : > { %4382 = vmatmul.f32.gmra.mxu3 %v3869_v8  ;;  %4447 = vmatmul.f32.gmra.mxu0 %v3870_v36  ;;  %v3319_v41 = vadd.f32 %v12924_v37, %v11460_v14  ;;  %v12927_v37 = vld [vmem:[#allocation122_spill] sm:$0xff] }
 0x823   : > { %v3649_v25 = vmax.f32 %v3254_v1, 0.0 }
 0x824   : > { %v4058_v22 = vpop.f32.mrf.mxu2 }
 0x825   : > { %v4059_v40 = vadd.f32 %v4058_v22, %v3994_v16  ;;  %v4123_v49 = vpop.f32.mrf.mxu3  ;;  %v3189_v16 = vadd.f32 %v12923_v54, %v11456_v60 }
 0x826   : > { %v4208_v10 = vpop.f32.mrf.mxu1 }
 0x827   : > { %v4124_v36 = vadd.f32 %v4123_v49, %v4059_v40  ;;  %v4403_v8 = vpop.f32.mrf.mxu0  ;;  %v4209_v44 = vadd.f32 %v4208_v10, %v11284_v31  ;;  %v12926_v31 = vld [vmem:[#allocation120_spill] sm:$0xff] }
 0x828   : > { %v3127_v10 = vadd.f32 %v12926_v31, %v11453_v3 }
 0x829   : > { %4467 = vmatmul.f32.vlgmr.msrb.gmra.mxu1 %v3631_v11  ;;  %4532 = vmatmul.f32.vlgmr.msrb.gmra.mxu2 %v3632_v42  ;;  %v11476_v57 = vadd.f32 %v4188_v19, %v4124_v36  ;;  %v3648_v11 = vmax.f32 %v3189_v16, 0.0 }
 0x82a   : > { %4597 = vmatmul.f32.vlgmr.msrb.gmra.mxu3 %v3633_v47  ;;  %4662 = vmatmul.f32.vlgmr.msrb.gmra.mxu0 %v3634_v29  ;;  %v3647_v47 = vmax.f32 %v3124_v39, 0.0  ;;  %v3650_v29 = vmax.f32 %v3319_v41, 0.0  ;;  %v12928_v39 = vld [vmem:[#allocation121_spill] sm:$0xff]  ;;  %v12929_v41 = vld [vmem:[#allocation123_spill] sm:$0xff] }
 0x82b   : > { %v3322_v16 = vadd.f32 %v12928_v39, %v11460_v14  ;;  %v3257_v1 = vadd.f32 %v12929_v41, %v11463_v32 }
 0x82c   : > { %v4273_v22 = vpop.f32.mrf.mxu2 }
 0x82d   : > { %v4274_v40 = vadd.f32 %v4273_v22, %v4209_v44  ;;  %v4338_v19 = vpop.f32.mrf.mxu3  ;;  %v3192_v44 = vadd.f32 %v12927_v37, %v11456_v60  ;;  %v3665_v31 = vmax.f32 %v3257_v1, 0.0 }
 0x82e   : > { %v4211_v49 = vpop.f32.mrf.mxu1 }
 0x82f   : > { %v4339_v42 = vadd.f32 %v4338_v19, %v4274_v40  ;;  %v4406_v36 = vpop.f32.mrf.mxu0  ;;  %v4212_v15 = vadd.f32 %v4211_v49, %v11295_v28  ;;  %v12930_v28 = vld [vmem:[#allocation124_spill] sm:$0xff] }
 0x830   : > { %v3130_v49 = vadd.f32 %v12930_v28, %v11453_v3  ;;  %v12932_v28 = vld [vmem:[#allocation127_spill] sm:$0xff] }
 0x831   : > { %4470 = vmatmul.f32.gmra.mxu1 %v3647_v47  ;;  %4535 = vmatmul.f32.gmra.mxu2 %v3648_v11  ;;  %v11487_v54 = vadd.f32 %v4403_v8, %v4339_v42  ;;  %v3663_v47 = vmax.f32 %v3127_v10, 0.0  ;;  %v3664_v11 = vmax.f32 %v3192_v44, 0.0  ;;  %v12931_v44 = vld [vmem:[#allocation125_spill] sm:$0xff] }
 0x832   : > { %4600 = vmatmul.f32.gmra.mxu3 %v3649_v25  ;;  %4665 = vmatmul.f32.gmra.mxu0 %v3650_v29  ;;  %v3666_v25 = vmax.f32 %v3322_v16, 0.0  ;;  %v3325_v39 = vadd.f32 %v12931_v44, %v11460_v14  ;;  %v3260_v16 = vadd.f32 %v10762_v17, %v11463_v32  ;;  %v3907_v17 = vld [vmem:[%s8599_s24 + $0xe0] sm:$0xff] }
 0x833   : > { %4725 = vmatpush.xpose.msra.mxu1 %v3907_v17  ;;  %v12936_v17 = vld [vmem:[#allocation131_spill] sm:$0xff] }
 0x834   : > { %v4276_v22 = vpop.f32.mrf.mxu2 }
 0x835   : > { %v4277_v40 = vadd.f32 %v4276_v22, %v4212_v15  ;;  %v4341_v8 = vpop.f32.mrf.mxu3  ;;  %v3195_v15 = vadd.f32 %v10760_v7, %v11456_v60  ;;  %v3682_v7 = vmax.f32 %v3325_v39, 0.0  ;;  %v12934_v39 = vld [vmem:[#allocation128_spill] sm:$0xff] }
 0x836   : > { %v4214_v19 = vpop.f32.mrf.mxu1 }
 0x837   : > { %v4342_v42 = vadd.f32 %v4341_v8, %v4277_v40  ;;  %v4409_v29 = vpop.f32.mrf.mxu0  ;;  %v4215_v10 = vadd.f32 %v4214_v19, %v11308_v0  ;;  %v3679_v40 = vmax.f32 %v3130_v49, 0.0  ;;  %v3680_v8 = vmax.f32 %v3195_v15, 0.0 }
 0x838   : > { %v3133_v19 = vadd.f32 %v10764_v12, %v11453_v3  ;;  %v3198_v49 = vadd.f32 %v12932_v28, %v11456_v60  ;;  %v3201_v28 = vadd.f32 %v12936_v17, %v11456_v60 }
 0x839   : > { %4473 = vmatmul.f32.gmra.mxu1 %v3663_v47  ;;  %4538 = vmatmul.f32.gmra.mxu2 %v3664_v11  ;;  %v11498_v37 = vadd.f32 %v4406_v36, %v4342_v42  ;;  %v3908_v42 = vld [vmem:[%s8599_s24 + $0xe8] sm:$0xff] }
 0x83a   : > { %4603 = vmatmul.f32.gmra.mxu3 %v3665_v31  ;;  %4668 = vmatmul.f32.gmra.mxu0 %v3666_v25  ;;  %v3909_v25 = vld [vmem:[%s8599_s24 + $0xf0] sm:$0xff]  ;;  %v3681_v31 = vmax.f32 %v3260_v16, 0.0 }
 0x83b   : > { %4790 = vmatpush.xpose.msra.mxu2 %v3908_v42  ;;  %4855 = vmatpush.xpose.msra.mxu3 %v3909_v25  ;;  %v3910_v42 = vld [vmem:[%s8599_s24 + $0xf8] sm:$0xff] }
 0x83c   : > { %v4279_v36 = vpop.f32.mrf.mxu2  ;;  %4920 = vmatpush.xpose.msra.mxu0 %v3910_v42 }
 0x83d   : > { %v4280_v41 = vadd.f32 %v4279_v36, %v4215_v10  ;;  %v4344_v1 = vpop.f32.mrf.mxu3  ;;  %v12933_v10 = vld [vmem:[#allocation126_spill] sm:$0xff] }
 0x83e   : > { %v4217_v22 = vpop.f32.mrf.mxu1  ;;  %v3328_v44 = vadd.f32 %v12933_v10, %v11460_v14  ;;  %v12938_v10 = vld [vmem:[#allocation132_spill] sm:$0xff] }
 0x83f   : > { %v4345_v47 = vadd.f32 %v4344_v1, %v4280_v41  ;;  %v4412_v11 = vpop.f32.mrf.mxu0  ;;  %v4218_v15 = vadd.f32 %v4217_v22, %v11321_v62  ;;  %v12935_v22 = vld [vmem:[#allocation129_spill] sm:$0xff] }
 0x840   : > { %v3698_v25 = vmax.f32 %v3328_v44, 0.0  ;;  %v3266_v44 = vadd.f32 %v12938_v10, %v11463_v32 }
 0x841   : > { %4476 = vmatmul.f32.gmra.mxu1 %v3679_v40  ;;  %4541 = vmatmul.f32.gmra.mxu2 %v3680_v8  ;;  %v11511_v0 = vadd.f32 %v4409_v29, %v4345_v47  ;;  %v3263_v29 = vadd.f32 %v12934_v39, %v11463_v32  ;;  %v3695_v40 = vmax.f32 %v3133_v19, 0.0  ;;  %v3696_v8 = vmax.f32 %v3198_v49, 0.0  ;;  %v12937_v49 = vld [vmem:[#allocation130_spill] sm:$0xff] }
 0x842   : > { %4606 = vmatmul.f32.gmra.mxu3 %v3681_v31  ;;  %4671 = vmatmul.f32.gmra.mxu0 %v3682_v7  ;;  %v3136_v31 = vadd.f32 %v12935_v22, %v11453_v3  ;;  %v3713_v42 = vmax.f32 %v3266_v44, 0.0 }
 0x843   : > { %v3697_v7 = vmax.f32 %v3263_v29, 0.0 }
 0x844   : > { %v4282_v16 = vpop.f32.mrf.mxu2 }
 0x845   : > { %v4283_v36 = vadd.f32 %v4282_v16, %v4218_v15  ;;  %v4347_v41 = vpop.f32.mrf.mxu3  ;;  %v3331_v15 = vadd.f32 %v12937_v49, %v11460_v14 }
 0x846   : > { %v4220_v1 = vpop.f32.mrf.mxu1 }
 0x847   : > { %v4348_v47 = vadd.f32 %v4347_v41, %v4283_v36  ;;  %v4415_v12 = vpop.f32.mrf.mxu0  ;;  %v4221_v19 = vadd.f32 %v4220_v1, %v11332_v45  ;;  %v3711_v36 = vmax.f32 %v3136_v31, 0.0  ;;  %v3712_v41 = vmax.f32 %v3201_v28, 0.0  ;;  %v12939_v45 = vld [vmem:[#allocation133_spill] sm:$0xff]  ;;  %v12941_v31 = vld [vmem:[#allocation134_spill] sm:$0xff] }
 0x848   : > { %v3139_v1 = vadd.f32 %v12939_v45, %v11453_v3  ;;  %v3334_v28 = vadd.f32 %v12941_v31, %v11460_v14 }
 0x849   : > { %4479 = vmatmul.f32.gmra.mxu1 %v3695_v40  ;;  %4544 = vmatmul.f32.gmra.mxu2 %v3696_v8  ;;  %v11524_v62 = vadd.f32 %v4412_v11, %v4348_v47  ;;  %v3714_v47 = vmax.f32 %v3331_v15, 0.0 }
 0x84a   : > { %4609 = vmatmul.f32.gmra.mxu3 %v3697_v7  ;;  %4674 = vmatmul.f32.gmra.mxu0 %v3698_v25  ;;  %v12940_v7 = vld [vmem:[#allocation135_spill] sm:$0xff] }
 0x84b   : > { %v3204_v22 = vadd.f32 %v12940_v7, %v11456_v60 }
 0x84c   : > { %v4285_v39 = vpop.f32.mrf.mxu2 }
 0x84d   : > { %v4286_v29 = vadd.f32 %v4285_v39, %v4221_v19  ;;  %v4350_v11 = vpop.f32.mrf.mxu3  ;;  %v12942_v19 = vld [vmem:[#allocation136_spill] sm:$0xff]  ;;  %v3727_v39 = vmax.f32 %v3139_v1, 0.0  ;;  %v12945_v1 = vld [vmem:[#allocation138_spill] sm:$0xff] }
 0x84e   : > { %v4223_v16 = vpop.f32.mrf.mxu1  ;;  %v3269_v49 = vadd.f32 %v12942_v19, %v11463_v32 }
 0x84f   : > { %v4351_v40 = vadd.f32 %v4350_v11, %v4286_v29  ;;  %v4418_v8 = vpop.f32.mrf.mxu0  ;;  %v4224_v17 = vadd.f32 %v4223_v16, %v11343_v23  ;;  %v3728_v29 = vmax.f32 %v3204_v22, 0.0  ;;  %v12943_v23 = vld [vmem:[#allocation137_spill] sm:$0xff]  ;;  %v3337_v22 = vadd.f32 %v12945_v1, %v11460_v14 }
 0x850   : > { %v3142_v16 = vadd.f32 %v12943_v23, %v11453_v3 }
 0x851   : > { %4482 = vmatmul.f32.gmra.mxu1 %v3711_v36  ;;  %4547 = vmatmul.f32.gmra.mxu2 %v3712_v41  ;;  %v11535_v25 = vadd.f32 %v4415_v12, %v4351_v40  ;;  %v3730_v41 = vmax.f32 %v3334_v28, 0.0  ;;  %v3729_v40 = vmax.f32 %v3269_v49, 0.0 }
 0x852   : > { %4612 = vmatmul.f32.gmra.mxu3 %v3713_v42  ;;  %4677 = vmatmul.f32.gmra.mxu0 %v3714_v47  ;;  %v12944_v42 = vld [vmem:[#allocation139_spill] sm:$0xff] }
 0x853   : > { %v3207_v45 = vadd.f32 %v12944_v42, %v11456_v60  ;;  %v12949_v42 = vld [vmem:[#allocation142_spill] sm:$0xff] }
 0x854   : > { %v4288_v15 = vpop.f32.mrf.mxu2 }
 0x855   : > { %v4289_v10 = vadd.f32 %v4288_v15, %v4224_v17  ;;  %v4353_v12 = vpop.f32.mrf.mxu3  ;;  %v12946_v17 = vld [vmem:[#allocation140_spill] sm:$0xff]  ;;  %v3743_v15 = vmax.f32 %v3142_v16, 0.0 }
 0x856   : > { %v4226_v44 = vpop.f32.mrf.mxu1  ;;  %v3272_v31 = vadd.f32 %v12946_v17, %v11463_v32 }
 0x857   : > { %v4354_v11 = vadd.f32 %v4353_v12, %v4289_v10  ;;  %v4421_v36 = vpop.f32.mrf.mxu0  ;;  %v4227_v7 = vadd.f32 %v4226_v44, %v11354_v24  ;;  %v3744_v10 = vmax.f32 %v3207_v45, 0.0  ;;  %v12947_v24 = vld [vmem:[#allocation141_spill] sm:$0xff]  ;;  %v3340_v45 = vadd.f32 %v12949_v42, %v11460_v14 }
 0x858   : > { %v3145_v44 = vadd.f32 %v12947_v24, %v11453_v3 }
 0x859   : > { %4485 = vmatmul.f32.gmra.mxu1 %v3727_v39  ;;  %4550 = vmatmul.f32.gmra.mxu2 %v3728_v29  ;;  %v11546_v47 = vadd.f32 %v4418_v8, %v4354_v11  ;;  %v3746_v29 = vmax.f32 %v3337_v22, 0.0  ;;  %v3745_v11 = vmax.f32 %v3272_v31, 0.0 }
 0x85a   : > { %4615 = vmatmul.f32.gmra.mxu3 %v3729_v40  ;;  %4680 = vmatmul.f32.gmra.mxu0 %v3730_v41  ;;  %v12948_v40 = vld [vmem:[#allocation143_spill] sm:$0xff] }
 0x85b   : > { %v3210_v23 = vadd.f32 %v12948_v40, %v11456_v60 }
 0x85c   : > { %v4291_v28 = vpop.f32.mrf.mxu2 }
 0x85d   : > { %v4292_v19 = vadd.f32 %v4291_v28, %v4227_v7  ;;  %v4356_v8 = vpop.f32.mrf.mxu3  ;;  %v12950_v7 = vld [vmem:[#allocation144_spill] sm:$0xff]  ;;  %v3759_v28 = vmax.f32 %v3145_v44, 0.0  ;;  %v12952_v44 = vld [vmem:[#allocation147_spill] sm:$0xff] }
 0x85e   : > { %v4229_v49 = vpop.f32.mrf.mxu1  ;;  %v3275_v1 = vadd.f32 %v12950_v7, %v11463_v32  ;;  %v3213_v40 = vadd.f32 %v12952_v44, %v11456_v60  ;;  %v12956_v44 = vld [vmem:[#allocation151_spill] sm:$0xff] }
 0x85f   : > { %v4357_v12 = vadd.f32 %v4356_v8, %v4292_v19  ;;  %v4424_v39 = vpop.f32.mrf.mxu0  ;;  %v4230_v16 = vadd.f32 %v4229_v49, %v11366_v59  ;;  %v3760_v19 = vmax.f32 %v3210_v23, 0.0  ;;  %v3893_v49 = vld [vmem:[%s8599_s24 + $0x70] sm:$0xff] }
 0x860   : > { %4856 = vmatpush.xpose.msra.mxu3 %v3893_v49  ;;  %v12955_v49 = vld [vmem:[#allocation149_spill] sm:$0xff] }
 0x861   : > { %4488 = vmatmul.f32.gmra.mxu1 %v3743_v15  ;;  %4553 = vmatmul.f32.gmra.mxu2 %v3744_v10  ;;  %v11557_v41 = vadd.f32 %v4421_v36, %v4357_v12  ;;  %v3892_v10 = vld [vmem:[%s8599_s24 + $0x68] sm:$0xff]  ;;  %v3762_v12 = vmax.f32 %v3340_v45, 0.0  ;;  %v12954_v45 = vld [vmem:[#allocation148_spill] sm:$0xff] }
 0x862   : > { %4618 = vmatmul.f32.gmra.mxu3 %v3745_v11  ;;  %4683 = vmatmul.f32.gmra.mxu0 %v3746_v29  ;;  %v3761_v29 = vmax.f32 %v3275_v1, 0.0  ;;  %v12951_v11 = vld [vmem:[#allocation145_spill] sm:$0xff] }
 0x863   : > { %4791 = vmatpush.xpose.msra.mxu2 %v3892_v10  ;;  %v3148_v24 = vadd.f32 %v12951_v11, %v11453_v3  ;;  %v3891_v10 = vld [vmem:[%s8599_s24 + $0x60] sm:$0xff]  ;;  %v3151_v11 = vadd.f32 %v12955_v49, %v11453_v3 }
 0x864   : > { %v4294_v22 = vpop.f32.mrf.mxu2  ;;  %4726 = vmatpush.xpose.msra.mxu1 %v3891_v10 }
 0x865   : > { %v4295_v36 = vadd.f32 %v4294_v22, %v4230_v16  ;;  %v4359_v17 = vpop.f32.mrf.mxu3  ;;  %v12953_v16 = vld [vmem:[#allocation146_spill] sm:$0xff] }
 0x866   : > { %v4232_v31 = vpop.f32.mrf.mxu1  ;;  %v3343_v42 = vadd.f32 %v12953_v16, %v11460_v14 }
 0x867   : > { %v4360_v8 = vadd.f32 %v4359_v17, %v4295_v36  ;;  %v4427_v15 = vpop.f32.mrf.mxu0  ;;  %v4233_v23 = vadd.f32 %v4232_v31, %v11379_v2  ;;  %v3775_v17 = vmax.f32 %v3148_v24, 0.0  ;;  %v3894_v31 = vld [vmem:[%s8599_s24 + $0x78] sm:$0xff]  ;;  %v3216_v24 = vadd.f32 %v12956_v44, %v11456_v60 }
 0x868   : > { %4921 = vmatpush.xpose.msra.mxu0 %v3894_v31  ;;  %v12960_v31 = vld [vmem:[#allocation155_spill] sm:$0xff] }
 0x869   : > { %4491 = vmatmul.f32.gmra.mxu1 %v3759_v28  ;;  %4556 = vmatmul.f32.gmra.mxu2 %v3760_v19  ;;  %v11569_v59 = vadd.f32 %v4424_v39, %v4360_v8  ;;  %v3278_v39 = vadd.f32 %v12954_v45, %v11463_v32  ;;  %v3776_v28 = vmax.f32 %v3213_v40, 0.0  ;;  %v3219_v49 = vadd.f32 %v12960_v31, %v11456_v60 }
 0x86a   : > { %4621 = vmatmul.f32.gmra.mxu3 %v3761_v29  ;;  %4686 = vmatmul.f32.gmra.mxu0 %v3762_v12  ;;  %v3778_v12 = vmax.f32 %v3343_v42, 0.0  ;;  %v12958_v42 = vld [vmem:[#allocation152_spill] sm:$0xff] }
 0x86b   : > { %v3777_v29 = vmax.f32 %v3278_v39, 0.0  ;;  %v3281_v45 = vadd.f32 %v12958_v42, %v11463_v32 }
 0x86c   : > { %v4297_v7 = vpop.f32.mrf.mxu2 }
 0x86d   : > { %v4298_v1 = vadd.f32 %v4297_v7, %v4233_v23  ;;  %v4362_v22 = vpop.f32.mrf.mxu3  ;;  %v12957_v23 = vld [vmem:[#allocation150_spill] sm:$0xff] }
 0x86e   : > { %v4235_v36 = vpop.f32.mrf.mxu1  ;;  %v3346_v16 = vadd.f32 %v12957_v23, %v11460_v14 }
 0x86f   : > { %v4363_v19 = vadd.f32 %v4362_v22, %v4298_v1  ;;  %v4430_v8 = vpop.f32.mrf.mxu0  ;;  %v4236_v40 = vadd.f32 %v4235_v36, %v11391_v30  ;;  %v3791_v22 = vmax.f32 %v3151_v11, 0.0  ;;  %v12959_v36 = vld [vmem:[#allocation153_spill] sm:$0xff]  ;;  %v12961_v11 = vld [vmem:[#allocation154_spill] sm:$0xff] }
 0x870   : > { %v3794_v10 = vmax.f32 %v3346_v16, 0.0 }
 0x871   : > { %4494 = vmatmul.f32.gmra.mxu1 %v3775_v17  ;;  %4559 = vmatmul.f32.gmra.mxu2 %v3776_v28  ;;  %v11582_v2 = vadd.f32 %v4427_v15, %v4363_v19  ;;  %v3792_v17 = vmax.f32 %v3216_v24, 0.0  ;;  %v3349_v24 = vadd.f32 %v12961_v11, %v11460_v14 }
 0x872   : > { %4624 = vmatmul.f32.gmra.mxu3 %v3777_v29  ;;  %4689 = vmatmul.f32.gmra.mxu0 %v3778_v12  ;;  %v3793_v12 = vmax.f32 %v3281_v45, 0.0  ;;  %v3154_v29 = vadd.f32 %v12959_v36, %v11453_v3 }
 0x874   : > { %v4300_v15 = vpop.f32.mrf.mxu2 }
 0x875   : > { %v4301_v39 = vadd.f32 %v4300_v15, %v4236_v40  ;;  %v4365_v7 = vpop.f32.mrf.mxu3  ;;  %v12962_v40 = vld [vmem:[#allocation156_spill] sm:$0xff]  ;;  %v3807_v15 = vmax.f32 %v3154_v29, 0.0  ;;  %v12965_v29 = vld [vmem:[#allocation158_spill] sm:$0xff] }
 0x876   : > { %v4238_v1 = vpop.f32.mrf.mxu1  ;;  %v3284_v23 = vadd.f32 %v12962_v40, %v11463_v32 }
 0x877   : > { %v4366_v28 = vadd.f32 %v4365_v7, %v4301_v39  ;;  %v4433_v19 = vpop.f32.mrf.mxu0  ;;  %v4239_v44 = vadd.f32 %v4238_v1, %v11402_v48  ;;  %v3808_v39 = vmax.f32 %v3219_v49, 0.0  ;;  %v12963_v48 = vld [vmem:[#allocation157_spill] sm:$0xff]  ;;  %v3352_v49 = vadd.f32 %v12965_v29, %v11460_v14 }
 0x878   : > { %v3157_v1 = vadd.f32 %v12963_v48, %v11453_v3 }
 0x879   : > { %4497 = vmatmul.f32.gmra.mxu1 %v3791_v22  ;;  %4562 = vmatmul.f32.gmra.mxu2 %v3792_v17  ;;  %v11594_v30 = vadd.f32 %v4430_v8, %v4366_v28  ;;  %v3810_v17 = vmax.f32 %v3349_v24, 0.0  ;;  %v3809_v28 = vmax.f32 %v3284_v23, 0.0 }
 0x87a   : > { %4627 = vmatmul.f32.gmra.mxu3 %v3793_v12  ;;  %4692 = vmatmul.f32.gmra.mxu0 %v3794_v10  ;;  %v12964_v12 = vld [vmem:[#allocation159_spill] sm:$0xff] }
 0x87b   : > { %v3222_v36 = vadd.f32 %v12964_v12, %v11456_v60 }
 0x87c   : > { %v4303_v16 = vpop.f32.mrf.mxu2 }
 0x87d   : > { %v4304_v42 = vadd.f32 %v4303_v16, %v4239_v44  ;;  %v4368_v8 = vpop.f32.mrf.mxu3  ;;  %v12966_v44 = vld [vmem:[#allocation160_spill] sm:$0xff]  ;;  %v3823_v16 = vmax.f32 %v3157_v1, 0.0  ;;  %v12969_v1 = vld [vmem:[#allocation162_spill] sm:$0xff] }
 0x87e   : > { %v4241_v45 = vpop.f32.mrf.mxu1  ;;  %v3287_v11 = vadd.f32 %v12966_v44, %v11463_v32 }
 0x87f   : > { %v4369_v7 = vadd.f32 %v4368_v8, %v4304_v42  ;;  %v4436_v22 = vpop.f32.mrf.mxu0  ;;  %v4242_v31 = vadd.f32 %v4241_v45, %v11413_v63  ;;  %v3824_v42 = vmax.f32 %v3222_v36, 0.0  ;;  %v12967_v63 = vld [vmem:[#allocation161_spill] sm:$0xff]  ;;  %v3355_v36 = vadd.f32 %v12969_v1, %v11460_v14 }
 0x880   : > { %v3160_v45 = vadd.f32 %v12967_v63, %v11453_v3 }
 0x881   : > { %4500 = vmatmul.f32.gmra.mxu1 %v3807_v15  ;;  %4565 = vmatmul.f32.gmra.mxu2 %v3808_v39  ;;  %v11605_v10 = vadd.f32 %v4433_v19, %v4369_v7  ;;  %v3826_v39 = vmax.f32 %v3352_v49, 0.0  ;;  %v3825_v7 = vmax.f32 %v3287_v11, 0.0 }
 0x882   : > { %4630 = vmatmul.f32.gmra.mxu3 %v3809_v28  ;;  %4695 = vmatmul.f32.gmra.mxu0 %v3810_v17  ;;  %v12968_v28 = vld [vmem:[#allocation163_spill] sm:$0xff] }
 0x883   : > { %v3225_v48 = vadd.f32 %v12968_v28, %v11456_v60 }
 0x884   : > { %v4306_v24 = vpop.f32.mrf.mxu2 }
 0x885   : > { %v4307_v40 = vadd.f32 %v4306_v24, %v4242_v31  ;;  %v4371_v19 = vpop.f32.mrf.mxu3  ;;  %v12970_v31 = vld [vmem:[#allocation164_spill] sm:$0xff]  ;;  %v3839_v24 = vmax.f32 %v3160_v45, 0.0  ;;  %v12973_v45 = vld [vmem:[#allocation166_spill] sm:$0xff] }
 0x886   : > { %v4244_v23 = vpop.f32.mrf.mxu1  ;;  %v3290_v29 = vadd.f32 %v12970_v31, %v11463_v32 }
 0x887   : > { %v4372_v8 = vadd.f32 %v4371_v19, %v4307_v40  ;;  %v4439_v15 = vpop.f32.mrf.mxu0  ;;  %v4245_v12 = vadd.f32 %v4244_v23, %v11424_v55  ;;  %v3840_v40 = vmax.f32 %v3225_v48, 0.0  ;;  %v12971_v55 = vld [vmem:[#allocation165_spill] sm:$0xff]  ;;  %v3358_v48 = vadd.f32 %v12973_v45, %v11460_v14 }
 0x888   : > { %v3163_v23 = vadd.f32 %v12971_v55, %v11453_v3 }
 0x889   : > { %4503 = vmatmul.f32.gmra.mxu1 %v3823_v16  ;;  %4568 = vmatmul.f32.gmra.mxu2 %v3824_v42  ;;  %v11616_v17 = vadd.f32 %v4436_v22, %v4372_v8  ;;  %v3842_v42 = vmax.f32 %v3355_v36, 0.0  ;;  %v3841_v8 = vmax.f32 %v3290_v29, 0.0 }
 0x88a   : > { %4633 = vmatmul.f32.gmra.mxu3 %v3825_v7  ;;  %4698 = vmatmul.f32.gmra.mxu0 %v3826_v39  ;;  %v12972_v7 = vld [vmem:[#allocation167_spill] sm:$0xff] }
 0x88b   : > { %v3228_v63 = vadd.f32 %v12972_v7, %v11456_v60 }
 0x88c   : > { %v4309_v49 = vpop.f32.mrf.mxu2 }
 0x88d   : > { %v4310_v44 = vadd.f32 %v4309_v49, %v4245_v12  ;;  %v4374_v22 = vpop.f32.mrf.mxu3  ;;  %v12974_v12 = vld [vmem:[#allocation168_spill] sm:$0xff]  ;;  %v3855_v49 = vmax.f32 %v3163_v23, 0.0  ;;  %v12976_v23 = vld [vmem:[#allocation170_spill] sm:$0xff] }
 0x88e   : > { %v4247_v11 = vpop.f32.mrf.mxu1  ;;  %v3293_v1 = vadd.f32 %v12974_v12, %v11463_v32  ;;  %v3361_v7 = vadd.f32 %v12976_v23, %v11460_v14  ;;  %v11656_v14 = vperm.slane %v11445_v56, 7 }
 0x88f   : > { %v4375_v19 = vadd.f32 %v4374_v22, %v4310_v44  ;;  %v4442_v16 = vpop.f32.mrf.mxu0  ;;  %v4248_v28 = vadd.f32 %v4247_v11, %v11438_v50  ;;  %v3856_v44 = vmax.f32 %v3228_v63, 0.0  ;;  %v12975_v50 = vld [vmem:[#allocation169_spill] sm:$0xff]  ;;  %v3296_v63 = vadd.f32 %v10986_v38, %v11463_v32 }
 0x890   : > { %v3166_v11 = vadd.f32 %v12975_v50, %v11453_v3  ;;  %v11659_v38 = vperm.slane %v11445_v56, 6 }
 0x891   : > { %4506 = vmatmul.f32.gmra.mxu1 %v3839_v24  ;;  %4571 = vmatmul.f32.gmra.mxu2 %v3840_v40  ;;  %v11627_v39 = vadd.f32 %v4439_v15, %v4375_v19  ;;  %v3858_v40 = vmax.f32 %v3358_v48, 0.0  ;;  %v3857_v19 = vmax.f32 %v3293_v1, 0.0  ;;  %v11650_v48 = vperm.slane %v11445_v56, 4 }
 0x892   : > { %4636 = vmatmul.f32.gmra.mxu3 %v3841_v8  ;;  %4701 = vmatmul.f32.gmra.mxu0 %v3842_v42  ;;  %v3231_v8 = vadd.f32 %v10984_v9, %v11456_v60  ;;  %v3871_v1 = vmax.f32 %v3166_v11, 0.0 }
 0x894   : > { %v4312_v36 = vpop.f32.mrf.mxu2  ;;  %v3872_v3 = vmax.f32 %v3231_v8, 0.0 }
 0x895   : > { %v4313_v31 = vadd.f32 %v4312_v36, %v4248_v28  ;;  %v4377_v15 = vpop.f32.mrf.mxu3  ;;  %v11653_v36 = vperm.slane %v11445_v56, 5  ;;  %v3511_v56 = vadd.f32 %v11002_v43, %v11659_v38 }
 0x896   : > { %v4250_v29 = vpop.f32.mrf.mxu1 }
 0x897   : > { %v4378_v22 = vadd.f32 %v4377_v15, %v4313_v31  ;;  %v4445_v24 = vpop.f32.mrf.mxu0  ;;  %v4251_v55 = vadd.f32 %v4250_v29, %v11465_v13  ;;  %v3874_v13 = vmax.f32 %v3361_v7, 0.0  ;;  %v3873_v31 = vmax.f32 %v3296_v63, 0.0 }
 0x898   : > { %v3381_v15 = vadd.f32 %v10988_v34, %v11650_v48  ;;  %v3446_v29 = vadd.f32 %v11000_v5, %v11653_v36  ;;  %v3637_v23 = vmax.f32 %v3511_v56, 0.0  ;;  %v3449_v43 = vadd.f32 %v11016_v6, %v11653_v36 }
 0x899   : > { %4509 = vmatmul.f32.gmra.mxu1 %v3855_v49  ;;  %4574 = vmatmul.f32.gmra.mxu2 %v3856_v44  ;;  %v11638_v42 = vadd.f32 %v4442_v16, %v4378_v22  ;;  %v3576_v44 = vadd.f32 %v10990_v21, %v11656_v14  ;;  %v3384_v21 = vadd.f32 %v11004_v53, %v11650_v48 }
 0x89a   : > { %4639 = vmatmul.f32.gmra.mxu3 %v3857_v19  ;;  %4704 = vmatmul.f32.gmra.mxu0 %v3858_v40  ;;  %v3635_v50 = vmax.f32 %v3381_v15, 0.0  ;;  %v3636_v11 = vmax.f32 %v3446_v29, 0.0  ;;  %v3579_v7 = vadd.f32 %v11006_v27, %v11656_v14  ;;  %v3514_v63 = vadd.f32 %v11018_v26, %v11659_v38  ;;  %v12977_v15 = vld [vmem:[#allocation171_spill] sm:$0xff] }
 0x89b   : > { %v3638_v34 = vmax.f32 %v3576_v44, 0.0  ;;  %v3387_v27 = vadd.f32 %v11020_v61, %v11650_v48  ;;  %v3452_v26 = vadd.f32 %v11032_v33, %v11653_v36  ;;  %v3517_v29 = vadd.f32 %v12977_v15, %v11659_v38 }
 0x89c   : > { %v4315_v28 = vpop.f32.mrf.mxu2  ;;  %v3654_v53 = vmax.f32 %v3579_v7, 0.0 }
 0x89d   : > { %v4316_v45 = vadd.f32 %v4315_v28, %v4251_v55  ;;  %v4380_v16 = vpop.f32.mrf.mxu3 }
 0x89e   : > { %v4253_v12 = vpop.f32.mrf.mxu1 }
 0x89f   : > { %v4381_v9 = vadd.f32 %v4380_v16, %v4316_v45  ;;  %v4448_v60 = vpop.f32.mrf.mxu0  ;;  %v4254_v49 = vadd.f32 %v4253_v12, %v11476_v57 }
 0x8a1   : > { %4512 = vmatmul.f32.gmra.mxu1 %v3871_v1  ;;  %4577 = vmatmul.f32.gmra.mxu2 %v3872_v3  ;;  %v11661_v32 = vadd.f32 %v4445_v24, %v4381_v9  ;;  %v3651_v1 = vmax.f32 %v3384_v21, 0.0  ;;  %v3652_v3 = vmax.f32 %v3449_v43, 0.0 }
 0x8a2   : > { %4642 = vmatmul.f32.gmra.mxu3 %v3873_v31  ;;  %4707 = vmatmul.f32.gmra.mxu0 %v3874_v13  ;;  %v3653_v13 = vmax.f32 %v3514_v63, 0.0  ;;  %v3582_v31 = vadd.f32 %v11022_v18, %v11656_v14  ;;  %v3390_v18 = vadd.f32 %v11036_v51, %v11650_v48 }
 0x8a4   : > { %v4318_v22 = vpop.f32.mrf.mxu2  ;;  %v3670_v61 = vmax.f32 %v3582_v31, 0.0  ;;  %v3683_v7 = vmax.f32 %v3390_v18, 0.0 }
 0x8a5   : > { %v4319_v40 = vadd.f32 %v4318_v22, %v4254_v49  ;;  %v4383_v24 = vpop.f32.mrf.mxu3 }
 0x8a6   : > { %v4468_v19 = vpop.f32.mrf.mxu1 }
 0x8a7   : > { %v4384_v8 = vadd.f32 %v4383_v24, %v4319_v40  ;;  %v4663_v55 = vpop.f32.mrf.mxu0  ;;  %v4469_v57 = vadd.f32 %v4468_v19, %v11487_v54  ;;  %v3667_v40 = vmax.f32 %v3387_v27, 0.0  ;;  %v3668_v24 = vmax.f32 %v3452_v26, 0.0 }
 0x8a9   : > { %4727 = vmatmul.f32.vlgmr.msra.gmra.mxu1 %v3635_v50  ;;  %4792 = vmatmul.f32.vlgmr.msra.gmra.mxu2 %v3636_v11  ;;  %v11672_v5 = vadd.f32 %v4448_v60, %v4384_v8  ;;  %v3669_v11 = vmax.f32 %v3517_v29, 0.0  ;;  %v12980_v29 = vld [vmem:[#allocation175_spill] sm:$0xff] }
 0x8aa   : > { %4857 = vmatmul.f32.vlgmr.msra.gmra.mxu3 %v3637_v23  ;;  %4922 = vmatmul.f32.vlgmr.msra.gmra.mxu0 %v3638_v34  ;;  %v3520_v34 = vadd.f32 %v11053_v35, %v11659_v38  ;;  %v3458_v35 = vadd.f32 %v11068_v4, %v11653_v36 }
 0x8ac   : > { %v4533_v28 = vpop.f32.mrf.mxu2  ;;  %v3700_v26 = vmax.f32 %v3458_v35, 0.0 }
 0x8ad   : > { %v4534_v45 = vadd.f32 %v4533_v28, %v4469_v57  ;;  %v4598_v16 = vpop.f32.mrf.mxu3 }
 0x8ae   : > { %v4471_v12 = vpop.f32.mrf.mxu1 }
 0x8af   : > { %v4599_v9 = vadd.f32 %v4598_v16, %v4534_v45  ;;  %v4666_v60 = vpop.f32.mrf.mxu0  ;;  %v4472_v54 = vadd.f32 %v4471_v12, %v11498_v37  ;;  %v3455_v37 = vadd.f32 %v11051_v52, %v11653_v36  ;;  %v3685_v16 = vmax.f32 %v3520_v34, 0.0 }
 0x8b0   : > { %v3588_v12 = vadd.f32 %v11057_v20, %v11656_v14  ;;  %v12979_v20 = vld [vmem:[#allocation173_spill] sm:$0xff] }
 0x8b1   : > { %4730 = vmatmul.f32.gmra.mxu1 %v3651_v1  ;;  %4795 = vmatmul.f32.gmra.mxu2 %v3652_v3  ;;  %v11683_v6 = vadd.f32 %v4663_v55, %v4599_v9  ;;  %v3585_v55 = vadd.f32 %v11038_v58, %v11656_v14  ;;  %v3684_v63 = vmax.f32 %v3455_v37, 0.0  ;;  %v3393_v58 = vadd.f32 %v11055_v46, %v11650_v48  ;;  %v12978_v1 = vld [vmem:[#allocation172_spill] sm:$0xff] }
 0x8b2   : > { %4860 = vmatmul.f32.gmra.mxu3 %v3653_v13  ;;  %4925 = vmatmul.f32.gmra.mxu0 %v3654_v53  ;;  %v3523_v3 = vadd.f32 %v12978_v1, %v11659_v38  ;;  %v3702_v46 = vmax.f32 %v3588_v12, 0.0 }
 0x8b3   : > { %v3686_v51 = vmax.f32 %v3585_v55, 0.0  ;;  %v3699_v27 = vmax.f32 %v3393_v58, 0.0 }
 0x8b4   : > { %v4536_v49 = vpop.f32.mrf.mxu2  ;;  %v3701_v15 = vmax.f32 %v3523_v3, 0.0 }
 0x8b5   : > { %v4537_v44 = vadd.f32 %v4536_v49, %v4472_v54  ;;  %v4601_v56 = vpop.f32.mrf.mxu3  ;;  %v3461_v49 = vadd.f32 %v12980_v29, %v11653_v36 }
 0x8b6   : > { %v4474_v22 = vpop.f32.mrf.mxu1 }
 0x8b7   : > { %v4602_v19 = vadd.f32 %v4601_v56, %v4537_v44  ;;  %v4669_v50 = vpop.f32.mrf.mxu0  ;;  %v4475_v8 = vadd.f32 %v4474_v22, %v11511_v0  ;;  %v12981_v56 = vld [vmem:[#allocation174_spill] sm:$0xff]  ;;  %v3716_v37 = vmax.f32 %v3461_v49, 0.0 }
 0x8b8   : > { %v3591_v22 = vadd.f32 %v12981_v56, %v11656_v14 }
 0x8b9   : > { %4733 = vmatmul.f32.gmra.mxu1 %v3667_v40  ;;  %4798 = vmatmul.f32.gmra.mxu2 %v3668_v24  ;;  %v11694_v33 = vadd.f32 %v4666_v60, %v4602_v19  ;;  %v12982_v40 = vld [vmem:[#allocation176_spill] sm:$0xff] }
 0x8ba   : > { %4863 = vmatmul.f32.gmra.mxu3 %v3669_v11  ;;  %4928 = vmatmul.f32.gmra.mxu0 %v3670_v61  ;;  %v3526_v24 = vadd.f32 %v12982_v40, %v11659_v38  ;;  %v3718_v34 = vmax.f32 %v3591_v22, 0.0 }
 0x8bc   : > { %v4539_v23 = vpop.f32.mrf.mxu2 }
 0x8bd   : > { %v4540_v21 = vadd.f32 %v4539_v23, %v4475_v8  ;;  %v4604_v43 = vpop.f32.mrf.mxu3  ;;  %v3717_v23 = vmax.f32 %v3526_v24, 0.0 }
 0x8be   : > { %v4477_v57 = vpop.f32.mrf.mxu1 }
 0x8bf   : > { %v4605_v28 = vadd.f32 %v4604_v43, %v4540_v21  ;;  %v4672_v45 = vpop.f32.mrf.mxu0  ;;  %v4478_v0 = vadd.f32 %v4477_v57, %v11524_v62  ;;  %v3396_v62 = vadd.f32 %v12979_v20, %v11650_v48  ;;  %v12984_v57 = vld [vmem:[#allocation179_spill] sm:$0xff] }
 0x8c1   : > { %4736 = vmatmul.f32.gmra.mxu1 %v3683_v7  ;;  %4801 = vmatmul.f32.gmra.mxu2 %v3684_v63  ;;  %v11705_v52 = vadd.f32 %v4669_v50, %v4605_v28  ;;  %v3715_v18 = vmax.f32 %v3396_v62, 0.0  ;;  %v3464_v7 = vadd.f32 %v12984_v57, %v11653_v36  ;;  %v12985_v28 = vld [vmem:[#allocation178_spill] sm:$0xff]  ;;  %v12990_v62 = vld [vmem:[#allocation184_spill] sm:$0xff] }
 0x8c2   : > { %4866 = vmatmul.f32.gmra.mxu3 %v3685_v16  ;;  %4931 = vmatmul.f32.gmra.mxu0 %v3686_v51  ;;  %v12986_v51 = vld [vmem:[#allocation180_spill] sm:$0xff]  ;;  %v3532_v29 = vadd.f32 %v12990_v62, %v11659_v38 }
 0x8c3   : > { %v3529_v16 = vadd.f32 %v12986_v51, %v11659_v38  ;;  %v3732_v3 = vmax.f32 %v3464_v7, 0.0 }
 0x8c4   : > { %v4542_v9 = vpop.f32.mrf.mxu2 }
 0x8c5   : > { %v4543_v60 = vadd.f32 %v4542_v9, %v4478_v0  ;;  %v4607_v53 = vpop.f32.mrf.mxu3 }
 0x8c6   : > { %v4480_v13 = vpop.f32.mrf.mxu1 }
 0x8c7   : > { %v4608_v54 = vadd.f32 %v4607_v53, %v4543_v60  ;;  %v4675_v31 = vpop.f32.mrf.mxu0  ;;  %v4481_v44 = vadd.f32 %v4480_v13, %v11535_v25  ;;  %v12983_v25 = vld [vmem:[#allocation177_spill] sm:$0xff]  ;;  %v3733_v13 = vmax.f32 %v3529_v16, 0.0 }
 0x8c8   : > { %v3399_v43 = vadd.f32 %v12983_v25, %v11650_v48 }
 0x8c9   : > { %4739 = vmatmul.f32.gmra.mxu1 %v3699_v27  ;;  %4804 = vmatmul.f32.gmra.mxu2 %v3700_v26  ;;  %v11716_v4 = vadd.f32 %v4672_v45, %v4608_v54  ;;  %v3594_v45 = vadd.f32 %v12985_v28, %v11656_v14  ;;  %v12988_v54 = vld [vmem:[#allocation183_spill] sm:$0xff] }
 0x8ca   : > { %4869 = vmatmul.f32.gmra.mxu3 %v3701_v15  ;;  %4934 = vmatmul.f32.gmra.mxu0 %v3702_v46  ;;  %v3731_v1 = vmax.f32 %v3399_v43, 0.0  ;;  %v12989_v15 = vld [vmem:[#allocation182_spill] sm:$0xff]  ;;  %v12994_v43 = vld [vmem:[#allocation188_spill] sm:$0xff] }
 0x8cb   : > { %v3734_v53 = vmax.f32 %v3594_v45, 0.0  ;;  %v3597_v20 = vadd.f32 %v12989_v15, %v11656_v14  ;;  %v3535_v57 = vadd.f32 %v12994_v43, %v11659_v38 }
 0x8cc   : > { %v4545_v19 = vpop.f32.mrf.mxu2 }
 0x8cd   : > { %v4546_v50 = vadd.f32 %v4545_v19, %v4481_v44  ;;  %v4610_v61 = vpop.f32.mrf.mxu3 }
 0x8ce   : > { %v4483_v11 = vpop.f32.mrf.mxu1 }
 0x8cf   : > { %v4611_v8 = vadd.f32 %v4610_v61, %v4546_v50  ;;  %v4678_v55 = vpop.f32.mrf.mxu0  ;;  %v4484_v63 = vadd.f32 %v4483_v11, %v11546_v47  ;;  %v12987_v47 = vld [vmem:[#allocation181_spill] sm:$0xff]  ;;  %v3750_v61 = vmax.f32 %v3597_v20, 0.0  ;;  %v3749_v11 = vmax.f32 %v3532_v29, 0.0 }
 0x8d0   : > { %v3402_v26 = vadd.f32 %v12987_v47, %v11650_v48 }
 0x8d1   : > { %4742 = vmatmul.f32.gmra.mxu1 %v3715_v18  ;;  %4807 = vmatmul.f32.gmra.mxu2 %v3716_v37  ;;  %v11727_v21 = vadd.f32 %v4675_v31, %v4611_v8  ;;  %v3467_v31 = vadd.f32 %v12988_v54, %v11653_v36  ;;  %v12992_v8 = vld [vmem:[#allocation187_spill] sm:$0xff] }
 0x8d2   : > { %4872 = vmatmul.f32.gmra.mxu3 %v3717_v23  ;;  %4937 = vmatmul.f32.gmra.mxu0 %v3718_v34  ;;  %v3747_v40 = vmax.f32 %v3402_v26, 0.0  ;;  %v12993_v23 = vld [vmem:[#allocation186_spill] sm:$0xff] }
 0x8d3   : > { %v3748_v24 = vmax.f32 %v3467_v31, 0.0  ;;  %v3600_v25 = vadd.f32 %v12993_v23, %v11656_v14 }
 0x8d4   : > { %v4548_v58 = vpop.f32.mrf.mxu2 }
 0x8d5   : > { %v4549_v35 = vadd.f32 %v4548_v58, %v4484_v63  ;;  %v4613_v0 = vpop.f32.mrf.mxu3 }
 0x8d6   : > { %v4486_v12 = vpop.f32.mrf.mxu1 }
 0x8d7   : > { %v4614_v9 = vadd.f32 %v4613_v0, %v4549_v35  ;;  %v4681_v60 = vpop.f32.mrf.mxu0  ;;  %v4487_v46 = vadd.f32 %v4486_v12, %v11557_v41  ;;  %v12991_v41 = vld [vmem:[#allocation185_spill] sm:$0xff]  ;;  %v3766_v12 = vmax.f32 %v3600_v25, 0.0 }
 0x8d8   : > { %v3405_v37 = vadd.f32 %v12991_v41, %v11650_v48 }
 0x8d9   : > { %4745 = vmatmul.f32.gmra.mxu1 %v3731_v1  ;;  %4810 = vmatmul.f32.gmra.mxu2 %v3732_v3  ;;  %v11738_v27 = vadd.f32 %v4678_v55, %v4614_v9  ;;  %v3470_v55 = vadd.f32 %v12992_v8, %v11653_v36  ;;  %v3765_v1 = vmax.f32 %v3535_v57, 0.0  ;;  %v12995_v3 = vld [vmem:[#allocation189_spill] sm:$0xff] }
 0x8da   : > { %4875 = vmatmul.f32.gmra.mxu3 %v3733_v13  ;;  %4940 = vmatmul.f32.gmra.mxu0 %v3734_v53  ;;  %v3763_v51 = vmax.f32 %v3405_v37, 0.0  ;;  %v3408_v9 = vadd.f32 %v12995_v3, %v11650_v48  ;;  %v12997_v13 = vld [vmem:[#allocation190_spill] sm:$0xff] }
 0x8db   : > { %v3764_v16 = vmax.f32 %v3470_v55, 0.0  ;;  %v3603_v47 = vadd.f32 %v12997_v13, %v11656_v14 }
 0x8dc   : > { %v4551_v49 = vpop.f32.mrf.mxu2  ;;  %v3779_v20 = vmax.f32 %v3408_v9, 0.0 }
 0x8dd   : > { %v4552_v44 = vadd.f32 %v4551_v49, %v4487_v46  ;;  %v4616_v56 = vpop.f32.mrf.mxu3 }
 0x8de   : > { %v4489_v22 = vpop.f32.mrf.mxu1 }
 0x8df   : > { %v4617_v19 = vadd.f32 %v4616_v56, %v4552_v44  ;;  %v4684_v50 = vpop.f32.mrf.mxu0  ;;  %v4490_v34 = vadd.f32 %v4489_v22, %v11569_v59  ;;  %v3782_v56 = vmax.f32 %v3603_v47, 0.0 }
 0x8e1   : > { %4748 = vmatmul.f32.gmra.mxu1 %v3747_v40  ;;  %4813 = vmatmul.f32.gmra.mxu2 %v3748_v24  ;;  %v11749_v18 = vadd.f32 %v4681_v60, %v4617_v19  ;;  %v12996_v60 = vld [vmem:[#allocation29_spill] sm:$0xff]  ;;  %v12999_v24 = vld [vmem:[#allocation30_spill] sm:$0xff] }
 0x8e2   : > { %4878 = vmatmul.f32.gmra.mxu3 %v3749_v11  ;;  %4943 = vmatmul.f32.gmra.mxu0 %v3750_v61  ;;  %v3473_v53 = vadd.f32 %v12996_v60, %v11653_v36  ;;  %v3411_v19 = vadd.f32 %v12999_v24, %v11650_v48  ;;  %v13001_v11 = vld [vmem:[#allocation191_spill] sm:$0xff] }
 0x8e3   : > { %v3606_v41 = vadd.f32 %v13001_v11, %v11656_v14 }
 0x8e4   : > { %v4554_v7 = vpop.f32.mrf.mxu2  ;;  %v3780_v62 = vmax.f32 %v3473_v53, 0.0  ;;  %v3795_v25 = vmax.f32 %v3411_v19, 0.0 }
 0x8e5   : > { %v4555_v63 = vadd.f32 %v4554_v7, %v4490_v34  ;;  %v4619_v28 = vpop.f32.mrf.mxu3 }
 0x8e6   : > { %v4492_v45 = vpop.f32.mrf.mxu1 }
 0x8e7   : > { %v4620_v58 = vadd.f32 %v4619_v28, %v4555_v63  ;;  %v4493_v35 = vadd.f32 %v4492_v45, %v11582_v2  ;;  %v4687_v0 = vpop.f32.mrf.mxu0  ;;  %v12998_v2 = vld [vmem:[#allocation28_spill] sm:$0xff]  ;;  %v3798_v28 = vmax.f32 %v3606_v41, 0.0 }
 0x8e8   : > { %v3538_v26 = vadd.f32 %v12998_v2, %v11659_v38 }
 0x8e9   : > { %4751 = vmatmul.f32.gmra.mxu1 %v3763_v51  ;;  %4816 = vmatmul.f32.gmra.mxu2 %v3764_v16  ;;  %v11761_v59 = vadd.f32 %v4684_v50, %v4620_v58  ;;  %v13000_v50 = vld [vmem:[#allocation31_spill] sm:$0xff]  ;;  %v13003_v16 = vld [vmem:[#allocation32_spill] sm:$0xff] }
 0x8ea   : > { %4881 = vmatmul.f32.gmra.mxu3 %v3765_v1  ;;  %4946 = vmatmul.f32.gmra.mxu0 %v3766_v12  ;;  %v3781_v22 = vmax.f32 %v3538_v26, 0.0  ;;  %v3476_v61 = vadd.f32 %v13000_v50, %v11653_v36  ;;  %v3414_v58 = vadd.f32 %v13003_v16, %v11650_v48  ;;  %v13005_v12 = vld [vmem:[#allocation34_spill] sm:$0xff] }
 0x8eb   : > { %v3609_v1 = vadd.f32 %v13005_v12, %v11656_v14 }
 0x8ec   : > { %v4557_v54 = vpop.f32.mrf.mxu2  ;;  %v3796_v43 = vmax.f32 %v3476_v61, 0.0  ;;  %v3811_v47 = vmax.f32 %v3414_v58, 0.0 }
 0x8ed   : > { %v4558_v31 = vadd.f32 %v4557_v54, %v4493_v35  ;;  %v4622_v46 = vpop.f32.mrf.mxu3  ;;  %v13004_v35 = vld [vmem:[#allocation35_spill] sm:$0xff] }
 0x8ee   : > { %v4495_v15 = vpop.f32.mrf.mxu1 }
 0x8ef   : > { %v4623_v29 = vadd.f32 %v4622_v46, %v4558_v31  ;;  %v4496_v49 = vadd.f32 %v4495_v15, %v11594_v30  ;;  %v4690_v44 = vpop.f32.mrf.mxu0  ;;  %v13002_v30 = vld [vmem:[#allocation33_spill] sm:$0xff]  ;;  %v3814_v46 = vmax.f32 %v3609_v1, 0.0 }
 0x8f0   : > { %v3541_v37 = vadd.f32 %v13002_v30, %v11659_v38 }
 0x8f1   : > { %4754 = vmatmul.f32.gmra.mxu1 %v3779_v20  ;;  %4819 = vmatmul.f32.gmra.mxu2 %v3780_v62  ;;  %v11772_v40 = vadd.f32 %v4687_v0, %v4623_v29  ;;  %v3479_v0 = vadd.f32 %v13004_v35, %v11653_v36  ;;  %v13007_v62 = vld [vmem:[#allocation36_spill] sm:$0xff] }
 0x8f2   : > { %4884 = vmatmul.f32.gmra.mxu3 %v3781_v22  ;;  %4949 = vmatmul.f32.gmra.mxu0 %v3782_v56  ;;  %v3797_v45 = vmax.f32 %v3541_v37, 0.0  ;;  %v3417_v29 = vadd.f32 %v13007_v62, %v11650_v48  ;;  %v13009_v56 = vld [vmem:[#allocation38_spill] sm:$0xff] }
 0x8f3   : > { %v3812_v2 = vmax.f32 %v3479_v0, 0.0  ;;  %v3612_v22 = vadd.f32 %v13009_v56, %v11656_v14 }
 0x8f4   : > { %v4560_v8 = vpop.f32.mrf.mxu2  ;;  %v3827_v41 = vmax.f32 %v3417_v29, 0.0 }
 0x8f5   : > { %v4561_v55 = vadd.f32 %v4560_v8, %v4496_v49  ;;  %v4625_v34 = vpop.f32.mrf.mxu3  ;;  %v13008_v49 = vld [vmem:[#allocation39_spill] sm:$0xff] }
 0x8f6   : > { %v4498_v23 = vpop.f32.mrf.mxu1 }
 0x8f7   : > { %v4626_v57 = vadd.f32 %v4625_v34, %v4561_v55  ;;  %v4499_v7 = vadd.f32 %v4498_v23, %v11605_v10  ;;  %v4693_v63 = vpop.f32.mrf.mxu0  ;;  %v13006_v10 = vld [vmem:[#allocation37_spill] sm:$0xff]  ;;  %v3830_v34 = vmax.f32 %v3612_v22, 0.0 }
 0x8f8   : > { %v3544_v3 = vadd.f32 %v13006_v10, %v11659_v38 }
 0x8f9   : > { %4757 = vmatmul.f32.gmra.mxu1 %v3795_v25  ;;  %4822 = vmatmul.f32.gmra.mxu2 %v3796_v43  ;;  %v11783_v51 = vadd.f32 %v4690_v44, %v4626_v57  ;;  %v3482_v44 = vadd.f32 %v13008_v49, %v11653_v36  ;;  %v13011_v43 = vld [vmem:[#allocation40_spill] sm:$0xff] }
 0x8fa   : > { %4887 = vmatmul.f32.gmra.mxu3 %v3797_v45  ;;  %4952 = vmatmul.f32.gmra.mxu0 %v3798_v28  ;;  %v3813_v15 = vmax.f32 %v3544_v3, 0.0  ;;  %v3420_v57 = vadd.f32 %v13011_v43, %v11650_v48  ;;  %v13013_v28 = vld [vmem:[#allocation42_spill] sm:$0xff] }
 0x8fb   : > { %v3828_v30 = vmax.f32 %v3482_v44, 0.0  ;;  %v3615_v45 = vadd.f32 %v13013_v28, %v11656_v14 }
 0x8fc   : > { %v4563_v9 = vpop.f32.mrf.mxu2  ;;  %v3843_v1 = vmax.f32 %v3420_v57, 0.0 }
 0x8fd   : > { %v4564_v60 = vadd.f32 %v4563_v9, %v4499_v7  ;;  %v4628_v53 = vpop.f32.mrf.mxu3  ;;  %v13012_v7 = vld [vmem:[#allocation43_spill] sm:$0xff] }
 0x8fe   : > { %v4501_v13 = vpop.f32.mrf.mxu1 }
 0x8ff   : > { %v4629_v26 = vadd.f32 %v4628_v53, %v4564_v60  ;;  %v4502_v54 = vadd.f32 %v4501_v13, %v11616_v17  ;;  %v4696_v31 = vpop.f32.mrf.mxu0  ;;  %v13010_v17 = vld [vmem:[#allocation41_spill] sm:$0xff]  ;;  %v3846_v53 = vmax.f32 %v3615_v45, 0.0 }
 0x900   : > { %v3547_v24 = vadd.f32 %v13010_v17, %v11659_v38 }
 0x901   : > { %4760 = vmatmul.f32.gmra.mxu1 %v3811_v47  ;;  %4825 = vmatmul.f32.gmra.mxu2 %v3812_v2  ;;  %v11794_v20 = vadd.f32 %v4693_v63, %v4629_v26  ;;  %v3485_v63 = vadd.f32 %v13012_v7, %v11653_v36  ;;  %v13015_v2 = vld [vmem:[#allocation44_spill] sm:$0xff] }
 0x902   : > { %4890 = vmatmul.f32.gmra.mxu3 %v3813_v15  ;;  %4955 = vmatmul.f32.gmra.mxu0 %v3814_v46  ;;  %v3829_v23 = vmax.f32 %v3547_v24, 0.0  ;;  %v3423_v26 = vadd.f32 %v13015_v2, %v11650_v48  ;;  %v13017_v46 = vld [vmem:[#allocation46_spill] sm:$0xff] }
 0x903   : > { %v3844_v10 = vmax.f32 %v3485_v63, 0.0  ;;  %v3618_v15 = vadd.f32 %v13017_v46, %v11656_v14  ;;  %v13023_v46 = vld [vmem:[#allocation12_spill] sm:$0xff] }
 0x904   : > { %v4566_v19 = vpop.f32.mrf.mxu2  ;;  %v3859_v22 = vmax.f32 %v3423_v26, 0.0 }
 0x905   : > { %v4567_v50 = vadd.f32 %v4566_v19, %v4502_v54  ;;  %v4631_v61 = vpop.f32.mrf.mxu3  ;;  %v13016_v54 = vld [vmem:[#allocation47_spill] sm:$0xff] }
 0x906   : > { %v4504_v11 = vpop.f32.mrf.mxu1 }
 0x907   : > { %v4632_v37 = vadd.f32 %v4631_v61, %v4567_v50  ;;  %v4505_v8 = vadd.f32 %v4504_v11, %v11627_v39  ;;  %v4699_v55 = vpop.f32.mrf.mxu0  ;;  %v13014_v39 = vld [vmem:[#allocation45_spill] sm:$0xff]  ;;  %v3862_v61 = vmax.f32 %v3618_v15, 0.0 }
 0x908   : > { %v3550_v16 = vadd.f32 %v13014_v39, %v11659_v38 }
 0x909   : > { %4763 = vmatmul.f32.gmra.mxu1 %v3827_v41  ;;  %4828 = vmatmul.f32.gmra.mxu2 %v3828_v30  ;;  %v11805_v25 = vadd.f32 %v4696_v31, %v4632_v37  ;;  %v3488_v31 = vadd.f32 %v13016_v54, %v11653_v36  ;;  %v13019_v30 = vld [vmem:[#allocation48_spill] sm:$0xff] }
 0x90a   : > { %4893 = vmatmul.f32.gmra.mxu3 %v3829_v23  ;;  %4958 = vmatmul.f32.gmra.mxu0 %v3830_v34  ;;  %v3845_v13 = vmax.f32 %v3550_v16, 0.0  ;;  %v3426_v37 = vadd.f32 %v13019_v30, %v11650_v48  ;;  %v13021_v34 = vld [vmem:[#allocation50_spill] sm:$0xff] }
 0x90b   : > { %v3860_v17 = vmax.f32 %v3488_v31, 0.0  ;;  %v3621_v23 = vadd.f32 %v13021_v34, %v11656_v14 }
 0x90c   : > { %v4569_v58 = vpop.f32.mrf.mxu2  ;;  %v3875_v45 = vmax.f32 %v3426_v37, 0.0 }
 0x90d   : > { %v4570_v35 = vadd.f32 %v4569_v58, %v4505_v8  ;;  %v4634_v0 = vpop.f32.mrf.mxu3  ;;  %v13020_v8 = vld [vmem:[#allocation51_spill] sm:$0xff]  ;;  %v3878_v48 = vmax.f32 %v3621_v23, 0.0 }
 0x90e   : > { %v4507_v12 = vpop.f32.mrf.mxu1 }
 0x90f   : > { %v4635_v3 = vadd.f32 %v4634_v0, %v4570_v35  ;;  %v4508_v9 = vadd.f32 %v4507_v12, %v11638_v42  ;;  %v4702_v60 = vpop.f32.mrf.mxu0  ;;  %v13018_v42 = vld [vmem:[#allocation49_spill] sm:$0xff] }
 0x910   : > { %v3553_v62 = vadd.f32 %v13018_v42, %v11659_v38 }
 0x911   : > { %4766 = vmatmul.f32.gmra.mxu1 %v3843_v1  ;;  %4831 = vmatmul.f32.gmra.mxu2 %v3844_v10  ;;  %v11816_v47 = vadd.f32 %v4699_v55, %v4635_v3  ;;  %v3491_v55 = vadd.f32 %v13020_v8, %v11653_v36 }
 0x912   : > { %4896 = vmatmul.f32.gmra.mxu3 %v3845_v13  ;;  %4961 = vmatmul.f32.gmra.mxu0 %v3846_v53  ;;  %v3861_v11 = vmax.f32 %v3553_v62, 0.0 }
 0x913   : > { %v3876_v39 = vmax.f32 %v3491_v55, 0.0 }
 0x914   : > { %v4572_v29 = vpop.f32.mrf.mxu2 }
 0x915   : > { %v4573_v49 = vadd.f32 %v4572_v29, %v4508_v9  ;;  %v4637_v44 = vpop.f32.mrf.mxu3 }
 0x916   : > { %v4510_v56 = vpop.f32.mrf.mxu1 }
 0x917   : > { %v4638_v24 = vadd.f32 %v4637_v44, %v4573_v49  ;;  %v4511_v19 = vadd.f32 %v4510_v56, %v11661_v32  ;;  %v4705_v50 = vpop.f32.mrf.mxu0  ;;  %v13022_v32 = vld [vmem:[#allocation53_spill] sm:$0xff] }
 0x918   : > { %v3556_v43 = vadd.f32 %v13022_v32, %v11659_v38 }
 0x919   : > { %4769 = vmatmul.f32.gmra.mxu1 %v3859_v22  ;;  %4834 = vmatmul.f32.gmra.mxu2 %v3860_v17  ;;  %v11827_v41 = vadd.f32 %v4702_v60, %v4638_v24 }
 0x91a   : > { %4899 = vmatmul.f32.gmra.mxu3 %v3861_v11  ;;  %4964 = vmatmul.f32.gmra.mxu0 %v3862_v61  ;;  %v3877_v0 = vmax.f32 %v3556_v43, 0.0 }
 0x91c   : > { %v4575_v57 = vpop.f32.mrf.mxu2 }
 0x91d   : > { %v4576_v7 = vadd.f32 %v4575_v57, %v4511_v19  ;;  %v4640_v63 = vpop.f32.mrf.mxu3 }
 0x91e   : > { %v4513_v28 = vpop.f32.mrf.mxu1 }
 0x91f   : > { %v4641_v16 = vadd.f32 %v4640_v63, %v4576_v7  ;;  %v4514_v58 = vadd.f32 %v4513_v28, %v11672_v5  ;;  %v4708_v35 = vpop.f32.mrf.mxu0  ;;  %v13025_v7 = vld [vmem:[#allocation14_spill] sm:$0xff] }
 0x921   : > { %4772 = vmatmul.f32.gmra.mxu1 %v3875_v45  ;;  %4837 = vmatmul.f32.gmra.mxu2 %v3876_v39  ;;  %v11838_v36 = vadd.f32 %v4705_v50, %v4641_v16  ;;  %v13024_v50 = vld [vmem:[#allocation13_spill] sm:$0xff] }
 0x922   : > { %4902 = vmatmul.f32.gmra.mxu3 %v3877_v0  ;;  %4967 = vmatmul.f32.gmra.mxu0 %v3878_v48 }
 0x924   : > { %v4578_v14 = vpop.f32.mrf.mxu2 }
 0x925   : > { %v4579_v38 = vadd.f32 %v4578_v14, %v4514_v58  ;;  %v4643_v12 = vpop.f32.mrf.mxu3 }
 0x926   : > { %v4728_v1 = vpop.f32.mrf.mxu1 }
 0x927   : > { %v4644_v10 = vadd.f32 %v4643_v12, %v4579_v38  ;;  %v4923_v3 = vpop.f32.mrf.mxu0  ;;  %v4729_v60 = vadd.f32 %v4728_v1, %v11683_v6  ;;  %v13026_v12 = vld [vmem:[#allocation15_spill] sm:$0xff] }
 0x929   : > { %v11840_v9 = vadd.f32 %v4708_v35, %v4644_v10 }
 0x92c   : > { %v4793_v5 = vpop.f32.mrf.mxu2 }
 0x92d   : > { %v4794_v53 = vadd.f32 %v4793_v5, %v4729_v60  ;;  %v4858_v13 = vpop.f32.mrf.mxu3 }
 0x92e   : > { %v4731_v2 = vpop.f32.mrf.mxu1 }
 0x92f   : > { %v4859_v26 = vadd.f32 %v4858_v13, %v4794_v53  ;;  %v4926_v54 = vpop.f32.mrf.mxu0  ;;  %v4732_v42 = vadd.f32 %v4731_v2, %v11694_v33 }
 0x931   : > { %v4924_v31 = vadd.f32 %v4923_v3, %v4859_v26 }
 0x933   : > { %v11844_v15 = vadd.f32 %v4924_v31, %v13023_v46  ;;  %v13027_v46 = vld [vmem:[#allocation16_spill] sm:$0xff] }
 0x934   : > { %v4796_v62 = vpop.f32.mrf.mxu2 }
 0x935   : > { %v4797_v29 = vadd.f32 %v4796_v62, %v4732_v42  ;;  %v4861_v49 = vpop.f32.mrf.mxu3  ;;  %v4989_v44 = vsel %vm1157_vm2, %v11844_v15, 0.0  ;;  %v5053_v6 = vmul.f32 %v11844_v15, %v11844_v15 }
 0x936   : > { %v4734_v56 = vpop.f32.mrf.mxu1  ;;  %4990 = vadd.xlane.f32.xlu1 %v4989_v44 }
 0x937   : > { %v4862_v22 = vadd.f32 %v4861_v49, %v4797_v29  ;;  %v4929_v17 = vpop.f32.mrf.mxu0  ;;  %v5069_v24 = vsel %vm1157_vm2, %v5053_v6, 0.0  ;;  %v4735_v33 = vadd.f32 %v4734_v56, %v11705_v52 }
 0x938   : > { %5070 = vadd.xlane.f32.xlu2 %v5069_v24 }
 0x939   : > { %v4927_v19 = vadd.f32 %v4926_v54, %v4862_v22 }
 0x93b   : > { %v11853_v61 = vadd.f32 %v4927_v19, %v13024_v50  ;;  %v13028_v50 = vld [vmem:[#allocation17_spill] sm:$0xff] }
 0x93c   : > { %v4799_v11 = vpop.f32.mrf.mxu2 }
 0x93d   : > { %v4800_v30 = vadd.f32 %v4799_v11, %v4735_v33  ;;  %v4864_v37 = vpop.f32.mrf.mxu3  ;;  %v5054_v8 = vmul.f32 %v11853_v61, %v11853_v61  ;;  %v4992_v43 = vsel %vm1157_vm2, %v11853_v61, 0.0 }
 0x93e   : > { %v4737_v55 = vpop.f32.mrf.mxu1 }
 0x93f   : > { %v4865_v34 = vadd.f32 %v4864_v37, %v4800_v30  ;;  %v4932_v23 = vpop.f32.mrf.mxu0  ;;  %v5072_v32 = vsel %vm1157_vm2, %v5054_v8, 0.0  ;;  %v4738_v52 = vadd.f32 %v4737_v55, %v11716_v4 }
 0x940   : > { %5073 = vadd.xlane.f32.xlu0 %v5072_v32  ;;  %4993 = vadd.xlane.f32.xlu2 %v4992_v43 }
 0x941   : > { %v4930_v57 = vadd.f32 %v4929_v17, %v4865_v34 }
 0x943   : > { %v11862_v63 = vadd.f32 %v4930_v57, %v13025_v7  ;;  %v13029_v7 = vld [vmem:[#allocation18_spill] sm:$0xff] }
 0x944   : > { %v4802_v28 = vpop.f32.mrf.mxu2 }
 0x945   : > { %v4803_v45 = vadd.f32 %v4802_v28, %v4738_v52  ;;  %v4867_v39 = vpop.f32.mrf.mxu3  ;;  %v5055_v16 = vmul.f32 %v11862_v63, %v11862_v63  ;;  %v4995_v0 = vsel %vm1157_vm2, %v11862_v63, 0.0 }
 0x946   : > { %v4740_v58 = vpop.f32.mrf.mxu1 }
 0x947   : > { %v4868_v35 = vadd.f32 %v4867_v39, %v4803_v45  ;;  %v4935_v48 = vpop.f32.mrf.mxu0  ;;  %v5075_v14 = vsel %vm1157_vm2, %v5055_v16, 0.0  ;;  %v4741_v4 = vadd.f32 %v4740_v58, %v11727_v21 }
 0x948   : > { %4996 = vadd.xlane.f32.xlu0 %v4995_v0  ;;  %5076 = vadd.xlane.f32.xlu1 %v5075_v14 }
 0x949   : > { %v4933_v38 = vadd.f32 %v4932_v23, %v4868_v35 }
 0x94b   : > { %v11871_v1 = vadd.f32 %v4933_v38, %v13026_v12  ;;  %v13030_v12 = vld [vmem:[#allocation19_spill] sm:$0xff] }
 0x94c   : > { %v4805_v10 = vpop.f32.mrf.mxu2 }
 0x94d   : > { %v4806_v3 = vadd.f32 %v4805_v10, %v4741_v4  ;;  %v4870_v60 = vpop.f32.mrf.mxu3  ;;  %v5056_v5 = vmul.f32 %v11871_v1, %v11871_v1  ;;  %v4998_v54 = vsel %vm1157_vm2, %v11871_v1, 0.0 }
 0x94e   : > { %v4743_v53 = vpop.f32.mrf.mxu1 }
 0x94f   : > { %v4871_v13 = vadd.f32 %v4870_v60, %v4806_v3  ;;  %v4938_v2 = vpop.f32.mrf.mxu0  ;;  %v5078_v26 = vsel %vm1157_vm2, %v5056_v5, 0.0  ;;  %v4744_v21 = vadd.f32 %v4743_v53, %v11738_v27 }
 0x950   : > { %5079 = vadd.xlane.f32.xlu2 %v5078_v26  ;;  %4999 = vadd.xlane.f32.xlu1 %v4998_v54 }
 0x951   : > { %v4936_v31 = vadd.f32 %v4935_v48, %v4871_v13 }
 0x953   : > { %v11880_v42 = vadd.f32 %v4936_v31, %v13027_v46  ;;  %v13031_v46 = vld [vmem:[#allocation20_spill] sm:$0xff] }
 0x954   : > { %v4808_v62 = vpop.f32.mrf.mxu2 }
 0x955   : > { %v4809_v29 = vadd.f32 %v4808_v62, %v4744_v21  ;;  %v4873_v49 = vpop.f32.mrf.mxu3  ;;  %v5057_v44 = vmul.f32 %v11880_v42, %v11880_v42  ;;  %v5001_v24 = vsel %vm1157_vm2, %v11880_v42, 0.0 }
 0x956   : > { %v4746_v6 = vpop.f32.mrf.mxu1 }
 0x957   : > { %v4874_v56 = vadd.f32 %v4873_v49, %v4809_v29  ;;  %v4941_v22 = vpop.f32.mrf.mxu0  ;;  %v5081_v17 = vsel %vm1157_vm2, %v5057_v44, 0.0  ;;  %v4747_v27 = vadd.f32 %v4746_v6, %v11749_v18 }
 0x958   : > { %5082 = vadd.xlane.f32.xlu0 %v5081_v17  ;;  %5002 = vadd.xlane.f32.xlu2 %v5001_v24 }
 0x959   : > { %v4939_v19 = vadd.f32 %v4938_v2, %v4874_v56 }
 0x95b   : > { %v11889_v33 = vadd.f32 %v4939_v19, %v13028_v50  ;;  %v13032_v50 = vld [vmem:[#allocation21_spill] sm:$0xff] }
 0x95c   : > { %v4811_v11 = vpop.f32.mrf.mxu2 }
 0x95d   : > { %v4812_v30 = vadd.f32 %v4811_v11, %v4747_v27  ;;  %v4876_v37 = vpop.f32.mrf.mxu3  ;;  %v5058_v8 = vmul.f32 %v11889_v33, %v11889_v33  ;;  %v5004_v32 = vsel %vm1157_vm2, %v11889_v33, 0.0 }
 0x95e   : > { %v4749_v55 = vpop.f32.mrf.mxu1 }
 0x95f   : > { %v4877_v34 = vadd.f32 %v4876_v37, %v4812_v30  ;;  %v4944_v23 = vpop.f32.mrf.mxu0  ;;  %v5084_v43 = vsel %vm1157_vm2, %v5058_v8, 0.0  ;;  %v4750_v18 = vadd.f32 %v4749_v55, %v11761_v59 }
 0x960   : > { %5005 = vadd.xlane.f32.xlu0 %v5004_v32  ;;  %5085 = vadd.xlane.f32.xlu1 %v5084_v43 }
 0x961   : > { %v4942_v57 = vadd.f32 %v4941_v22, %v4877_v34 }
 0x963   : > { %v11898_v52 = vadd.f32 %v4942_v57, %v13029_v7  ;;  %v13033_v7 = vld [vmem:[#allocation22_spill] sm:$0xff] }
 0x964   : > { %v4814_v28 = vpop.f32.mrf.mxu2 }
 0x965   : > { %v4815_v45 = vadd.f32 %v4814_v28, %v4750_v18  ;;  %v4879_v39 = vpop.f32.mrf.mxu3  ;;  %v5059_v16 = vmul.f32 %v11898_v52, %v11898_v52  ;;  %v5007_v14 = vsel %vm1157_vm2, %v11898_v52, 0.0 }
 0x966   : > { %v4752_v58 = vpop.f32.mrf.mxu1 }
 0x967   : > { %v4880_v35 = vadd.f32 %v4879_v39, %v4815_v45  ;;  %v4947_v48 = vpop.f32.mrf.mxu0  ;;  %v5087_v0 = vsel %vm1157_vm2, %v5059_v16, 0.0  ;;  %v4753_v59 = vadd.f32 %v4752_v58, %v11772_v40 }
 0x968   : > { %5088 = vadd.xlane.f32.xlu2 %v5087_v0  ;;  %5008 = vadd.xlane.f32.xlu1 %v5007_v14 }
 0x969   : > { %v4945_v38 = vadd.f32 %v4944_v23, %v4880_v35 }
 0x96b   : > { %v11907_v4 = vadd.f32 %v4945_v38, %v13030_v12  ;;  %v13034_v12 = vld [vmem:[#allocation23_spill] sm:$0xff] }
 0x96c   : > { %v4817_v10 = vpop.f32.mrf.mxu2 }
 0x96d   : > { %v4818_v3 = vadd.f32 %v4817_v10, %v4753_v59  ;;  %v4882_v60 = vpop.f32.mrf.mxu3  ;;  %v5060_v5 = vmul.f32 %v11907_v4, %v11907_v4  ;;  %v5010_v54 = vsel %vm1157_vm2, %v11907_v4, 0.0 }
 0x96e   : > { %v4755_v53 = vpop.f32.mrf.mxu1 }
 0x96f   : > { %v4883_v13 = vadd.f32 %v4882_v60, %v4818_v3  ;;  %v4950_v2 = vpop.f32.mrf.mxu0  ;;  %v5090_v26 = vsel %vm1157_vm2, %v5060_v5, 0.0  ;;  %v4756_v40 = vadd.f32 %v4755_v53, %v11783_v51 }
 0x970   : > { %5091 = vadd.xlane.f32.xlu0 %v5090_v26  ;;  %5011 = vadd.xlane.f32.xlu2 %v5010_v54 }
 0x971   : > { %v4948_v31 = vadd.f32 %v4947_v48, %v4883_v13 }
 0x973   : > { %v11916_v21 = vadd.f32 %v4948_v31, %v13031_v46  ;;  %v13035_v31 = vld [vmem:[#allocation24_spill] sm:$0xff] }
 0x974   : > { %v4820_v62 = vpop.f32.mrf.mxu2 }
 0x975   : > { %v4821_v29 = vadd.f32 %v4820_v62, %v4756_v40  ;;  %v4885_v49 = vpop.f32.mrf.mxu3  ;;  %v5061_v44 = vmul.f32 %v11916_v21, %v11916_v21  ;;  %v5013_v17 = vsel %vm1157_vm2, %v11916_v21, 0.0 }
 0x976   : > { %v4758_v6 = vpop.f32.mrf.mxu1 }
 0x977   : > { %v4886_v56 = vadd.f32 %v4885_v49, %v4821_v29  ;;  %v4953_v22 = vpop.f32.mrf.mxu0  ;;  %v5093_v24 = vsel %vm1157_vm2, %v5061_v44, 0.0  ;;  %v4759_v51 = vadd.f32 %v4758_v6, %v11794_v20 }
 0x978   : > { %5014 = vadd.xlane.f32.xlu0 %v5013_v17  ;;  %5094 = vadd.xlane.f32.xlu1 %v5093_v24 }
 0x979   : > { %v4951_v19 = vadd.f32 %v4950_v2, %v4886_v56 }
 0x97b   : > { %v11925_v27 = vadd.f32 %v4951_v19, %v13032_v50  ;;  %v13036_v19 = vld [vmem:[#allocation25_spill] sm:$0xff] }
 0x97c   : > { %v4823_v11 = vpop.f32.mrf.mxu2 }
 0x97d   : > { %v4824_v30 = vadd.f32 %v4823_v11, %v4759_v51  ;;  %v4888_v37 = vpop.f32.mrf.mxu3  ;;  %v5062_v8 = vmul.f32 %v11925_v27, %v11925_v27  ;;  %v5016_v32 = vsel %vm1157_vm2, %v11925_v27, 0.0 }
 0x97e   : > { %v4761_v55 = vpop.f32.mrf.mxu1 }
 0x97f   : > { %v4889_v34 = vadd.f32 %v4888_v37, %v4824_v30  ;;  %v5096_v23 = vsel %vm1157_vm2, %v5062_v8, 0.0  ;;  %v4956_v43 = vpop.f32.mrf.mxu0  ;;  %v4762_v20 = vadd.f32 %v4761_v55, %v11805_v25 }
 0x980   : > { %5097 = vadd.xlane.f32.xlu2 %v5096_v23  ;;  %5017 = vadd.xlane.f32.xlu1 %v5016_v32  ;;  %v13037_v32 = vld [vmem:[#allocation26_spill] sm:$0xff] }
 0x981   : > { %v4954_v57 = vadd.f32 %v4953_v22, %v4889_v34 }
 0x983   : > { %v11934_v18 = vadd.f32 %v4954_v57, %v13033_v7 }
 0x984   : > { %v4826_v28 = vpop.f32.mrf.mxu2 }
 0x985   : > { %v4827_v45 = vadd.f32 %v4826_v28, %v4762_v20  ;;  %v4891_v39 = vpop.f32.mrf.mxu3  ;;  %v5063_v16 = vmul.f32 %v11934_v18, %v11934_v18  ;;  %v5019_v0 = vsel %vm1157_vm2, %v11934_v18, 0.0 }
 0x986   : > { %v4764_v58 = vpop.f32.mrf.mxu1 }
 0x987   : > { %v4892_v35 = vadd.f32 %v4891_v39, %v4827_v45  ;;  %v5099_v48 = vsel %vm1157_vm2, %v5063_v16, 0.0  ;;  %v4959_v38 = vpop.f32.mrf.mxu0  ;;  %v4765_v25 = vadd.f32 %v4764_v58, %v11816_v47 }
 0x988   : > { %5100 = vadd.xlane.f32.xlu0 %v5099_v48  ;;  %5020 = vadd.xlane.f32.xlu2 %v5019_v0  ;;  %v13038_v48 = vld [vmem:[#allocation11_spill] sm:$0xff] }
 0x989   : > { %v4957_v14 = vadd.f32 %v4956_v43, %v4892_v35 }
 0x98b   : > { %v11943_v59 = vadd.f32 %v4957_v14, %v13034_v12  ;;  %v13039_v14 = vld [vmem:[#allocation27_spill] sm:$0xff] }
 0x98c   : > { %v4829_v10 = vpop.f32.mrf.mxu2 }
 0x98d   : > { %v4830_v3 = vadd.f32 %v4829_v10, %v4765_v25  ;;  %v4894_v60 = vpop.f32.mrf.mxu3  ;;  %v5064_v5 = vmul.f32 %v11943_v59, %v11943_v59  ;;  %v5022_v2 = vsel %vm1157_vm2, %v11943_v59, 0.0 }
 0x98e   : > { %v4767_v53 = vpop.f32.mrf.mxu1 }
 0x98f   : > { %v4895_v13 = vadd.f32 %v4894_v60, %v4830_v3  ;;  %v5102_v26 = vsel %vm1157_vm2, %v5064_v5, 0.0  ;;  %v4768_v47 = vadd.f32 %v4767_v53, %v11827_v41  ;;  %v4962_v40 = vpop.f32.mrf.mxu0 }
 0x990   : > { %5023 = vadd.xlane.f32.xlu0 %v5022_v2  ;;  %5103 = vadd.xlane.f32.xlu1 %v5102_v26 }
 0x991   : > { %v4960_v54 = vadd.f32 %v4959_v38, %v4895_v13 }
 0x993   : > { %v11952_v46 = vadd.f32 %v4960_v54, %v13035_v31 }
 0x994   : > { %v4832_v62 = vpop.f32.mrf.mxu2 }
 0x995   : > { %v4833_v29 = vadd.f32 %v4832_v62, %v4768_v47  ;;  %v4897_v49 = vpop.f32.mrf.mxu3  ;;  %v5065_v44 = vmul.f32 %v11952_v46, %v11952_v46  ;;  %v5025_v17 = vsel %vm1157_vm2, %v11952_v46, 0.0 }
 0x996   : > { %v4770_v6 = vpop.f32.mrf.mxu1 }
 0x997   : > { %v4898_v56 = vadd.f32 %v4897_v49, %v4833_v29  ;;  %v5105_v22 = vsel %vm1157_vm2, %v5065_v44, 0.0  ;;  %v4771_v41 = vadd.f32 %v4770_v6, %v11838_v36  ;;  %v4965_v37 = vpop.f32.mrf.mxu0 }
 0x998   : > { %5106 = vadd.xlane.f32.xlu2 %v5105_v22  ;;  %5026 = vadd.xlane.f32.xlu1 %v5025_v17 }
 0x999   : > { %v4963_v24 = vadd.f32 %v4962_v40, %v4898_v56 }
 0x99b   : > { %v11961_v50 = vadd.f32 %v4963_v24, %v13036_v19 }
 0x99c   : > { %v4835_v51 = vpop.f32.mrf.mxu2 }
 0x99d   : > { %v4836_v11 = vadd.f32 %v4835_v51, %v4771_v41  ;;  %v4900_v30 = vpop.f32.mrf.mxu3  ;;  %v5028_v55 = vsel %vm1157_vm2, %v11961_v50, 0.0  ;;  %v5066_v35 = vmul.f32 %v11961_v50, %v11961_v50 }
 0x99e   : > { %v4773_v34 = vpop.f32.mrf.mxu1 }
 0x99f   : > { %v4901_v8 = vadd.f32 %v4900_v30, %v4836_v11  ;;  %v4774_v57 = vadd.f32 %v4773_v34, %v11840_v9  ;;  %v4968_v39 = vpop.f32.mrf.mxu0  ;;  %v5108_v10 = vsel %vm1157_vm2, %v5066_v35, 0.0  ;;  %v12002_v34 = vld [vmem:[%s683_s20] ss:$0 sm:$0xff] }
 0x9a0   : > { %5029 = vadd.xlane.f32.xlu2 %v5028_v55 }
 0x9a1   : > { %v4966_v23 = vadd.f32 %v4965_v37, %v4901_v8 }
 0x9a3   : > { %v11967_v43 = vadd.f32 %v4966_v23, %v13037_v32 }
 0x9a4   : > { %v4838_v7 = vpop.f32.mrf.mxu2 }
 0x9a5   : > { %v4839_v20 = vadd.f32 %v4838_v7, %v4774_v57  ;;  %v5031_v36 = vsel %vm1157_vm2, %v11967_v43, 0.0  ;;  %v4903_v28 = vpop.f32.mrf.mxu3  ;;  %v5067_v2 = vmul.f32 %v11967_v43, %v11967_v43 }
 0x9a6   : > { %5032 = vadd.xlane.f32.xlu0 %v5031_v36  ;;  %v12009_v36 = vld [vmem:[%s686_s5] ss:$0 sm:$0xff] }
 0x9a7   : > { %v4904_v45 = vadd.f32 %v4903_v28, %v4839_v20  ;;  %v5111_v47 = vsel %vm1157_vm2, %v5067_v2, 0.0 }
 0x9a9   : > { %v4969_v16 = vadd.f32 %v4968_v39, %v4904_v45  ;;  %v4991_v58 = vpop.xlane.xlu1 %4990 }
 0x9aa   : > { %v5037_v0 = vmul.f32 %v4991_v58, %v13038_v48 }
 0x9ab   : > { %v11976_v38 = vadd.f32 %v4969_v16, %v13039_v14  ;;  %v5071_v9 = vpop.xlane.xlu2 %5070 }
 0x9ac   : > { %v5133_v12 = vmul.f32 %v5037_v0, %v5037_v0  ;;  %v5117_v25 = vmul.f32 %v5071_v9, %v13038_v48  ;;  %v5165_v55 = vsub.f32 %v11844_v15, %v5037_v0 }
 0x9ad   : > { %v5034_v3 = vsel %vm1157_vm2, %v11976_v38, 0.0  ;;  %v5068_v60 = vmul.f32 %v11976_v38, %v11976_v38 }
 0x9ae   : > { %v5149_v5 = vsub.f32 %v5117_v25, %v5133_v12  ;;  %5109 = vadd.xlane.f32.xlu0 %v5108_v10  ;;  %5035 = vadd.xlane.f32.xlu1 %v5034_v3 }
 0x9af   : > { %v5114_v53 = vsel %vm1157_vm2, %v5068_v60, 0.0 }
 0x9b0   : > { %v5181_v13 = vadd.f32 1e-05, %v5149_v5  ;;  %5115 = vadd.xlane.f32.xlu2 %v5114_v53 }
 0x9b2   : > { %8350 = vrsqrt.f32 %v5181_v13  ;;  %vm5203_vm12 = vweird.f32 %v5181_v13 }
 0x9b3   : > { %v5074_v26 = vpop.xlane.xlu0 %5073  ;;  %v4994_v54 = vpop.xlane.xlu2 %4993 }
 0x9b4   : > { %v5038_v31 = vmul.f32 %v4994_v54, %v13038_v48  ;;  %v5118_v40 = vmul.f32 %v5074_v26, %v13038_v48 }
 0x9b6   : > { %v5134_v62 = vmul.f32 %v5038_v31, %v5038_v31  ;;  %5112 = vadd.xlane.f32.xlu1 %v5111_v47  ;;  %v5166_v53 = vsub.f32 %v11853_v61, %v5038_v31 }
 0x9b8   : > { %v8351_v29 = vpop.eup %8350  ;;  %v5150_v49 = vsub.f32 %v5118_v40, %v5134_v62 }
 0x9b9   : > { %v5198_v44 = vmul.f32 %v8351_v29, %v5181_v13  ;;  %vm5204_vm11 = vweird.f32 %v8351_v29 }
 0x9ba   : > { %v5182_v6 = vadd.f32 1e-05, %v5150_v49  ;;  %vm5205_vm13 = vmor %vm5203_vm12, %vm5204_vm11 }
 0x9bb   : > { %v5199_v56 = vmul.f32 %v8351_v29, %v5198_v44  ;;  %v4997_v22 = vpop.xlane.xlu0 %4996  ;;  %v5077_v17 = vpop.xlane.xlu1 %5076 }
 0x9bc   : > { %8352 = vrsqrt.f32 %v5182_v6  ;;  %v11991_v24 = vmul.f32 %v4997_v22, %v13038_v48  ;;  %v5119_v51 = vmul.f32 %v5077_v17, %v13038_v48  ;;  %vm5213_vm15 = vweird.f32 %v5182_v6 }
 0x9bd   : > { %v5200_v19 = vmul.f32 0.5, %v5199_v56 }
 0x9be   : > { %v5135_v41 = vmul.f32 %v11991_v24, %v11991_v24 }
 0x9bf   : > { %v5201_v11 = vsub.f32 1.5, %v5200_v19  ;;  %v5167_v19 = vsub.f32 %v11862_v63, %v11991_v24 }
 0x9c0   : > { %v5151_v30 = vsub.f32 %v5119_v51, %v5135_v41 }
 0x9c1   : > { %v5202_v37 = vmul.f32 %v8351_v29, %v5201_v11 }
 0x9c2   : > { %v8353_v8 = vpop.eup %8352  ;;  %v5183_v23 = vadd.f32 1e-05, %v5151_v30 }
 0x9c3   : > { %v5206_v32 = vsel %vm5205_vm13, %v8351_v29, %v5202_v37  ;;  %v5208_v57 = vmul.f32 %v8353_v8, %v5182_v6  ;;  %v5080_v7 = vpop.xlane.xlu2 %5079  ;;  %v5000_v20 = vpop.xlane.xlu1 %4999  ;;  %vm5214_vm14 = vweird.f32 %v8353_v8 }
 0x9c4   : > { %v5357_v28 = vmul.f32 %v5206_v32, %v5165_v55  ;;  %8354 = vrsqrt.f32 %v5183_v23  ;;  %v12012_v45 = vmul.f32 %v5000_v20, %v13038_v48  ;;  %v5120_v58 = vmul.f32 %v5080_v7, %v13038_v48  ;;  %vm5215_vm0 = vmor %vm5213_vm15, %vm5214_vm14 }
 0x9c5   : > { %v5209_v15 = vmul.f32 %v8353_v8, %v5208_v57  ;;  %vm5223_vm4 = vweird.f32 %v5183_v23 }
 0x9c6   : > { %v5376_v39 = vmul.f32 %v12002_v34, %v5357_v28  ;;  %v5136_v35 = vmul.f32 %v12012_v45, %v12012_v45 }
 0x9c7   : > { %v5210_v16 = vmul.f32 0.5, %v5209_v15 }
 0x9c8   : > { %v12019_v0 = vadd.f32 %v12009_v36, %v5376_v39  ;;  %v5152_v9 = vsub.f32 %v5120_v58, %v5136_v35  ;;  %v5168_v35 = vsub.f32 %v11871_v1, %v12012_v45 }
 0x9c9   : > { %v5211_v14 = vsub.f32 1.5, %v5210_v16 }
 0x9ca   : > { %v8355_v12 = vpop.eup %8354  ;;  %5411 = vst.msk [vmem:[#allocation2] sm:$0xff] %vm1157_vm2, %v12019_v0  ;;  %v5184_v3 = vadd.f32 1e-05, %v5152_v9 }
 0x9cb   : > { %v5212_v25 = vmul.f32 %v8353_v8, %v5211_v14  ;;  %v5218_v10 = vmul.f32 %v8355_v12, %v5183_v23  ;;  %v5083_v60 = vpop.xlane.xlu0 %5082  ;;  %v5003_v5 = vpop.xlane.xlu2 %5002  ;;  %vm5224_vm3 = vweird.f32 %v8355_v12 }
 0x9cc   : > { %v12025_v13 = vmul.f32 %v5003_v5, %v13038_v48  ;;  %8356 = vrsqrt.f32 %v5184_v3  ;;  %v5121_v47 = vmul.f32 %v5083_v60, %v13038_v48  ;;  %vm5225_vm5 = vmor %vm5223_vm4, %vm5224_vm3  ;;  %vm5233_vm7 = vweird.f32 %v5184_v3 }
 0x9cd   : > { %v5216_v2 = vsel %vm5215_vm0, %v8353_v8, %v5212_v25  ;;  %v5219_v26 = vmul.f32 %v8355_v12, %v5218_v10 }
 0x9ce   : > { %v5358_v54 = vmul.f32 %v5216_v2, %v5166_v53  ;;  %v5137_v40 = vmul.f32 %v12025_v13, %v12025_v13 }
 0x9cf   : > { %v5220_v62 = vmul.f32 0.5, %v5219_v26 }
 0x9d0   : > { %v5377_v29 = vmul.f32 %v12002_v34, %v5358_v54  ;;  %v5153_v49 = vsub.f32 %v5121_v47, %v5137_v40  ;;  %v5169_v40 = vsub.f32 %v11880_v42, %v12025_v13 }
 0x9d1   : > { %v5221_v44 = vsub.f32 1.5, %v5220_v62 }
 0x9d2   : > { %v12032_v61 = vadd.f32 %v12009_v36, %v5377_v29  ;;  %v5185_v31 = vadd.f32 1e-05, %v5153_v49  ;;  %v8357_v6 = vpop.eup %8356 }
 0x9d3   : > { %v5222_v56 = vmul.f32 %v8355_v12, %v5221_v44  ;;  %v5006_v22 = vpop.xlane.xlu0 %5005  ;;  %v5086_v17 = vpop.xlane.xlu1 %5085  ;;  %v5228_v41 = vmul.f32 %v8357_v6, %v5184_v3  ;;  %vm5234_vm6 = vweird.f32 %v8357_v6 }
 0x9d4   : > { %5412 = vst.msk [vmem:[#allocation2 + $0x8] sm:$0xff] %vm1157_vm2, %v12032_v61  ;;  %8358 = vrsqrt.f32 %v5185_v31  ;;  %v12039_v11 = vmul.f32 %v5006_v22, %v13038_v48  ;;  %v5122_v55 = vmul.f32 %v5086_v17, %v13038_v48  ;;  %vm5235_vm8 = vmor %vm5233_vm7, %vm5234_vm6  ;;  %vm5243_vm10 = vweird.f32 %v5185_v31 }
 0x9d5   : > { %v5226_v51 = vsel %vm5225_vm5, %v8355_v12, %v5222_v56  ;;  %v5229_v37 = vmul.f32 %v8357_v6, %v5228_v41 }
 0x9d6   : > { %v5359_v30 = vmul.f32 %v5226_v51, %v5167_v19  ;;  %v5138_v8 = vmul.f32 %v12039_v11, %v12039_v11 }
 0x9d7   : > { %v5230_v32 = vmul.f32 0.5, %v5229_v37 }
 0x9d8   : > { %v5378_v23 = vmul.f32 %v12002_v34, %v5359_v30  ;;  %v5154_v57 = vsub.f32 %v5122_v55, %v5138_v8 }
 0x9d9   : > { %v5231_v24 = vsub.f32 1.5, %v5230_v32  ;;  %v5170_v32 = vsub.f32 %v11889_v33, %v12039_v11 }
 0x9da   : > { %v8359_v7 = vpop.eup %8358  ;;  %v12046_v63 = vadd.f32 %v12009_v36, %v5378_v23  ;;  %v5186_v28 = vadd.f32 1e-05, %v5154_v57 }
 0x9db   : > { %v5238_v20 = vmul.f32 %v8359_v7, %v5185_v31  ;;  %v5089_v15 = vpop.xlane.xlu2 %5088  ;;  %v5009_v39 = vpop.xlane.xlu1 %5008  ;;  %v5232_v16 = vmul.f32 %v8357_v6, %v5231_v24  ;;  %vm5244_vm9 = vweird.f32 %v8359_v7 }
 0x9dc   : > { %5413 = vst.msk [vmem:[#allocation2 + $0x10] sm:$0xff] %vm1157_vm2, %v12046_v63  ;;  %v12051_v58 = vmul.f32 %v5009_v39, %v13038_v48  ;;  %8360 = vrsqrt.f32 %v5186_v28  ;;  %v5123_v12 = vmul.f32 %v5089_v15, %v13038_v48  ;;  %vm5245_vm11 = vmor %vm5243_vm10, %vm5244_vm9  ;;  %vm5253_vm13 = vweird.f32 %v5186_v28 }
 0x9dd   : > { %v5239_v14 = vmul.f32 %v8359_v7, %v5238_v20  ;;  %v5236_v9 = vsel %vm5235_vm8, %v8357_v6, %v5232_v16 }
 0x9de   : > { %v5139_v25 = vmul.f32 %v12051_v58, %v12051_v58  ;;  %v5360_v10 = vmul.f32 %v5236_v9, %v5168_v35 }
 0x9df   : > { %v5240_v60 = vmul.f32 0.5, %v5239_v14 }
 0x9e0   : > { %v5155_v5 = vsub.f32 %v5123_v12, %v5139_v25  ;;  %v5379_v3 = vmul.f32 %v12002_v34, %v5360_v10  ;;  %v5171_v10 = vsub.f32 %v11898_v52, %v12051_v58 }
 0x9e1   : > { %v5241_v53 = vsub.f32 1.5, %v5240_v60 }
 0x9e2   : > { %v5187_v2 = vadd.f32 1e-05, %v5155_v5  ;;  %v8361_v26 = vpop.eup %8360  ;;  %v12060_v1 = vadd.f32 %v12009_v36, %v5379_v3 }
 0x9e3   : > { %v5242_v45 = vmul.f32 %v8359_v7, %v5241_v53  ;;  %v5092_v54 = vpop.xlane.xlu0 %5091  ;;  %v5012_v47 = vpop.xlane.xlu2 %5011  ;;  %v5248_v62 = vmul.f32 %v8361_v26, %v5186_v28  ;;  %vm5254_vm12 = vweird.f32 %v8361_v26 }
 0x9e4   : > { %8362 = vrsqrt.f32 %v5187_v2  ;;  %5414 = vst.msk [vmem:[#allocation2 + $0x18] sm:$0xff] %vm1157_vm2, %v12060_v1  ;;  %v12067_v49 = vmul.f32 %v5012_v47, %v13038_v48  ;;  %v5124_v56 = vmul.f32 %v5092_v54, %v13038_v48  ;;  %vm5255_vm14 = vmor %vm5253_vm13, %vm5254_vm12  ;;  %vm5263_vm0 = vweird.f32 %v5187_v2 }
 0x9e5   : > { %v5246_v29 = vsel %vm5245_vm11, %v8359_v7, %v5242_v45  ;;  %v5249_v6 = vmul.f32 %v8361_v26, %v5248_v62 }
 0x9e6   : > { %v5361_v44 = vmul.f32 %v5246_v29, %v5169_v40  ;;  %v5140_v31 = vmul.f32 %v12067_v49, %v12067_v49 }
 0x9e7   : > { %v5250_v42 = vmul.f32 0.5, %v5249_v6 }
 0x9e8   : > { %v5380_v22 = vmul.f32 %v12002_v34, %v5361_v44  ;;  %v5156_v13 = vsub.f32 %v5124_v56, %v5140_v31 }
 0x9e9   : > { %v5251_v41 = vsub.f32 1.5, %v5250_v42  ;;  %v5172_v42 = vsub.f32 %v11907_v4, %v12067_v49 }
 0x9ea   : > { %v8363_v17 = vpop.eup %8362  ;;  %v12074_v19 = vadd.f32 %v12009_v36, %v5380_v22  ;;  %v5188_v30 = vadd.f32 1e-05, %v5156_v13 }
 0x9eb   : > { %v5258_v51 = vmul.f32 %v8363_v17, %v5187_v2  ;;  %v5015_v37 = vpop.xlane.xlu0 %5014  ;;  %v5095_v8 = vpop.xlane.xlu1 %5094  ;;  %v5252_v55 = vmul.f32 %v8361_v26, %v5251_v41  ;;  %vm5264_vm15 = vweird.f32 %v8363_v17 }
 0x9ec   : > { %5415 = vst.msk [vmem:[#allocation2 + $0x20] sm:$0xff] %vm1157_vm2, %v12074_v19  ;;  %v12079_v23 = vmul.f32 %v5015_v37, %v13038_v48  ;;  %8364 = vrsqrt.f32 %v5188_v30  ;;  %v5125_v20 = vmul.f32 %v5095_v8, %v13038_v48  ;;  %vm5265_vm3 = vmor %vm5263_vm0, %vm5264_vm15  ;;  %vm5273_vm5 = vweird.f32 %v5188_v30 }
 0x9ed   : > { %v5259_v57 = vmul.f32 %v8363_v17, %v5258_v51  ;;  %v5256_v7 = vsel %vm5255_vm14, %v8361_v26, %v5252_v55 }
 0x9ee   : > { %v5141_v24 = vmul.f32 %v12079_v23, %v12079_v23  ;;  %v5362_v15 = vmul.f32 %v5256_v7, %v5170_v32 }
 0x9ef   : > { %v5260_v39 = vmul.f32 0.5, %v5259_v57 }
 0x9f0   : > { %v5157_v16 = vsub.f32 %v5125_v20, %v5141_v24  ;;  %v5381_v28 = vmul.f32 %v12002_v34, %v5362_v15  ;;  %v5173_v15 = vsub.f32 %v11916_v21, %v12079_v23 }
 0x9f1   : > { %v5261_v35 = vsub.f32 1.5, %v5260_v39 }
 0x9f2   : > { %v5189_v14 = vadd.f32 1e-05, %v5157_v16  ;;  %v8365_v9 = vpop.eup %8364  ;;  %v12088_v33 = vadd.f32 %v12009_v36, %v5381_v28 }
 0x9f3   : > { %v5262_v11 = vmul.f32 %v8363_v17, %v5261_v35  ;;  %v5098_v12 = vpop.xlane.xlu2 %5097  ;;  %v5018_v25 = vpop.xlane.xlu1 %5017  ;;  %v5268_v60 = vmul.f32 %v8365_v9, %v5188_v30  ;;  %vm5274_vm4 = vweird.f32 %v8365_v9 }
 0x9f4   : > { %8366 = vrsqrt.f32 %v5189_v14  ;;  %5416 = vst.msk [vmem:[#allocation2 + $0x28] sm:$0xff] %vm1157_vm2, %v12088_v33  ;;  %v12095_v3 = vmul.f32 %v5018_v25, %v13038_v48  ;;  %v5126_v45 = vmul.f32 %v5098_v12, %v13038_v48  ;;  %vm5275_vm6 = vmor %vm5273_vm5, %vm5274_vm4  ;;  %vm5283_vm8 = vweird.f32 %v5189_v14 }
 0x9f5   : > { %v5266_v5 = vsel %vm5265_vm3, %v8363_v17, %v5262_v11  ;;  %v5269_v26 = vmul.f32 %v8365_v9, %v5268_v60 }
 0x9f6   : > { %v5363_v53 = vmul.f32 %v5266_v5, %v5171_v10  ;;  %v5142_v2 = vmul.f32 %v12095_v3, %v12095_v3 }
 0x9f7   : > { %v5270_v52 = vmul.f32 0.5, %v5269_v26 }
 0x9f8   : > { %v5382_v54 = vmul.f32 %v12002_v34, %v5363_v53  ;;  %v5158_v58 = vsub.f32 %v5126_v45, %v5142_v2 }
 0x9f9   : > { %v5271_v62 = vsub.f32 1.5, %v5270_v52  ;;  %v5174_v52 = vsub.f32 %v11925_v27, %v12095_v3 }
 0x9fa   : > { %v8367_v47 = vpop.eup %8366  ;;  %v12102_v40 = vadd.f32 %v12009_v36, %v5382_v54  ;;  %v5190_v44 = vadd.f32 1e-05, %v5158_v58 }
 0x9fb   : > { %v5278_v29 = vmul.f32 %v8367_v47, %v5189_v14  ;;  %v5101_v6 = vpop.xlane.xlu0 %5100  ;;  %v5021_v56 = vpop.xlane.xlu2 %5020  ;;  %v5272_v31 = vmul.f32 %v8365_v9, %v5271_v62  ;;  %vm5284_vm7 = vweird.f32 %v8367_v47 }
 0x9fc   : > { %5417 = vst.msk [vmem:[#allocation2 + $0x30] sm:$0xff] %vm1157_vm2, %v12102_v40  ;;  %v12107_v22 = vmul.f32 %v5021_v56, %v13038_v48  ;;  %8368 = vrsqrt.f32 %v5190_v44  ;;  %v5127_v41 = vmul.f32 %v5101_v6, %v13038_v48  ;;  %vm5285_vm9 = vmor %vm5283_vm8, %vm5284_vm7  ;;  %vm5293_vm11 = vweird.f32 %v5190_v44 }
 0x9fd   : > { %v5279_v13 = vmul.f32 %v8367_v47, %v5278_v29  ;;  %v5276_v17 = vsel %vm5275_vm6, %v8365_v9, %v5272_v31 }
 0x9fe   : > { %v5143_v51 = vmul.f32 %v12107_v22, %v12107_v22  ;;  %v5364_v37 = vmul.f32 %v5276_v17, %v5172_v42 }
 0x9ff   : > { %v5280_v8 = vmul.f32 0.5, %v5279_v13 }
 0xa00   : > { %v5159_v55 = vsub.f32 %v5127_v41, %v5143_v51  ;;  %v5383_v30 = vmul.f32 %v12002_v34, %v5364_v37  ;;  %v5175_v41 = vsub.f32 %v11934_v18, %v12107_v22 }
 0xa01   : > { %v5281_v32 = vsub.f32 1.5, %v5280_v8 }
 0xa02   : > { %v5191_v57 = vadd.f32 1e-05, %v5159_v55  ;;  %v8369_v7 = vpop.eup %8368  ;;  %v12116_v4 = vadd.f32 %v12009_v36, %v5383_v30 }
 0xa03   : > { %v5282_v49 = vmul.f32 %v8367_v47, %v5281_v32  ;;  %v5024_v24 = vpop.xlane.xlu0 %5023  ;;  %v5104_v20 = vpop.xlane.xlu1 %5103  ;;  %v5288_v39 = vmul.f32 %v8369_v7, %v5190_v44  ;;  %vm5294_vm10 = vweird.f32 %v8369_v7 }
 0xa04   : > { %8370 = vrsqrt.f32 %v5191_v57  ;;  %5418 = vst.msk [vmem:[#allocation2 + $0x38] sm:$0xff] %vm1157_vm2, %v12116_v4  ;;  %v12123_v28 = vmul.f32 %v5024_v24, %v13038_v48  ;;  %v5128_v11 = vmul.f32 %v5104_v20, %v13038_v48  ;;  %vm5295_vm12 = vmor %vm5293_vm11, %vm5294_vm10  ;;  %vm5303_vm14 = vweird.f32 %v5191_v57 }
 0xa05   : > { %v5286_v16 = vsel %vm5285_vm9, %v8367_v47, %v5282_v49  ;;  %v5289_v9 = vmul.f32 %v8369_v7, %v5288_v39 }
 0xa06   : > { %v5365_v35 = vmul.f32 %v5286_v16, %v5173_v15  ;;  %v5144_v14 = vmul.f32 %v12123_v28, %v12123_v28  ;;  %v5176_v15 = vsub.f32 %v11943_v59, %v12123_v28 }
 0xa07   : > { %v5290_v21 = vmul.f32 0.5, %v5289_v9 }
 0xa08   : > { %v5384_v12 = vmul.f32 %v12002_v34, %v5365_v35  ;;  %v5160_v23 = vsub.f32 %v5128_v11, %v5144_v14 }
 0xa09   : > { %v5291_v60 = vsub.f32 1.5, %v5290_v21 }
 0xa0a   : > { %v8371_v25 = vpop.eup %8370  ;;  %v12130_v10 = vadd.f32 %v12009_v36, %v5384_v12  ;;  %v5192_v53 = vadd.f32 1e-05, %v5160_v23 }
 0xa0b   : > { %v5298_v5 = vmul.f32 %v8371_v25, %v5191_v57  ;;  %v5107_v26 = vpop.xlane.xlu2 %5106  ;;  %v5027_v45 = vpop.xlane.xlu1 %5026  ;;  %v5292_v2 = vmul.f32 %v8369_v7, %v5291_v60  ;;  %vm5304_vm13 = vweird.f32 %v8371_v25 }
 0xa0c   : > { %5419 = vst.msk [vmem:[#allocation2 + $0x40] sm:$0xff] %vm1157_vm2, %v12130_v10  ;;  %v12135_v54 = vmul.f32 %v5027_v45, %v13038_v48  ;;  %8372 = vrsqrt.f32 %v5192_v53  ;;  %v5129_v62 = vmul.f32 %v5107_v26, %v13038_v48  ;;  %vm5305_vm15 = vmor %vm5303_vm14, %vm5304_vm13  ;;  %vm5313_vm3 = vweird.f32 %v5192_v53 }
 0xa0d   : > { %v5299_v58 = vmul.f32 %v8371_v25, %v5298_v5  ;;  %v5296_v47 = vsel %vm5295_vm12, %v8369_v7, %v5292_v2 }
 0xa0e   : > { %v5145_v29 = vmul.f32 %v12135_v54, %v12135_v54  ;;  %v5366_v6 = vmul.f32 %v5296_v47, %v5174_v52  ;;  %v5177_v26 = vsub.f32 %v11952_v46, %v12135_v54 }
 0xa0f   : > { %v5300_v56 = vmul.f32 0.5, %v5299_v58 }
 0xa10   : > { %v5161_v31 = vsub.f32 %v5129_v62, %v5145_v29  ;;  %v5385_v44 = vmul.f32 %v12002_v34, %v5366_v6 }
 0xa11   : > { %v5301_v42 = vsub.f32 1.5, %v5300_v56 }
 0xa12   : > { %v5193_v13 = vadd.f32 1e-05, %v5161_v31  ;;  %v8373_v17 = vpop.eup %8372  ;;  %v12144_v27 = vadd.f32 %v12009_v36, %v5385_v44 }
 0xa13   : > { %v5302_v3 = vmul.f32 %v8371_v25, %v5301_v42  ;;  %v5308_v51 = vmul.f32 %v8373_v17, %v5192_v53  ;;  %vm5314_vm0 = vweird.f32 %v8373_v17  ;;  %v5030_v22 = vpop.xlane.xlu2 %5029 }
 0xa14   : > { %8374 = vrsqrt.f32 %v5193_v13  ;;  %5420 = vst.msk [vmem:[#allocation2 + $0x48] sm:$0xff] %vm1157_vm2, %v12144_v27  ;;  %vm5315_vm4 = vmor %vm5313_vm3, %vm5314_vm0  ;;  %v5050_v35 = vmul.f32 %v5030_v22, %v13038_v48  ;;  %vm5323_vm6 = vweird.f32 %v5193_v13 }
 0xa15   : > { %v5306_v37 = vsel %vm5305_vm15, %v8371_v25, %v5302_v3  ;;  %v5309_v55 = vmul.f32 %v8373_v17, %v5308_v51 }
 0xa16   : > { %v5367_v8 = vmul.f32 %v5306_v37, %v5175_v41  ;;  %v5146_v25 = vmul.f32 %v5050_v35, %v5050_v35  ;;  %v5178_v22 = vsub.f32 %v11961_v50, %v5050_v35 }
 0xa17   : > { %v5310_v32 = vmul.f32 0.5, %v5309_v55 }
 0xa18   : > { %v5386_v30 = vmul.f32 %v12002_v34, %v5367_v8 }
 0xa19   : > { %v5033_v7 = vpop.xlane.xlu0 %5032  ;;  %v5311_v57 = vsub.f32 1.5, %v5310_v32 }
 0xa1a   : > { %v8375_v49 = vpop.eup %8374  ;;  %v12152_v24 = vadd.f32 %v12009_v36, %v5386_v30  ;;  %v5051_v62 = vmul.f32 %v5033_v7, %v13038_v48 }
 0xa1b   : > { %v5318_v18 = vmul.f32 %v8375_v49, %v5193_v13  ;;  %v5312_v20 = vmul.f32 %v8373_v17, %v5311_v57  ;;  %vm5324_vm5 = vweird.f32 %v8375_v49 }
 0xa1c   : > { %5421 = vst.msk [vmem:[#allocation2 + $0x50] sm:$0xff] %vm1157_vm2, %v12152_v24  ;;  %vm5325_vm7 = vmor %vm5323_vm6, %vm5324_vm5  ;;  %v5147_v54 = vmul.f32 %v5051_v62, %v5051_v62 }
 0xa1d   : > { %v5319_v39 = vmul.f32 %v8375_v49, %v5318_v18  ;;  %v5316_v16 = vsel %vm5315_vm4, %v8373_v17, %v5312_v20 }
 0xa1e   : > { %v5368_v9 = vmul.f32 %v5316_v16, %v5176_v15 }
 0xa1f   : > { %v5320_v14 = vmul.f32 0.5, %v5319_v39 }
 0xa20   : > { %v5387_v11 = vmul.f32 %v12002_v34, %v5368_v9 }
 0xa21   : > { %v5321_v12 = vsub.f32 1.5, %v5320_v14  ;;  %v5110_v21 = vpop.xlane.xlu0 %5109  ;;  %v5036_v23 = vpop.xlane.xlu1 %5035 }
 0xa22   : > { %v5130_v60 = vmul.f32 %v5110_v21, %v13038_v48  ;;  %v5052_v5 = vmul.f32 %v5036_v23, %v13038_v48  ;;  %v12163_v59 = vadd.f32 %v12009_v36, %v5387_v11 }
 0xa23   : > { %v5322_v28 = vmul.f32 %v8375_v49, %v5321_v12  ;;  %v5116_v53 = vpop.xlane.xlu2 %5115 }
 0xa24   : > { %v5162_v45 = vsub.f32 %v5130_v60, %v5146_v25  ;;  %v5148_v2 = vmul.f32 %v5052_v5, %v5052_v5  ;;  %v5132_v52 = vmul.f32 %v5116_v53, %v13038_v48  ;;  %5422 = vst.msk [vmem:[#allocation2 + $0x58] sm:$0xff] %vm1157_vm2, %v12163_v59  ;;  %v5180_v9 = vsub.f32 %v11976_v38, %v5052_v5 }
 0xa25   : > { %v5326_v58 = vsel %vm5325_vm7, %v8375_v49, %v5322_v28  ;;  %v5179_v60 = vsub.f32 %v11967_v43, %v5051_v62 }
 0xa26   : > { %v5369_v47 = vmul.f32 %v5326_v58, %v5177_v26  ;;  %v5194_v29 = vadd.f32 1e-05, %v5162_v45  ;;  %v5164_v6 = vsub.f32 %v5132_v52, %v5148_v2 }
 0xa28   : > { %v5388_v56 = vmul.f32 %v12002_v34, %v5369_v47  ;;  %8376 = vrsqrt.f32 %v5194_v29  ;;  %v5196_v31 = vadd.f32 1e-05, %v5164_v6  ;;  %vm5333_vm9 = vweird.f32 %v5194_v29 }
 0xa29   : > { %v5113_v44 = vpop.xlane.xlu1 %5112 }
 0xa2a   : > { %v12173_v46 = vadd.f32 %v12009_v36, %v5388_v56  ;;  %8378 = vrsqrt.f32 %v5196_v31  ;;  %v5131_v42 = vmul.f32 %v5113_v44, %v13038_v48  ;;  %vm5353_vm12 = vweird.f32 %v5196_v31 }
 0xa2c   : > { %5423 = vst.msk [vmem:[#allocation2 + $0x60] sm:$0xff] %vm1157_vm2, %v12173_v46  ;;  %v5163_v13 = vsub.f32 %v5131_v42, %v5147_v54 }
 0xa2e   : > { %v8377_v17 = vpop.eup %8376  ;;  %v5195_v3 = vadd.f32 1e-05, %v5163_v13 }
 0xa2f   : > { %v5328_v41 = vmul.f32 %v8377_v17, %v5194_v29  ;;  %vm5334_vm8 = vweird.f32 %v8377_v17 }
 0xa30   : > { %v8379_v51 = vpop.eup %8378  ;;  %8380 = vrsqrt.f32 %v5195_v3  ;;  %vm5335_vm11 = vmor %vm5333_vm9, %vm5334_vm8  ;;  %vm5343_vm15 = vweird.f32 %v5195_v3 }
 0xa31   : > { %v5329_v37 = vmul.f32 %v8377_v17, %v5328_v41  ;;  %v5348_v8 = vmul.f32 %v8379_v51, %v5196_v31  ;;  %vm5354_vm10 = vweird.f32 %v8379_v51 }
 0xa32   : > { %vm5355_vm13 = vmor %vm5353_vm12, %vm5354_vm10 }
 0xa33   : > { %v5330_v55 = vmul.f32 0.5, %v5329_v37  ;;  %v5349_v30 = vmul.f32 %v8379_v51, %v5348_v8 }
 0xa35   : > { %v5331_v32 = vsub.f32 1.5, %v5330_v55  ;;  %v5350_v7 = vmul.f32 0.5, %v5349_v30 }
 0xa36   : > { %v8381_v49 = vpop.eup %8380 }
 0xa37   : > { %v5332_v57 = vmul.f32 %v8377_v17, %v5331_v32  ;;  %v5351_v48 = vsub.f32 1.5, %v5350_v7  ;;  %v5338_v18 = vmul.f32 %v8381_v49, %v5195_v3  ;;  %vm5344_vm14 = vweird.f32 %v8381_v49 }
 0xa38   : > { %vm5345_vm0 = vmor %vm5343_vm15, %vm5344_vm14 }
 0xa39   : > { %v5336_v20 = vsel %vm5335_vm11, %v8377_v17, %v5332_v57  ;;  %v5352_v15 = vmul.f32 %v8379_v51, %v5351_v48  ;;  %v5339_v39 = vmul.f32 %v8381_v49, %v5338_v18 }
 0xa3a   : > { %v5370_v16 = vmul.f32 %v5336_v20, %v5178_v22 }
 0xa3b   : > { %v5356_v14 = vsel %vm5355_vm13, %v8379_v51, %v5352_v15  ;;  %v5340_v11 = vmul.f32 0.5, %v5339_v39 }
 0xa3c   : > { %v5389_v12 = vmul.f32 %v12002_v34, %v5370_v16  ;;  %v5372_v21 = vmul.f32 %v5356_v14, %v5180_v9 }
 0xa3d   : > { %v5341_v23 = vsub.f32 1.5, %v5340_v11 }
 0xa3e   : > { %v12182_v25 = vadd.f32 %v12009_v36, %v5389_v12  ;;  %v5391_v50 = vmul.f32 %v12002_v34, %v5372_v21 }
 0xa3f   : > { %v5342_v35 = vmul.f32 %v8381_v49, %v5341_v23 }
 0xa40   : > { %5424 = vst.msk [vmem:[#allocation2 + $0x68] sm:$0xff] %vm1157_vm2, %v12182_v25  ;;  %v12189_v38 = vadd.f32 %v12009_v36, %v5391_v50 }
 0xa41   : > { %v5346_v5 = vsel %vm5345_vm0, %v8381_v49, %v5342_v35 }
 0xa42   : > { %5426 = vst.msk [vmem:[#allocation2 + $0x78] sm:$0xff] %vm1157_vm2, %v12189_v38  ;;  %v5371_v28 = vmul.f32 %v5346_v5, %v5179_v60 }
 0xa44   : > { %v5390_v53 = vmul.f32 %v12002_v34, %v5371_v28  ;;  %5430 = sbr.rel (%p8079_p5) target bundleno = 3290 (0xcda), region = 111 }
 0xa46   : > { %v12195_v26 = vadd.f32 %v12009_v36, %v5390_v53 }
 0xa48   : > { %5425 = vst.msk [vmem:[#allocation2 + $0x70] sm:$0xff] %vm1157_vm2, %v12195_v26 }
 0xa49   : > { %8434 = dma.done.wait [#allocation4], 24576 }
 0xa4a   : > { %8435 = vsyncadd [#allocation4], 4294942720  ;;  %v5453_v43 = vrot.slane %v12019_v0, 1  ;;  %vm5454_vm3 = vcmask 1041409   ;;  %v5510_v45 = vrot.slane %v12074_v19, 7  ;;  %v5456_v2 = vrot.slane %v12130_v10, 7 }
 0xa4b   : > { %vm5457_vm4 = vcmask 1042434   ;;  %v5512_v36 = vrot.slane %v12130_v10, 6  ;;  %v5459_v52 = vrot.slane %v12173_v46, 6  ;;  %v5447_v47 = vld [vmem:[#allocation3 + $0x490] sm:$0x1]  ;;  %v5445_v56 = vld [vmem:[#allocation3 + $0x108] sm:$0xff] }
 0xa4c   : > { %v5455_v34 = vsel %vm5454_vm3, %v12074_v19, %v5453_v43  ;;  %v5511_v58 = vsel %vm5454_vm3, %v5510_v45, %v12019_v0  ;;  %v5448_v62 = vld [vmem:[#allocation3 + $0x318] sm:$0x1]  ;;  %v5440_v29 = vld [vmem:[#allocation3 + $0x450] sm:$0x1]  ;;  %8080 = vmatpush.msk.msra.mxu0 %vm1206_vm1, %v5447_v47  ;;  %v5441_v6 = vld [vmem:[#allocation3 + $0x328] sm:$0x1] }
 0xa4d   : > { %8082 = vmatpush.msk.msra.mxu1 %vm1206_vm1, %v5448_v62  ;;  %v5446_v31 = vld [vmem:[#allocation3 + $0x510] sm:$0xff]  ;;  %v5458_v44 = vsel %vm5457_vm4, %v5456_v2, %v5455_v34  ;;  %vm5460_vm5 = vcmask 1043459   ;;  %v5514_v54 = vrot.slane %v12173_v46, 5  ;;  %8084 = vmatpush.msk.msra.mxu2 %vm1206_vm1, %v5440_v29  ;;  %v5438_v42 = vld [vmem:[#allocation3 + $0x4d8] sm:$0xff]  ;;  %v5443_v17 = vld [vmem:[#allocation3 + $0x440] sm:$0xff]  ;;  %v5513_v3 = vsel %vm5457_vm4, %v5512_v36, %v5511_v58  ;;  %s13040_s5 = sld [smem:[#allocation197_spill]] }
 0xa4e   : > { %8086 = vmatpush.msk.msra.mxu3 %vm1206_vm1, %v5441_v6  ;;  %v5439_v13 = vld [vmem:[#allocation3 + $0x18] sm:$0xff]  ;;  %v5571_v41 = vrot.slane %v12019_v0, 2  ;;  %v5572_v51 = vrot.slane %v12074_v19, 1  ;;  %5484 = vmatpush.msra.mxu0 %v5445_v56  ;;  %v5436_v8 = vld [vmem:[#allocation3 + $0x2b0] sm:$0xff]  ;;  %v5634_v30 = vrot.slane %v12019_v0, 3  ;;  %v5635_v32 = vrot.slane %v12074_v19, 2 }
 0xa4f   : > { %5504 = vmatpush.msra.mxu1 %v5446_v31  ;;  %v5444_v37 = vld [vmem:[#allocation3 + $0x378] sm:$0xff]  ;;  %v5437_v55 = vld [vmem:[#allocation3 + $0x3b0] sm:$0xff]  ;;  %5538 = vmatpush.msra.mxu2 %v5438_v42  ;;  %v5461_v7 = vsel %vm5460_vm5, %v5459_v52, %v5458_v44  ;;  %v5515_v49 = vsel %vm5460_vm5, %v5514_v54, %v5513_v3  ;;  %v5632_v57 = vld [vmem:[#allocation3 + $0x8] sm:$0x1]  ;;  %v5637_v22 = vrot.slane %v12130_v10, 1  ;;  %v5575_v14 = vrot.slane %v12173_v46, 7 }
 0xa50   : > { %5558 = vmatpush.msra.mxu3 %v5439_v13  ;;  %5485 = vmatpush.msra.mxu0 %v5443_v17  ;;  %v5633_v48 = vld [vmem:[#allocation3 + $0x188] sm:$0x1]  ;;  %v5573_v18 = vsel %vm5454_vm3, %v5572_v51, %v5571_v41  ;;  %v5569_v20 = vld [vmem:[#allocation3 + $0x580] sm:$0x1]  ;;  %v5570_v15 = vld [vmem:[#allocation3 + $0x590] sm:$0x1]  ;;  %v5636_v39 = vsel %vm5454_vm3, %v5635_v32, %v5634_v30 }
 0xa51   : > { %5505 = vmatpush.msra.mxu1 %v5444_v37  ;;  %5539 = vmatpush.msra.mxu2 %v5436_v8  ;;  %v5630_v16 = vld [vmem:[#allocation3 + $0x330] sm:$0xff]  ;;  %v5631_v9 = vld [vmem:[#allocation3 + $0x100] sm:$0xff]  ;;  %v5567_v11 = vld [vmem:[#allocation3 + $0x58] sm:$0xff]  ;;  %v5574_v21 = vsel %vm5457_vm4, %v12130_v10, %v5573_v18  ;;  %v5638_v35 = vsel %vm5457_vm4, %v5637_v22, %v5636_v39  ;;  %v5697_v60 = vrot.slane %v12019_v0, 4  ;;  %v5698_v5 = vrot.slane %v12074_v19, 3  ;;  %s13041_s21 = sld [smem:[#allocation196_spill]] }
 0xa52   : > { %5559 = vmatpush.msra.mxu3 %v5437_v55  ;;  %8081 = vmatmul.msk.f32.vlgmr.msra.gmra.mxu0 %vm1157_vm2, %v5461_v7  ;;  %v5568_v12 = vld [vmem:[#allocation3 + $0x2b8] sm:$0xff]  ;;  %v5628_v23 = vld [vmem:[#allocation3 + $0x540] sm:$0xff]  ;;  %v5565_v28 = vld [vmem:[#allocation3 + $0x548] sm:$0xff]  ;;  %v5761_v43 = vrot.slane %v12019_v0, 5  ;;  %v5762_v45 = vrot.slane %v12074_v19, 4  ;;  %v5576_v2 = vsel %vm5460_vm5, %v5575_v14, %v5574_v21  ;;  %v5639_v34 = vsel %vm5460_vm5, %v12173_v46, %v5638_v35  ;;  %s13042_s22 = sld [smem:[#allocation198_spill]] }
 0xa53   : > { %8083 = vmatmul.msk.f32.vlgmr.msra.gmra.mxu1 %vm1157_vm2, %v5461_v7  ;;  %8085 = vmatmul.msk.f32.vlgmr.msra.gmra.mxu2 %vm1157_vm2, %v5515_v49  ;;  %v5629_v50 = vld [vmem:[#allocation3 + $0x3c0] sm:$0xff]  ;;  %v5700_v36 = vrot.slane %v12130_v10, 2  ;;  %v5760_v58 = vld [vmem:[#allocation3 + $0x570] sm:$0x1]  ;;  %v5699_v47 = vsel %vm5454_vm3, %v5698_v5, %v5697_v60  ;;  %v5764_v62 = vrot.slane %v12130_v10, 3  ;;  %v5757_v31 = vld [vmem:[#allocation3 + $0x98] sm:$0xff] }
 0xa54   : > { %8087 = vmatmul.msk.f32.vlgmr.msra.gmra.mxu3 %vm1157_vm2, %v5515_v49  ;;  %8092 = vmatpush.msk.msrb.mxu2 %vm1206_vm1, %v5632_v57  ;;  %v5566_v53 = vld [vmem:[#allocation3 + $0x500] sm:$0xff]  ;;  %v5695_v29 = vld [vmem:[#allocation3 + $0x3a8] sm:$0x1]  ;;  %v5763_v56 = vsel %vm5454_vm3, %v5762_v45, %v5761_v43  ;;  %v5758_v44 = vld [vmem:[#allocation3 + $0xb0] sm:$0xff]  ;;  %v5702_v54 = vrot.slane %v12173_v46, 1  ;;  %v5766_v3 = vrot.slane %v12173_v46, 2 }
 0xa55   : > { %8094 = vmatpush.msk.msrb.mxu3 %vm1206_vm1, %v5633_v48  ;;  %8088 = vmatpush.msk.msrb.mxu0 %vm1206_vm1, %v5569_v20  ;;  %v5759_v52 = vld [vmem:[#allocation3 + $0x2a0] sm:$0x1]  ;;  %v5693_v42 = vld [vmem:[#allocation3 + $0x388] sm:$0xff]  ;;  %v5701_v17 = vsel %vm5457_vm4, %v5700_v36, %v5699_v47  ;;  %v5756_v51 = vld [vmem:[#allocation3 + $0x4d0] sm:$0xff]  ;;  %v5765_v37 = vsel %vm5457_vm4, %v5764_v62, %v5763_v56  ;;  %v5825_v8 = vrot.slane %v12019_v0, 6  ;;  %v5826_v55 = vrot.slane %v12074_v19, 5 }
 0xa56   : > { %8090 = vmatpush.msk.msrb.mxu1 %vm1206_vm1, %v5570_v15  ;;  %5662 = vmatpush.msrb.mxu2 %v5630_v16  ;;  %v5696_v6 = vld [vmem:[#allocation3 + $0x5e0] sm:$0x1]  ;;  %v5755_v41 = vld [vmem:[#allocation3 + $0x488] sm:$0xff]  ;;  %v5889_v7 = vrot.slane %v12019_v0, 7  ;;  %v5890_v49 = vrot.slane %v12074_v19, 6  ;;  %v5703_v57 = vsel %vm5460_vm5, %v5702_v54, %v5701_v17  ;;  %v5767_v48 = vsel %vm5460_vm5, %v5766_v3, %v5765_v37  ;;  %v6017_v56 = vld [vmem:[#allocation3 + $0x4f8] sm:$0xff] }
 0xa57   : > { %5682 = vmatpush.msrb.mxu3 %v5631_v9  ;;  %5599 = vmatpush.msrb.mxu0 %v5567_v11  ;;  %v5694_v13 = vld [vmem:[#allocation3 + $0x520] sm:$0xff]  ;;  %v5691_v30 = vld [vmem:[#allocation3 + $0x248] sm:$0xff]  ;;  %v5828_v18 = vrot.slane %v12130_v10, 4  ;;  %v5827_v15 = vsel %vm5454_vm3, %v5826_v55, %v5825_v8  ;;  %v5892_v0 = vrot.slane %v12130_v10, 5  ;;  %v5823_v19 = vld [vmem:[#allocation3 + $0x1f8] sm:$0x1] }
 0xa58   : > { %5619 = vmatpush.msrb.mxu1 %v5568_v12  ;;  %5663 = vmatpush.msrb.mxu2 %v5628_v23  ;;  %v5692_v32 = vld [vmem:[#allocation3 + $0xc8] sm:$0xff]  ;;  %v5888_v20 = vld [vmem:[#allocation3 + $0x3e0] sm:$0x1]  ;;  %v5824_v39 = vld [vmem:[#allocation3 + $0x2f0] sm:$0x1]  ;;  %v5891_v16 = vsel %vm5454_vm3, %v5890_v49, %v5889_v7  ;;  %v5830_v11 = vrot.slane %v12173_v46, 3 }
 0xa59   : > { %5683 = vmatpush.msrb.mxu3 %v5629_v50  ;;  %5600 = vmatpush.msrb.mxu0 %v5565_v28  ;;  %v5887_v22 = vld [vmem:[#allocation3 + $0x2a8] sm:$0x1]  ;;  %v5885_v9 = vld [vmem:[#allocation3 + $0x338] sm:$0xff]  ;;  %v5886_v14 = vld [vmem:[#allocation3 + $0x480] sm:$0xff]  ;;  %v5829_v21 = vsel %vm5457_vm4, %v5828_v18, %v5827_v15  ;;  %v5894_v23 = vrot.slane %v12173_v46, 4  ;;  %v5893_v60 = vsel %vm5457_vm4, %v5892_v0, %v5891_v16  ;;  %v5957_v5 = vrot.slane %v12088_v33, 7 }
 0xa5a   : > { %5620 = vmatpush.msrb.mxu1 %v5566_v53  ;;  %8089 = vmatmul.msk.f32.vlgmr.msrb.gmra.mxu0 %vm1157_vm2, %v5576_v2  ;;  %v5821_v10 = vld [vmem:[#allocation3 + $0x4c8] sm:$0xff]  ;;  %v5884_v35 = vld [vmem:[#allocation3 + $0x5c0] sm:$0xff]  ;;  %v5819_v28 = vld [vmem:[#allocation3 + $0x598] sm:$0xff]  ;;  %v6020_v43 = vrot.slane %v12032_v61, 1  ;;  %v5831_v46 = vsel %vm5460_vm5, %v5830_v11, %v5829_v21  ;;  %v6084_v37 = vrot.slane %v12088_v33, 1  ;;  %v6087_v16 = vrot.slane %v12182_v25, 7 }
 0xa5b   : > { %8091 = vmatmul.msk.f32.vlgmr.msrb.gmra.mxu1 %vm1157_vm2, %v5576_v2  ;;  %8093 = vmatmul.msk.f32.vlgmr.msrb.gmra.mxu2 %vm1157_vm2, %v5639_v34  ;;  %v5822_v12 = vld [vmem:[#allocation3 + $0x5e8] sm:$0xff]  ;;  %v5895_v45 = vsel %vm5460_vm5, %v5894_v23, %v5893_v60  ;;  %v5959_v2 = vrot.slane %v12144_v27, 6  ;;  %v6019_v36 = vld [vmem:[#allocation3 + $0x370] sm:$0x1]  ;;  %v5952_v62 = vld [vmem:[#allocation3 + $0x120] sm:$0x1] }
 0xa5c   : > { %8095 = vmatmul.msk.f32.vlgmr.msrb.gmra.mxu3 %vm1157_vm2, %v5639_v34  ;;  %8100 = vmatpush.msk.msra.mxu2 %vm1206_vm1, %v5759_v52  ;;  %v5883_v50 = vld [vmem:[#allocation3 + $0x3c8] sm:$0xff]  ;;  %v5958_v52 = vsel %vm5454_vm3, %v5957_v5, %v12032_v61  ;;  %v5950_v54 = vld [vmem:[#allocation3 + $0xf8] sm:$0xff]  ;;  %v5948_v55 = vld [vmem:[#allocation3 + $0x4b0] sm:$0xff]  ;;  %v6209_v23 = vrot.slane %v12032_v61, 4  ;;  %v6273_v5 = vrot.slane %v12032_v61, 5 }
 0xa5d   : > { %8102 = vmatpush.msk.msra.mxu3 %vm1206_vm1, %v5760_v58  ;;  %8096 = vmatpush.msk.msra.mxu0 %vm1206_vm1, %v5695_v29  ;;  %v5820_v53 = vld [vmem:[#allocation3 + $0x5a8] sm:$0xff]  ;;  %v6022_v58 = vrot.slane %v12144_v27, 7  ;;  %v6021_v29 = vsel %vm5454_vm3, %v12088_v33, %v6020_v43  ;;  %v6014_v17 = vld [vmem:[#allocation3 + $0x2f8] sm:$0xff]  ;;  %v6082_v15 = vld [vmem:[#allocation3 + $0x260] sm:$0x1] }
 0xa5e   : > { %8098 = vmatpush.msk.msra.mxu1 %vm1206_vm1, %v5696_v6  ;;  %5790 = vmatpush.msra.mxu2 %v5757_v31  ;;  %v6018_v34 = vld [vmem:[#allocation3 + $0x2e8] sm:$0x1]  ;;  %v6016_v6 = vld [vmem:[#allocation3 + $0x560] sm:$0xff]  ;;  %v5961_v31 = vrot.slane %v12182_v25, 5  ;;  %v5947_v8 = vld [vmem:[#allocation3 + $0x3d8] sm:$0xff] }
 0xa5f   : > { %5810 = vmatpush.msra.mxu3 %v5758_v44  ;;  %5726 = vmatpush.msra.mxu0 %v5693_v42  ;;  %v5951_v47 = vld [vmem:[#allocation3 + $0x4e8] sm:$0x1]  ;;  %v5960_v42 = vsel %vm5457_vm4, %v5959_v2, %v5958_v52  ;;  %v6272_v2 = vld [vmem:[#allocation3 + $0x360] sm:$0x1] }
 0xa60   : > { %5746 = vmatpush.msra.mxu1 %v5694_v13  ;;  %5791 = vmatpush.msra.mxu2 %v5755_v41  ;;  %v5949_v44 = vld [vmem:[#allocation3 + $0x28] sm:$0xff]  ;;  %v6024_v13 = vrot.slane %v12182_v25, 6  ;;  %v6023_v41 = vsel %vm5457_vm4, %v6022_v58, %v6021_v29  ;;  %v5962_v7 = vsel %vm5460_vm5, %v5961_v31, %v5960_v42  ;;  %v6207_v52 = vld [vmem:[#allocation3 + $0x40] sm:$0x1]  ;;  %v6206_v31 = vld [vmem:[#allocation3 + $0x258] sm:$0xff] }
 0xa61   : > { %5811 = vmatpush.msra.mxu3 %v5756_v51  ;;  %5727 = vmatpush.msra.mxu0 %v5691_v30  ;;  %v6015_v3 = vld [vmem:[#allocation3 + $0x268] sm:$0xff]  ;;  %v6083_v51 = vrot.slane %v12032_v61, 2  ;;  %v6146_v30 = vrot.slane %v12032_v61, 3  ;;  %v6208_v58 = vld [vmem:[#allocation3 + $0x4e0] sm:$0x1]  ;;  %v6267_v42 = vld [vmem:[#allocation3 + $0x198] sm:$0xff] }
 0xa62   : > { %5747 = vmatpush.msra.mxu1 %v5692_v32  ;;  %8097 = vmatmul.msk.f32.vlgmr.msra.gmra.mxu0 %vm1157_vm2, %v5703_v57  ;;  %v6147_v32 = vrot.slane %v12088_v33, 2  ;;  %v6025_v49 = vsel %vm5460_vm5, %v6024_v13, %v6023_v41  ;;  %v6078_v60 = vld [vmem:[#allocation3 + $0x308] sm:$0xff]  ;;  %v6268_v13 = vld [vmem:[#allocation3 + $0x550] sm:$0xff]  ;;  %v6338_v41 = vrot.slane %v12088_v33, 5 }
 0xa63   : > { %8099 = vmatmul.msk.f32.vlgmr.msra.gmra.mxu1 %vm1157_vm2, %v5703_v57  ;;  %8101 = vmatmul.msk.f32.vlgmr.msra.gmra.mxu2 %vm1157_vm2, %v5767_v48  ;;  %v6144_v57 = vld [vmem:[#allocation3 + $0x80] sm:$0x1]  ;;  %v6085_v18 = vsel %vm5454_vm3, %v6084_v37, %v6083_v51  ;;  %v6270_v29 = vld [vmem:[#allocation3 + $0x5c8] sm:$0xff]  ;;  %v6203_v51 = vld [vmem:[#allocation3 + $0x4b8] sm:$0xff] }
 0xa64   : > { %8103 = vmatmul.msk.f32.vlgmr.msra.gmra.mxu3 %vm1157_vm2, %v5767_v48  ;;  %8108 = vmatpush.msk.msrb.mxu2 %vm1206_vm1, %v5887_v22  ;;  %v6145_v48 = vld [vmem:[#allocation3 + $0x5a0] sm:$0x1]  ;;  %v6149_v22 = vrot.slane %v12144_v27, 1  ;;  %v6148_v0 = vsel %vm5454_vm3, %v6147_v32, %v6146_v30  ;;  %v6086_v11 = vsel %vm5457_vm4, %v12144_v27, %v6085_v18  ;;  %v6204_v37 = vld [vmem:[#allocation3 + $0x310] sm:$0xff]  ;;  %v6336_v18 = vld [vmem:[#allocation3 + $0x2c8] sm:$0x1] }
 0xa65   : > { %8110 = vmatpush.msk.msrb.mxu3 %vm1206_vm1, %v5888_v20  ;;  %8104 = vmatpush.msk.msrb.mxu0 %vm1206_vm1, %v5823_v19  ;;  %v6081_v20 = vld [vmem:[#allocation3 + $0x5d0] sm:$0x1]  ;;  %v6142_v19 = vld [vmem:[#allocation3 + $0x60] sm:$0xff] }
 0xa66   : > { %8106 = vmatpush.msk.msrb.mxu1 %vm1206_vm1, %v5824_v39  ;;  %5918 = vmatpush.msrb.mxu2 %v5885_v9  ;;  %v6143_v39 = vld [vmem:[#allocation3 + $0x200] sm:$0xff]  ;;  %v6079_v9 = vld [vmem:[#allocation3 + $0x528] sm:$0xff]  ;;  %v6150_v21 = vsel %vm5457_vm4, %v6149_v22, %v6148_v0  ;;  %v6342_v0 = vrot.slane %v12182_v25, 3 }
 0xa67   : > { %5938 = vmatpush.msrb.mxu3 %v5886_v14  ;;  %5854 = vmatpush.msrb.mxu0 %v5821_v10  ;;  %v6080_v14 = vld [vmem:[#allocation3 + $0x1c0] sm:$0xff]  ;;  %v6140_v10 = vld [vmem:[#allocation3 + $0x438] sm:$0xff]  ;;  %v6151_v43 = vsel %vm5460_vm5, %v12182_v25, %v6150_v21  ;;  %v6332_v21 = vld [vmem:[#allocation3 + $0x530] sm:$0xff] }
 0xa68   : > { %5874 = vmatpush.msrb.mxu1 %v5822_v12  ;;  %5919 = vmatpush.msrb.mxu2 %v5883_v50  ;;  %v6141_v12 = vld [vmem:[#allocation3 + $0xf0] sm:$0xff]  ;;  %v6210_v50 = vrot.slane %v12088_v33, 3 }
 0xa69   : > { %5939 = vmatpush.msrb.mxu3 %v5884_v35  ;;  %5855 = vmatpush.msrb.mxu0 %v5819_v28  ;;  %v6077_v35 = vld [vmem:[#allocation3 + $0x138] sm:$0xff]  ;;  %v6274_v28 = vrot.slane %v12088_v33, 4 }
 0xa6a   : > { %5875 = vmatpush.msrb.mxu1 %v5820_v53  ;;  %8105 = vmatmul.msk.f32.vlgmr.msrb.gmra.mxu0 %vm1157_vm2, %v5831_v46  ;;  %v6088_v53 = vsel %vm5460_vm5, %v6087_v16, %v6086_v11  ;;  %v6406_v16 = vrot.slane %v12182_v25, 4 }
 0xa6b   : > { %8107 = vmatmul.msk.f32.vlgmr.msrb.gmra.mxu1 %vm1157_vm2, %v5831_v46  ;;  %8109 = vmatmul.msk.f32.vlgmr.msrb.gmra.mxu2 %vm1157_vm2, %v5895_v45  ;;  %v6212_v46 = vrot.slane %v12144_v27, 2 }
 0xa6c   : > { %8111 = vmatmul.msk.f32.vlgmr.msrb.gmra.mxu3 %vm1157_vm2, %v5895_v45  ;;  %8116 = vmatpush.msk.msra.mxu2 %vm1206_vm1, %v6018_v34  ;;  %v6271_v45 = vld [vmem:[#allocation3 + $0x340] sm:$0x1]  ;;  %v6211_v34 = vsel %vm5454_vm3, %v6210_v50, %v6209_v23  ;;  %v6532_v23 = vrot.slane %v12046_v63, 1 }
 0xa6d   : > { %8118 = vmatpush.msk.msra.mxu3 %vm1206_vm1, %v6019_v36  ;;  %8112 = vmatpush.msk.msra.mxu0 %vm1206_vm1, %v5951_v47  ;;  %v6276_v36 = vrot.slane %v12144_v27, 3  ;;  %v6275_v47 = vsel %vm5454_vm3, %v6274_v28, %v6273_v5  ;;  %v6531_v5 = vld [vmem:[#allocation3 + $0x228] sm:$0x1] }
 0xa6e   : > { %8114 = vmatpush.msk.msra.mxu1 %vm1206_vm1, %v5952_v62  ;;  %6048 = vmatpush.msra.mxu2 %v6016_v6  ;;  %v6269_v62 = vld [vmem:[#allocation3 + $0x418] sm:$0xff]  ;;  %v6214_v6 = vrot.slane %v12182_v25, 1 }
 0xa6f   : > { %6068 = vmatpush.msra.mxu3 %v6017_v56  ;;  %5985 = vmatpush.msra.mxu0 %v5949_v44  ;;  %v6205_v56 = vld [vmem:[#allocation3 + $0x1e8] sm:$0xff]  ;;  %v6213_v44 = vsel %vm5457_vm4, %v6212_v46, %v6211_v34  ;;  %v6464_v46 = vld [vmem:[#allocation3 + $0x160] sm:$0x1]  ;;  %v6529_v34 = vld [vmem:[#allocation3 + $0x390] sm:$0xff] }
 0xa70   : > { %6005 = vmatpush.msra.mxu1 %v5950_v54  ;;  %6049 = vmatpush.msra.mxu2 %v6014_v17  ;;  %v6278_v54 = vrot.slane %v12182_v25, 2  ;;  %v6277_v17 = vsel %vm5457_vm4, %v6276_v36, %v6275_v47  ;;  %v6215_v30 = vsel %vm5460_vm5, %v6214_v6, %v6213_v44  ;;  %v6473_v36 = vrot.slane %v12195_v26, 5  ;;  %v6527_v6 = vld [vmem:[#allocation3 + $0x538] sm:$0xff] }
 0xa71   : > { %6069 = vmatpush.msra.mxu3 %v6015_v3  ;;  %5986 = vmatpush.msra.mxu0 %v5947_v8  ;;  %v6337_v3 = vrot.slane %v12032_v61, 6  ;;  %v6401_v8 = vrot.slane %v12032_v61, 7  ;;  %v6404_v61 = vrot.slane %v12144_v27, 5  ;;  %v6596_v44 = vrot.slane %v12102_v40, 1 }
 0xa72   : > { %6006 = vmatpush.msra.mxu1 %v5948_v55  ;;  %8113 = vmatmul.msk.f32.vlgmr.msra.gmra.mxu0 %vm1157_vm2, %v5962_v7  ;;  %v6402_v55 = vrot.slane %v12088_v33, 6  ;;  %v6279_v32 = vsel %vm5460_vm5, %v6278_v54, %v6277_v17  ;;  %v6335_v33 = vld [vmem:[#allocation3 + $0x460] sm:$0x1]  ;;  %v6459_v54 = vld [vmem:[#allocation3 + $0x458] sm:$0xff]  ;;  %v6659_v17 = vrot.slane %v12102_v40, 2 }
 0xa73   : > { %8115 = vmatmul.msk.f32.vlgmr.msra.gmra.mxu1 %vm1157_vm2, %v5962_v7  ;;  %8117 = vmatmul.msk.f32.vlgmr.msra.gmra.mxu2 %vm1157_vm2, %v6025_v49  ;;  %v6340_v7 = vrot.slane %v12144_v27, 4  ;;  %v6333_v27 = vld [vmem:[#allocation3 + $0x1f0] sm:$0xff] }
 0xa74   : > { %8119 = vmatmul.msk.f32.vlgmr.msra.gmra.mxu3 %vm1157_vm2, %v6025_v49  ;;  %8124 = vmatpush.msk.msrb.mxu2 %vm1206_vm1, %v6144_v57  ;;  %v6399_v49 = vld [vmem:[#allocation3 + $0x468] sm:$0x1]  ;;  %v6400_v57 = vld [vmem:[#allocation3 + $0x278] sm:$0x1]  ;;  %v6403_v22 = vsel %vm5454_vm3, %v6402_v55, %v6401_v8  ;;  %v6661_v55 = vrot.slane %v12152_v24, 1 }
 0xa75   : > { %8126 = vmatpush.msk.msrb.mxu3 %vm1206_vm1, %v6145_v48  ;;  %8120 = vmatpush.msk.msrb.mxu0 %vm1206_vm1, %v6081_v20  ;;  %v6339_v48 = vsel %vm5454_vm3, %v6338_v41, %v6337_v3  ;;  %v6397_v20 = vld [vmem:[#allocation3 + $0x50] sm:$0xff]  ;;  %v6405_v11 = vsel %vm5457_vm4, %v6404_v61, %v6403_v22  ;;  %v6591_v61 = vld [vmem:[#allocation3 + $0xd8] sm:$0xff]  ;;  %v6652_v22 = vld [vmem:[#allocation3 + $0x208] sm:$0xff] }
 0xa76   : > { %8122 = vmatpush.msk.msrb.mxu1 %vm1206_vm1, %v6082_v15  ;;  %6174 = vmatpush.msrb.mxu2 %v6142_v19  ;;  %v6398_v15 = vld [vmem:[#allocation3 + $0x4a0] sm:$0xff]  ;;  %v6407_v50 = vsel %vm5460_vm5, %v6406_v16, %v6405_v11  ;;  %v6785_v16 = vrot.slane %v12046_v63, 5 }
 0xa77   : > { %6194 = vmatpush.msrb.mxu3 %v6143_v39  ;;  %6111 = vmatpush.msrb.mxu0 %v6079_v9  ;;  %v6334_v19 = vld [vmem:[#allocation3 + $0x3a0] sm:$0xff]  ;;  %v6341_v39 = vsel %vm5457_vm4, %v6340_v7, %v6339_v48  ;;  %v6395_v9 = vld [vmem:[#allocation3 + $0x1d0] sm:$0xff]  ;;  %v6599_v48 = vrot.slane %v12195_v26, 7 }
 0xa78   : > { %6131 = vmatpush.msrb.mxu1 %v6080_v14  ;;  %6175 = vmatpush.msrb.mxu2 %v6140_v10  ;;  %v6396_v14 = vld [vmem:[#allocation3 + $0x4f0] sm:$0xff]  ;;  %v6469_v10 = vrot.slane %v12102_v40, 7  ;;  %v6343_v25 = vsel %vm5460_vm5, %v6342_v0, %v6341_v39  ;;  %v6721_v0 = vrot.slane %v12046_v63, 4  ;;  %v6590_v39 = vld [vmem:[#allocation3 + $0xc0] sm:$0xff] }
 0xa79   : > { %6195 = vmatpush.msrb.mxu3 %v6141_v12  ;;  %6112 = vmatpush.msrb.mxu0 %v6077_v35  ;;  %v6331_v12 = vld [vmem:[#allocation3 + $0x3b8] sm:$0xff]  ;;  %v6471_v35 = vrot.slane %v12152_v24, 6 }
 0xa7a   : > { %6132 = vmatpush.msrb.mxu1 %v6078_v60  ;;  %8121 = vmatmul.msk.f32.vlgmr.msrb.gmra.mxu0 %vm1157_vm2, %v6088_v53  ;;  %v6530_v60 = vld [vmem:[#allocation3 + $0x2c0] sm:$0x1]  ;;  %v6470_v28 = vsel %vm5454_vm3, %v6469_v10, %v12046_v63  ;;  %v6724_v10 = vrot.slane %v12152_v24, 2 }
 0xa7b   : > { %8123 = vmatmul.msk.f32.vlgmr.msrb.gmra.mxu1 %vm1157_vm2, %v6088_v53  ;;  %8125 = vmatmul.msk.f32.vlgmr.msrb.gmra.mxu2 %vm1157_vm2, %v6151_v43  ;;  %v6534_v53 = vrot.slane %v12152_v24, 7  ;;  %v6472_v47 = vsel %vm5457_vm4, %v6471_v35, %v6470_v28  ;;  %v6720_v35 = vld [vmem:[#allocation3 + $0x2e0] sm:$0x1]  ;;  %v6782_v28 = vld [vmem:[#allocation3 + $0x1a8] sm:$0xff] }
 0xa7c   : > { %8127 = vmatmul.msk.f32.vlgmr.msrb.gmra.mxu3 %vm1157_vm2, %v6151_v43  ;;  %8132 = vmatpush.msk.msra.mxu2 %vm1206_vm1, %v6271_v45  ;;  %v6463_v43 = vld [vmem:[#allocation3 + $0xe8] sm:$0x1]  ;;  %v6533_v45 = vsel %vm5454_vm3, %v12102_v40, %v6532_v23  ;;  %v6474_v3 = vsel %vm5460_vm5, %v6473_v36, %v6472_v47  ;;  %v6850_v47 = vrot.slane %v12102_v40, 5 }
 0xa7d   : > { %8134 = vmatpush.msk.msra.mxu3 %vm1206_vm1, %v6272_v2  ;;  %8128 = vmatpush.msk.msra.mxu0 %vm1206_vm1, %v6207_v52  ;;  %v6528_v2 = vld [vmem:[#allocation3 + $0x1e0] sm:$0xff]  ;;  %v6780_v36 = vld [vmem:[#allocation3 + $0xa8] sm:$0xff] }
 0xa7e   : > { %8130 = vmatpush.msk.msra.mxu1 %vm1206_vm1, %v6208_v58  ;;  %6302 = vmatpush.msra.mxu2 %v6269_v62  ;;  %v6461_v52 = vld [vmem:[#allocation3 + $0x400] sm:$0xff]  ;;  %v6462_v58 = vld [vmem:[#allocation3 + $0x5d8] sm:$0xff]  ;;  %v6536_v62 = vrot.slane %v12195_v26, 6 }
 0xa7f   : > { %6322 = vmatpush.msra.mxu3 %v6270_v29  ;;  %6238 = vmatpush.msra.mxu0 %v6205_v56  ;;  %v6526_v29 = vld [vmem:[#allocation3 + $0x178] sm:$0xff]  ;;  %v6535_v56 = vsel %vm5457_vm4, %v6534_v53, %v6533_v45  ;;  %v6726_v53 = vrot.slane %v12195_v26, 1 }
 0xa80   : > { %6258 = vmatpush.msra.mxu1 %v6206_v31  ;;  %6303 = vmatpush.msra.mxu2 %v6267_v42  ;;  %v6595_v31 = vrot.slane %v12046_v63, 2  ;;  %v6460_v42 = vld [vmem:[#allocation3 + $0x498] sm:$0xff]  ;;  %v6537_v41 = vsel %vm5460_vm5, %v6536_v62, %v6535_v56  ;;  %v6715_v62 = vld [vmem:[#allocation3 + $0x420] sm:$0xff]  ;;  %v6914_v56 = vrot.slane %v12102_v40, 6 }
 0xa81   : > { %6323 = vmatpush.msra.mxu3 %v6268_v13  ;;  %6239 = vmatpush.msra.mxu0 %v6203_v51  ;;  %v6658_v13 = vrot.slane %v12046_v63, 3  ;;  %v6656_v51 = vld [vmem:[#allocation3 + $0x368] sm:$0x1] }
 0xa82   : > { %6259 = vmatpush.msra.mxu1 %v6204_v37  ;;  %8129 = vmatmul.msk.f32.vlgmr.msra.gmra.mxu0 %vm1157_vm2, %v6215_v30  ;;  %v6657_v37 = vld [vmem:[#allocation3 + $0x298] sm:$0x1]  ;;  %v6597_v8 = vsel %vm5454_vm3, %v6596_v44, %v6595_v31 }
 0xa83   : > { %8131 = vmatmul.msk.f32.vlgmr.msra.gmra.mxu1 %vm1157_vm2, %v6215_v30  ;;  %8133 = vmatmul.msk.f32.vlgmr.msra.gmra.mxu2 %vm1157_vm2, %v6279_v32  ;;  %v6593_v30 = vld [vmem:[#allocation3 + $0x30] sm:$0x1]  ;;  %v6660_v7 = vsel %vm5454_vm3, %v6659_v17, %v6658_v13 }
 0xa84   : > { %8135 = vmatmul.msk.f32.vlgmr.msra.gmra.mxu3 %vm1157_vm2, %v6279_v32  ;;  %8140 = vmatpush.msk.msrb.mxu2 %vm1206_vm1, %v6399_v49  ;;  %v6594_v32 = vld [vmem:[#allocation3 + $0x410] sm:$0x1]  ;;  %v6654_v49 = vld [vmem:[#allocation3 + $0x5b8] sm:$0xff] }
 0xa85   : > { %8142 = vmatpush.msk.msrb.mxu3 %vm1206_vm1, %v6400_v57  ;;  %8136 = vmatpush.msk.msrb.mxu0 %vm1206_vm1, %v6335_v33  ;;  %v6655_v57 = vld [vmem:[#allocation3 + $0x218] sm:$0xff]  ;;  %v6592_v33 = vld [vmem:[#allocation3 + $0x428] sm:$0xff]  ;;  %v6912_v13 = vld [vmem:[#allocation3 + $0x70] sm:$0x1] }
 0xa86   : > { %8138 = vmatpush.msk.msrb.mxu1 %vm1206_vm1, %v6336_v18  ;;  %6430 = vmatpush.msrb.mxu2 %v6397_v20  ;;  %v6598_v18 = vsel %vm5457_vm4, %v12152_v24, %v6597_v8  ;;  %v6653_v20 = vld [vmem:[#allocation3 + $0x4a8] sm:$0xff]  ;;  %v6854_v8 = vrot.slane %v12195_v26, 3 }
 0xa87   : > { %6450 = vmatpush.msrb.mxu3 %v6398_v15  ;;  %6366 = vmatpush.msrb.mxu0 %v6333_v27  ;;  %v6662_v15 = vsel %vm5457_vm4, %v6661_v55, %v6660_v7  ;;  %v6722_v27 = vrot.slane %v12102_v40, 3  ;;  %v6846_v55 = vld [vmem:[#allocation3 + $0x240] sm:$0xff]  ;;  %v6907_v7 = vld [vmem:[#allocation3 + $0x148] sm:$0xff] }
 0xa88   : > { %6386 = vmatpush.msrb.mxu1 %v6334_v19  ;;  %6431 = vmatpush.msrb.mxu2 %v6395_v9  ;;  %v6589_v19 = vld [vmem:[#allocation3 + $0x5b0] sm:$0xff]  ;;  %v6786_v9 = vrot.slane %v12102_v40, 4  ;;  %v6663_v11 = vsel %vm5460_vm5, %v12195_v26, %v6662_v15  ;;  %v6847_v40 = vld [vmem:[#allocation3 + $0x280] sm:$0x1]  ;;  %v7042_v15 = vld [vmem:[#allocation3 + $0x3f8] sm:$0x1] }
 0xa89   : > { %6451 = vmatpush.msrb.mxu3 %v6396_v14  ;;  %6367 = vmatpush.msrb.mxu0 %v6331_v12  ;;  %v6600_v14 = vsel %vm5460_vm5, %v6599_v48, %v6598_v18  ;;  %v6783_v12 = vld [vmem:[#allocation3 + $0x398] sm:$0x1]  ;;  %v6723_v23 = vsel %vm5454_vm3, %v6722_v27, %v6721_v0  ;;  %v6981_v48 = vrot.slane %v12116_v4, 7  ;;  %v7044_v18 = vrot.slane %v12060_v1, 1  ;;  %v7043_v0 = vld [vmem:[#allocation3 + $0x380] sm:$0x1] }
 0xa8a   : > { %6387 = vmatpush.msrb.mxu1 %v6332_v21  ;;  %8137 = vmatmul.msk.f32.vlgmr.msrb.gmra.mxu0 %vm1157_vm2, %v6343_v25  ;;  %v6784_v21 = vld [vmem:[#allocation3 + $0x470] sm:$0x1]  ;;  %v6725_v45 = vsel %vm5457_vm4, %v6724_v10, %v6723_v23  ;;  %v6985_v10 = vrot.slane %v12189_v38, 5 }
 0xa8b   : > { %8139 = vmatmul.msk.f32.vlgmr.msrb.gmra.mxu1 %vm1157_vm2, %v6343_v25  ;;  %8141 = vmatmul.msk.f32.vlgmr.msrb.gmra.mxu2 %vm1157_vm2, %v6407_v50  ;;  %v6788_v25 = vrot.slane %v12152_v24, 3  ;;  %v6727_v31 = vsel %vm5460_vm5, %v6726_v53, %v6725_v45  ;;  %v6982_v27 = vsel %vm5454_vm3, %v6981_v48, %v12060_v1  ;;  %v6971_v53 = vld [vmem:[#allocation3 + $0xb8] sm:$0xff]  ;;  %v7171_v45 = vrot.slane %v12116_v4, 2 }
 0xa8c   : > { %8143 = vmatmul.msk.f32.vlgmr.msrb.gmra.mxu3 %vm1157_vm2, %v6407_v50  ;;  %8148 = vmatpush.msk.msra.mxu2 %vm1206_vm1, %v6530_v60  ;;  %v6719_v50 = vld [vmem:[#allocation3 + $0x230] sm:$0x1]  ;;  %v6787_v60 = vsel %vm5454_vm3, %v6786_v9, %v6785_v16  ;;  %v6976_v16 = vld [vmem:[#allocation3 + $0x558] sm:$0x1]  ;;  %v7045_v9 = vsel %vm5454_vm3, %v12116_v4, %v7044_v18  ;;  %v7300_v48 = vrot.slane %v12163_v59, 3 }
 0xa8d   : > { %8150 = vmatpush.msk.msra.mxu3 %vm1206_vm1, %v6531_v5  ;;  %8144 = vmatpush.msk.msra.mxu0 %vm1206_vm1, %v6463_v43  ;;  %v6781_v5 = vld [vmem:[#allocation3 + $0x190] sm:$0xff] }
 0xa8e   : > { %8146 = vmatpush.msk.msra.mxu1 %vm1206_vm1, %v6464_v46  ;;  %6560 = vmatpush.msra.mxu2 %v6528_v2  ;;  %v6717_v43 = vld [vmem:[#allocation3 + $0x130] sm:$0xff]  ;;  %v6790_v2 = vrot.slane %v12195_v26, 2 }
 0xa8f   : > { %6580 = vmatpush.msra.mxu3 %v6529_v34  ;;  %6497 = vmatpush.msra.mxu0 %v6461_v52  ;;  %v6718_v46 = vld [vmem:[#allocation3 + $0x5f0] sm:$0xff]  ;;  %v6789_v52 = vsel %vm5457_vm4, %v6788_v25, %v6787_v60  ;;  %v7048_v25 = vrot.slane %v12189_v38, 6 }
 0xa90   : > { %6517 = vmatpush.msra.mxu1 %v6462_v58  ;;  %6561 = vmatpush.msra.mxu2 %v6526_v29  ;;  %v6779_v34 = vld [vmem:[#allocation3 + $0x110] sm:$0xff]  ;;  %v6849_v58 = vrot.slane %v12046_v63, 6  ;;  %v6716_v29 = vld [vmem:[#allocation3 + $0x88] sm:$0xff]  ;;  %v6791_v44 = vsel %vm5460_vm5, %v6790_v2, %v6789_v52 }
 0xa91   : > { %6581 = vmatpush.msra.mxu3 %v6527_v6  ;;  %6498 = vmatpush.msra.mxu0 %v6459_v54  ;;  %v6913_v6 = vrot.slane %v12046_v63, 7  ;;  %v6852_v54 = vrot.slane %v12152_v24, 4  ;;  %v6916_v63 = vrot.slane %v12152_v24, 5  ;;  %v6845_v24 = vld [vmem:[#allocation3 + $0x38] sm:$0xff]  ;;  %v7169_v52 = vld [vmem:[#allocation3 + $0x168] sm:$0x1] }
 0xa92   : > { %6518 = vmatpush.msra.mxu1 %v6460_v42  ;;  %8145 = vmatmul.msk.f32.vlgmr.msra.gmra.mxu0 %vm1157_vm2, %v6474_v3  ;;  %v6911_v42 = vld [vmem:[#allocation3 + $0x358] sm:$0x1]  ;;  %v6851_v17 = vsel %vm5454_vm3, %v6850_v47, %v6849_v58  ;;  %v7173_v47 = vrot.slane %v12163_v59, 1 }
 0xa93   : > { %8147 = vmatmul.msk.f32.vlgmr.msra.gmra.mxu1 %vm1157_vm2, %v6474_v3  ;;  %8149 = vmatmul.msk.f32.vlgmr.msra.gmra.mxu2 %vm1157_vm2, %v6537_v41  ;;  %v6848_v3 = vld [vmem:[#allocation3 + $0x518] sm:$0x1] }
 0xa94   : > { %8151 = vmatmul.msk.f32.vlgmr.msra.gmra.mxu3 %vm1157_vm2, %v6537_v41  ;;  %8156 = vmatpush.msk.msrb.mxu2 %vm1206_vm1, %v6656_v51  ;;  %v6915_v41 = vsel %vm5454_vm3, %v6914_v56, %v6913_v6  ;;  %v6909_v51 = vld [vmem:[#allocation3 + $0x3d0] sm:$0xff]  ;;  %v7166_v56 = vld [vmem:[#allocation3 + $0x158] sm:$0xff] }
 0xa95   : > { %8158 = vmatpush.msk.msrb.mxu3 %vm1206_vm1, %v6657_v37  ;;  %8152 = vmatpush.msk.msrb.mxu0 %vm1206_vm1, %v6593_v30  ;;  %v6910_v37 = vld [vmem:[#allocation3 + $0x68] sm:$0xff]  ;;  %v6853_v30 = vsel %vm5457_vm4, %v6852_v54, %v6851_v17  ;;  %v7103_v54 = vld [vmem:[#allocation3 + $0x1a0] sm:$0xff] }
 0xa96   : > { %8154 = vmatpush.msk.msrb.mxu1 %vm1206_vm1, %v6594_v32  ;;  %6686 = vmatpush.msrb.mxu2 %v6654_v49  ;;  %v6918_v32 = vrot.slane %v12195_v26, 4  ;;  %v6908_v49 = vld [vmem:[#allocation3 + $0x508] sm:$0xff]  ;;  %v6855_v26 = vsel %vm5460_vm5, %v6854_v8, %v6853_v30  ;;  %v7164_v17 = vld [vmem:[#allocation3] sm:$0xff]  ;;  %v7297_v8 = vrot.slane %v12060_v1, 5 }
 0xa97   : > { %6706 = vmatpush.msrb.mxu3 %v6655_v57  ;;  %6623 = vmatpush.msrb.mxu0 %v6591_v61  ;;  %v6917_v57 = vsel %vm5457_vm4, %v6916_v63, %v6915_v41  ;;  %v6843_v61 = vld [vmem:[#allocation3 + $0xe0] sm:$0xff]  ;;  %v7234_v41 = vrot.slane %v12116_v4, 3 }
 0xa98   : > { %6643 = vmatpush.msrb.mxu1 %v6592_v33  ;;  %6687 = vmatpush.msrb.mxu2 %v6652_v22  ;;  %v6844_v33 = vld [vmem:[#allocation3 + $0xd0] sm:$0xff]  ;;  %v6919_v22 = vsel %vm5460_vm5, %v6918_v32, %v6917_v57  ;;  %v7165_v63 = vld [vmem:[#allocation3 + $0x320] sm:$0xff]  ;;  %v7236_v32 = vrot.slane %v12163_v59, 2 }
 0xa99   : > { %6707 = vmatpush.msrb.mxu3 %v6653_v20  ;;  %6624 = vmatpush.msrb.mxu0 %v6589_v19  ;;  %v6983_v20 = vrot.slane %v12163_v59, 6  ;;  %v7046_v19 = vrot.slane %v12163_v59, 7 }
 0xa9a   : > { %6644 = vmatpush.msrb.mxu1 %v6590_v39  ;;  %8153 = vmatmul.msk.f32.vlgmr.msrb.gmra.mxu0 %vm1157_vm2, %v6600_v14  ;;  %v6975_v39 = vld [vmem:[#allocation3 + $0x210] sm:$0x1] }
 0xa9b   : > { %8155 = vmatmul.msk.f32.vlgmr.msrb.gmra.mxu1 %vm1157_vm2, %v6600_v14  ;;  %8157 = vmatmul.msk.f32.vlgmr.msrb.gmra.mxu2 %vm1157_vm2, %v6663_v11  ;;  %v7040_v14 = vld [vmem:[#allocation3 + $0x118] sm:$0xff]  ;;  %v6984_v23 = vsel %vm5457_vm4, %v6983_v20, %v6982_v27  ;;  %v7047_v60 = vsel %vm5457_vm4, %v7046_v19, %v7045_v9  ;;  %v7238_v20 = vrot.slane %v12189_v38, 1  ;;  %v7302_v19 = vrot.slane %v12189_v38, 2 }
 0xa9c   : > { %8159 = vmatmul.msk.f32.vlgmr.msrb.gmra.mxu3 %vm1157_vm2, %v6663_v11  ;;  %8164 = vmatpush.msk.msra.mxu2 %vm1206_vm1, %v6783_v12  ;;  %v7041_v11 = vld [vmem:[#allocation3 + $0x478] sm:$0xff]  ;;  %v6973_v12 = vld [vmem:[#allocation3 + $0x20] sm:$0xff]  ;;  %v6986_v2 = vsel %vm5460_vm5, %v6985_v10, %v6984_v23  ;;  %v7227_v10 = vld [vmem:[#allocation3 + $0x1c8] sm:$0xff]  ;;  %v7426_v23 = vrot.slane %v12116_v4, 6 }
 0xa9d   : > { %8166 = vmatpush.msk.msra.mxu3 %vm1206_vm1, %v6784_v21  ;;  %8160 = vmatpush.msk.msra.mxu0 %vm1206_vm1, %v6719_v50  ;;  %v6974_v21 = vld [vmem:[#allocation3 + $0x78] sm:$0xff]  ;;  %v7038_v50 = vld [vmem:[#allocation3 + $0x588] sm:$0xff] }
 0xa9e   : > { %8162 = vmatpush.msk.msra.mxu1 %vm1206_vm1, %v6720_v35  ;;  %6814 = vmatpush.msra.mxu2 %v6781_v5  ;;  %v7039_v35 = vld [vmem:[#allocation3 + $0x48] sm:$0xff]  ;;  %v7107_v5 = vrot.slane %v12060_v1, 2 }
 0xa9f   : > { %6834 = vmatpush.msra.mxu3 %v6782_v28  ;;  %6750 = vmatpush.msra.mxu0 %v6717_v43  ;;  %v7108_v28 = vrot.slane %v12116_v4, 1  ;;  %v6972_v43 = vld [vmem:[#allocation3 + $0x10] sm:$0xff] }
 0xaa0   : > { %6770 = vmatpush.msra.mxu1 %v6718_v46  ;;  %6815 = vmatpush.msra.mxu2 %v6779_v34  ;;  %v7170_v46 = vrot.slane %v12060_v1, 3  ;;  %v7049_v34 = vsel %vm5460_vm5, %v7048_v25, %v7047_v60  ;;  %v7423_v60 = vld [vmem:[#allocation3 + $0x568] sm:$0x1] }
 0xaa1   : > { %6835 = vmatpush.msra.mxu3 %v6780_v36  ;;  %6751 = vmatpush.msra.mxu0 %v6715_v62  ;;  %v7168_v36 = vld [vmem:[#allocation3 + $0x2d8] sm:$0x1]  ;;  %v7109_v58 = vsel %vm5454_vm3, %v7108_v28, %v7107_v5  ;;  %v7105_v62 = vld [vmem:[#allocation3 + $0x140] sm:$0x1]  ;;  %v7424_v5 = vld [vmem:[#allocation3 + $0x90] sm:$0x1] }
 0xaa2   : > { %6771 = vmatpush.msra.mxu1 %v6716_v29  ;;  %8161 = vmatmul.msk.f32.vlgmr.msra.gmra.mxu0 %vm1157_vm2, %v6727_v31  ;;  %v7106_v29 = vld [vmem:[#allocation3 + $0x300] sm:$0x1]  ;;  %v7172_v6 = vsel %vm5454_vm3, %v7171_v45, %v7170_v46  ;;  %v7421_v46 = vld [vmem:[#allocation3 + $0x238] sm:$0xff]  ;;  %v7422_v45 = vld [vmem:[#allocation3 + $0x290] sm:$0xff] }
 0xaa3   : > { %8163 = vmatmul.msk.f32.vlgmr.msra.gmra.mxu1 %vm1157_vm2, %v6727_v31  ;;  %8165 = vmatmul.msk.f32.vlgmr.msra.gmra.mxu2 %vm1157_vm2, %v6791_v44  ;;  %v7167_v31 = vld [vmem:[#allocation3 + $0x348] sm:$0xff] }
 0xaa4   : > { %8167 = vmatmul.msk.f32.vlgmr.msra.gmra.mxu3 %vm1157_vm2, %v6791_v44  ;;  %8172 = vmatpush.msk.msrb.mxu2 %vm1206_vm1, %v6911_v42  ;;  %v7111_v44 = vrot.slane %v12189_v38, 7  ;;  %v7104_v42 = vld [vmem:[#allocation3 + $0x288] sm:$0xff] }
 0xaa5   : > { %8174 = vmatpush.msk.msrb.mxu3 %vm1206_vm1, %v6912_v13  ;;  %8168 = vmatpush.msk.msrb.mxu0 %vm1206_vm1, %v6847_v40  ;;  %v7110_v13 = vsel %vm5457_vm4, %v12163_v59, %v7109_v58  ;;  %v7174_v40 = vsel %vm5457_vm4, %v7173_v47, %v7172_v6  ;;  %v7419_v58 = vld [vmem:[#allocation3 + $0x128] sm:$0xff]  ;;  %v7420_v47 = vld [vmem:[#allocation3 + $0x3f0] sm:$0xff] }
 0xaa6   : > { %8170 = vmatpush.msk.msrb.mxu1 %vm1206_vm1, %v6848_v3  ;;  %6942 = vmatpush.msrb.mxu2 %v6909_v51  ;;  %v7233_v3 = vrot.slane %v12060_v1, 4  ;;  %v7101_v51 = vld [vmem:[#allocation3 + $0x578] sm:$0xff]  ;;  %v7175_v30 = vsel %vm5460_vm5, %v12189_v38, %v7174_v40  ;;  %v7356_v6 = vld [vmem:[#allocation3 + $0x448] sm:$0xff] }
 0xaa7   : > { %6962 = vmatpush.msrb.mxu3 %v6910_v37  ;;  %6878 = vmatpush.msrb.mxu0 %v6845_v24  ;;  %v7102_v37 = vld [vmem:[#allocation3 + $0x170] sm:$0xff]  ;;  %v7298_v24 = vrot.slane %v12116_v4, 4 }
 0xaa8   : > { %6898 = vmatpush.msrb.mxu1 %v6846_v55  ;;  %6943 = vmatpush.msrb.mxu2 %v6907_v7  ;;  %v7112_v55 = vsel %vm5460_vm5, %v7111_v44, %v7110_v13  ;;  %v7295_v7 = vld [vmem:[#allocation3 + $0x220] sm:$0x1]  ;;  %v7235_v57 = vsel %vm5454_vm3, %v7234_v41, %v7233_v3 }
 0xaa9   : > { %6963 = vmatpush.msrb.mxu3 %v6908_v49  ;;  %6879 = vmatpush.msrb.mxu0 %v6843_v61  ;;  %v7296_v49 = vld [vmem:[#allocation3 + $0x1d8] sm:$0x1]  ;;  %v7231_v61 = vld [vmem:[#allocation3 + $0x270] sm:$0x1]  ;;  %v7299_v18 = vsel %vm5454_vm3, %v7298_v24, %v7297_v8  ;;  %v7237_v27 = vsel %vm5457_vm4, %v7236_v32, %v7235_v57 }
 0xaaa   : > { %6899 = vmatpush.msrb.mxu1 %v6844_v33  ;;  %8169 = vmatmul.msk.f32.vlgmr.msrb.gmra.mxu0 %vm1157_vm2, %v6855_v26  ;;  %v7232_v33 = vld [vmem:[#allocation3 + $0x250] sm:$0x1]  ;;  %v7301_v9 = vsel %vm5457_vm4, %v7300_v48, %v7299_v18  ;;  %v7239_v25 = vsel %vm5460_vm5, %v7238_v20, %v7237_v27 }
 0xaab   : > { %8171 = vmatmul.msk.f32.vlgmr.msrb.gmra.mxu1 %vm1157_vm2, %v6855_v26  ;;  %8173 = vmatmul.msk.f32.vlgmr.msrb.gmra.mxu2 %vm1157_vm2, %v6919_v22  ;;  %v7293_v26 = vld [vmem:[#allocation3 + $0x150] sm:$0xff] }
 0xaac   : > { %8175 = vmatmul.msk.f32.vlgmr.msrb.gmra.mxu3 %vm1157_vm2, %v6919_v22  ;;  %8180 = vmatpush.msk.msra.mxu2 %vm1206_vm1, %v7042_v15  ;;  %v7294_v22 = vld [vmem:[#allocation3 + $0x1b0] sm:$0xff]  ;;  %v7229_v15 = vld [vmem:[#allocation3 + $0x408] sm:$0xff] }
 0xaad   : > { %8182 = vmatpush.msk.msra.mxu3 %vm1206_vm1, %v7043_v0  ;;  %8176 = vmatpush.msk.msra.mxu0 %vm1206_vm1, %v6975_v39  ;;  %v7230_v0 = vld [vmem:[#allocation3 + $0x5f8] sm:$0xff]  ;;  %v7291_v39 = vld [vmem:[#allocation3 + $0x2d0] sm:$0xff] }
 0xaae   : > { %8178 = vmatpush.msk.msra.mxu1 %vm1206_vm1, %v6976_v16  ;;  %7072 = vmatpush.msra.mxu2 %v7040_v14  ;;  %v7292_v16 = vld [vmem:[#allocation3 + $0x1b8] sm:$0xff]  ;;  %v7361_v14 = vrot.slane %v12060_v1, 6 }
 0xaaf   : > { %7092 = vmatpush.msra.mxu3 %v7041_v11  ;;  %7009 = vmatpush.msra.mxu0 %v6973_v12  ;;  %v7362_v11 = vrot.slane %v12116_v4, 5  ;;  %v7228_v12 = vld [vmem:[#allocation3 + $0xa0] sm:$0xff]  ;;  %v7359_v4 = vld [vmem:[#allocation3 + $0x350] sm:$0x1] }
 0xab0   : > { %7029 = vmatpush.msra.mxu1 %v6974_v21  ;;  %7073 = vmatpush.msra.mxu2 %v7038_v50  ;;  %v7425_v21 = vrot.slane %v12060_v1, 7  ;;  %v7303_v50 = vsel %vm5460_vm5, %v7302_v19, %v7301_v9  ;;  %v7428_v1 = vrot.slane %v12163_v59, 5 }
 0xab1   : > { %7093 = vmatpush.msra.mxu3 %v7039_v35  ;;  %7010 = vmatpush.msra.mxu0 %v6971_v53  ;;  %v7364_v35 = vrot.slane %v12163_v59, 4  ;;  %v7363_v28 = vsel %vm5454_vm3, %v7362_v11, %v7361_v14  ;;  %v7360_v53 = vld [vmem:[#allocation3 + $0x4c0] sm:$0x1]  ;;  %v7357_v59 = vld [vmem:[#allocation3 + $0x430] sm:$0xff] }
 0xab2   : > { %7030 = vmatpush.msra.mxu1 %v6972_v43  ;;  %8177 = vmatmul.msk.f32.vlgmr.msra.gmra.mxu0 %vm1157_vm2, %v6986_v2  ;;  %v7427_v43 = vsel %vm5454_vm3, %v7426_v23, %v7425_v21 }
 0xab3   : > { %8179 = vmatmul.msk.f32.vlgmr.msra.gmra.mxu1 %vm1157_vm2, %v6986_v2  ;;  %8181 = vmatmul.msk.f32.vlgmr.msra.gmra.mxu2 %vm1157_vm2, %v7049_v34  ;;  %v7366_v2 = vrot.slane %v12189_v38, 3 }
 0xab4   : > { %8183 = vmatmul.msk.f32.vlgmr.msra.gmra.mxu3 %vm1157_vm2, %v7049_v34  ;;  %8188 = vmatpush.msk.msrb.mxu2 %vm1206_vm1, %v7168_v36  ;;  %v7358_v34 = vld [vmem:[#allocation3 + $0x180] sm:$0xff]  ;;  %v7365_v36 = vsel %vm5457_vm4, %v7364_v35, %v7363_v28 }
 0xab5   : > { %8190 = vmatpush.msk.msrb.mxu3 %vm1206_vm1, %v7169_v52  ;;  %8184 = vmatpush.msk.msrb.mxu0 %vm1206_vm1, %v7105_v62  ;;  %v7430_v52 = vrot.slane %v12189_v38, 4  ;;  %v7429_v62 = vsel %vm5457_vm4, %v7428_v1, %v7427_v43 }
 0xab6   : > { %8186 = vmatpush.msk.msrb.mxu1 %vm1206_vm1, %v7106_v29  ;;  %7198 = vmatpush.msrb.mxu2 %v7166_v56  ;;  %v7355_v29 = vld [vmem:[#allocation3 + $0x3e8] sm:$0xff]  ;;  %v7367_v56 = vsel %vm5460_vm5, %v7366_v2, %v7365_v36 }
 0xab7   : > { %7218 = vmatpush.msrb.mxu3 %v7167_v31  ;;  %7135 = vmatpush.msrb.mxu0 %v7103_v54  ;;  %v7431_v38 = vsel %vm5460_vm5, %v7430_v52, %v7429_v62 }
 0xab8   : > { %7155 = vmatpush.msrb.mxu1 %v7104_v42  ;;  %7199 = vmatpush.msrb.mxu2 %v7164_v17 }
 0xab9   : > { %7219 = vmatpush.msrb.mxu3 %v7165_v63  ;;  %7136 = vmatpush.msrb.mxu0 %v7101_v51 }
 0xaba   : > { %7156 = vmatpush.msrb.mxu1 %v7102_v37  ;;  %8185 = vmatmul.msk.f32.vlgmr.msrb.gmra.mxu0 %vm1157_vm2, %v7112_v55 }
 0xabb   : > { %8187 = vmatmul.msk.f32.vlgmr.msrb.gmra.mxu1 %vm1157_vm2, %v7112_v55  ;;  %8189 = vmatmul.msk.f32.vlgmr.msrb.gmra.mxu2 %vm1157_vm2, %v7175_v30 }
 0xabc   : > { %8191 = vmatmul.msk.f32.vlgmr.msrb.gmra.mxu3 %vm1157_vm2, %v7175_v30  ;;  %8196 = vmatpush.msk.msra.mxu2 %vm1206_vm1, %v7295_v7 }
 0xabd   : > { %8198 = vmatpush.msk.msra.mxu3 %vm1206_vm1, %v7296_v49  ;;  %8192 = vmatpush.msk.msra.mxu0 %vm1206_vm1, %v7231_v61 }
 0xabe   : > { %8194 = vmatpush.msk.msra.mxu1 %vm1206_vm1, %v7232_v33  ;;  %7326 = vmatpush.msra.mxu2 %v7293_v26 }
 0xabf   : > { %7346 = vmatpush.msra.mxu3 %v7294_v22  ;;  %7262 = vmatpush.msra.mxu0 %v7229_v15 }
 0xac0   : > { %7282 = vmatpush.msra.mxu1 %v7230_v0  ;;  %7327 = vmatpush.msra.mxu2 %v7291_v39 }
 0xac1   : > { %7347 = vmatpush.msra.mxu3 %v7292_v16  ;;  %7263 = vmatpush.msra.mxu0 %v7227_v10 }
 0xac2   : > { %7283 = vmatpush.msra.mxu1 %v7228_v12  ;;  %8193 = vmatmul.msk.f32.vlgmr.msra.gmra.mxu0 %vm1157_vm2, %v7239_v25 }
 0xac3   : > { %8195 = vmatmul.msk.f32.vlgmr.msra.gmra.mxu1 %vm1157_vm2, %v7239_v25  ;;  %8197 = vmatmul.msk.f32.vlgmr.msra.gmra.mxu2 %vm1157_vm2, %v7303_v50 }
 0xac4   : > { %8199 = vmatmul.msk.f32.vlgmr.msra.gmra.mxu3 %vm1157_vm2, %v7303_v50  ;;  %8204 = vmatpush.msk.msrb.mxu2 %vm1206_vm1, %v7423_v60 }
 0xac5   : > { %8206 = vmatpush.msk.msrb.mxu3 %vm1206_vm1, %v7424_v5  ;;  %8200 = vmatpush.msk.msrb.mxu0 %vm1206_vm1, %v7359_v4 }
 0xac6   : > { %8202 = vmatpush.msk.msrb.mxu1 %vm1206_vm1, %v7360_v53  ;;  %7454 = vmatpush.msrb.mxu2 %v7421_v46  ;;  %vm7543_vm1 = vcmask 27648  }
 0xac7   : > { %7474 = vmatpush.msrb.mxu3 %v7422_v45  ;;  %7390 = vmatpush.msrb.mxu0 %v7357_v59 }
 0xac8   : > { %7410 = vmatpush.msrb.mxu1 %v7358_v34  ;;  %7455 = vmatpush.msrb.mxu2 %v7419_v58 }
 0xac9   : > { %7475 = vmatpush.msrb.mxu3 %v7420_v47  ;;  %7391 = vmatpush.msrb.mxu0 %v7355_v29 }
 0xaca   : > { %7411 = vmatpush.msrb.mxu1 %v7356_v6  ;;  %8201 = vmatmul.msk.f32.vlgmr.msrb.gmra.mxu0 %vm1157_vm2, %v7367_v56 }
 0xacb   : > { %8203 = vmatmul.msk.f32.vlgmr.msrb.gmra.mxu1 %vm1157_vm2, %v7367_v56  ;;  %8205 = vmatmul.msk.f32.vlgmr.msrb.gmra.mxu2 %vm1157_vm2, %v7431_v38 }
 0xacc   : > { %8207 = vmatmul.msk.f32.vlgmr.msrb.gmra.mxu3 %vm1157_vm2, %v7431_v38 }
 0xacf   : > { %v5487_v31 = vpop.f32.mrf.mxu0 }
 0xad0   : > { %v5507_v44 = vpop.f32.mrf.mxu1 }
 0xad6   : > { %v5541_v54 = vpop.f32.mrf.mxu2 }
 0xad7   : > { %v5561_v42 = vpop.f32.mrf.mxu3  ;;  %v5602_v13 = vpop.f32.mrf.mxu0  ;;  %v5542_v49 = vadd.f32 %v5541_v54, %v5487_v31 }
 0xad8   : > { %v5622_v17 = vpop.f32.mrf.mxu1  ;;  %v5562_v57 = vadd.f32 %v5561_v42, %v5507_v44 }
 0xad9   : > { %v5625_v26 = vadd.f32 %v5602_v13, %v5542_v49  ;;  %v7492_v49 = vld [vmem:[%s13040_s5] sm:$0xff] }
 0xada   : > { %v5626_v22 = vadd.f32 %v5622_v17, %v5562_v57  ;;  %7498 = vst [vmem:[#allocation1] ss:$2 sm:$0xff] %v7492_v49 }
 0xade   : > { %v5665_v63 = vpop.f32.mrf.mxu2 }
 0xadf   : > { %v5685_v40 = vpop.f32.mrf.mxu3  ;;  %v5729_v3 = vpop.f32.mrf.mxu0  ;;  %v5688_v20 = vadd.f32 %v5665_v63, %v5625_v26 }
 0xae0   : > { %v5749_v41 = vpop.f32.mrf.mxu1  ;;  %v5689_v15 = vadd.f32 %v5685_v40, %v5626_v22 }
 0xae1   : > { %v5752_v19 = vadd.f32 %v5729_v3, %v5688_v20 }
 0xae2   : > { %v5753_v39 = vadd.f32 %v5749_v41, %v5689_v15 }
 0xae6   : > { %v5793_v51 = vpop.f32.mrf.mxu2 }
 0xae7   : > { %v5813_v37 = vpop.f32.mrf.mxu3  ;;  %v5857_v8 = vpop.f32.mrf.mxu0  ;;  %v5816_v14 = vadd.f32 %v5793_v51, %v5752_v19  ;;  %v7500_v19 = vld.sshfl [vmem:[#allocation1 + $0x8] sm:$0xff pattern:$0x75316420] }
 0xae8   : > { %v5877_v24 = vpop.f32.mrf.mxu1  ;;  %v5817_v11 = vadd.f32 %v5813_v37, %v5753_v39  ;;  %7538 = vmatpush.xpose.msra.mxu1 %v7500_v19 }
 0xae9   : > { %v5880_v10 = vadd.f32 %v5857_v8, %v5816_v14 }
 0xaea   : > { %v5881_v12 = vadd.f32 %v5877_v24, %v5817_v11 }
 0xaee   : > { %v5921_v55 = vpop.f32.mrf.mxu2 }
 0xaef   : > { %v5941_v30 = vpop.f32.mrf.mxu3  ;;  %v5988_v32 = vpop.f32.mrf.mxu0  ;;  %v5944_v25 = vadd.f32 %v5921_v55, %v5880_v10 }
 0xaf0   : > { %v6008_v7 = vpop.f32.mrf.mxu1  ;;  %v5945_v50 = vadd.f32 %v5941_v30, %v5881_v12 }
 0xaf1   : > { %v6011_v5 = vadd.f32 %v5988_v32, %v5944_v25 }
 0xaf2   : > { %v6012_v28 = vadd.f32 %v6008_v7, %v5945_v50 }
 0xaf6   : > { %v6051_v48 = vpop.f32.mrf.mxu2 }
 0xaf7   : > { %v6071_v61 = vpop.f32.mrf.mxu3  ;;  %v6114_v33 = vpop.f32.mrf.mxu0  ;;  %v6074_v1 = vadd.f32 %v6051_v48, %v6011_v5 }
 0xaf8   : > { %v6134_v18 = vpop.f32.mrf.mxu1  ;;  %v6075_v4 = vadd.f32 %v6071_v61, %v6012_v28 }
 0xaf9   : > { %v6137_v2 = vadd.f32 %v6114_v33, %v6074_v1 }
 0xafa   : > { %v6138_v59 = vadd.f32 %v6134_v18, %v6075_v4 }
 0xafe   : > { %v6177_v0 = vpop.f32.mrf.mxu2 }
 0xaff   : > { %v6197_v27 = vpop.f32.mrf.mxu3  ;;  %v6241_v16 = vpop.f32.mrf.mxu0  ;;  %v6200_v34 = vadd.f32 %v6177_v0, %v6137_v2 }
 0xb00   : > { %v6261_v9 = vpop.f32.mrf.mxu1  ;;  %v6201_v36 = vadd.f32 %v6197_v27, %v6138_v59  ;;  %v7499_v27 = vld.sshfl [vmem:[#allocation1] sm:$0xff pattern:$0x75316420] }
 0xb01   : > { %v6264_v47 = vadd.f32 %v6241_v16, %v6200_v34  ;;  %7518 = vmatpush.xpose.msra.mxu0 %v7499_v27 }
 0xb02   : > { %v6265_v62 = vadd.f32 %v6261_v9, %v6201_v36 }
 0xb06   : > { %v6305_v21 = vpop.f32.mrf.mxu2 }
 0xb07   : > { %v6325_v23 = vpop.f32.mrf.mxu3  ;;  %v6369_v35 = vpop.f32.mrf.mxu0  ;;  %v6328_v56 = vadd.f32 %v6305_v21, %v6264_v47 }
 0xb08   : > { %v6389_v60 = vpop.f32.mrf.mxu1  ;;  %v6329_v38 = vadd.f32 %v6325_v23, %v6265_v62  ;;  %v7482_v62 = vld [vmem:[%s13041_s21] sm:$0x3] }
 0xb09   : > { %v6392_v31 = vadd.f32 %v6369_v35, %v6328_v56  ;;  %v7484_v56 = vperm.slane %v7482_v62, 0 }
 0xb0a   : > { %v6393_v44 = vadd.f32 %v6389_v60, %v6329_v38  ;;  %v7485_v38 = vperm.slane %v7482_v62, 1 }
 0xb0e   : > { %v6433_v53 = vpop.f32.mrf.mxu2 }
 0xb0f   : > { %v6453_v43 = vpop.f32.mrf.mxu3  ;;  %v6500_v46 = vpop.f32.mrf.mxu0  ;;  %v6456_v13 = vadd.f32 %v6433_v53, %v6392_v31 }
 0xb10   : > { %v6520_v45 = vpop.f32.mrf.mxu1  ;;  %v6457_v17 = vadd.f32 %v6453_v43, %v6393_v44 }
 0xb11   : > { %v6523_v3 = vadd.f32 %v6500_v46, %v6456_v13 }
 0xb12   : > { %v6524_v41 = vadd.f32 %v6520_v45, %v6457_v17 }
 0xb16   : > { %v6563_v52 = vpop.f32.mrf.mxu2 }
 0xb17   : > { %v6583_v58 = vpop.f32.mrf.mxu3  ;;  %v6626_v29 = vpop.f32.mrf.mxu0  ;;  %v6586_v51 = vadd.f32 %v6563_v52, %v6523_v3  ;;  %v8397_v3 = vld [vmem:[%s13042_s22] ss:$0 sm:$0xff] }
 0xb18   : > { %v6646_v6 = vpop.f32.mrf.mxu1  ;;  %v6587_v37 = vadd.f32 %v6583_v58, %v6524_v41 }
 0xb19   : > { %v6649_v32 = vadd.f32 %v6626_v29, %v6586_v51 }
 0xb1a   : > { %v6650_v7 = vadd.f32 %v6646_v6, %v6587_v37 }
 0xb1e   : > { %v6689_v54 = vpop.f32.mrf.mxu2 }
 0xb1f   : > { %v6709_v42 = vpop.f32.mrf.mxu3  ;;  %v6753_v63 = vpop.f32.mrf.mxu0  ;;  %v6712_v57 = vadd.f32 %v6689_v54, %v6649_v32 }
 0xb20   : > { %v6773_v40 = vpop.f32.mrf.mxu1  ;;  %v6713_v48 = vadd.f32 %v6709_v42, %v6650_v7 }
 0xb21   : > { %v6776_v18 = vadd.f32 %v6753_v63, %v6712_v57 }
 0xb22   : > { %v6777_v26 = vadd.f32 %v6773_v40, %v6713_v48 }
 0xb26   : > { %v6817_v8 = vpop.f32.mrf.mxu2 }
 0xb27   : > { %v6837_v24 = vpop.f32.mrf.mxu3  ;;  %v6881_v55 = vpop.f32.mrf.mxu0  ;;  %v6840_v15 = vadd.f32 %v6817_v8, %v6776_v18 }
 0xb28   : > { %v6901_v30 = vpop.f32.mrf.mxu1  ;;  %v6841_v0 = vadd.f32 %v6837_v24, %v6777_v26 }
 0xb29   : > { %v6904_v39 = vadd.f32 %v6881_v55, %v6840_v15 }
 0xb2a   : > { %v6905_v16 = vadd.f32 %v6901_v30, %v6841_v0 }
 0xb2e   : > { %v6945_v61 = vpop.f32.mrf.mxu2 }
 0xb2f   : > { %v6965_v33 = vpop.f32.mrf.mxu3  ;;  %v7012_v22 = vpop.f32.mrf.mxu0  ;;  %v6968_v11 = vadd.f32 %v6945_v61, %v6904_v39 }
 0xb30   : > { %v7032_v20 = vpop.f32.mrf.mxu1  ;;  %v6969_v10 = vadd.f32 %v6965_v33, %v6905_v16 }
 0xb31   : > { %v7035_v23 = vadd.f32 %v7012_v22, %v6968_v11 }
 0xb32   : > { %v7036_v25 = vadd.f32 %v7032_v20, %v6969_v10 }
 0xb36   : > { %v7075_v9 = vpop.f32.mrf.mxu2 }
 0xb37   : > { %v7095_v14 = vpop.f32.mrf.mxu3  ;;  %v7138_v12 = vpop.f32.mrf.mxu0  ;;  %v7098_v50 = vadd.f32 %v7075_v9, %v7035_v23 }
 0xb38   : > { %v7158_v21 = vpop.f32.mrf.mxu1  ;;  %v7099_v35 = vadd.f32 %v7095_v14, %v7036_v25 }
 0xb39   : > { %v7161_v4 = vadd.f32 %v7138_v12, %v7098_v50 }
 0xb3a   : > { %v7162_v53 = vadd.f32 %v7158_v21, %v7099_v35 }
 0xb3e   : > { %v7201_v60 = vpop.f32.mrf.mxu2 }
 0xb3f   : > { %v7221_v5 = vpop.f32.mrf.mxu3  ;;  %v7265_v28 = vpop.f32.mrf.mxu0  ;;  %v7224_v43 = vadd.f32 %v7201_v60, %v7161_v4 }
 0xb40   : > { %v7285_v1 = vpop.f32.mrf.mxu1  ;;  %v7225_v46 = vadd.f32 %v7221_v5, %v7162_v53 }
 0xb41   : > { %v7288_v59 = vadd.f32 %v7265_v28, %v7224_v43 }
 0xb42   : > { %v7289_v34 = vadd.f32 %v7285_v1, %v7225_v46 }
 0xb46   : > { %v7329_v45 = vpop.f32.mrf.mxu2 }
 0xb47   : > { %v7349_v2 = vpop.f32.mrf.mxu3  ;;  %v7352_v36 = vadd.f32 %v7329_v45, %v7288_v59  ;;  %v7393_v58 = vpop.f32.mrf.mxu0 }
 0xb48   : > { %v7353_v52 = vadd.f32 %v7349_v2, %v7289_v34  ;;  %v7413_v47 = vpop.f32.mrf.mxu1 }
 0xb49   : > { %v7416_v29 = vadd.f32 %v7393_v58, %v7352_v36 }
 0xb4a   : > { %v7417_v6 = vadd.f32 %v7413_v47, %v7353_v52 }
 0xb4e   : > { %v7457_v31 = vpop.f32.mrf.mxu2 }
 0xb4f   : > { %v7477_v44 = vpop.f32.mrf.mxu3  ;;  %v7480_v54 = vadd.f32 %v7457_v31, %v7416_v29 }
 0xb50   : > { %v7481_v42 = vadd.f32 %v7477_v44, %v7417_v6 }
 0xb51   : > { %v7488_v13 = vadd.f32 %v7484_v56, %v7480_v54 }
 0xb52   : > { %v7489_v17 = vadd.f32 %v7485_v38, %v7481_v42 }
 0xb53   : > { %v7490_v63 = vmax.f32 %v7488_v13, 0.0 }
 0xb54   : > { %v7491_v40 = vmax.f32 %v7489_v17, 0.0 }
 0xb55   : > { %7519 = vmatmul.f32.vlgmr.msra.gmra.mxu0 %v7490_v63 }
 0xb56   : > { %7539 = vmatmul.f32.vlgmr.msra.gmra.mxu1 %v7491_v40 }
 0xbd2   : > { %v7520_v41 = vpop.f32.mrf.mxu0 }
 0xbd3   : > { %v7521_v51 = vadd.f32 %v8397_v3, %v7520_v41  ;;  %v7540_v37 = vpop.f32.mrf.mxu1 }
 0xbd5   : > { %v7541_v8 = vadd.f32 %v7540_v37, %v7521_v51 }
 0xbd7   : > { %v7544_v24 = vsel %vm7543_vm1, %v7541_v8, -inf }
 0xbd8   : > { %7545 = vmax.xlane.f32.xlu0 %v7544_v24 }
 0xc4b   : > { %v7546_v55 = vpop.xlane.xlu0 %7545 }
 0xc4c   : > { %v7547_v30 = vsub.f32 %v7541_v8, %v7546_v55 }
 0xc4e   : > { %v7548_v32 = vmul.f32 1.442695, %v7547_v30 }
 0xc50   : > { %8398 = vpow2.f32 %v7548_v32 }
 0xc56   : > { %v8399_v7 = vpop.eup %8398 }
 0xc57   : > { %v7550_v49 = vsel %vm7543_vm1, %v8399_v7, 0.0 }
 0xc58   : > { %7551 = vadd.xlane.f32.xlu0 %v7550_v49 }
 0xccb   : > { %v7552_v57 = vpop.xlane.xlu0 %7551 }
 0xccc   : > { %8400 = vlog2.f32 %v7552_v57 }
 0xcd2   : > { %v8401_v48 = vpop.eup %8400 }
 0xcd3   : > { %v7554_v61 = vmul.f32 0.6931472, %v8401_v48 }
 0xcd5   : > { %v7555_v33 = vadd.f32 %v7554_v61, %v7546_v55 }
 0xcd7   : > { %v7556_v18 = vsub.f32 %v7541_v8, %v7555_v33 }
 0xcd9   : > { %7557 = vst.msk [vmem:[#allocation5] sm:$0xf] %vm7543_vm1, %v7556_v18 }
 0xcda PF: > { %p8234_p6 = scmp.eq.s32.totalorder %s8542_s25, 1  ;;  %s8445_s17 = smov [#allocation5]  }
 0xcdb   : > { %s7564_s30 = sshll.u32 %s8445_s17, 4  ;;  %s13043_s19 = sld [smem:[#allocation199_spill]]  ;;  %s7565_s30 = int_to_ptr.vmem [resolvable:$true] %s7564_s30 }
 0xce1   : > { %s7566_s4 = sshll.u32 %s13043_s19, 4  ;;  %s7567_s4 = int_to_ptr.hbm [resolvable:$true] %s7566_s4 }
 0xce2   : > { %8231 = dma.vmem_to_hbm [thread:$0]  (%p8234_p6), %s7565_s30, 64, %s7567_s4, [#allocation6]  }
 0xce3   : > { %8437 = dma.done.wait (%p8234_p6), [#allocation6], 64  }
 0xce4   : > { %8439 = vsyncadd (%p8234_p6), [#allocation6], 4294967232 }
 0xce5 PF: > { %s13044_s15 = sld [smem:[#allocation10_spill]] }
 0xceb   : > { %s28_s24 = sadd.s32 1, %s13044_s15  }
 0xcec   : > { %p25_p7 = scmp.ge.s32.totalorder %s28_s24, 4  }
 0xcee   :  { %27 = sbr.rel (!%p25_p7) target bundleno = 10 (0xa), region = 206 }
 0xcf3   :  { %7580 = vsyncpa [#allocation6], 1 }
 0xcf4   :  { %7582 = vsyncpa [#allocation6 + $0x1], 1 }
 0xcf5   :  { %7583 = vsyncmov [#allocation4] }
 0xcf8   :  { %s7584_s25 = vpop.sfrf %7583 }
 0xcf9   :  { %p8212_p8 = scmp.ne.s32.totalorder %s7584_s25, 0 }
 0xcfb   :  { %7588 = shalt.err (%p8212_p8)  }

</bundles_post_ra>
